<compile_context>
chip_gen: v7x
topology: tpu7x:2x2x1
jax: 0.10.0
libtpu: 0.0.40
codegen_flags: <defaults>
</compile_context>

<pallas_src>
import functools
import math

import jax
import jax.numpy as jnp
from jax.experimental import pallas as pl
from jax.experimental.pallas import tpu as pltpu


# ----------------------------------------------------------------------------
# Fused kernel: out = proj( softmax(q k^T / sqrt(hd)) v ), all batches & heads.
# ----------------------------------------------------------------------------
def _fused_attn_kernel(x_ref, wqkv_ref, bqkv_ref, wproj_ref, bproj_ref,
                       o_ref, ctx_ref, *, batch, seq, num_heads):
    # x_ref: (B*T, C) bf16. ctx_ref: (B*T, C) bf16 VMEM scratch.
    BT, C = x_ref.shape
    hd = C // num_heads

    # qkv projection: one lane-dense MXU matmul, M = B*T (batch folded into M).
    # Softmax scale is already folded into the q columns of wqkv / bqkv.
    qkv = jnp.dot(x_ref[...], wqkv_ref[...],
                  preferred_element_type=jnp.float32)            # (B*T, 3C) f32
    qkv = (qkv + bqkv_ref[...]).astype(jnp.bfloat16)             # (B*T, 3C) bf16

    # Column layout matches torch's reshape(B, T, 3, H, hd):
    #   q_h -> [h*hd : (h+1)*hd], k_h -> [C + h*hd : ...], v_h -> [2C + h*hd : ...]
    for h in range(num_heads):
        lo = h * hd
        q = qkv[:, lo:lo + hd]                                   # (B*T, hd)
        k = qkv[:, C + lo:C + lo + hd]
        v = qkv[:, 2 * C + lo:2 * C + lo + hd]

        for b in range(batch):
            r = b * seq
            qb = q[r:r + seq]                                    # (T, hd)
            kb = k[r:r + seq]
            vb = v[r:r + seq]

            # q @ k^T without materializing k.T (contract last dims of both).
            s = jax.lax.dot_general(
                qb, kb, dimension_numbers=(((1,), (1,)), ((), ())),
                preferred_element_type=jnp.float32)              # (T, T) f32

            # Softmax in f32 (portable to v5e: no bf16 VPU/EUP there).
            m = jnp.max(s, axis=-1, keepdims=True)
            p = jnp.exp(s - m)
            denom = jnp.sum(p, axis=-1, keepdims=True)           # (T, 1)

            ob = jnp.dot(p.astype(jnp.bfloat16), vb,
                         preferred_element_type=jnp.float32)     # (T, hd)
            # Divide after PV: T*hd elementwise work, reciprocal on the EUP slot.
            ob = ob * pl.reciprocal(denom, approx=True)

            # Write directly into the (B*T, C) context scratch: no lane concat,
            # and this head's intermediates die right here.
            ctx_ref[r:r + seq, lo:lo + hd] = ob.astype(jnp.bfloat16)

    # Output projection, full-C contraction at M = B*T.
    out = jnp.dot(ctx_ref[...], wproj_ref[...],
                  preferred_element_type=jnp.float32)
    o_ref[...] = (out + bproj_ref[...]).astype(o_ref.dtype)


def attention_forward(x, w_qkv, b_qkv, w_proj, b_proj, num_heads):
    """Attention.forward.

    x:      (B, X, Y, Z, C) float32
    w_qkv:  (C, 3C)  (torch weight transposed to (in, out))
    b_qkv:  (3C,)
    w_proj: (C, C)   (in, out)
    b_proj: (C,)
    returns (B, X, Y, Z, C) float32
    """
    B, X, Y, Z, C = x.shape
    assert C % num_heads == 0
    T = X * Y * Z
    BT = B * T
    hd = C // num_heads
    scale = hd ** -0.5

    # Fold the softmax scale into the q columns of the qkv weight / bias (free,
    # host side, mathematically identical to scaling q in-kernel).
    col_scale = jnp.concatenate([
        jnp.full((C,), scale, jnp.float32),
        jnp.ones((2 * C,), jnp.float32)])
    wqkv_bf = (w_qkv.astype(jnp.float32) * col_scale[None, :]).astype(jnp.bfloat16)
    bqkv2 = (b_qkv.astype(jnp.float32) * col_scale).reshape(1, 3 * C)
    wproj_bf = w_proj.astype(jnp.bfloat16)
    bproj2 = b_proj.reshape(1, C).astype(jnp.float32)

    # bf16 activations into the kernel: half the DMA bytes / VMEM.
    xf = x.reshape(BT, C).astype(jnp.bfloat16)

    flops = 2 * (BT * C * 3 * C                      # qkv
                 + B * num_heads * 2 * T * T * hd    # qk^T + pv
                 + BT * C * C)                       # proj
    transcendentals = B * num_heads * (T * T + T)    # exp + reciprocal
    bytes_accessed = (BT * C * 2                     # x in (bf16)
                      + BT * C * 4                   # out (f32)
                      + (C * 3 * C + C * C) * 2      # bf16 weights
                      + (3 * C + C) * 4)             # biases

    out = pl.pallas_call(
        functools.partial(_fused_attn_kernel,
                          batch=B, seq=T, num_heads=num_heads),
        out_shape=jax.ShapeDtypeStruct((BT, C), jnp.float32),
        in_specs=[
            pl.BlockSpec((BT, C), lambda: (0, 0)),
            pl.BlockSpec((C, 3 * C), lambda: (0, 0)),
            pl.BlockSpec((1, 3 * C), lambda: (0, 0)),
            pl.BlockSpec((C, C), lambda: (0, 0)),
            pl.BlockSpec((1, C), lambda: (0, 0)),
        ],
        out_specs=pl.BlockSpec((BT, C), lambda: (0, 0)),
        scratch_shapes=[pltpu.VMEM((BT, C), jnp.bfloat16)],
        cost_estimate=pl.CostEstimate(
            flops=flops, transcendentals=transcendentals,
            bytes_accessed=bytes_accessed),
    )(xf, wqkv_bf, bqkv2, wproj_bf, bproj2)

    return out.reshape(B, X, Y, Z, C)


# ----------------------------------------------------------------------------
# Plain-JAX reference (mirrors the PyTorch forward exactly, in f32).
# ----------------------------------------------------------------------------
def attention_ref(x, w_qkv, b_qkv, w_proj, b_proj, num_heads):
    B, X, Y, Z, C = x.shape
    T = X * Y * Z
    hd = C // num_heads
    scale = hd ** -0.5
    xf = x.reshape(B, T, C)
    qkv = xf @ w_qkv + b_qkv                                        # (B, T, 3C)
    qkv = qkv.reshape(B, T, 3, num_heads, hd).transpose(2, 0, 3, 1, 4)
    q, k, v = qkv[0], qkv[1], qkv[2]                                # (B, H, T, hd)
    attn = (q * scale) @ jnp.swapaxes(k, -2, -1)
    attn = jax.nn.softmax(attn, axis=-1)
    o = attn @ v                                                    # (B, H, T, hd)
    o = o.transpose(0, 2, 1, 3).reshape(B, T, C)
    out = o @ w_proj + b_proj
    return out.reshape(B, X, Y, Z, C)


# ----------------------------------------------------------------------------
if __name__ == "__main__":
    # Small-but-lane-friendly config: dim=128, 8 heads (head_dim=16), 4x4x4 grid.
    B, X, Y, Z = 2, 4, 4, 4
    C, num_heads = 128, 8

    key = jax.random.PRNGKey(0)
    kx, k1, k2, k3, k4 = jax.random.split(key, 5)

    x = jax.random.normal(kx, (B, X, Y, Z, C), jnp.float32)
    w_qkv = jax.random.normal(k1, (C, 3 * C), jnp.float32) / math.sqrt(C)
    b_qkv = jax.random.normal(k2, (3 * C,), jnp.float32) * 0.02
    w_proj = jax.random.normal(k3, (C, C), jnp.float32) / math.sqrt(C)
    b_proj = jax.random.normal(k4, (C,), jnp.float32) * 0.02

    out = attention_forward(x, w_qkv, b_qkv, w_proj, b_proj, num_heads)
    out = jax.block_until_ready(out)

    ref = attention_ref(x, w_qkv, b_qkv, w_proj, b_proj, num_heads)
    assert out.shape == (B, X, Y, Z, C)
    assert bool(jnp.all(jnp.isfinite(out)))
    max_err = float(jnp.max(jnp.abs(out - ref)))
    # bf16 matmul operands + approx reciprocal -> loose tolerance.
    assert max_err < 0.1, f"max abs error vs reference: {max_err}"
    print("KERNEL_OK")
</pallas_src>

<mosaic_0001>
module attributes {stable_mosaic.version = 11 : i64} {
  func.func @_fused_attn_kernel(%arg0: memref<128x128xbf16, #tpu.memory_space<vmem>>, %arg1: memref<128x384xbf16, #tpu.memory_space<vmem>>, %arg2: memref<1x384xf32, #tpu.memory_space<vmem>>, %arg3: memref<128x128xbf16, #tpu.memory_space<vmem>>, %arg4: memref<1x128xf32, #tpu.memory_space<vmem>>, %arg5: memref<128x128xf32, #tpu.memory_space<vmem>>, %arg6: memref<128x128xbf16, #tpu.memory_space<vmem>>) attributes {dimension_semantics = [], scalar_prefetch = 0 : i64, scratch_operands = 1 : i64, tpu.core_type = #tpu.core_type<tc>} {
    %c0 = arith.constant 0 : index
    %c0_0 = arith.constant 0 : index
    %0 = vector.load %arg0[%c0, %c0_0] : memref<128x128xbf16, #tpu.memory_space<vmem>>, vector<128x128xbf16>
    %c0_1 = arith.constant 0 : index
    %c0_2 = arith.constant 0 : index
    %1 = vector.load %arg1[%c0_1, %c0_2] : memref<128x384xbf16, #tpu.memory_space<vmem>>, vector<128x384xbf16>
    %cst = arith.constant dense<0.000000e+00> : vector<128x384xf32>
    %2 = tpu.matmul %0, %1, %cst {dimension_numbers = #tpu.dot_dimension_numbers<[1], [0], [0], [1], [0, 0, 1, 1], [], []>} : vector<128x128xbf16>, vector<128x384xbf16>, vector<128x384xf32> -> vector<128x384xf32>
    %c0_3 = arith.constant 0 : index
    %c0_4 = arith.constant 0 : index
    %3 = vector.load %arg2[%c0_3, %c0_4] : memref<1x384xf32, #tpu.memory_space<vmem>>, vector<1x384xf32>
    %4 = vector.broadcast %3 : vector<1x384xf32> to vector<128x384xf32>
    %5 = arith.addf %2, %4 : vector<128x384xf32>
    %6 = arith.truncf %5 : vector<128x384xf32> to vector<128x384xbf16>
    %7 = vector.extract_strided_slice %6 {offsets = [0, 0], sizes = [128, 16], strides = [1, 1]} : vector<128x384xbf16> to vector<128x16xbf16>
    %8 = vector.extract_strided_slice %6 {offsets = [0, 128], sizes = [128, 16], strides = [1, 1]} : vector<128x384xbf16> to vector<128x16xbf16>
    %9 = vector.extract_strided_slice %6 {offsets = [0, 256], sizes = [128, 16], strides = [1, 1]} : vector<128x384xbf16> to vector<128x16xbf16>
    %10 = vector.extract_strided_slice %7 {offsets = [0, 0], sizes = [64, 16], strides = [1, 1]} : vector<128x16xbf16> to vector<64x16xbf16>
    %11 = vector.extract_strided_slice %8 {offsets = [0, 0], sizes = [64, 16], strides = [1, 1]} : vector<128x16xbf16> to vector<64x16xbf16>
    %12 = vector.extract_strided_slice %9 {offsets = [0, 0], sizes = [64, 16], strides = [1, 1]} : vector<128x16xbf16> to vector<64x16xbf16>
    %cst_5 = arith.constant dense<0.000000e+00> : vector<64x64xf32>
    %13 = tpu.matmul %10, %11, %cst_5 {dimension_numbers = #tpu.dot_dimension_numbers<[1], [1], [0], [0], [0, 0, 1, 0], [], []>} : vector<64x16xbf16>, vector<64x16xbf16>, vector<64x64xf32> -> vector<64x64xf32>
    %cst_6 = arith.constant dense<0xFF800000> : vector<64xf32>
    %14 = vector.multi_reduction <maximumf>, %13, %cst_6 [1] : vector<64x64xf32> to vector<64xf32>
    %15 = vector.shape_cast %14 : vector<64xf32> to vector<64x1xf32>
    %16 = vector.broadcast %15 : vector<64x1xf32> to vector<64x64xf32>
    %17 = arith.subf %13, %16 : vector<64x64xf32>
    %18 = math.exp %17 : vector<64x64xf32>
    %cst_7 = arith.constant dense<0.000000e+00> : vector<64xf32>
    %19 = vector.multi_reduction <add>, %18, %cst_7 [1] : vector<64x64xf32> to vector<64xf32>
    %20 = vector.shape_cast %19 : vector<64xf32> to vector<64x1xf32>
    %21 = arith.truncf %18 : vector<64x64xf32> to vector<64x64xbf16>
    %cst_8 = arith.constant dense<0.000000e+00> : vector<64x16xf32>
    %22 = tpu.matmul %21, %12, %cst_8 {dimension_numbers = #tpu.dot_dimension_numbers<[1], [0], [0], [1], [0, 0, 1, 1], [], []>} : vector<64x64xbf16>, vector<64x16xbf16>, vector<64x16xf32> -> vector<64x16xf32>
    %23 = tpu.reciprocal %20 {approx = true} : vector<64x1xf32> -> vector<64x1xf32>
    %24 = vector.broadcast %23 : vector<64x1xf32> to vector<64x16xf32>
    %25 = arith.mulf %22, %24 : vector<64x16xf32>
    %26 = arith.truncf %25 : vector<64x16xf32> to vector<64x16xbf16>
    %c0_9 = arith.constant 0 : index
    %c0_10 = arith.constant 0 : index
    %27 = vector.load %arg6[%c0_9, %c0_10] : memref<128x128xbf16, #tpu.memory_space<vmem>>, vector<64x16xbf16>
    tpu.vector_store %arg6[%c0_9, %c0_10], %26 {strides = array<i32>} : memref<128x128xbf16, #tpu.memory_space<vmem>>, vector<64x16xbf16>,
    %28 = vector.extract_strided_slice %7 {offsets = [64, 0], sizes = [64, 16], strides = [1, 1]} : vector<128x16xbf16> to vector<64x16xbf16>
    %29 = vector.extract_strided_slice %8 {offsets = [64, 0], sizes = [64, 16], strides = [1, 1]} : vector<128x16xbf16> to vector<64x16xbf16>
    %30 = vector.extract_strided_slice %9 {offsets = [64, 0], sizes = [64, 16], strides = [1, 1]} : vector<128x16xbf16> to vector<64x16xbf16>
    %cst_11 = arith.constant dense<0.000000e+00> : vector<64x64xf32>
    %31 = tpu.matmul %28, %29, %cst_11 {dimension_numbers = #tpu.dot_dimension_numbers<[1], [1], [0], [0], [0, 0, 1, 0], [], []>} : vector<64x16xbf16>, vector<64x16xbf16>, vector<64x64xf32> -> vector<64x64xf32>
    %cst_12 = arith.constant dense<0xFF800000> : vector<64xf32>
    %32 = vector.multi_reduction <maximumf>, %31, %cst_12 [1] : vector<64x64xf32> to vector<64xf32>
    %33 = vector.shape_cast %32 : vector<64xf32> to vector<64x1xf32>
    %34 = vector.broadcast %33 : vector<64x1xf32> to vector<64x64xf32>
    %35 = arith.subf %31, %34 : vector<64x64xf32>
    %36 = math.exp %35 : vector<64x64xf32>
    %cst_13 = arith.constant dense<0.000000e+00> : vector<64xf32>
    %37 = vector.multi_reduction <add>, %36, %cst_13 [1] : vector<64x64xf32> to vector<64xf32>
    %38 = vector.shape_cast %37 : vector<64xf32> to vector<64x1xf32>
    %39 = arith.truncf %36 : vector<64x64xf32> to vector<64x64xbf16>
    %cst_14 = arith.constant dense<0.000000e+00> : vector<64x16xf32>
    %40 = tpu.matmul %39, %30, %cst_14 {dimension_numbers = #tpu.dot_dimension_numbers<[1], [0], [0], [1], [0, 0, 1, 1], [], []>} : vector<64x64xbf16>, vector<64x16xbf16>, vector<64x16xf32> -> vector<64x16xf32>
    %41 = tpu.reciprocal %38 {approx = true} : vector<64x1xf32> -> vector<64x1xf32>
    %42 = vector.broadcast %41 : vector<64x1xf32> to vector<64x16xf32>
    %43 = arith.mulf %40, %42 : vector<64x16xf32>
    %44 = arith.truncf %43 : vector<64x16xf32> to vector<64x16xbf16>
    %c64 = arith.constant 64 : index
    %c0_15 = arith.constant 0 : index
    %45 = vector.load %arg6[%c64, %c0_15] : memref<128x128xbf16, #tpu.memory_space<vmem>>, vector<64x16xbf16>
    tpu.vector_store %arg6[%c64, %c0_15], %44 {strides = array<i32>} : memref<128x128xbf16, #tpu.memory_space<vmem>>, vector<64x16xbf16>,
    %46 = vector.extract_strided_slice %6 {offsets = [0, 16], sizes = [128, 16], strides = [1, 1]} : vector<128x384xbf16> to vector<128x16xbf16>
    %47 = vector.extract_strided_slice %6 {offsets = [0, 144], sizes = [128, 16], strides = [1, 1]} : vector<128x384xbf16> to vector<128x16xbf16>
    %48 = vector.extract_strided_slice %6 {offsets = [0, 272], sizes = [128, 16], strides = [1, 1]} : vector<128x384xbf16> to vector<128x16xbf16>
    %49 = vector.extract_strided_slice %46 {offsets = [0, 0], sizes = [64, 16], strides = [1, 1]} : vector<128x16xbf16> to vector<64x16xbf16>
    %50 = vector.extract_strided_slice %47 {offsets = [0, 0], sizes = [64, 16], strides = [1, 1]} : vector<128x16xbf16> to vector<64x16xbf16>
    %51 = vector.extract_strided_slice %48 {offsets = [0, 0], sizes = [64, 16], strides = [1, 1]} : vector<128x16xbf16> to vector<64x16xbf16>
    %cst_16 = arith.constant dense<0.000000e+00> : vector<64x64xf32>
    %52 = tpu.matmul %49, %50, %cst_16 {dimension_numbers = #tpu.dot_dimension_numbers<[1], [1], [0], [0], [0, 0, 1, 0], [], []>} : vector<64x16xbf16>, vector<64x16xbf16>, vector<64x64xf32> -> vector<64x64xf32>
    %cst_17 = arith.constant dense<0xFF800000> : vector<64xf32>
    %53 = vector.multi_reduction <maximumf>, %52, %cst_17 [1] : vector<64x64xf32> to vector<64xf32>
    %54 = vector.shape_cast %53 : vector<64xf32> to vector<64x1xf32>
    %55 = vector.broadcast %54 : vector<64x1xf32> to vector<64x64xf32>
    %56 = arith.subf %52, %55 : vector<64x64xf32>
    %57 = math.exp %56 : vector<64x64xf32>
    %cst_18 = arith.constant dense<0.000000e+00> : vector<64xf32>
    %58 = vector.multi_reduction <add>, %57, %cst_18 [1] : vector<64x64xf32> to vector<64xf32>
    %59 = vector.shape_cast %58 : vector<64xf32> to vector<64x1xf32>
    %60 = arith.truncf %57 : vector<64x64xf32> to vector<64x64xbf16>
    %cst_19 = arith.constant dense<0.000000e+00> : vector<64x16xf32>
    %61 = tpu.matmul %60, %51, %cst_19 {dimension_numbers = #tpu.dot_dimension_numbers<[1], [0], [0], [1], [0, 0, 1, 1], [], []>} : vector<64x64xbf16>, vector<64x16xbf16>, vector<64x16xf32> -> vector<64x16xf32>
    %62 = tpu.reciprocal %59 {approx = true} : vector<64x1xf32> -> vector<64x1xf32>
    %63 = vector.broadcast %62 : vector<64x1xf32> to vector<64x16xf32>
    %64 = arith.mulf %61, %63 : vector<64x16xf32>
    %65 = arith.truncf %64 : vector<64x16xf32> to vector<64x16xbf16>
    %c0_20 = arith.constant 0 : index
    %c16 = arith.constant 16 : index
    %66 = vector.load %arg6[%c0_20, %c16] : memref<128x128xbf16, #tpu.memory_space<vmem>>, vector<64x16xbf16>
    tpu.vector_store %arg6[%c0_20, %c16], %65 {strides = array<i32>} : memref<128x128xbf16, #tpu.memory_space<vmem>>, vector<64x16xbf16>,
    %67 = vector.extract_strided_slice %46 {offsets = [64, 0], sizes = [64, 16], strides = [1, 1]} : vector<128x16xbf16> to vector<64x16xbf16>
    %68 = vector.extract_strided_slice %47 {offsets = [64, 0], sizes = [64, 16], strides = [1, 1]} : vector<128x16xbf16> to vector<64x16xbf16>
    %69 = vector.extract_strided_slice %48 {offsets = [64, 0], sizes = [64, 16], strides = [1, 1]} : vector<128x16xbf16> to vector<64x16xbf16>
    %cst_21 = arith.constant dense<0.000000e+00> : vector<64x64xf32>
    %70 = tpu.matmul %67, %68, %cst_21 {dimension_numbers = #tpu.dot_dimension_numbers<[1], [1], [0], [0], [0, 0, 1, 0], [], []>} : vector<64x16xbf16>, vector<64x16xbf16>, vector<64x64xf32> -> vector<64x64xf32>
    %cst_22 = arith.constant dense<0xFF800000> : vector<64xf32>
    %71 = vector.multi_reduction <maximumf>, %70, %cst_22 [1] : vector<64x64xf32> to vector<64xf32>
    %72 = vector.shape_cast %71 : vector<64xf32> to vector<64x1xf32>
    %73 = vector.broadcast %72 : vector<64x1xf32> to vector<64x64xf32>
    %74 = arith.subf %70, %73 : vector<64x64xf32>
    %75 = math.exp %74 : vector<64x64xf32>
    %cst_23 = arith.constant dense<0.000000e+00> : vector<64xf32>
    %76 = vector.multi_reduction <add>, %75, %cst_23 [1] : vector<64x64xf32> to vector<64xf32>
    %77 = vector.shape_cast %76 : vector<64xf32> to vector<64x1xf32>
    %78 = arith.truncf %75 : vector<64x64xf32> to vector<64x64xbf16>
    %cst_24 = arith.constant dense<0.000000e+00> : vector<64x16xf32>
    %79 = tpu.matmul %78, %69, %cst_24 {dimension_numbers = #tpu.dot_dimension_numbers<[1], [0], [0], [1], [0, 0, 1, 1], [], []>} : vector<64x64xbf16>, vector<64x16xbf16>, vector<64x16xf32> -> vector<64x16xf32>
    %80 = tpu.reciprocal %77 {approx = true} : vector<64x1xf32> -> vector<64x1xf32>
    %81 = vector.broadcast %80 : vector<64x1xf32> to vector<64x16xf32>
    %82 = arith.mulf %79, %81 : vector<64x16xf32>
    %83 = arith.truncf %82 : vector<64x16xf32> to vector<64x16xbf16>
    %c64_25 = arith.constant 64 : index
    %c16_26 = arith.constant 16 : index
    %84 = vector.load %arg6[%c64_25, %c16_26] : memref<128x128xbf16, #tpu.memory_space<vmem>>, vector<64x16xbf16>
    tpu.vector_store %arg6[%c64_25, %c16_26], %83 {strides = array<i32>} : memref<128x128xbf16, #tpu.memory_space<vmem>>, vector<64x16xbf16>,
    %85 = vector.extract_strided_slice %6 {offsets = [0, 32], sizes = [128, 16], strides = [1, 1]} : vector<128x384xbf16> to vector<128x16xbf16>
    %86 = vector.extract_strided_slice %6 {offsets = [0, 160], sizes = [128, 16], strides = [1, 1]} : vector<128x384xbf16> to vector<128x16xbf16>
    %87 = vector.extract_strided_slice %6 {offsets = [0, 288], sizes = [128, 16], strides = [1, 1]} : vector<128x384xbf16> to vector<128x16xbf16>
    %88 = vector.extract_strided_slice %85 {offsets = [0, 0], sizes = [64, 16], strides = [1, 1]} : vector<128x16xbf16> to vector<64x16xbf16>
    %89 = vector.extract_strided_slice %86 {offsets = [0, 0], sizes = [64, 16], strides = [1, 1]} : vector<128x16xbf16> to vector<64x16xbf16>
    %90 = vector.extract_strided_slice %87 {offsets = [0, 0], sizes = [64, 16], strides = [1, 1]} : vector<128x16xbf16> to vector<64x16xbf16>
    %cst_27 = arith.constant dense<0.000000e+00> : vector<64x64xf32>
    %91 = tpu.matmul %88, %89, %cst_27 {dimension_numbers = #tpu.dot_dimension_numbers<[1], [1], [0], [0], [0, 0, 1, 0], [], []>} : vector<64x16xbf16>, vector<64x16xbf16>, vector<64x64xf32> -> vector<64x64xf32>
    %cst_28 = arith.constant dense<0xFF800000> : vector<64xf32>
    %92 = vector.multi_reduction <maximumf>, %91, %cst_28 [1] : vector<64x64xf32> to vector<64xf32>
    %93 = vector.shape_cast %92 : vector<64xf32> to vector<64x1xf32>
    %94 = vector.broadcast %93 : vector<64x1xf32> to vector<64x64xf32>
    %95 = arith.subf %91, %94 : vector<64x64xf32>
    %96 = math.exp %95 : vector<64x64xf32>
    %cst_29 = arith.constant dense<0.000000e+00> : vector<64xf32>
    %97 = vector.multi_reduction <add>, %96, %cst_29 [1] : vector<64x64xf32> to vector<64xf32>
    %98 = vector.shape_cast %97 : vector<64xf32> to vector<64x1xf32>
    %99 = arith.truncf %96 : vector<64x64xf32> to vector<64x64xbf16>
    %cst_30 = arith.constant dense<0.000000e+00> : vector<64x16xf32>
    %100 = tpu.matmul %99, %90, %cst_30 {dimension_numbers = #tpu.dot_dimension_numbers<[1], [0], [0], [1], [0, 0, 1, 1], [], []>} : vector<64x64xbf16>, vector<64x16xbf16>, vector<64x16xf32> -> vector<64x16xf32>
    %101 = tpu.reciprocal %98 {approx = true} : vector<64x1xf32> -> vector<64x1xf32>
    %102 = vector.broadcast %101 : vector<64x1xf32> to vector<64x16xf32>
    %103 = arith.mulf %100, %102 : vector<64x16xf32>
    %104 = arith.truncf %103 : vector<64x16xf32> to vector<64x16xbf16>
    %c0_31 = arith.constant 0 : index
    %c32 = arith.constant 32 : index
    %105 = vector.load %arg6[%c0_31, %c32] : memref<128x128xbf16, #tpu.memory_space<vmem>>, vector<64x16xbf16>
    tpu.vector_store %arg6[%c0_31, %c32], %104 {strides = array<i32>} : memref<128x128xbf16, #tpu.memory_space<vmem>>, vector<64x16xbf16>,
    %106 = vector.extract_strided_slice %85 {offsets = [64, 0], sizes = [64, 16], strides = [1, 1]} : vector<128x16xbf16> to vector<64x16xbf16>
    %107 = vector.extract_strided_slice %86 {offsets = [64, 0], sizes = [64, 16], strides = [1, 1]} : vector<128x16xbf16> to vector<64x16xbf16>
    %108 = vector.extract_strided_slice %87 {offsets = [64, 0], sizes = [64, 16], strides = [1, 1]} : vector<128x16xbf16> to vector<64x16xbf16>
    %cst_32 = arith.constant dense<0.000000e+00> : vector<64x64xf32>
    %109 = tpu.matmul %106, %107, %cst_32 {dimension_numbers = #tpu.dot_dimension_numbers<[1], [1], [0], [0], [0, 0, 1, 0], [], []>} : vector<64x16xbf16>, vector<64x16xbf16>, vector<64x64xf32> -> vector<64x64xf32>
    %cst_33 = arith.constant dense<0xFF800000> : vector<64xf32>
    %110 = vector.multi_reduction <maximumf>, %109, %cst_33 [1] : vector<64x64xf32> to vector<64xf32>
    %111 = vector.shape_cast %110 : vector<64xf32> to vector<64x1xf32>
    %112 = vector.broadcast %111 : vector<64x1xf32> to vector<64x64xf32>
    %113 = arith.subf %109, %112 : vector<64x64xf32>
    %114 = math.exp %113 : vector<64x64xf32>
    %cst_34 = arith.constant dense<0.000000e+00> : vector<64xf32>
    %115 = vector.multi_reduction <add>, %114, %cst_34 [1] : vector<64x64xf32> to vector<64xf32>
    %116 = vector.shape_cast %115 : vector<64xf32> to vector<64x1xf32>
    %117 = arith.truncf %114 : vector<64x64xf32> to vector<64x64xbf16>
    %cst_35 = arith.constant dense<0.000000e+00> : vector<64x16xf32>
    %118 = tpu.matmul %117, %108, %cst_35 {dimension_numbers = #tpu.dot_dimension_numbers<[1], [0], [0], [1], [0, 0, 1, 1], [], []>} : vector<64x64xbf16>, vector<64x16xbf16>, vector<64x16xf32> -> vector<64x16xf32>
    %119 = tpu.reciprocal %116 {approx = true} : vector<64x1xf32> -> vector<64x1xf32>
    %120 = vector.broadcast %119 : vector<64x1xf32> to vector<64x16xf32>
    %121 = arith.mulf %118, %120 : vector<64x16xf32>
    %122 = arith.truncf %121 : vector<64x16xf32> to vector<64x16xbf16>
    %c64_36 = arith.constant 64 : index
    %c32_37 = arith.constant 32 : index
    %123 = vector.load %arg6[%c64_36, %c32_37] : memref<128x128xbf16, #tpu.memory_space<vmem>>, vector<64x16xbf16>
    tpu.vector_store %arg6[%c64_36, %c32_37], %122 {strides = array<i32>} : memref<128x128xbf16, #tpu.memory_space<vmem>>, vector<64x16xbf16>,
    %124 = vector.extract_strided_slice %6 {offsets = [0, 48], sizes = [128, 16], strides = [1, 1]} : vector<128x384xbf16> to vector<128x16xbf16>
    %125 = vector.extract_strided_slice %6 {offsets = [0, 176], sizes = [128, 16], strides = [1, 1]} : vector<128x384xbf16> to vector<128x16xbf16>
    %126 = vector.extract_strided_slice %6 {offsets = [0, 304], sizes = [128, 16], strides = [1, 1]} : vector<128x384xbf16> to vector<128x16xbf16>
    %127 = vector.extract_strided_slice %124 {offsets = [0, 0], sizes = [64, 16], strides = [1, 1]} : vector<128x16xbf16> to vector<64x16xbf16>
    %128 = vector.extract_strided_slice %125 {offsets = [0, 0], sizes = [64, 16], strides = [1, 1]} : vector<128x16xbf16> to vector<64x16xbf16>
    %129 = vector.extract_strided_slice %126 {offsets = [0, 0], sizes = [64, 16], strides = [1, 1]} : vector<128x16xbf16> to vector<64x16xbf16>
    %cst_38 = arith.constant dense<0.000000e+00> : vector<64x64xf32>
    %130 = tpu.matmul %127, %128, %cst_38 {dimension_numbers = #tpu.dot_dimension_numbers<[1], [1], [0], [0], [0, 0, 1, 0], [], []>} : vector<64x16xbf16>, vector<64x16xbf16>, vector<64x64xf32> -> vector<64x64xf32>
    %cst_39 = arith.constant dense<0xFF800000> : vector<64xf32>
    %131 = vector.multi_reduction <maximumf>, %130, %cst_39 [1] : vector<64x64xf32> to vector<64xf32>
    %132 = vector.shape_cast %131 : vector<64xf32> to vector<64x1xf32>
    %133 = vector.broadcast %132 : vector<64x1xf32> to vector<64x64xf32>
    %134 = arith.subf %130, %133 : vector<64x64xf32>
    %135 = math.exp %134 : vector<64x64xf32>
    %cst_40 = arith.constant dense<0.000000e+00> : vector<64xf32>
    %136 = vector.multi_reduction <add>, %135, %cst_40 [1] : vector<64x64xf32> to vector<64xf32>
    %137 = vector.shape_cast %136 : vector<64xf32> to vector<64x1xf32>
    %138 = arith.truncf %135 : vector<64x64xf32> to vector<64x64xbf16>
    %cst_41 = arith.constant dense<0.000000e+00> : vector<64x16xf32>
    %139 = tpu.matmul %138, %129, %cst_41 {dimension_numbers = #tpu.dot_dimension_numbers<[1], [0], [0], [1], [0, 0, 1, 1], [], []>} : vector<64x64xbf16>, vector<64x16xbf16>, vector<64x16xf32> -> vector<64x16xf32>
    %140 = tpu.reciprocal %137 {approx = true} : vector<64x1xf32> -> vector<64x1xf32>
    %141 = vector.broadcast %140 : vector<64x1xf32> to vector<64x16xf32>
    %142 = arith.mulf %139, %141 : vector<64x16xf32>
    %143 = arith.truncf %142 : vector<64x16xf32> to vector<64x16xbf16>
    %c0_42 = arith.constant 0 : index
    %c48 = arith.constant 48 : index
    %144 = vector.load %arg6[%c0_42, %c48] : memref<128x128xbf16, #tpu.memory_space<vmem>>, vector<64x16xbf16>
    tpu.vector_store %arg6[%c0_42, %c48], %143 {strides = array<i32>} : memref<128x128xbf16, #tpu.memory_space<vmem>>, vector<64x16xbf16>,
    %145 = vector.extract_strided_slice %124 {offsets = [64, 0], sizes = [64, 16], strides = [1, 1]} : vector<128x16xbf16> to vector<64x16xbf16>
    %146 = vector.extract_strided_slice %125 {offsets = [64, 0], sizes = [64, 16], strides = [1, 1]} : vector<128x16xbf16> to vector<64x16xbf16>
    %147 = vector.extract_strided_slice %126 {offsets = [64, 0], sizes = [64, 16], strides = [1, 1]} : vector<128x16xbf16> to vector<64x16xbf16>
    %cst_43 = arith.constant dense<0.000000e+00> : vector<64x64xf32>
    %148 = tpu.matmul %145, %146, %cst_43 {dimension_numbers = #tpu.dot_dimension_numbers<[1], [1], [0], [0], [0, 0, 1, 0], [], []>} : vector<64x16xbf16>, vector<64x16xbf16>, vector<64x64xf32> -> vector<64x64xf32>
    %cst_44 = arith.constant dense<0xFF800000> : vector<64xf32>
    %149 = vector.multi_reduction <maximumf>, %148, %cst_44 [1] : vector<64x64xf32> to vector<64xf32>
    %150 = vector.shape_cast %149 : vector<64xf32> to vector<64x1xf32>
    %151 = vector.broadcast %150 : vector<64x1xf32> to vector<64x64xf32>
    %152 = arith.subf %148, %151 : vector<64x64xf32>
    %153 = math.exp %152 : vector<64x64xf32>
    %cst_45 = arith.constant dense<0.000000e+00> : vector<64xf32>
    %154 = vector.multi_reduction <add>, %153, %cst_45 [1] : vector<64x64xf32> to vector<64xf32>
    %155 = vector.shape_cast %154 : vector<64xf32> to vector<64x1xf32>
    %156 = arith.truncf %153 : vector<64x64xf32> to vector<64x64xbf16>
    %cst_46 = arith.constant dense<0.000000e+00> : vector<64x16xf32>
    %157 = tpu.matmul %156, %147, %cst_46 {dimension_numbers = #tpu.dot_dimension_numbers<[1], [0], [0], [1], [0, 0, 1, 1], [], []>} : vector<64x64xbf16>, vector<64x16xbf16>, vector<64x16xf32> -> vector<64x16xf32>
    %158 = tpu.reciprocal %155 {approx = true} : vector<64x1xf32> -> vector<64x1xf32>
    %159 = vector.broadcast %158 : vector<64x1xf32> to vector<64x16xf32>
    %160 = arith.mulf %157, %159 : vector<64x16xf32>
    %161 = arith.truncf %160 : vector<64x16xf32> to vector<64x16xbf16>
    %c64_47 = arith.constant 64 : index
    %c48_48 = arith.constant 48 : index
    %162 = vector.load %arg6[%c64_47, %c48_48] : memref<128x128xbf16, #tpu.memory_space<vmem>>, vector<64x16xbf16>
    tpu.vector_store %arg6[%c64_47, %c48_48], %161 {strides = array<i32>} : memref<128x128xbf16, #tpu.memory_space<vmem>>, vector<64x16xbf16>,
    %163 = vector.extract_strided_slice %6 {offsets = [0, 64], sizes = [128, 16], strides = [1, 1]} : vector<128x384xbf16> to vector<128x16xbf16>
    %164 = vector.extract_strided_slice %6 {offsets = [0, 192], sizes = [128, 16], strides = [1, 1]} : vector<128x384xbf16> to vector<128x16xbf16>
    %165 = vector.extract_strided_slice %6 {offsets = [0, 320], sizes = [128, 16], strides = [1, 1]} : vector<128x384xbf16> to vector<128x16xbf16>
    %166 = vector.extract_strided_slice %163 {offsets = [0, 0], sizes = [64, 16], strides = [1, 1]} : vector<128x16xbf16> to vector<64x16xbf16>
    %167 = vector.extract_strided_slice %164 {offsets = [0, 0], sizes = [64, 16], strides = [1, 1]} : vector<128x16xbf16> to vector<64x16xbf16>
    %168 = vector.extract_strided_slice %165 {offsets = [0, 0], sizes = [64, 16], strides = [1, 1]} : vector<128x16xbf16> to vector<64x16xbf16>
    %cst_49 = arith.constant dense<0.000000e+00> : vector<64x64xf32>
    %169 = tpu.matmul %166, %167, %cst_49 {dimension_numbers = #tpu.dot_dimension_numbers<[1], [1], [0], [0], [0, 0, 1, 0], [], []>} : vector<64x16xbf16>, vector<64x16xbf16>, vector<64x64xf32> -> vector<64x64xf32>
    %cst_50 = arith.constant dense<0xFF800000> : vector<64xf32>
    %170 = vector.multi_reduction <maximumf>, %169, %cst_50 [1] : vector<64x64xf32> to vector<64xf32>
    %171 = vector.shape_cast %170 : vector<64xf32> to vector<64x1xf32>
    %172 = vector.broadcast %171 : vector<64x1xf32> to vector<64x64xf32>
    %173 = arith.subf %169, %172 : vector<64x64xf32>
    %174 = math.exp %173 : vector<64x64xf32>
    %cst_51 = arith.constant dense<0.000000e+00> : vector<64xf32>
    %175 = vector.multi_reduction <add>, %174, %cst_51 [1] : vector<64x64xf32> to vector<64xf32>
    %176 = vector.shape_cast %175 : vector<64xf32> to vector<64x1xf32>
    %177 = arith.truncf %174 : vector<64x64xf32> to vector<64x64xbf16>
    %cst_52 = arith.constant dense<0.000000e+00> : vector<64x16xf32>
    %178 = tpu.matmul %177, %168, %cst_52 {dimension_numbers = #tpu.dot_dimension_numbers<[1], [0], [0], [1], [0, 0, 1, 1], [], []>} : vector<64x64xbf16>, vector<64x16xbf16>, vector<64x16xf32> -> vector<64x16xf32>
    %179 = tpu.reciprocal %176 {approx = true} : vector<64x1xf32> -> vector<64x1xf32>
    %180 = vector.broadcast %179 : vector<64x1xf32> to vector<64x16xf32>
    %181 = arith.mulf %178, %180 : vector<64x16xf32>
    %182 = arith.truncf %181 : vector<64x16xf32> to vector<64x16xbf16>
    %c0_53 = arith.constant 0 : index
    %c64_54 = arith.constant 64 : index
    %183 = vector.load %arg6[%c0_53, %c64_54] : memref<128x128xbf16, #tpu.memory_space<vmem>>, vector<64x16xbf16>
    tpu.vector_store %arg6[%c0_53, %c64_54], %182 {strides = array<i32>} : memref<128x128xbf16, #tpu.memory_space<vmem>>, vector<64x16xbf16>,
    %184 = vector.extract_strided_slice %163 {offsets = [64, 0], sizes = [64, 16], strides = [1, 1]} : vector<128x16xbf16> to vector<64x16xbf16>
    %185 = vector.extract_strided_slice %164 {offsets = [64, 0], sizes = [64, 16], strides = [1, 1]} : vector<128x16xbf16> to vector<64x16xbf16>
    %186 = vector.extract_strided_slice %165 {offsets = [64, 0], sizes = [64, 16], strides = [1, 1]} : vector<128x16xbf16> to vector<64x16xbf16>
    %cst_55 = arith.constant dense<0.000000e+00> : vector<64x64xf32>
    %187 = tpu.matmul %184, %185, %cst_55 {dimension_numbers = #tpu.dot_dimension_numbers<[1], [1], [0], [0], [0, 0, 1, 0], [], []>} : vector<64x16xbf16>, vector<64x16xbf16>, vector<64x64xf32> -> vector<64x64xf32>
    %cst_56 = arith.constant dense<0xFF800000> : vector<64xf32>
    %188 = vector.multi_reduction <maximumf>, %187, %cst_56 [1] : vector<64x64xf32> to vector<64xf32>
    %189 = vector.shape_cast %188 : vector<64xf32> to vector<64x1xf32>
    %190 = vector.broadcast %189 : vector<64x1xf32> to vector<64x64xf32>
    %191 = arith.subf %187, %190 : vector<64x64xf32>
    %192 = math.exp %191 : vector<64x64xf32>
    %cst_57 = arith.constant dense<0.000000e+00> : vector<64xf32>
    %193 = vector.multi_reduction <add>, %192, %cst_57 [1] : vector<64x64xf32> to vector<64xf32>
    %194 = vector.shape_cast %193 : vector<64xf32> to vector<64x1xf32>
    %195 = arith.truncf %192 : vector<64x64xf32> to vector<64x64xbf16>
    %cst_58 = arith.constant dense<0.000000e+00> : vector<64x16xf32>
    %196 = tpu.matmul %195, %186, %cst_58 {dimension_numbers = #tpu.dot_dimension_numbers<[1], [0], [0], [1], [0, 0, 1, 1], [], []>} : vector<64x64xbf16>, vector<64x16xbf16>, vector<64x16xf32> -> vector<64x16xf32>
    %197 = tpu.reciprocal %194 {approx = true} : vector<64x1xf32> -> vector<64x1xf32>
    %198 = vector.broadcast %197 : vector<64x1xf32> to vector<64x16xf32>
    %199 = arith.mulf %196, %198 : vector<64x16xf32>
    %200 = arith.truncf %199 : vector<64x16xf32> to vector<64x16xbf16>
    %c64_59 = arith.constant 64 : index
    %c64_60 = arith.constant 64 : index
    %201 = vector.load %arg6[%c64_59, %c64_60] : memref<128x128xbf16, #tpu.memory_space<vmem>>, vector<64x16xbf16>
    tpu.vector_store %arg6[%c64_59, %c64_60], %200 {strides = array<i32>} : memref<128x128xbf16, #tpu.memory_space<vmem>>, vector<64x16xbf16>,
    %202 = vector.extract_strided_slice %6 {offsets = [0, 80], sizes = [128, 16], strides = [1, 1]} : vector<128x384xbf16> to vector<128x16xbf16>
    %203 = vector.extract_strided_slice %6 {offsets = [0, 208], sizes = [128, 16], strides = [1, 1]} : vector<128x384xbf16> to vector<128x16xbf16>
    %204 = vector.extract_strided_slice %6 {offsets = [0, 336], sizes = [128, 16], strides = [1, 1]} : vector<128x384xbf16> to vector<128x16xbf16>
    %205 = vector.extract_strided_slice %202 {offsets = [0, 0], sizes = [64, 16], strides = [1, 1]} : vector<128x16xbf16> to vector<64x16xbf16>
    %206 = vector.extract_strided_slice %203 {offsets = [0, 0], sizes = [64, 16], strides = [1, 1]} : vector<128x16xbf16> to vector<64x16xbf16>
    %207 = vector.extract_strided_slice %204 {offsets = [0, 0], sizes = [64, 16], strides = [1, 1]} : vector<128x16xbf16> to vector<64x16xbf16>
    %cst_61 = arith.constant dense<0.000000e+00> : vector<64x64xf32>
    %208 = tpu.matmul %205, %206, %cst_61 {dimension_numbers = #tpu.dot_dimension_numbers<[1], [1], [0], [0], [0, 0, 1, 0], [], []>} : vector<64x16xbf16>, vector<64x16xbf16>, vector<64x64xf32> -> vector<64x64xf32>
    %cst_62 = arith.constant dense<0xFF800000> : vector<64xf32>
    %209 = vector.multi_reduction <maximumf>, %208, %cst_62 [1] : vector<64x64xf32> to vector<64xf32>
    %210 = vector.shape_cast %209 : vector<64xf32> to vector<64x1xf32>
    %211 = vector.broadcast %210 : vector<64x1xf32> to vector<64x64xf32>
    %212 = arith.subf %208, %211 : vector<64x64xf32>
    %213 = math.exp %212 : vector<64x64xf32>
    %cst_63 = arith.constant dense<0.000000e+00> : vector<64xf32>
    %214 = vector.multi_reduction <add>, %213, %cst_63 [1] : vector<64x64xf32> to vector<64xf32>
    %215 = vector.shape_cast %214 : vector<64xf32> to vector<64x1xf32>
    %216 = arith.truncf %213 : vector<64x64xf32> to vector<64x64xbf16>
    %cst_64 = arith.constant dense<0.000000e+00> : vector<64x16xf32>
    %217 = tpu.matmul %216, %207, %cst_64 {dimension_numbers = #tpu.dot_dimension_numbers<[1], [0], [0], [1], [0, 0, 1, 1], [], []>} : vector<64x64xbf16>, vector<64x16xbf16>, vector<64x16xf32> -> vector<64x16xf32>
    %218 = tpu.reciprocal %215 {approx = true} : vector<64x1xf32> -> vector<64x1xf32>
    %219 = vector.broadcast %218 : vector<64x1xf32> to vector<64x16xf32>
    %220 = arith.mulf %217, %219 : vector<64x16xf32>
    %221 = arith.truncf %220 : vector<64x16xf32> to vector<64x16xbf16>
    %c0_65 = arith.constant 0 : index
    %c80 = arith.constant 80 : index
    %222 = vector.load %arg6[%c0_65, %c80] : memref<128x128xbf16, #tpu.memory_space<vmem>>, vector<64x16xbf16>
    tpu.vector_store %arg6[%c0_65, %c80], %221 {strides = array<i32>} : memref<128x128xbf16, #tpu.memory_space<vmem>>, vector<64x16xbf16>,
    %223 = vector.extract_strided_slice %202 {offsets = [64, 0], sizes = [64, 16], strides = [1, 1]} : vector<128x16xbf16> to vector<64x16xbf16>
    %224 = vector.extract_strided_slice %203 {offsets = [64, 0], sizes = [64, 16], strides = [1, 1]} : vector<128x16xbf16> to vector<64x16xbf16>
    %225 = vector.extract_strided_slice %204 {offsets = [64, 0], sizes = [64, 16], strides = [1, 1]} : vector<128x16xbf16> to vector<64x16xbf16>
    %cst_66 = arith.constant dense<0.000000e+00> : vector<64x64xf32>
    %226 = tpu.matmul %223, %224, %cst_66 {dimension_numbers = #tpu.dot_dimension_numbers<[1], [1], [0], [0], [0, 0, 1, 0], [], []>} : vector<64x16xbf16>, vector<64x16xbf16>, vector<64x64xf32> -> vector<64x64xf32>
    %cst_67 = arith.constant dense<0xFF800000> : vector<64xf32>
    %227 = vector.multi_reduction <maximumf>, %226, %cst_67 [1] : vector<64x64xf32> to vector<64xf32>
    %228 = vector.shape_cast %227 : vector<64xf32> to vector<64x1xf32>
    %229 = vector.broadcast %228 : vector<64x1xf32> to vector<64x64xf32>
    %230 = arith.subf %226, %229 : vector<64x64xf32>
    %231 = math.exp %230 : vector<64x64xf32>
    %cst_68 = arith.constant dense<0.000000e+00> : vector<64xf32>
    %232 = vector.multi_reduction <add>, %231, %cst_68 [1] : vector<64x64xf32> to vector<64xf32>
    %233 = vector.shape_cast %232 : vector<64xf32> to vector<64x1xf32>
    %234 = arith.truncf %231 : vector<64x64xf32> to vector<64x64xbf16>
    %cst_69 = arith.constant dense<0.000000e+00> : vector<64x16xf32>
    %235 = tpu.matmul %234, %225, %cst_69 {dimension_numbers = #tpu.dot_dimension_numbers<[1], [0], [0], [1], [0, 0, 1, 1], [], []>} : vector<64x64xbf16>, vector<64x16xbf16>, vector<64x16xf32> -> vector<64x16xf32>
    %236 = tpu.reciprocal %233 {approx = true} : vector<64x1xf32> -> vector<64x1xf32>
    %237 = vector.broadcast %236 : vector<64x1xf32> to vector<64x16xf32>
    %238 = arith.mulf %235, %237 : vector<64x16xf32>
    %239 = arith.truncf %238 : vector<64x16xf32> to vector<64x16xbf16>
    %c64_70 = arith.constant 64 : index
    %c80_71 = arith.constant 80 : index
    %240 = vector.load %arg6[%c64_70, %c80_71] : memref<128x128xbf16, #tpu.memory_space<vmem>>, vector<64x16xbf16>
    tpu.vector_store %arg6[%c64_70, %c80_71], %239 {strides = array<i32>} : memref<128x128xbf16, #tpu.memory_space<vmem>>, vector<64x16xbf16>,
    %241 = vector.extract_strided_slice %6 {offsets = [0, 96], sizes = [128, 16], strides = [1, 1]} : vector<128x384xbf16> to vector<128x16xbf16>
    %242 = vector.extract_strided_slice %6 {offsets = [0, 224], sizes = [128, 16], strides = [1, 1]} : vector<128x384xbf16> to vector<128x16xbf16>
    %243 = vector.extract_strided_slice %6 {offsets = [0, 352], sizes = [128, 16], strides = [1, 1]} : vector<128x384xbf16> to vector<128x16xbf16>
    %244 = vector.extract_strided_slice %241 {offsets = [0, 0], sizes = [64, 16], strides = [1, 1]} : vector<128x16xbf16> to vector<64x16xbf16>
    %245 = vector.extract_strided_slice %242 {offsets = [0, 0], sizes = [64, 16], strides = [1, 1]} : vector<128x16xbf16> to vector<64x16xbf16>
    %246 = vector.extract_strided_slice %243 {offsets = [0, 0], sizes = [64, 16], strides = [1, 1]} : vector<128x16xbf16> to vector<64x16xbf16>
    %cst_72 = arith.constant dense<0.000000e+00> : vector<64x64xf32>
    %247 = tpu.matmul %244, %245, %cst_72 {dimension_numbers = #tpu.dot_dimension_numbers<[1], [1], [0], [0], [0, 0, 1, 0], [], []>} : vector<64x16xbf16>, vector<64x16xbf16>, vector<64x64xf32> -> vector<64x64xf32>
    %cst_73 = arith.constant dense<0xFF800000> : vector<64xf32>
    %248 = vector.multi_reduction <maximumf>, %247, %cst_73 [1] : vector<64x64xf32> to vector<64xf32>
    %249 = vector.shape_cast %248 : vector<64xf32> to vector<64x1xf32>
    %250 = vector.broadcast %249 : vector<64x1xf32> to vector<64x64xf32>
    %251 = arith.subf %247, %250 : vector<64x64xf32>
    %252 = math.exp %251 : vector<64x64xf32>
    %cst_74 = arith.constant dense<0.000000e+00> : vector<64xf32>
    %253 = vector.multi_reduction <add>, %252, %cst_74 [1] : vector<64x64xf32> to vector<64xf32>
    %254 = vector.shape_cast %253 : vector<64xf32> to vector<64x1xf32>
    %255 = arith.truncf %252 : vector<64x64xf32> to vector<64x64xbf16>
    %cst_75 = arith.constant dense<0.000000e+00> : vector<64x16xf32>
    %256 = tpu.matmul %255, %246, %cst_75 {dimension_numbers = #tpu.dot_dimension_numbers<[1], [0], [0], [1], [0, 0, 1, 1], [], []>} : vector<64x64xbf16>, vector<64x16xbf16>, vector<64x16xf32> -> vector<64x16xf32>
    %257 = tpu.reciprocal %254 {approx = true} : vector<64x1xf32> -> vector<64x1xf32>
    %258 = vector.broadcast %257 : vector<64x1xf32> to vector<64x16xf32>
    %259 = arith.mulf %256, %258 : vector<64x16xf32>
    %260 = arith.truncf %259 : vector<64x16xf32> to vector<64x16xbf16>
    %c0_76 = arith.constant 0 : index
    %c96 = arith.constant 96 : index
    %261 = vector.load %arg6[%c0_76, %c96] : memref<128x128xbf16, #tpu.memory_space<vmem>>, vector<64x16xbf16>
    tpu.vector_store %arg6[%c0_76, %c96], %260 {strides = array<i32>} : memref<128x128xbf16, #tpu.memory_space<vmem>>, vector<64x16xbf16>,
    %262 = vector.extract_strided_slice %241 {offsets = [64, 0], sizes = [64, 16], strides = [1, 1]} : vector<128x16xbf16> to vector<64x16xbf16>
    %263 = vector.extract_strided_slice %242 {offsets = [64, 0], sizes = [64, 16], strides = [1, 1]} : vector<128x16xbf16> to vector<64x16xbf16>
    %264 = vector.extract_strided_slice %243 {offsets = [64, 0], sizes = [64, 16], strides = [1, 1]} : vector<128x16xbf16> to vector<64x16xbf16>
    %cst_77 = arith.constant dense<0.000000e+00> : vector<64x64xf32>
    %265 = tpu.matmul %262, %263, %cst_77 {dimension_numbers = #tpu.dot_dimension_numbers<[1], [1], [0], [0], [0, 0, 1, 0], [], []>} : vector<64x16xbf16>, vector<64x16xbf16>, vector<64x64xf32> -> vector<64x64xf32>
    %cst_78 = arith.constant dense<0xFF800000> : vector<64xf32>
    %266 = vector.multi_reduction <maximumf>, %265, %cst_78 [1] : vector<64x64xf32> to vector<64xf32>
    %267 = vector.shape_cast %266 : vector<64xf32> to vector<64x1xf32>
    %268 = vector.broadcast %267 : vector<64x1xf32> to vector<64x64xf32>
    %269 = arith.subf %265, %268 : vector<64x64xf32>
    %270 = math.exp %269 : vector<64x64xf32>
    %cst_79 = arith.constant dense<0.000000e+00> : vector<64xf32>
    %271 = vector.multi_reduction <add>, %270, %cst_79 [1] : vector<64x64xf32> to vector<64xf32>
    %272 = vector.shape_cast %271 : vector<64xf32> to vector<64x1xf32>
    %273 = arith.truncf %270 : vector<64x64xf32> to vector<64x64xbf16>
    %cst_80 = arith.constant dense<0.000000e+00> : vector<64x16xf32>
    %274 = tpu.matmul %273, %264, %cst_80 {dimension_numbers = #tpu.dot_dimension_numbers<[1], [0], [0], [1], [0, 0, 1, 1], [], []>} : vector<64x64xbf16>, vector<64x16xbf16>, vector<64x16xf32> -> vector<64x16xf32>
    %275 = tpu.reciprocal %272 {approx = true} : vector<64x1xf32> -> vector<64x1xf32>
    %276 = vector.broadcast %275 : vector<64x1xf32> to vector<64x16xf32>
    %277 = arith.mulf %274, %276 : vector<64x16xf32>
    %278 = arith.truncf %277 : vector<64x16xf32> to vector<64x16xbf16>
    %c64_81 = arith.constant 64 : index
    %c96_82 = arith.constant 96 : index
    %279 = vector.load %arg6[%c64_81, %c96_82] : memref<128x128xbf16, #tpu.memory_space<vmem>>, vector<64x16xbf16>
    tpu.vector_store %arg6[%c64_81, %c96_82], %278 {strides = array<i32>} : memref<128x128xbf16, #tpu.memory_space<vmem>>, vector<64x16xbf16>,
    %280 = vector.extract_strided_slice %6 {offsets = [0, 112], sizes = [128, 16], strides = [1, 1]} : vector<128x384xbf16> to vector<128x16xbf16>
    %281 = vector.extract_strided_slice %6 {offsets = [0, 240], sizes = [128, 16], strides = [1, 1]} : vector<128x384xbf16> to vector<128x16xbf16>
    %282 = vector.extract_strided_slice %6 {offsets = [0, 368], sizes = [128, 16], strides = [1, 1]} : vector<128x384xbf16> to vector<128x16xbf16>
    %283 = vector.extract_strided_slice %280 {offsets = [0, 0], sizes = [64, 16], strides = [1, 1]} : vector<128x16xbf16> to vector<64x16xbf16>
    %284 = vector.extract_strided_slice %281 {offsets = [0, 0], sizes = [64, 16], strides = [1, 1]} : vector<128x16xbf16> to vector<64x16xbf16>
    %285 = vector.extract_strided_slice %282 {offsets = [0, 0], sizes = [64, 16], strides = [1, 1]} : vector<128x16xbf16> to vector<64x16xbf16>
    %cst_83 = arith.constant dense<0.000000e+00> : vector<64x64xf32>
    %286 = tpu.matmul %283, %284, %cst_83 {dimension_numbers = #tpu.dot_dimension_numbers<[1], [1], [0], [0], [0, 0, 1, 0], [], []>} : vector<64x16xbf16>, vector<64x16xbf16>, vector<64x64xf32> -> vector<64x64xf32>
    %cst_84 = arith.constant dense<0xFF800000> : vector<64xf32>
    %287 = vector.multi_reduction <maximumf>, %286, %cst_84 [1] : vector<64x64xf32> to vector<64xf32>
    %288 = vector.shape_cast %287 : vector<64xf32> to vector<64x1xf32>
    %289 = vector.broadcast %288 : vector<64x1xf32> to vector<64x64xf32>
    %290 = arith.subf %286, %289 : vector<64x64xf32>
    %291 = math.exp %290 : vector<64x64xf32>
    %cst_85 = arith.constant dense<0.000000e+00> : vector<64xf32>
    %292 = vector.multi_reduction <add>, %291, %cst_85 [1] : vector<64x64xf32> to vector<64xf32>
    %293 = vector.shape_cast %292 : vector<64xf32> to vector<64x1xf32>
    %294 = arith.truncf %291 : vector<64x64xf32> to vector<64x64xbf16>
    %cst_86 = arith.constant dense<0.000000e+00> : vector<64x16xf32>
    %295 = tpu.matmul %294, %285, %cst_86 {dimension_numbers = #tpu.dot_dimension_numbers<[1], [0], [0], [1], [0, 0, 1, 1], [], []>} : vector<64x64xbf16>, vector<64x16xbf16>, vector<64x16xf32> -> vector<64x16xf32>
    %296 = tpu.reciprocal %293 {approx = true} : vector<64x1xf32> -> vector<64x1xf32>
    %297 = vector.broadcast %296 : vector<64x1xf32> to vector<64x16xf32>
    %298 = arith.mulf %295, %297 : vector<64x16xf32>
    %299 = arith.truncf %298 : vector<64x16xf32> to vector<64x16xbf16>
    %c0_87 = arith.constant 0 : index
    %c112 = arith.constant 112 : index
    %300 = vector.load %arg6[%c0_87, %c112] : memref<128x128xbf16, #tpu.memory_space<vmem>>, vector<64x16xbf16>
    tpu.vector_store %arg6[%c0_87, %c112], %299 {strides = array<i32>} : memref<128x128xbf16, #tpu.memory_space<vmem>>, vector<64x16xbf16>,
    %301 = vector.extract_strided_slice %280 {offsets = [64, 0], sizes = [64, 16], strides = [1, 1]} : vector<128x16xbf16> to vector<64x16xbf16>
    %302 = vector.extract_strided_slice %281 {offsets = [64, 0], sizes = [64, 16], strides = [1, 1]} : vector<128x16xbf16> to vector<64x16xbf16>
    %303 = vector.extract_strided_slice %282 {offsets = [64, 0], sizes = [64, 16], strides = [1, 1]} : vector<128x16xbf16> to vector<64x16xbf16>
    %cst_88 = arith.constant dense<0.000000e+00> : vector<64x64xf32>
    %304 = tpu.matmul %301, %302, %cst_88 {dimension_numbers = #tpu.dot_dimension_numbers<[1], [1], [0], [0], [0, 0, 1, 0], [], []>} : vector<64x16xbf16>, vector<64x16xbf16>, vector<64x64xf32> -> vector<64x64xf32>
    %cst_89 = arith.constant dense<0xFF800000> : vector<64xf32>
    %305 = vector.multi_reduction <maximumf>, %304, %cst_89 [1] : vector<64x64xf32> to vector<64xf32>
    %306 = vector.shape_cast %305 : vector<64xf32> to vector<64x1xf32>
    %307 = vector.broadcast %306 : vector<64x1xf32> to vector<64x64xf32>
    %308 = arith.subf %304, %307 : vector<64x64xf32>
    %309 = math.exp %308 : vector<64x64xf32>
    %cst_90 = arith.constant dense<0.000000e+00> : vector<64xf32>
    %310 = vector.multi_reduction <add>, %309, %cst_90 [1] : vector<64x64xf32> to vector<64xf32>
    %311 = vector.shape_cast %310 : vector<64xf32> to vector<64x1xf32>
    %312 = arith.truncf %309 : vector<64x64xf32> to vector<64x64xbf16>
    %cst_91 = arith.constant dense<0.000000e+00> : vector<64x16xf32>
    %313 = tpu.matmul %312, %303, %cst_91 {dimension_numbers = #tpu.dot_dimension_numbers<[1], [0], [0], [1], [0, 0, 1, 1], [], []>} : vector<64x64xbf16>, vector<64x16xbf16>, vector<64x16xf32> -> vector<64x16xf32>
    %314 = tpu.reciprocal %311 {approx = true} : vector<64x1xf32> -> vector<64x1xf32>
    %315 = vector.broadcast %314 : vector<64x1xf32> to vector<64x16xf32>
    %316 = arith.mulf %313, %315 : vector<64x16xf32>
    %317 = arith.truncf %316 : vector<64x16xf32> to vector<64x16xbf16>
    %c64_92 = arith.constant 64 : index
    %c112_93 = arith.constant 112 : index
    %318 = vector.load %arg6[%c64_92, %c112_93] : memref<128x128xbf16, #tpu.memory_space<vmem>>, vector<64x16xbf16>
    tpu.vector_store %arg6[%c64_92, %c112_93], %317 {strides = array<i32>} : memref<128x128xbf16, #tpu.memory_space<vmem>>, vector<64x16xbf16>,
    %c0_94 = arith.constant 0 : index
    %c0_95 = arith.constant 0 : index
    %319 = vector.load %arg6[%c0_94, %c0_95] : memref<128x128xbf16, #tpu.memory_space<vmem>>, vector<128x128xbf16>
    %c0_96 = arith.constant 0 : index
    %c0_97 = arith.constant 0 : index
    %320 = vector.load %arg3[%c0_96, %c0_97] : memref<128x128xbf16, #tpu.memory_space<vmem>>, vector<128x128xbf16>
    %cst_98 = arith.constant dense<0.000000e+00> : vector<128x128xf32>
    %321 = tpu.matmul %319, %320, %cst_98 {dimension_numbers = #tpu.dot_dimension_numbers<[1], [0], [0], [1], [0, 0, 1, 1], [], []>} : vector<128x128xbf16>, vector<128x128xbf16>, vector<128x128xf32> -> vector<128x128xf32>
    %c0_99 = arith.constant 0 : index
    %c0_100 = arith.constant 0 : index
    %322 = vector.load %arg4[%c0_99, %c0_100] : memref<1x128xf32, #tpu.memory_space<vmem>>, vector<1x128xf32>
    %323 = vector.broadcast %322 : vector<1x128xf32> to vector<128x128xf32>
    %324 = arith.addf %321, %323 : vector<128x128xf32>
    %c0_101 = arith.constant 0 : index
    %c0_102 = arith.constant 0 : index
    %325 = vector.load %arg5[%c0_101, %c0_102] : memref<128x128xf32, #tpu.memory_space<vmem>>, vector<128x128xf32>
    tpu.vector_store %arg5[%c0_101, %c0_102], %324 {strides = array<i32>} : memref<128x128xf32, #tpu.memory_space<vmem>>, vector<128x128xf32>,
    return
  }
}

</mosaic_0001>

<bundles_post_ra>
// kernel: tpu_custom_call.1
= control target key start
LH: loop header
LB: loop body
LE: loop exit
PB: predicated region body
PF: predicated region fallthrough
CT: control target
= control target key end

     0   :  { %10 = vsyncpa [#allocation4], 0  ;;  %s10268_s0 = inlined_call_operand.hbm [shape: bf16[128,128], index: 0, kind: input, shape index: {}]   ;;  %s10269_s1 = inlined_call_operand.hbm [shape: bf16[128,384], index: 1, kind: input, shape index: {}]   ;;  %s10270_s2 = inlined_call_operand.vmem [shape: f32[1,384], index: 2, kind: input, shape index: {}]   ;;  %s10271_s3 = inlined_call_operand.hbm [shape: bf16[128,128], index: 3, kind: input, shape index: {}]   ;;  %s10272_s4 = inlined_call_operand.vmem [shape: f32[1,128], index: 4, kind: input, shape index: {}]   ;;  %s10273_s5 = inlined_call_operand.hbm [shape: f32[128,128], index: 5, kind: output, shape index: {}]  }
   0x1   :  { %11 = vsyncpa [#allocation7], 0 }
   0x2   :  { %12 = vsyncpa [#allocation5], 0  ;;  %s7437_s18 = smov [#allocation6]   ;;  %s7343_s22 = scalar_lea.hbm %s10269_s1, 3072 }
   0x3   :  { %s30_s19 = sshll.u32 %s7437_s18, 4  ;;  %p7344_p0 = scmp.ne.s32.totalorder %s10269_s1, %s7343_s22  ;;  %s31_s19 = int_to_ptr.vmem [resolvable:$true] %s30_s19 }
   0x4   :  { %p7347_p1 = scmp.lt.u32.totalorder %s7343_s22, %s10269_s1 }
   0x6   :  { %p7349_p2 = pnand %p7347_p1, %p7344_p0 }
   0x8   :  { %7352 = shalt.err (!%p7349_p2)
}
   0x9   :  { %s7353_s27 = scalar_lea.vmem %s31_s19, 3072  ;;  %p7358_p4 = scmp.lt.s32.totalorder %s31_s19, %s31_s19 }
   0xa   :  { %p7354_p3 = scmp.ne.s32.totalorder %s31_s19, %s7353_s27  ;;  %p7359_p5 = scmp.lt.s32.totalorder %s7353_s27, %s7353_s27 }
   0xc   :  { %p7360_p6 = por %p7359_p5, %p7358_p4 }
   0xe   :  { %p7361_p7 = pnand %p7360_p6, %p7354_p3 }
  0x10   :  { %7364 = shalt.err (!%p7361_p7)
}
  0x11   :  { %s7438_s28 = smov 192   ;;  %s7439_s29 = smov 12  }
  0x12   :  { %36 = dma.hbm_to_vmem [thread:$0]  %s10269_s1, 3072, %s31_s19, [#allocation7], %s7438_s28, %s7438_s28, %s7439_s29  }
  0x13   :  { %s7440_s7 = smov [#allocation3]   ;;  %s7365_s11 = scalar_lea.hbm %s10268_s0, 1024 }
  0x14   :  { %s18_s8 = sshll.u32 %s7440_s7, 4  ;;  %p7366_p8 = scmp.ne.s32.totalorder %s10268_s0, %s7365_s11  ;;  %s19_s8 = int_to_ptr.vmem [resolvable:$true] %s18_s8 }
  0x15   :  { %p7369_p9 = scmp.lt.u32.totalorder %s7365_s11, %s10268_s0 }
  0x17   :  { %p7371_p10 = pnand %p7369_p9, %p7366_p8 }
  0x19   :  { %7374 = shalt.err (!%p7371_p10)
}
  0x1a   :  { %s7375_s16 = scalar_lea.vmem %s19_s8, 1024  ;;  %p7380_p12 = scmp.lt.s32.totalorder %s19_s8, %s19_s8 }
  0x1b   :  { %p7376_p11 = scmp.ne.s32.totalorder %s19_s8, %s7375_s16  ;;  %p7381_p13 = scmp.lt.s32.totalorder %s7375_s16, %s7375_s16 }
  0x1d   :  { %p7382_p0 = por %p7381_p13, %p7380_p12 }
  0x1f   :  { %p7383_p1 = pnand %p7382_p0, %p7376_p11 }
  0x21   :  { %7386 = shalt.err (!%p7383_p1)
}
  0x22   :  { %s7441_s1 = smov 64   ;;  %s7442_s17 = smov 4  }
  0x23   :  { %24 = dma.hbm_to_vmem [thread:$0]  %s10268_s0, 1024, %s19_s8, [#allocation4], %s7441_s1, %s7441_s1, %s7442_s17  }
  0x24   :  { %s7443_s20 = smov [#allocation8]   ;;  %s7387_s24 = scalar_lea.hbm %s10271_s3, 1024 }
  0x25   :  { %s44_s21 = sshll.u32 %s7443_s20, 4  ;;  %p7388_p2 = scmp.ne.s32.totalorder %s10271_s3, %s7387_s24  ;;  %s45_s21 = int_to_ptr.vmem [resolvable:$true] %s44_s21 }
  0x26   :  { %p7391_p3 = scmp.lt.u32.totalorder %s7387_s24, %s10271_s3 }
  0x28   :  { %p7393_p4 = pnand %p7391_p3, %p7388_p2 }
  0x2a   :  { %7396 = shalt.err (!%p7393_p4)
}
  0x2b   :  { %s7397_s29 = scalar_lea.vmem %s45_s21, 1024  ;;  %p7402_p6 = scmp.lt.s32.totalorder %s45_s21, %s45_s21 }
  0x2c   :  { %p7398_p5 = scmp.ne.s32.totalorder %s45_s21, %s7397_s29  ;;  %p7403_p7 = scmp.lt.s32.totalorder %s7397_s29, %s7397_s29 }
  0x2e   :  { %p7404_p8 = por %p7403_p7, %p7402_p6 }
  0x30   :  { %p7405_p9 = pnand %p7404_p8, %p7398_p5 }
  0x32   :  { %7408 = shalt.err (!%p7405_p9)
}
  0x33   :  { %50 = dma.hbm_to_vmem [thread:$0]  %s10271_s3, 1024, %s45_s21, [#allocation7], %s7441_s1, %s7441_s1, %s7442_s17  }
  0x34   :  { %7431 = dma.done.wait [#allocation4], 1024  }
  0x35   :  { %7432 = vsyncadd [#allocation4], 4294966272 }
  0x36   :  { %7433 = dma.done.wait [#allocation7], 4096  }
  0x37   :  { %7434 = vsyncadd [#allocation7], 4294963200  ;;  %v7444_v0 = vmov 0   ;;  %v6783_v1 = vld [vmem:[#allocation6 + $0x4] ss:$12 sps:$4 sm:$0xff]   ;;  %v6809_v22 = vld [vmem:[#allocation3 + $0x8] sm:$0xff]   ;;  %v113_v33 = vlaneseq }
  0x38   :  { %336 = vmatprep.mubr.bf16.mxu0 %v7444_v0  ;;  %376 = vmatprep.mubr.bf16.mxu1 %v7444_v0  ;;  %v6785_v2 = vld [vmem:[#allocation6] ss:$12 sps:$4 sm:$0xff]   ;;  %v6786_v3 = vld [vmem:[#allocation6 + $0x1c] ss:$12 sps:$4 sm:$0xff]   ;;  %v6788_v4 = vld [vmem:[#allocation6 + $0x18] ss:$12 sps:$4 sm:$0xff]  }
  0x39   :  { %304 = vmatprep.subr.bf16.mxu0 %v6783_v1  ;;  %6686 = vmatprep.subr.bf16.mxu1 %v6783_v1  ;;  %v6789_v5 = vld [vmem:[#allocation6 + $0x34] ss:$12 sps:$4 sm:$0xff]   ;;  %v6791_v6 = vld [vmem:[#allocation6 + $0x30] ss:$12 sps:$4 sm:$0xff]   ;;  %v6792_v7 = vld [vmem:[#allocation6 + $0x4c] ss:$12 sps:$4 sm:$0xff]  }
  0x3a   :  { %305 = vmatpush1.bf16.msra.mxu0 %v6785_v2  ;;  %6694 = vmatpush1.bf16.msra.mxu1 %v6785_v2  ;;  %v6794_v8 = vld [vmem:[#allocation6 + $0x48] ss:$12 sps:$4 sm:$0xff]   ;;  %v6795_v9 = vld [vmem:[#allocation6 + $0x64] ss:$12 sps:$4 sm:$0xff]   ;;  %v6797_v10 = vld [vmem:[#allocation6 + $0x60] ss:$12 sps:$4 sm:$0xff]  }
  0x3b   :  { %306 = vmatprep.subr.bf16.mxu0 %v6786_v3  ;;  %6687 = vmatprep.subr.bf16.mxu1 %v6786_v3  ;;  %v6798_v11 = vld [vmem:[#allocation6 + $0x7c] ss:$12 sps:$4 sm:$0xff]   ;;  %v6800_v12 = vld [vmem:[#allocation6 + $0x78] ss:$12 sps:$4 sm:$0xff]   ;;  %v6801_v13 = vld [vmem:[#allocation6 + $0x94] ss:$12 sps:$4 sm:$0xff]  }
  0x3c   :  { %v6803_v14 = vld [vmem:[#allocation6 + $0x90] ss:$12 sps:$4 sm:$0xff]   ;;  %v6804_v15 = vld [vmem:[#allocation6 + $0xac] ss:$12 sps:$4 sm:$0xff]   ;;  %v6806_v16 = vld [vmem:[#allocation6 + $0xa8] ss:$12 sps:$4 sm:$0xff]  }
  0x3d   :  { %v6815_v17 = vld [vmem:[#allocation6 + $0x8] ss:$12 sps:$4 sm:$0xff]   ;;  %v6807_v18 = vld [vmem:[#allocation3] sm:$0xff]   ;;  %v6818_v24 = vld [vmem:[#allocation6 + $0x50] ss:$12 sps:$4 sm:$0xff]   ;;  %v7532_v34 = vshrl.u32 %v113_v33, 7 }
  0x3e   :  { %307 = vmatpush1.bf16.msra.mxu0 %v6788_v4  ;;  %6695 = vmatpush1.bf16.msra.mxu1 %v6788_v4  ;;  %v6808_v19 = vld [vmem:[#allocation3 + $0x20] sm:$0xff]   ;;  %v6810_v23 = vld [vmem:[#allocation3 + $0x28] sm:$0xff]   ;;  %v6811_v26 = vld [vmem:[#allocation3 + $0x10] sm:$0xff]   ;;  %vm538_vm0 = vcmask 130048   ;;  %vm628_vm1 = vcmask 523264   ;;  %s7446_s7 = smov 96  }
  0x3f   :  { %308 = vmatprep.subr.bf16.mxu0 %v6789_v5  ;;  %6688 = vmatprep.subr.bf16.mxu1 %v6789_v5  ;;  %v6816_v20 = vld [vmem:[#allocation6 + $0x20] ss:$12 sps:$4 sm:$0xff]   ;;  %v6817_v21 = vld [vmem:[#allocation6 + $0x38] ss:$12 sps:$4 sm:$0xff]   ;;  %v6819_v25 = vld [vmem:[#allocation6 + $0x68] ss:$12 sps:$4 sm:$0xff]  }
  0x40   :  { %v6812_v27 = vld [vmem:[#allocation3 + $0x30] sm:$0xff]   ;;  %v6820_v28 = vld [vmem:[#allocation6 + $0x80] ss:$12 sps:$4 sm:$0xff]   ;;  %v6821_v29 = vld [vmem:[#allocation6 + $0x98] ss:$12 sps:$4 sm:$0xff]   ;;  %v115_v35 = vsub.s32 0, %v7532_v34 }
  0x41   :  { %v6813_v30 = vld [vmem:[#allocation3 + $0x18] sm:$0xff]   ;;  %v7538_v36 = vld [vmem:[%s10270_s2] sm:$0x7]  ;;  %v119_v37 = vsub.s32 1, %v7532_v34  ;;  %s7445_s2 = smov 112   ;;  %s7447_s8 = smov 80  }
  0x42   :  { %309 = vmatpush1.bf16.msra.mxu0 %v6791_v6  ;;  %6696 = vmatpush1.bf16.msra.mxu1 %v6791_v6  ;;  %v6814_v31 = vld [vmem:[#allocation3 + $0x38] sm:$0xff]   ;;  %v7542_v38 = vrot.slane %v7538_v36, %v115_v35  ;;  %s7448_s9 = smov 48   ;;  %s7449_s10 = smov 32   ;;  %vm1390_vm2 = vcmask 261248   ;;  %vm2023_vm3 = vcmask 392448   ;;  %vm2644_vm4 = vcmask 523648  }
  0x43   :  { %310 = vmatprep.subr.bf16.mxu0 %v6792_v7  ;;  %6689 = vmatprep.subr.bf16.mxu1 %v6792_v7  ;;  %v6822_v32 = vld [vmem:[#allocation6 + $0xb0] ss:$12 sps:$4 sm:$0xff]   ;;  %v7545_v41 = vrot.slane %v7538_v36, %v119_v37  ;;  %s7450_s11 = smov 16   ;;  %vm3265_vm5 = vcmask 654848   ;;  %vm3886_vm6 = vcmask 786048   ;;  %vm4507_vm7 = vcmask 917248  }
  0x44   :  { %vm5128_vm8 = vcmask 1048448  }
  0x46   :  { %311 = vmatpush1.bf16.msra.mxu0 %v6794_v8  ;;  %6697 = vmatpush1.bf16.msra.mxu1 %v6794_v8 }
  0x47   :  { %312 = vmatprep.subr.bf16.mxu0 %v6795_v9  ;;  %6690 = vmatprep.subr.bf16.mxu1 %v6795_v9 }
  0x4a   :  { %313 = vmatpush1.bf16.msra.mxu0 %v6797_v10  ;;  %6698 = vmatpush1.bf16.msra.mxu1 %v6797_v10 }
  0x4b   :  { %314 = vmatprep.subr.bf16.mxu0 %v6798_v11  ;;  %6691 = vmatprep.subr.bf16.mxu1 %v6798_v11 }
  0x4e   :  { %315 = vmatpush1.bf16.msra.mxu0 %v6800_v12  ;;  %6699 = vmatpush1.bf16.msra.mxu1 %v6800_v12 }
  0x4f   :  { %316 = vmatprep.subr.bf16.mxu0 %v6801_v13  ;;  %6692 = vmatprep.subr.bf16.mxu1 %v6801_v13 }
  0x52   :  { %317 = vmatpush1.bf16.msra.mxu0 %v6803_v14  ;;  %6700 = vmatpush1.bf16.msra.mxu1 %v6803_v14 }
  0x53   :  { %318 = vmatprep.subr.bf16.mxu0 %v6804_v15  ;;  %6693 = vmatprep.subr.bf16.mxu1 %v6804_v15 }
  0x56   :  { %319 = vmatpush1.bf16.msra.mxu0 %v6806_v16  ;;  %6701 = vmatpush1.bf16.msra.mxu1 %v6806_v16 }
  0x57   :  { %6110 = vmatprep.subr.bf16.mxu1 %v6815_v17 }
  0x59   :  { %337 = vmatmul.mubr.bf16.vlgmr.msra.gmra.mrb[0].mxu0 %v6807_v18  ;;  %377 = vmatmul.mubr.bf16.vlgmr.msra.gmra.mrb[0].mxu1 %v6808_v19 }
  0x5a   :  { %346 = vmatprep.mubr.bf16.mxu0 %v7444_v0  ;;  %386 = vmatprep.mubr.bf16.mxu1 %v7444_v0 }
  0x5b   :  { %6111 = vmatpush3.bf16.msra.mxu1 %v6815_v17 }
  0x5c   :  { %6112 = vmatprep.subr.bf16.mxu1 %v6816_v20 }
  0x5f   :  { %6113 = vmatpush3.bf16.msra.mxu1 %v6816_v20 }
  0x60   :  { %6114 = vmatprep.subr.bf16.mxu1 %v6817_v21 }
  0x61   :  { %347 = vmatmul.mubr.bf16.gmra.mrb[4].mxu0 %v6809_v22  ;;  %387 = vmatmul.mubr.bf16.gmra.mrb[4].mxu1 %v6810_v23 }
  0x62   :  { %356 = vmatprep.mubr.bf16.mxu0 %v7444_v0  ;;  %396 = vmatprep.mubr.bf16.mxu1 %v7444_v0 }
  0x63   :  { %6115 = vmatpush3.bf16.msra.mxu1 %v6817_v21 }
  0x64   :  { %6116 = vmatprep.subr.bf16.mxu1 %v6818_v24 }
  0x67   :  { %6117 = vmatpush3.bf16.msra.mxu1 %v6818_v24 }
  0x68   :  { %6118 = vmatprep.subr.bf16.mxu1 %v6819_v25 }
  0x69   :  { %357 = vmatmul.mubr.bf16.gmra.mrb[8].mxu0 %v6811_v26  ;;  %397 = vmatmul.mubr.bf16.gmra.mrb[8].mxu1 %v6812_v27 }
  0x6a   :  { %366 = vmatprep.mubr.bf16.mxu0 %v7444_v0  ;;  %406 = vmatprep.mubr.bf16.mxu1 %v7444_v0 }
  0x6b   :  { %6119 = vmatpush3.bf16.msra.mxu1 %v6819_v25 }
  0x6c   :  { %6120 = vmatprep.subr.bf16.mxu1 %v6820_v28 }
  0x6f   :  { %6121 = vmatpush3.bf16.msra.mxu1 %v6820_v28 }
  0x70   :  { %6122 = vmatprep.subr.bf16.mxu1 %v6821_v29 }
  0x71   :  { %367 = vmatmul.mubr.bf16.gmra.mrb[12].mxu0 %v6813_v30  ;;  %407 = vmatmul.mubr.bf16.gmra.mrb[12].mxu1 %v6814_v31 }
  0x72   :  { %6126 = vmatprep.mubr.bf16.mxu1 %v6807_v18 }
  0x73   :  { %6123 = vmatpush3.bf16.msra.mxu1 %v6821_v29 }
  0x74   :  { %6124 = vmatprep.subr.bf16.mxu1 %v6822_v32 }
  0x77   :  { %6125 = vmatpush3.bf16.msra.mxu1 %v6822_v32 }
  0x7a   :  { %6127 = vmatmul.mubr.bf16.vlgmr.msra.gmra.mrb[16].mxu1 %v6809_v22 }
  0x7b   :  { %6130 = vmatprep.mubr.bf16.mxu1 %v6811_v26 }
  0x82   :  { %6131 = vmatmul.mubr.bf16.gmra.mrb[20].mxu1 %v6813_v30 }
  0x83   :  { %6134 = vmatprep.mubr.bf16.mxu1 %v6808_v19 }
  0x8a   :  { %6135 = vmatmul.mubr.bf16.gmra.mrb[24].mxu1 %v6810_v23 }
  0x8b   :  { %6138 = vmatprep.mubr.bf16.mxu1 %v6812_v27 }
  0x92   :  { %6139 = vmatmul.mubr.bf16.gmra.mrb[28].mxu1 %v6814_v31 }
 0x12c   :  { %v338_v39 = vpop.f32.mrb[0].mxu0  ;;  %v378_v40 = vpop.f32.mrb[0].mxu1 }
 0x12d   :  { %v379_v42 = vadd.f32 %v378_v40, %v7542_v38  ;;  %v340_v43 = vpop.f32.mrb[1].mxu0  ;;  %v380_v44 = vpop.f32.mrb[1].mxu1  ;;  %v339_v48 = vadd.f32 %v338_v39, %v7542_v38 }
 0x12e   :  { %v381_v45 = vadd.f32 %v380_v44, %v7545_v41  ;;  %v342_v46 = vpop.f32.mrb[2].mxu0  ;;  %v382_v47 = vpop.f32.mrb[2].mxu1  ;;  %v341_v53 = vadd.f32 %v340_v43, %v7545_v41 }
 0x12f   :  { %v343_v49 = vadd.f32 %v342_v46, %v7542_v38  ;;  %v383_v50 = vadd.f32 %v382_v47, %v7542_v38  ;;  %v344_v51 = vpop.f32.mrb[3].mxu0  ;;  %v384_v52 = vpop.f32.mrb[3].mxu1 }
 0x130   :  { %v345_v54 = vadd.f32 %v344_v51, %v7545_v41  ;;  %v385_v55 = vadd.f32 %v384_v52, %v7545_v41 }
 0x131   :  { %v7555_v56 = vpack.c.bf16 %v343_v49, %v339_v48  ;;  %v7557_v57 = vpack.c.bf16 %v383_v50, %v379_v42 }
 0x132   :  { %v7559_v58 = vpack.c.bf16 %v345_v54, %v341_v53  ;;  %v7561_v59 = vpack.c.bf16 %v385_v55, %v381_v45 }
 0x133   :  { %6150 = vmatprep.mubr.msk.bf16.mxu1 %vm538_vm0, %v7555_v56  ;;  %6182 = vmatprep.mubr.msk.bf16.mxu0 %vm538_vm0, %v7557_v57 }
 0x134   :  { %10387 = vst [vmem:[#allocation13_spill] sm:$0xff] %v7561_v59  ;;  %v348_v60 = vpop.f32.mrb[4].mxu0  ;;  %v388_v61 = vpop.f32.mrb[4].mxu1  ;;  %6706 = vmatprep.subr.msk.bf16.mxu0 %vm538_vm0, %v7561_v59  ;;  %1088 = vrot.lane.b32.xlu0 %v7559_v58, %s7445_s2  ;;  %v552_v62 = vsel %vm538_vm0, %v7559_v58, 0  ;;  %v819_v63 = vsel %vm538_vm0, %v7561_v59, 0 }
 0x135   :  { %v389_v0 = vadd.f32 %v388_v61, %v7542_v38  ;;  %6702 = vmatprep.subr.msk.bf16.mxu1 %vm538_vm0, %v7559_v58  ;;  %v350_v1 = vpop.f32.mrb[5].mxu0  ;;  %v390_v2 = vpop.f32.mrb[5].mxu1  ;;  %6175 = vmatpush3.bf16.xpose.msra.mxu0 %v819_v63  ;;  %v349_v6 = vadd.f32 %v348_v60, %v7542_v38 }
 0x136   :  { %v391_v3 = vadd.f32 %v390_v2, %v7545_v41  ;;  %6143 = vmatpush3.bf16.xpose.msra.mxu1 %v552_v62  ;;  %v352_v4 = vpop.f32.mrb[6].mxu0  ;;  %v392_v5 = vpop.f32.mrb[6].mxu1  ;;  %v351_v11 = vadd.f32 %v350_v1, %v7545_v41 }
 0x137   :  { %v353_v7 = vadd.f32 %v352_v4, %v7542_v38  ;;  %v393_v8 = vadd.f32 %v392_v5, %v7542_v38  ;;  %v354_v9 = vpop.f32.mrb[7].mxu0  ;;  %v394_v10 = vpop.f32.mrb[7].mxu1 }
 0x138   :  { %v355_v12 = vadd.f32 %v354_v9, %v7545_v41  ;;  %v395_v13 = vadd.f32 %v394_v10, %v7545_v41 }
 0x139   :  { %v7585_v14 = vpack.c.bf16 %v353_v7, %v349_v6  ;;  %v7587_v15 = vpack.c.bf16 %v393_v8, %v389_v0  ;;  %v123_v6 = vsub.s32 2, %v7532_v34 }
 0x13a   :  { %v7589_v16 = vpack.c.bf16 %v355_v12, %v351_v11  ;;  %v7591_v17 = vpack.c.bf16 %v395_v13, %v391_v3 }
 0x13b   :  { %v124_v9 = vrot.slane %v7538_v36, %v123_v6 }
 0x13c   :  { %v358_v18 = vpop.f32.mrb[8].mxu0  ;;  %v398_v19 = vpop.f32.mrb[8].mxu1  ;;  %6707 = vmatprep.subr.msk.bf16.mxu0 %vm538_vm0, %v7591_v17  ;;  %1090 = vrot.lane.b32.xlu0 %v7589_v16, %s7445_s2  ;;  %v555_v20 = vsel %vm538_vm0, %v7589_v16, 0  ;;  %v822_v21 = vsel %vm538_vm0, %v7591_v17, 0 }
 0x13d   :  { %v399_v22 = vadd.f32 %v398_v19, %v7542_v38  ;;  %6703 = vmatprep.subr.msk.bf16.mxu1 %vm538_vm0, %v7589_v16  ;;  %v360_v23 = vpop.f32.mrb[9].mxu0  ;;  %v400_v24 = vpop.f32.mrb[9].mxu1  ;;  %6177 = vmatpush3.bf16.xpose.msra.mxu0 %v822_v21  ;;  %v359_v28 = vadd.f32 %v358_v18, %v7542_v38 }
 0x13e   :  { %v401_v25 = vadd.f32 %v400_v24, %v7545_v41  ;;  %6145 = vmatpush3.bf16.xpose.msra.mxu1 %v555_v20  ;;  %v362_v26 = vpop.f32.mrb[10].mxu0  ;;  %v402_v27 = vpop.f32.mrb[10].mxu1  ;;  %v361_v33 = vadd.f32 %v360_v23, %v7545_v41 }
 0x13f   :  { %v363_v29 = vadd.f32 %v362_v26, %v7542_v38  ;;  %v403_v30 = vadd.f32 %v402_v27, %v7542_v38  ;;  %v364_v31 = vpop.f32.mrb[11].mxu0  ;;  %v404_v32 = vpop.f32.mrb[11].mxu1 }
 0x140   :  { %v365_v35 = vadd.f32 %v364_v31, %v7545_v41  ;;  %v405_v37 = vadd.f32 %v404_v32, %v7545_v41  ;;  %1076 = vrot.lane.b32.xlu0 %v7555_v56, %s7445_s2 }
 0x141   :  { %v7613_v39 = vpack.c.bf16 %v363_v29, %v359_v28  ;;  %v7615_v40 = vpack.c.bf16 %v403_v30, %v399_v22 }
 0x142   :  { %v7617_v42 = vpack.c.bf16 %v365_v35, %v361_v33  ;;  %v7619_v43 = vpack.c.bf16 %v405_v37, %v401_v25 }
 0x144   :  { %10388 = vst [vmem:[#allocation14_spill] sm:$0xff] %v7619_v43  ;;  %v368_v44 = vpop.f32.mrb[12].mxu0  ;;  %v408_v45 = vpop.f32.mrb[12].mxu1  ;;  %6708 = vmatprep.subr.msk.bf16.mxu0 %vm538_vm0, %v7619_v43  ;;  %1092 = vrot.lane.b32.xlu1 %v7617_v42, %s7445_s2  ;;  %v558_v46 = vsel %vm538_vm0, %v7617_v42, 0  ;;  %v825_v47 = vsel %vm538_vm0, %v7619_v43, 0 }
 0x145   :  { %v409_v48 = vadd.f32 %v408_v45, %v7542_v38  ;;  %6704 = vmatprep.subr.msk.bf16.mxu1 %vm538_vm0, %v7617_v42  ;;  %1080 = vrot.lane.b32.xlu0 %v7613_v39, %s7445_s2  ;;  %v370_v49 = vpop.f32.mrb[13].mxu0  ;;  %v410_v50 = vpop.f32.mrb[13].mxu1  ;;  %v369_v54 = vadd.f32 %v368_v44, %v7542_v38 }
 0x146   :  { %v411_v51 = vadd.f32 %v410_v50, %v7545_v41  ;;  %6147 = vmatpush3.bf16.xpose.msra.mxu1 %v558_v46  ;;  %6179 = vmatpush3.bf16.xpose.msra.mxu0 %v825_v47  ;;  %v372_v52 = vpop.f32.mrb[14].mxu0  ;;  %v412_v53 = vpop.f32.mrb[14].mxu1  ;;  %v371_v63 = vadd.f32 %v370_v49, %v7545_v41 }
 0x147   :  { %v373_v55 = vadd.f32 %v372_v52, %v7542_v38  ;;  %v413_v60 = vadd.f32 %v412_v53, %v7542_v38  ;;  %v374_v61 = vpop.f32.mrb[15].mxu0  ;;  %v414_v62 = vpop.f32.mrb[15].mxu1 }
 0x148   :  { %v375_v0 = vadd.f32 %v374_v61, %v7545_v41  ;;  %v415_v1 = vadd.f32 %v414_v62, %v7545_v41 }
 0x149   :  { %v7641_v2 = vpack.c.bf16 %v373_v55, %v369_v54  ;;  %v7643_v3 = vpack.c.bf16 %v413_v60, %v409_v48 }
 0x14a   :  { %v7645_v4 = vpack.c.bf16 %v375_v0, %v371_v63  ;;  %v7647_v5 = vpack.c.bf16 %v415_v1, %v411_v51 }
 0x14c   :  { %6709 = vmatprep.subr.msk.bf16.mxu0 %vm538_vm0, %v7647_v5  ;;  %1094 = vrot.lane.b32.xlu1 %v7645_v4, %s7445_s2  ;;  %v561_v38 = vsel %vm538_vm0, %v7645_v4, 0  ;;  %v828_v41 = vsel %vm538_vm0, %v7647_v5, 0 }
 0x14d   :  { %6705 = vmatprep.subr.msk.bf16.mxu1 %vm538_vm0, %v7645_v4  ;;  %v6128_v7 = vpop.f32.mrb[16].mxu1 }
 0x14e   :  { %6149 = vmatpush3.bf16.xpose.msra.mxu1 %v561_v38  ;;  %6181 = vmatpush3.bf16.xpose.msra.mxu0 %v828_v41  ;;  %v451_v8 = vpop.f32.mrb[17].mxu1  ;;  %v460_v12 = vadd.f32 %v6128_v7, %v124_v9 }
 0x14f   :  { %v6129_v10 = vpop.f32.mrb[18].mxu1  ;;  %v452_v13 = vadd.f32 %v451_v8, %v124_v9 }
 0x150   :  { %1078 = vrot.lane.b32.xlu1 %v7585_v14, %s7445_s2  ;;  %v454_v11 = vpop.f32.mrb[19].mxu1  ;;  %v463_v18 = vadd.f32 %v6129_v10, %v124_v9 }
 0x151   :  { %v455_v19 = vadd.f32 %v454_v11, %v124_v9 }
 0x152   :  { %v7669_v34 = vpack.c.bf16 %v463_v18, %v460_v12 }
 0x153   :  { %v7671_v20 = vpack.c.bf16 %v455_v19, %v452_v13 }
 0x154   :  { %1082 = vrot.lane.b32.xlu1 %v7641_v2, %s7445_s2 }
 0x155   :  { %6183 = vmatmul.mubr.msk.bf16.vlgmr.msra.gmra.mrb[16].mxu0 %vm538_vm0, %v7587_v15  ;;  %6151 = vmatmul.mubr.msk.bf16.vlgmr.msra.gmra.mrb[32].mxu1 %vm538_vm0, %v7585_v14  ;;  %v6132_v36 = vpop.f32.mrb[20].mxu1 }
 0x156   :  { %6154 = vmatprep.mubr.msk.bf16.mxu1 %vm538_vm0, %v7613_v39  ;;  %6186 = vmatprep.mubr.msk.bf16.mxu0 %vm538_vm0, %v7615_v40  ;;  %v476_v21 = vadd.f32 %v6132_v36, %v124_v9  ;;  %v467_v22 = vpop.f32.mrb[21].mxu1 }
 0x157   :  { %6158 = vmatprep.subr.bf16.mxu1 %v7671_v20  ;;  %v468_v23 = vadd.f32 %v467_v22, %v124_v9  ;;  %v6133_v24 = vpop.f32.mrb[22].mxu1 }
 0x158   :  { %1265 = vrot.lane.b32.xlu1 %v7671_v20, %s7445_s2  ;;  %6159 = vmatpush3.bf16.msra.mxu1 %v7671_v20  ;;  %v479_v25 = vadd.f32 %v6133_v24, %v124_v9  ;;  %v470_v26 = vpop.f32.mrb[23].mxu1 }
 0x159   :  { %v471_v27 = vadd.f32 %v470_v26, %v124_v9  ;;  %6160 = vmatprep.subr.bf16.mxu1 %v7669_v34 }
 0x15a   :  { %v7682_v28 = vpack.c.bf16 %v479_v25, %v476_v21 }
 0x15b   :  { %v7684_v29 = vpack.c.bf16 %v471_v27, %v468_v23 }
 0x15c   :  { %6161 = vmatpush3.bf16.msra.mxu1 %v7669_v34 }
 0x15d   :  { %6155 = vmatmul.mubr.msk.bf16.gmra.mrb[36].mxu1 %vm538_vm0, %v7641_v2  ;;  %6187 = vmatmul.mubr.msk.bf16.gmra.mrb[20].mxu0 %vm538_vm0, %v7643_v3  ;;  %v6136_v30 = vpop.f32.mrb[24].mxu1 }
 0x15e   :  { %v492_v31 = vadd.f32 %v6136_v30, %v124_v9  ;;  %v483_v32 = vpop.f32.mrb[25].mxu1  ;;  %6162 = vmatprep.subr.bf16.mxu1 %v7684_v29 }
 0x15f   :  { %v484_v33 = vadd.f32 %v483_v32, %v124_v9  ;;  %v6137_v35 = vpop.f32.mrb[26].mxu1 }
 0x160   :  { %v495_v37 = vadd.f32 %v6137_v35, %v124_v9  ;;  %v486_v44 = vpop.f32.mrb[27].mxu1  ;;  %6163 = vmatpush3.bf16.msra.mxu1 %v7684_v29 }
 0x161   :  { %v487_v45 = vadd.f32 %v486_v44, %v124_v9  ;;  %6164 = vmatprep.subr.bf16.mxu1 %v7682_v28 }
 0x162   :  { %v7694_v46 = vpack.c.bf16 %v495_v37, %v492_v31 }
 0x163   :  { %v7696_v47 = vpack.c.bf16 %v487_v45, %v484_v33 }
 0x164   :  { %6165 = vmatpush3.bf16.msra.mxu1 %v7682_v28 }
 0x165   :  { %v6140_v48 = vpop.f32.mrb[28].mxu1  ;;  %6190 = vmatprep.subr.bf16.mxu1 %v7696_v47 }
 0x166   :  { %v508_v49 = vadd.f32 %v6140_v48, %v124_v9  ;;  %v499_v50 = vpop.f32.mrb[29].mxu1 }
 0x167   :  { %v500_v51 = vadd.f32 %v499_v50, %v124_v9  ;;  %v6141_v52 = vpop.f32.mrb[30].mxu1 }
 0x168   :  { %v511_v53 = vadd.f32 %v6141_v52, %v124_v9  ;;  %v502_v54 = vpop.f32.mrb[31].mxu1 }
 0x169   :  { %v503_v55 = vadd.f32 %v502_v54, %v124_v9 }
 0x16a   :  { %v7700_v60 = vpack.c.bf16 %v511_v53, %v508_v49 }
 0x16b   :  { %v7702_v61 = vpack.c.bf16 %v503_v55, %v500_v51 }
 0x1a6   :  { %v1089_v62 = vpop.permute.xlu0 %1088 }
 0x1a7   :  { %6710 = vmatprep.subr.msk.bf16.mxu0 %vm538_vm0, %v1089_v62  ;;  %v1109_v63 = vsel %vm538_vm0, %v1089_v62, 0 }
 0x1a8   :  { %6207 = vmatpush3.bf16.xpose.msra.mxu0 %v1109_v63 }
 0x1ae   :  { %v1091_v0 = vpop.permute.xlu0 %1090 }
 0x1af   :  { %6711 = vmatprep.subr.msk.bf16.mxu0 %vm538_vm0, %v1091_v0  ;;  %v1112_v1 = vsel %vm538_vm0, %v1091_v0, 0 }
 0x1b0   :  { %6209 = vmatpush3.bf16.xpose.msra.mxu0 %v1112_v1 }
 0x1b2   :  { %v1077_v38 = vpop.permute.xlu0 %1076 }
 0x1b3   :  { %6214 = vmatprep.mubr.msk.bf16.mxu0 %vm538_vm0, %v1077_v38 }
 0x1b6   :  { %v1093_v41 = vpop.permute.xlu1 %1092 }
 0x1b7   :  { %6712 = vmatprep.subr.msk.bf16.mxu0 %vm538_vm0, %v1093_v41  ;;  %v1115_v6 = vsel %vm538_vm0, %v1093_v41, 0  ;;  %v1081_v10 = vpop.permute.xlu0 %1080 }
 0x1b8   :  { %6211 = vmatpush3.bf16.xpose.msra.mxu0 %v1115_v6 }
 0x1be   :  { %v1095_v7 = vpop.permute.xlu1 %1094 }
 0x1bf   :  { %6713 = vmatprep.subr.msk.bf16.mxu0 %vm538_vm0, %v1095_v7  ;;  %v1118_v8 = vsel %vm538_vm0, %v1095_v7, 0 }
 0x1c0   :  { %6213 = vmatpush3.bf16.xpose.msra.mxu0 %v1118_v8 }
 0x1c2   :  { %v1079_v9 = vpop.permute.xlu1 %1078 }
 0x1c6   :  { %v1083_v11 = vpop.permute.xlu1 %1082 }
 0x1c7   :  { %6215 = vmatmul.mubr.msk.bf16.vlgmr.msra.gmra.mrb[24].mxu0 %vm538_vm0, %v1079_v9 }
 0x1c8   :  { %6218 = vmatprep.mubr.msk.bf16.mxu0 %vm538_vm0, %v1081_v10 }
 0x1cf   :  { %6219 = vmatmul.mubr.msk.bf16.gmra.mrb[28].mxu0 %vm538_vm0, %v1083_v11 }
 0x228   :  { %v7716_v12 = vpop.f32.mrb[32].mxu1  ;;  %v7718_v13 = vpop.f32.mrb[16].mxu0 }
 0x229   :  { %v7720_v18 = vpop.f32.mrb[33].mxu1  ;;  %v7722_v19 = vpop.f32.mrb[17].mxu0  ;;  %v901_v36 = vsel %vm628_vm1, %v7718_v13, -inf  ;;  %v635_v21 = vsel %vm628_vm1, %v7716_v12, -inf }
 0x22a   :  { %v7728_v22 = vpop.f32.mrb[18].mxu0  ;;  %902 = vmax.xlane.f32.xlu1 %v901_v36  ;;  %636 = vmax.xlane.f32.xlu0 %v635_v21  ;;  %v7730_v23 = vpop.f32.mrb[34].mxu1  ;;  %v895_v26 = vsel %vm628_vm1, %v7722_v19, -inf  ;;  %v629_v27 = vsel %vm628_vm1, %v7720_v18, -inf }
 0x22b   :  { %v7732_v24 = vpop.f32.mrb[35].mxu1  ;;  %v7734_v25 = vpop.f32.mrb[19].mxu0  ;;  %v638_v33 = vsel %vm628_vm1, %v7730_v23, -inf  ;;  %v904_v50 = vsel %vm628_vm1, %v7728_v22, -inf }
 0x22c   :  { %v632_v35 = vsel %vm628_vm1, %v7732_v24, -inf  ;;  %v898_v53 = vsel %vm628_vm1, %v7734_v25, -inf }
 0x22e   :  { %896 = vmax.xlane.f32.xlu1 %v895_v26  ;;  %630 = vmax.xlane.f32.xlu0 %v629_v27 }
 0x230   :  { %v7740_v30 = vpop.f32.mrb[36].mxu1  ;;  %v7742_v31 = vpop.f32.mrb[20].mxu0 }
 0x231   :  { %v7744_v32 = vpop.f32.mrb[37].mxu1  ;;  %v7750_v37 = vpop.f32.mrb[21].mxu0  ;;  %v647_v51 = vsel %vm628_vm1, %v7740_v30, -inf  ;;  %v913_v52 = vsel %vm628_vm1, %v7742_v31, -inf }
 0x232   :  { %639 = vmax.xlane.f32.xlu0 %v638_v33  ;;  %633 = vmax.xlane.f32.xlu1 %v632_v35  ;;  %v7752_v44 = vpop.f32.mrb[38].mxu1  ;;  %v7754_v45 = vpop.f32.mrb[22].mxu0  ;;  %v641_v54 = vsel %vm628_vm1, %v7744_v32, -inf  ;;  %v907_v62 = vsel %vm628_vm1, %v7750_v37, -inf }
 0x233   :  { %v7756_v48 = vpop.f32.mrb[39].mxu1  ;;  %v7758_v49 = vpop.f32.mrb[23].mxu0  ;;  %v650_v55 = vsel %vm628_vm1, %v7752_v44, -inf  ;;  %v916_v63 = vsel %vm628_vm1, %v7754_v45, -inf }
 0x234   :  { %v644_v0 = vsel %vm628_vm1, %v7756_v48, -inf  ;;  %v910_v1 = vsel %vm628_vm1, %v7758_v49, -inf }
 0x236   :  { %905 = vmax.xlane.f32.xlu0 %v904_v50  ;;  %648 = vmax.xlane.f32.xlu1 %v647_v51  ;;  %v7820_v51 = vpop.permute.xlu1 %1265 }
 0x23a   :  { %899 = vmax.xlane.f32.xlu0 %v898_v53  ;;  %914 = vmax.xlane.f32.xlu1 %v913_v52 }
 0x23e   :  { %642 = vmax.xlane.f32.xlu1 %v641_v54  ;;  %651 = vmax.xlane.f32.xlu0 %v650_v55 }
 0x242   :  { %908 = vmax.xlane.f32.xlu1 %v907_v62  ;;  %917 = vmax.xlane.f32.xlu0 %v916_v63 }
 0x246   :  { %645 = vmax.xlane.f32.xlu0 %v644_v0 }
 0x253   :  { %1269 = vrot.lane.b32.xlu1 %v7684_v29, %s7445_s2 }
 0x257   :  { %1271 = vrot.lane.b32.xlu1 %v7682_v28, %s7445_s2 }
 0x25b   :  { %1411 = vrot.lane.b32.xlu1 %v7561_v59, %s7445_s2 }
 0x25c   :  { %1267 = vrot.lane.b32.xlu0 %v7669_v34, %s7445_s2 }
 0x27b   :  { %911 = vmax.xlane.f32.xlu0 %v910_v1 }
 0x29a   :  { %v7788_v38 = vpop.f32.mrb[24].mxu0 }
 0x29b   :  { %v7790_v41 = vpop.f32.mrb[25].mxu0  ;;  %v1191_v6 = vsel %vm628_vm1, %v7788_v38, -inf }
 0x29c   :  { %v7794_v7 = vpop.f32.mrb[26].mxu0  ;;  %1192 = vmax.xlane.f32.xlu1 %v1191_v6  ;;  %v1185_v10 = vsel %vm628_vm1, %v7790_v41, -inf }
 0x29d   :  { %v7796_v8 = vpop.f32.mrb[27].mxu0  ;;  %v1194_v9 = vsel %vm628_vm1, %v7794_v7, -inf }
 0x29e   :  { %1195 = vmax.xlane.f32.xlu0 %v1194_v9  ;;  %v1188_v11 = vsel %vm628_vm1, %v7796_v8, -inf }
 0x2a0   :  { %1186 = vmax.xlane.f32.xlu1 %v1185_v10 }
 0x2a2   :  { %v7804_v36 = vpop.f32.mrb[28].mxu0  ;;  %1189 = vmax.xlane.f32.xlu0 %v1188_v11 }
 0x2a3   :  { %v7806_v21 = vpop.f32.mrb[29].mxu0  ;;  %v1203_v33 = vsel %vm628_vm1, %v7804_v36, -inf }
 0x2a4   :  { %v7808_v26 = vpop.f32.mrb[30].mxu0  ;;  %v1197_v35 = vsel %vm628_vm1, %v7806_v21, -inf }
 0x2a5   :  { %v7810_v27 = vpop.f32.mrb[31].mxu0  ;;  %v1206_v50 = vsel %vm628_vm1, %v7808_v26, -inf }
 0x2a6   :  { %1204 = vmax.xlane.f32.xlu0 %v1203_v33 }
 0x2aa   :  { %1198 = vmax.xlane.f32.xlu0 %v1197_v35 }
 0x2ae   :  { %1207 = vmax.xlane.f32.xlu0 %v1206_v50 }
 0x2b1   :  { %1415 = vrot.lane.b32.xlu1 %v7619_v43, %s7445_s2 }
 0x2b7   :  { %v903_v52 = vpop.xlane.xlu1 %902  ;;  %v637_v53 = vpop.xlane.xlu0 %636 }
 0x2b8   :  { %v655_v54 = vsub.f32 %v7716_v12, %v637_v53  ;;  %v921_v1 = vsub.f32 %v7718_v13, %v903_v52 }
 0x2ba   :  { %v665_v0 = vmul.f32 1.442695, %v655_v54  ;;  %v931_v43 = vmul.f32 1.442695, %v921_v1 }
 0x2bb   :  { %v897_v55 = vpop.xlane.xlu1 %896  ;;  %v631_v62 = vpop.xlane.xlu0 %630 }
 0x2bc   :  { %v653_v63 = vsub.f32 %v7720_v18, %v631_v62  ;;  %6831 = vpow2.f32 %v665_v0  ;;  %v919_v12 = vsub.f32 %v7722_v19, %v897_v55 }
 0x2be   :  { %v661_v6 = vmul.f32 1.442695, %v653_v63 }
 0x2bf   :  { %v640_v9 = vpop.xlane.xlu0 %639  ;;  %v634_v10 = vpop.xlane.xlu1 %633 }
 0x2c0   :  { %v656_v11 = vsub.f32 %v7730_v23, %v640_v9  ;;  %v654_v33 = vsub.f32 %v7732_v24, %v634_v10  ;;  %6833 = vpow2.f32 %v661_v6  ;;  %v927_v23 = vmul.f32 1.442695, %v919_v12 }
 0x2c2   :  { %v667_v35 = vmul.f32 1.442695, %v656_v11  ;;  %v663_v50 = vmul.f32 1.442695, %v654_v33 }
 0x2c3   :  { %v906_v53 = vpop.xlane.xlu0 %905  ;;  %v649_v59 = vpop.xlane.xlu1 %648 }
 0x2c4   :  { %6835 = vpow2.f32 %v667_v35  ;;  %v922_v18 = vsub.f32 %v7728_v22, %v906_v53  ;;  %1413 = vrot.lane.b32.xlu0 %v7591_v17, %s7445_s2  ;;  %v659_v54 = vsub.f32 %v7740_v30, %v649_v59 }
 0x2c5   :  { %6837 = vpow2.f32 %v663_v50 }
 0x2c6   :  { %v933_v13 = vmul.f32 1.442695, %v922_v18  ;;  %6839 = vpow2.f32 %v931_v43  ;;  %v7835_v62 = vpop.eup %6831  ;;  %v673_v63 = vmul.f32 1.442695, %v659_v54 }
 0x2c7   :  { %v900_v24 = vpop.xlane.xlu0 %899  ;;  %v915_v52 = vpop.xlane.xlu1 %914  ;;  %10389 = vst [vmem:[#allocation15_spill] sm:$0xff] %v7835_v62 }
 0x2c8   :  { %6841 = vpow2.f32 %v933_v13  ;;  %v920_v19 = vsub.f32 %v7734_v25, %v900_v24  ;;  %1399 = vrot.lane.b32.xlu0 %v7557_v57, %s7445_s2  ;;  %v925_v43 = vsub.f32 %v7742_v31, %v915_v52  ;;  %v1200_v13 = vsel %vm628_vm1, %v7810_v27, -inf }
 0x2c9   :  { %6843 = vpow2.f32 %v927_v23 }
 0x2ca   :  { %v929_v55 = vmul.f32 1.442695, %v920_v19  ;;  %v7841_v59 = vpop.eup %6833  ;;  %v939_v31 = vmul.f32 1.442695, %v925_v43 }
 0x2cb   :  { %v652_v22 = vpop.xlane.xlu0 %651  ;;  %v643_v0 = vpop.xlane.xlu1 %642  ;;  %10390 = vst [vmem:[#allocation16_spill] sm:$0xff] %v7841_v59 }
 0x2cc   :  { %6845 = vpow2.f32 %v929_v55  ;;  %v660_v1 = vsub.f32 %v7752_v44, %v652_v22  ;;  %1403 = vrot.lane.b32.xlu0 %v7615_v40, %s7445_s2  ;;  %v657_v10 = vsub.f32 %v7744_v32, %v643_v0 }
 0x2cd   :  { %6847 = vpow2.f32 %v673_v63 }
 0x2ce   :  { %v7843_v25 = vpop.eup %6835  ;;  %v675_v30 = vmul.f32 1.442695, %v660_v1  ;;  %v669_v53 = vmul.f32 1.442695, %v657_v10 }
 0x2cf   :  { %10391 = vst [vmem:[#allocation17_spill] sm:$0xff] %v7843_v25  ;;  %v7845_v6 = vpop.eup %6837  ;;  %v702_v9 = vpack.c.bf16 %v7843_v25, %v7835_v62  ;;  %v918_v11 = vpop.xlane.xlu0 %917 }
 0x2d0   :  { %10392 = vst [vmem:[#allocation18_spill] sm:$0xff] %v7845_v6  ;;  %v926_v44 = vsub.f32 %v7754_v45, %v918_v11  ;;  %v701_v33 = vpack.c.bf16 %v7845_v6, %v7841_v59  ;;  %1590 = vrot.lane.b32.xlu0 %v7694_v46, %s7445_s2  ;;  %v7855_v35 = vpop.eup %6839  ;;  %6849 = vpow2.f32 %v675_v30 }
 0x2d1   :  { %10393 = vst [vmem:[#allocation19_spill] sm:$0xff] %v7855_v35  ;;  %6851 = vpow2.f32 %v939_v31 }
 0x2d2   :  { %v7857_v50 = vpop.eup %6841  ;;  %v941_v12 = vmul.f32 1.442695, %v926_v44  ;;  %6166 = vmatprep.mubr.msk.bf16.mxu1 %vm628_vm1, %v701_v33 }
 0x2d3   :  { %10394 = vst [vmem:[#allocation20_spill] sm:$0xff] %v7857_v50  ;;  %v968_v32 = vpack.c.bf16 %v7857_v50, %v7855_v35  ;;  %6167 = vmatmul.mubr.msk.bf16.vlgmr.msra.gmra.mrb[40].mxu1 %vm628_vm1, %v702_v9  ;;  %v646_v45 = vpop.xlane.xlu0 %645  ;;  %v7867_v23 = vpop.eup %6843 }
 0x2d4   :  { %6191 = vmatpush3.bf16.msra.mxu1 %v7696_v47  ;;  %v658_v18 = vsub.f32 %v7756_v48, %v646_v45  ;;  %10395 = vst [vmem:[#allocation21_spill] sm:$0xff] %v7867_v23  ;;  %6853 = vpow2.f32 %v941_v12  ;;  %v909_v9 = vpop.xlane.xlu1 %908 }
 0x2d5   :  { %6192 = vmatprep.subr.bf16.mxu1 %v7694_v46  ;;  %1201 = vmax.xlane.f32.xlu1 %v1200_v13  ;;  %6855 = vpow2.f32 %v669_v53 }
 0x2d6   :  { %v7870_v24 = vpop.eup %6845  ;;  %v671_v52 = vmul.f32 1.442695, %v658_v18 }
 0x2d7   :  { %10396 = vst [vmem:[#allocation22_spill] sm:$0xff] %v7870_v24  ;;  %v967_v54 = vpack.c.bf16 %v7870_v24, %v7867_v23  ;;  %v7876_v48 = vpop.eup %6847  ;;  %v1268_v11 = vpop.permute.xlu0 %1267 }
 0x2d8   :  { %6857 = vpow2.f32 %v671_v52  ;;  %6193 = vmatpush3.bf16.msra.mxu1 %v7694_v46  ;;  %10397 = vst [vmem:[#allocation23_spill] sm:$0xff] %v7876_v48  ;;  %v1270_v10 = vpop.permute.xlu1 %1269 }
 0x2d9   :  { %6194 = vmatprep.subr.bf16.mxu1 %v7702_v61 }
 0x2da   :  { %v7878_v19 = vpop.eup %6849 }
 0x2db   :  { %10398 = vst [vmem:[#allocation24_spill] sm:$0xff] %v7878_v19  ;;  %v704_v55 = vpack.c.bf16 %v7878_v19, %v7876_v48  ;;  %v7884_v22 = vpop.eup %6851 }
 0x2dc   :  { %6195 = vmatpush3.bf16.msra.mxu1 %v7702_v61  ;;  %10399 = vst [vmem:[#allocation25_spill] sm:$0xff] %v7884_v22  ;;  %v1272_v31 = vpop.permute.xlu1 %1271 }
 0x2dd   :  { %6196 = vmatprep.subr.bf16.mxu1 %v7700_v60 }
 0x2de   :  { %v7886_v63 = vpop.eup %6853 }
 0x2df   :  { %10400 = vst [vmem:[#allocation26_spill] sm:$0xff] %v7886_v63  ;;  %v970_v43 = vpack.c.bf16 %v7886_v63, %v7884_v22  ;;  %v7891_v0 = vpop.eup %6855 }
 0x2e0   :  { %6197 = vmatpush3.bf16.msra.mxu1 %v7700_v60  ;;  %10401 = vst [vmem:[#allocation27_spill] sm:$0xff] %v7891_v0  ;;  %v1412_v44 = vpop.permute.xlu1 %1411 }
 0x2e1   :  { %6222 = vmatprep.subr.bf16.mxu1 %v7820_v51 }
 0x2e2   :  { %v7894_v1 = vpop.eup %6857 }
 0x2e3   :  { %10402 = vst [vmem:[#allocation28_spill] sm:$0xff] %v7894_v1  ;;  %v703_v30 = vpack.c.bf16 %v7894_v1, %v7891_v0 }
 0x2e5   :  { %6170 = vmatprep.mubr.msk.bf16.mxu1 %vm628_vm1, %v703_v30 }
 0x2e6   :  { %6171 = vmatmul.mubr.msk.bf16.gmra.mrb[44].mxu1 %vm628_vm1, %v704_v55  ;;  %1417 = vrot.lane.b32.xlu1 %v7647_v5, %s7445_s2 }
 0x2e7   :  { %6198 = vmatprep.mubr.msk.bf16.mxu1 %vm628_vm1, %v967_v54 }
 0x2ea   :  { %1401 = vrot.lane.b32.xlu1 %v7587_v15, %s7445_s2 }
 0x2ee   :  { %6199 = vmatmul.mubr.msk.bf16.vlgmr.msra.gmra.mrb[48].mxu1 %vm628_vm1, %v968_v32  ;;  %1405 = vrot.lane.b32.xlu1 %v7643_v3, %s7445_s2 }
 0x2ef   :  { %6223 = vmatpush3.bf16.msra.mxu1 %v7820_v51  ;;  %v923_v51 = vsub.f32 %v7750_v37, %v909_v9 }
 0x2f0   :  { %6224 = vmatprep.subr.bf16.mxu1 %v1268_v11 }
 0x2f1   :  { %v935_v33 = vmul.f32 1.442695, %v923_v51 }
 0x2f2   :  { %1588 = vrot.lane.b32.xlu1 %v7696_v47, %s7445_s2 }
 0x2f3   :  { %6225 = vmatpush3.bf16.msra.mxu1 %v1268_v11  ;;  %6859 = vpow2.f32 %v935_v33 }
 0x2f4   :  { %6226 = vmatprep.subr.bf16.mxu1 %v1270_v10 }
 0x2f6   :  { %1592 = vrot.lane.b32.xlu1 %v7702_v61, %s7445_s2 }
 0x2f7   :  { %6227 = vmatpush3.bf16.msra.mxu1 %v1270_v10 }
 0x2f8   :  { %6228 = vmatprep.subr.bf16.mxu1 %v1272_v31 }
 0x2fa   :  { %1594 = vrot.lane.b32.xlu1 %v7700_v60, %s7445_s2 }
 0x2fb   :  { %6229 = vmatpush3.bf16.msra.mxu1 %v1272_v31 }
 0x2fc   :  { %6714 = vmatprep.subr.msk.bf16.mxu1 %vm538_vm0, %v1412_v44 }
 0x2fd   :  { %v7920_v45 = vpop.eup %6859 }
 0x2fe   :  { %1725 = vrot.lane.b32.xlu1 %v7559_v58, %s7446_s7  ;;  %10403 = vst [vmem:[#allocation29_spill] sm:$0xff] %v7920_v45 }
 0x308   :  { %v912_v12 = vpop.xlane.xlu0 %911 }
 0x309   :  { %v924_v32 = vsub.f32 %v7758_v49, %v912_v12 }
 0x30b   :  { %v937_v53 = vmul.f32 1.442695, %v924_v32 }
 0x30d   :  { %6861 = vpow2.f32 %v937_v53 }
 0x317   :  { %v7922_v18 = vpop.eup %6861 }
 0x318   :  { %10404 = vst [vmem:[#allocation30_spill] sm:$0xff] %v7922_v18  ;;  %v969_v13 = vpack.c.bf16 %v7922_v18, %v7920_v45 }
 0x31a   :  { %6202 = vmatprep.mubr.msk.bf16.mxu1 %vm628_vm1, %v969_v13 }
 0x31b   :  { %6203 = vmatmul.mubr.msk.bf16.gmra.mrb[52].mxu1 %vm628_vm1, %v970_v43 }
 0x329   :  { %v1193_v52 = vpop.xlane.xlu1 %1192 }
 0x32a   :  { %v1211_v37 = vsub.f32 %v7788_v38, %v1193_v52 }
 0x32b   :  { %v1196_v54 = vpop.xlane.xlu0 %1195 }
 0x32c   :  { %v1221_v55 = vmul.f32 1.442695, %v1211_v37  ;;  %v1212_v49 = vsub.f32 %v7794_v7, %v1196_v54 }
 0x32d   :  { %v1187_v30 = vpop.xlane.xlu1 %1186 }
 0x32e   :  { %v1223_v9 = vmul.f32 1.442695, %v1212_v49  ;;  %v1209_v10 = vsub.f32 %v7790_v41, %v1187_v30  ;;  %6863 = vpow2.f32 %v1221_v55  ;;  %v1432_v55 = vsel %vm538_vm0, %v1412_v44, 0 }
 0x32f   :  { %v1190_v11 = vpop.xlane.xlu0 %1189 }
 0x330   :  { %6865 = vpow2.f32 %v1223_v9  ;;  %v1217_v31 = vmul.f32 1.442695, %v1209_v10  ;;  %v1210_v51 = vsub.f32 %v7796_v8, %v1190_v11 }
 0x331   :  { %v1416_v10 = vpop.permute.xlu1 %1415 }
 0x332   :  { %v1219_v33 = vmul.f32 1.442695, %v1210_v51  ;;  %6867 = vpow2.f32 %v1217_v31  ;;  %v1438_v31 = vsel %vm538_vm0, %v1416_v10, 0 }
 0x333   :  { %v1205_v43 = vpop.xlane.xlu0 %1204 }
 0x334   :  { %6869 = vpow2.f32 %v1219_v33  ;;  %v1215_v38 = vsub.f32 %v7804_v36, %v1205_v43 }
 0x336   :  { %v1229_v53 = vmul.f32 1.442695, %v1215_v38 }
 0x337   :  { %v1199_v12 = vpop.xlane.xlu0 %1198 }
 0x338   :  { %v7933_v32 = vpop.eup %6863  ;;  %6871 = vpow2.f32 %v1229_v53  ;;  %v1213_v44 = vsub.f32 %v7806_v21, %v1199_v12 }
 0x33a   :  { %v7935_v7 = vpop.eup %6865  ;;  %v1225_v51 = vmul.f32 1.442695, %v1213_v44 }
 0x33b   :  { %v1258_v41 = vpack.c.bf16 %v7935_v7, %v7933_v32  ;;  %v1208_v13 = vpop.xlane.xlu0 %1207 }
 0x33c   :  { %v1216_v52 = vsub.f32 %v7808_v26, %v1208_v13  ;;  %v7940_v37 = vpop.eup %6867 }
 0x33e   :  { %v7942_v8 = vpop.eup %6869  ;;  %v1231_v54 = vmul.f32 1.442695, %v1216_v52 }
 0x33f   :  { %v1257_v36 = vpack.c.bf16 %v7942_v8, %v7940_v37  ;;  %v1414_v49 = vpop.permute.xlu0 %1413 }
 0x340   :  { %6873 = vpow2.f32 %v1231_v54  ;;  %v1435_v9 = vsel %vm538_vm0, %v1414_v49, 0 }
 0x341   :  { %6230 = vmatprep.mubr.msk.bf16.mxu1 %vm628_vm1, %v1257_v36  ;;  %6875 = vpow2.f32 %v1225_v51 }
 0x342   :  { %6231 = vmatmul.mubr.msk.bf16.vlgmr.msra.gmra.mrb[56].mxu1 %vm628_vm1, %v1258_v41  ;;  %v7950_v26 = vpop.eup %6871 }
 0x343   :  { %6239 = vmatpush3.bf16.xpose.msra.mxu1 %v1432_v55  ;;  %10405 = vst [vmem:[#allocation31_spill] sm:$0xff] %v7950_v26  ;;  %v1400_v13 = vpop.permute.xlu0 %1399 }
 0x344   :  { %6715 = vmatprep.subr.msk.bf16.mxu1 %vm538_vm0, %v1414_v49 }
 0x347   :  { %v1404_v54 = vpop.permute.xlu0 %1403 }
 0x34a   :  { %v7952_v30 = vpop.eup %6873 }
 0x34b   :  { %10406 = vst [vmem:[#allocation32_spill] sm:$0xff] %v7952_v30  ;;  %6241 = vmatpush3.bf16.xpose.msra.mxu1 %v1435_v9  ;;  %v1260_v11 = vpack.c.bf16 %v7952_v30, %v7950_v26  ;;  %v7963_v55 = vpop.eup %6875  ;;  %v1591_v49 = vpop.permute.xlu0 %1590 }
 0x34c   :  { %6716 = vmatprep.subr.msk.bf16.mxu1 %vm538_vm0, %v1416_v10  ;;  %10407 = vst [vmem:[#allocation33_spill] sm:$0xff] %v7963_v55 }
 0x353   :  { %6243 = vmatpush3.bf16.xpose.msra.mxu1 %v1438_v31 }
 0x362   :  { %v1202_v33 = vpop.xlane.xlu1 %1201 }
 0x363   :  { %v1214_v43 = vsub.f32 %v7810_v27, %v1202_v33 }
 0x365   :  { %v1227_v38 = vmul.f32 1.442695, %v1214_v43 }
 0x366   :  { %v1418_v41 = vpop.permute.xlu1 %1417 }
 0x367   :  { %6877 = vpow2.f32 %v1227_v38  ;;  %6717 = vmatprep.subr.msk.bf16.mxu1 %vm538_vm0, %v1418_v41  ;;  %v1441_v53 = vsel %vm538_vm0, %v1418_v41, 0 }
 0x368   :  { %6245 = vmatpush3.bf16.xpose.msra.mxu1 %v1441_v53 }
 0x36a   :  { %v1402_v52 = vpop.permute.xlu1 %1401 }
 0x36e   :  { %v1406_v36 = vpop.permute.xlu1 %1405 }
 0x371   :  { %v7965_v21 = vpop.eup %6877 }
 0x372   :  { %v1589_v12 = vpop.permute.xlu1 %1588  ;;  %v1259_v27 = vpack.c.bf16 %v7965_v21, %v7963_v55 }
 0x373   :  { %6254 = vmatprep.subr.bf16.mxu0 %v1589_v12 }
 0x374   :  { %6234 = vmatprep.mubr.msk.bf16.mxu1 %vm628_vm1, %v1259_v27  ;;  %6255 = vmatpush3.bf16.msra.mxu0 %v1589_v12 }
 0x375   :  { %6235 = vmatmul.mubr.msk.bf16.gmra.mrb[60].mxu1 %vm628_vm1, %v1260_v11  ;;  %6256 = vmatprep.subr.bf16.mxu0 %v1591_v49 }
 0x376   :  { %v1593_v9 = vpop.permute.xlu1 %1592  ;;  %6246 = vmatprep.mubr.msk.bf16.mxu1 %vm538_vm0, %v1400_v13 }
 0x378   :  { %6257 = vmatpush3.bf16.msra.mxu0 %v1591_v49 }
 0x379   :  { %6258 = vmatprep.subr.bf16.mxu0 %v1593_v9 }
 0x37a   :  { %v1595_v10 = vpop.permute.xlu1 %1594 }
 0x37c   :  { %6259 = vmatpush3.bf16.msra.mxu0 %v1593_v9 }
 0x37d   :  { %6247 = vmatmul.mubr.msk.bf16.vlgmr.msra.gmra.mrb[64].mxu1 %vm538_vm0, %v1402_v52  ;;  %6260 = vmatprep.subr.bf16.mxu0 %v1595_v10 }
 0x37e   :  { %6250 = vmatprep.mubr.msk.bf16.mxu1 %vm538_vm0, %v1404_v54  ;;  %v7974_v31 = vpop.permute.xlu1 %1725 }
 0x380   :  { %6261 = vmatpush3.bf16.msra.mxu0 %v1595_v10 }
 0x381   :  { %6718 = vmatprep.subr.msk.bf16.mxu0 %vm538_vm0, %v7974_v31 }
 0x385   :  { %6251 = vmatmul.mubr.msk.bf16.gmra.mrb[68].mxu1 %vm538_vm0, %v1406_v36 }
 0x3a6   :  { %v7979_v11 = vpop.f32.mrb[40].mxu1 }
 0x3a7   :  { %10408 = vst [vmem:[#allocation34_spill] sm:$0xff] %v7979_v11  ;;  %v7981_v44 = vpop.f32.mrb[41].mxu1 }
 0x3a8   :  { %10409 = vst [vmem:[#allocation35_spill] sm:$0xff] %v7981_v44  ;;  %v7983_v51 = vpop.f32.mrb[42].mxu1 }
 0x3a9   :  { %10410 = vst [vmem:[#allocation36_spill] sm:$0xff] %v7983_v51  ;;  %v7985_v33 = vpop.f32.mrb[43].mxu1 }
 0x3aa   :  { %10411 = vst [vmem:[#allocation37_spill] sm:$0xff] %v7985_v33 }
 0x3b9   :  { %v7987_v43 = vpop.f32.mrb[44].mxu1 }
 0x3ba   :  { %10412 = vst [vmem:[#allocation38_spill] sm:$0xff] %v7987_v43  ;;  %v7989_v38 = vpop.f32.mrb[45].mxu1 }
 0x3bb   :  { %10413 = vst [vmem:[#allocation39_spill] sm:$0xff] %v7989_v38  ;;  %v7991_v41 = vpop.f32.mrb[46].mxu1 }
 0x3bc   :  { %10414 = vst [vmem:[#allocation40_spill] sm:$0xff] %v7991_v41  ;;  %v7993_v53 = vpop.f32.mrb[47].mxu1 }
 0x3bd   :  { %10415 = vst [vmem:[#allocation41_spill] sm:$0xff] %v7993_v53 }
 0x3c1   :  { %v7995_v13 = vpop.f32.mrb[48].mxu1 }
 0x3c2   :  { %10416 = vst [vmem:[#allocation42_spill] sm:$0xff] %v7995_v13  ;;  %v7997_v52 = vpop.f32.mrb[49].mxu1 }
 0x3c3   :  { %10417 = vst [vmem:[#allocation43_spill] sm:$0xff] %v7997_v52  ;;  %v7999_v54 = vpop.f32.mrb[50].mxu1 }
 0x3c4   :  { %10418 = vst [vmem:[#allocation44_spill] sm:$0xff] %v7999_v54  ;;  %v8001_v36 = vpop.f32.mrb[51].mxu1 }
 0x3c5   :  { %10419 = vst [vmem:[#allocation45_spill] sm:$0xff] %v8001_v36 }
 0x3ee   :  { %v8003_v12 = vpop.f32.mrb[52].mxu1 }
 0x3ef   :  { %10420 = vst [vmem:[#allocation46_spill] sm:$0xff] %v8003_v12  ;;  %v8005_v27 = vpop.f32.mrb[53].mxu1 }
 0x3f0   :  { %10421 = vst [vmem:[#allocation47_spill] sm:$0xff] %v8005_v27  ;;  %v8007_v49 = vpop.f32.mrb[54].mxu1 }
 0x3f1   :  { %10422 = vst [vmem:[#allocation48_spill] sm:$0xff] %v8007_v49  ;;  %v8009_v9 = vpop.f32.mrb[55].mxu1 }
 0x3f2   :  { %10423 = vst [vmem:[#allocation49_spill] sm:$0xff] %v8009_v9 }
 0x415   :  { %v8011_v10 = vpop.f32.mrb[56].mxu1 }
 0x416   :  { %10424 = vst [vmem:[#allocation50_spill] sm:$0xff] %v8011_v10  ;;  %v8013_v41 = vpop.f32.mrb[57].mxu1 }
 0x417   :  { %10425 = vst [vmem:[#allocation51_spill] sm:$0xff] %v8013_v41  ;;  %v8015_v43 = vpop.f32.mrb[58].mxu1 }
 0x418   :  { %10426 = vst [vmem:[#allocation52_spill] sm:$0xff] %v8015_v43  ;;  %v8017_v13 = vpop.f32.mrb[59].mxu1 }
 0x419   :  { %10427 = vst [vmem:[#allocation53_spill] sm:$0xff] %v8017_v13 }
 0x448   :  { %v8019_v52 = vpop.f32.mrb[60].mxu1 }
 0x449   :  { %10428 = vst [vmem:[#allocation54_spill] sm:$0xff] %v8019_v52  ;;  %v8021_v54 = vpop.f32.mrb[61].mxu1 }
 0x44a   :  { %10429 = vst [vmem:[#allocation55_spill] sm:$0xff] %v8021_v54  ;;  %v8023_v36 = vpop.f32.mrb[62].mxu1 }
 0x44b   :  { %10430 = vst [vmem:[#allocation56_spill] sm:$0xff] %v8023_v36  ;;  %v8025_v12 = vpop.f32.mrb[63].mxu1 }
 0x44c   :  { %10431 = vst [vmem:[#allocation57_spill] sm:$0xff] %v8025_v12 }
 0x450   :  { %v6248_v27 = vpop.f32.mrb[64].mxu1 }
 0x451   :  { %v1477_v49 = vpop.f32.mrb[65].mxu1  ;;  %v1514_v9 = vsel %vm628_vm1, %v6248_v27, -inf }
 0x452   :  { %1515 = vmax.xlane.f32.xlu0 %v1514_v9  ;;  %v6249_v53 = vpop.f32.mrb[66].mxu1  ;;  %v1508_v11 = vsel %vm628_vm1, %v1477_v49, -inf }
 0x453   :  { %v1480_v38 = vpop.f32.mrb[67].mxu1  ;;  %v1517_v63 = vsel %vm628_vm1, %v6249_v53, -inf }
 0x454   :  { %v1511_v51 = vsel %vm628_vm1, %v1480_v38, -inf }
 0x455   :  { %1512 = vmax.xlane.f32.xlu1 %v1511_v51 }
 0x456   :  { %1509 = vmax.xlane.f32.xlu0 %v1508_v11 }
 0x458   :  { %v6252_v33 = vpop.f32.mrb[68].mxu1 }
 0x459   :  { %v8030_v44 = vpop.f32.mrb[69].mxu1  ;;  %v1526_v22 = vsel %vm628_vm1, %v6252_v33, -inf }
 0x45a   :  { %1518 = vmax.xlane.f32.xlu0 %v1517_v63  ;;  %v6253_v18 = vpop.f32.mrb[70].mxu1  ;;  %v1520_v9 = vsel %vm628_vm1, %v8030_v44, -inf  ;;  %v10432_v63 = vld [vmem:[#allocation13_spill] sm:$0xff] }
 0x45b   :  { %v8033_v50 = vpop.f32.mrb[71].mxu1  ;;  %v1529_v51 = vsel %vm628_vm1, %v6253_v18, -inf }
 0x45e   :  { %1527 = vmax.xlane.f32.xlu0 %v1526_v22  ;;  %v1523_v22 = vsel %vm628_vm1, %v8033_v50, -inf }
 0x462   :  { %1521 = vmax.xlane.f32.xlu0 %v1520_v9 }
 0x466   :  { %1729 = vrot.lane.b32.xlu1 %v7617_v42, %s7446_s7  ;;  %1530 = vmax.xlane.f32.xlu0 %v1529_v51 }
 0x47c   :  { %1727 = vrot.lane.b32.xlu0 %v7589_v16, %s7446_s7 }
 0x480   :  { %1717 = vrot.lane.b32.xlu0 %v7555_v56, %s7446_s7 }
 0x484   :  { %1721 = vrot.lane.b32.xlu0 %v7613_v39, %s7446_s7 }
 0x488   :  { %1900 = vrot.lane.b32.xlu0 %v7669_v34, %s7446_s7 }
 0x48a   :  { %1524 = vmax.xlane.f32.xlu1 %v1523_v22 }
 0x49b   :  { %1731 = vrot.lane.b32.xlu1 %v7645_v4, %s7446_s7 }
 0x49f   :  { %1719 = vrot.lane.b32.xlu1 %v7585_v14, %s7446_s7 }
 0x4a3   :  { %1723 = vrot.lane.b32.xlu1 %v7641_v2, %s7446_s7 }
 0x4a7   :  { %1898 = vrot.lane.b32.xlu1 %v7671_v20, %s7446_s7 }
 0x4ab   :  { %1902 = vrot.lane.b32.xlu1 %v7684_v29, %s7446_s7 }
 0x4af   :  { %1904 = vrot.lane.b32.xlu1 %v7682_v28, %s7446_s7 }
 0x4b3   :  { %2036 = vrot.lane.b32.xlu1 %v10432_v63, %s7446_s7 }
 0x4df   :  { %v1516_v11 = vpop.xlane.xlu0 %1515 }
 0x4e0   :  { %v1534_v51 = vsub.f32 %v6248_v27, %v1516_v11 }
 0x4e2   :  { %v1513_v9 = vpop.xlane.xlu1 %1512  ;;  %v1544_v1 = vmul.f32 1.442695, %v1534_v51 }
 0x4e3   :  { %v1533_v22 = vsub.f32 %v1480_v38, %v1513_v9  ;;  %v1510_v24 = vpop.xlane.xlu0 %1509 }
 0x4e4   :  { %v1532_v45 = vsub.f32 %v1477_v49, %v1510_v24 }
 0x4e5   :  { %v1542_v19 = vmul.f32 1.442695, %v1533_v22 }
 0x4e6   :  { %v1540_v35 = vmul.f32 1.442695, %v1532_v45 }
 0x4e7   :  { %6879 = vpow2.f32 %v1542_v19  ;;  %v1519_v23 = vpop.xlane.xlu0 %1518 }
 0x4e8   :  { %6881 = vpow2.f32 %v1540_v35  ;;  %v1535_v25 = vsub.f32 %v6249_v53, %v1519_v23  ;;  %v1746_v23 = vsel %vm538_vm0, %v7974_v31, 0 }
 0x4e9   :  { %6883 = vpow2.f32 %v1544_v1 }
 0x4ea   :  { %v1546_v48 = vmul.f32 1.442695, %v1535_v25 }
 0x4eb   :  { %v1528_v6 = vpop.xlane.xlu0 %1527 }
 0x4ec   :  { %6885 = vpow2.f32 %v1546_v48  ;;  %v1538_v0 = vsub.f32 %v6252_v33, %v1528_v6  ;;  %v1730_v33 = vpop.permute.xlu1 %1729 }
 0x4ed   :  { %v1752_v49 = vsel %vm538_vm0, %v1730_v33, 0 }
 0x4ee   :  { %v1552_v38 = vmul.f32 1.442695, %v1538_v0 }
 0x4ef   :  { %v1522_v62 = vpop.xlane.xlu0 %1521 }
 0x4f0   :  { %6887 = vpow2.f32 %v1552_v38  ;;  %v1536_v31 = vsub.f32 %v8030_v44, %v1522_v62 }
 0x4f1   :  { %v8065_v59 = vpop.eup %6879 }
 0x4f2   :  { %10433 = vst [vmem:[#allocation13_spill] sm:$0xff] %v8065_v59  ;;  %v8067_v36 = vpop.eup %6881  ;;  %v1548_v11 = vmul.f32 1.442695, %v1536_v31 }
 0x4f3   :  { %10434 = vst [vmem:[#allocation58_spill] sm:$0xff] %v8067_v36  ;;  %v1531_v27 = vpop.xlane.xlu0 %1530  ;;  %v1580_v24 = vpack.c.bf16 %v8065_v59, %v8067_v36  ;;  %v8071_v19 = vpop.eup %6883 }
 0x4f4   :  { %v1539_v45 = vsub.f32 %v6253_v18, %v1531_v27  ;;  %10435 = vst [vmem:[#allocation59_spill] sm:$0xff] %v8071_v19 }
 0x4f5   :  { %6262 = vmatprep.mubr.msk.bf16.mxu0 %vm628_vm1, %v1580_v24 }
 0x4f6   :  { %v8074_v25 = vpop.eup %6885  ;;  %v1554_v35 = vmul.f32 1.442695, %v1539_v45 }
 0x4f7   :  { %10436 = vst [vmem:[#allocation60_spill] sm:$0xff] %v8074_v25  ;;  %v1581_v6 = vpack.c.bf16 %v8074_v25, %v8071_v19  ;;  %v1728_v48 = vpop.permute.xlu0 %1727 }
 0x4f8   :  { %6889 = vpow2.f32 %v1554_v35  ;;  %v1749_v1 = vsel %vm538_vm0, %v1728_v48, 0 }
 0x4f9   :  { %6263 = vmatmul.mubr.msk.bf16.vlgmr.msra.gmra.mrb[32].mxu0 %vm628_vm1, %v1581_v6  ;;  %6891 = vpow2.f32 %v1548_v11 }
 0x4fa   :  { %6271 = vmatpush3.bf16.xpose.msra.mxu0 %v1746_v23  ;;  %v8082_v0 = vpop.eup %6887 }
 0x4fb   :  { %6719 = vmatprep.subr.msk.bf16.mxu0 %vm538_vm0, %v1728_v48  ;;  %10437 = vst [vmem:[#allocation61_spill] sm:$0xff] %v8082_v0  ;;  %v1718_v24 = vpop.permute.xlu0 %1717 }
 0x4ff   :  { %v1722_v35 = vpop.permute.xlu0 %1721 }
 0x502   :  { %v8085_v18 = vpop.eup %6889  ;;  %6273 = vmatpush3.bf16.xpose.msra.mxu0 %v1749_v1 }
 0x503   :  { %10438 = vst [vmem:[#allocation62_spill] sm:$0xff] %v8085_v18  ;;  %6720 = vmatprep.subr.msk.bf16.mxu0 %vm538_vm0, %v1730_v33  ;;  %v1583_v53 = vpack.c.bf16 %v8085_v18, %v8082_v0  ;;  %v8095_v23 = vpop.eup %6891  ;;  %v1901_v48 = vpop.permute.xlu0 %1900 }
 0x504   :  { %10439 = vst [vmem:[#allocation63_spill] sm:$0xff] %v8095_v23 }
 0x50a   :  { %6275 = vmatpush3.bf16.xpose.msra.mxu0 %v1752_v49 }
 0x517   :  { %v1525_v9 = vpop.xlane.xlu1 %1524 }
 0x518   :  { %v1537_v51 = vsub.f32 %v8033_v50, %v1525_v9 }
 0x51a   :  { %v1550_v22 = vmul.f32 1.442695, %v1537_v51 }
 0x51b   :  { %v1732_v38 = vpop.permute.xlu1 %1731 }
 0x51c   :  { %6893 = vpow2.f32 %v1550_v22  ;;  %6721 = vmatprep.subr.msk.bf16.mxu0 %vm538_vm0, %v1732_v38  ;;  %v1755_v27 = vsel %vm538_vm0, %v1732_v38, 0 }
 0x51d   :  { %6277 = vmatpush3.bf16.xpose.msra.mxu0 %v1755_v27 }
 0x51f   :  { %v1720_v45 = vpop.permute.xlu1 %1719 }
 0x523   :  { %v1724_v6 = vpop.permute.xlu1 %1723 }
 0x526   :  { %v8097_v62 = vpop.eup %6893 }
 0x527   :  { %10440 = vst [vmem:[#allocation64_spill] sm:$0xff] %v8097_v62  ;;  %v1899_v44 = vpop.permute.xlu1 %1898  ;;  %v1582_v50 = vpack.c.bf16 %v8097_v62, %v8095_v23 }
 0x528   :  { %6286 = vmatprep.subr.bf16.mxu1 %v1899_v44 }
 0x529   :  { %6266 = vmatprep.mubr.msk.bf16.mxu0 %vm628_vm1, %v1582_v50  ;;  %6287 = vmatpush3.bf16.msra.mxu1 %v1899_v44 }
 0x52a   :  { %6267 = vmatmul.mubr.msk.bf16.gmra.mrb[36].mxu0 %vm628_vm1, %v1583_v53  ;;  %6288 = vmatprep.subr.bf16.mxu1 %v1901_v48 }
 0x52b   :  { %v1903_v1 = vpop.permute.xlu1 %1902  ;;  %6278 = vmatprep.mubr.msk.bf16.mxu0 %vm538_vm0, %v1718_v24 }
 0x52d   :  { %6289 = vmatpush3.bf16.msra.mxu1 %v1901_v48 }
 0x52e   :  { %6290 = vmatprep.subr.bf16.mxu1 %v1903_v1 }
 0x52f   :  { %v1905_v33 = vpop.permute.xlu1 %1904 }
 0x531   :  { %6291 = vmatpush3.bf16.msra.mxu1 %v1903_v1 }
 0x532   :  { %6279 = vmatmul.mubr.msk.bf16.vlgmr.msra.gmra.mrb[40].mxu0 %vm538_vm0, %v1720_v45  ;;  %6292 = vmatprep.subr.bf16.mxu1 %v1905_v33 }
 0x533   :  { %6282 = vmatprep.mubr.msk.bf16.mxu0 %vm538_vm0, %v1722_v35  ;;  %v8106_v49 = vpop.permute.xlu1 %2036 }
 0x535   :  { %6293 = vmatpush3.bf16.msra.mxu1 %v1905_v33 }
 0x536   :  { %6722 = vmatprep.subr.msk.bf16.mxu1 %vm538_vm0, %v8106_v49 }
 0x53a   :  { %6283 = vmatmul.mubr.msk.bf16.gmra.mrb[44].mxu0 %vm538_vm0, %v1724_v6 }
 0x5cc   :  { %v8111_v53 = vpop.f32.mrb[32].mxu0 }
 0x5cd   :  { %10441 = vst [vmem:[#allocation65_spill] sm:$0xff] %v8111_v53  ;;  %v8113_v31 = vpop.f32.mrb[33].mxu0 }
 0x5ce   :  { %10442 = vst [vmem:[#allocation66_spill] sm:$0xff] %v8113_v31  ;;  %v8115_v11 = vpop.f32.mrb[34].mxu0 }
 0x5cf   :  { %10443 = vst [vmem:[#allocation67_spill] sm:$0xff] %v8115_v11  ;;  %v8117_v9 = vpop.f32.mrb[35].mxu0 }
 0x5d0   :  { %10444 = vst [vmem:[#allocation68_spill] sm:$0xff] %v8117_v9 }
 0x5fd   :  { %v8119_v51 = vpop.f32.mrb[36].mxu0 }
 0x5fe   :  { %10445 = vst [vmem:[#allocation69_spill] sm:$0xff] %v8119_v51  ;;  %v8121_v22 = vpop.f32.mrb[37].mxu0 }
 0x5ff   :  { %10446 = vst [vmem:[#allocation70_spill] sm:$0xff] %v8121_v22  ;;  %v8123_v38 = vpop.f32.mrb[38].mxu0 }
 0x600   :  { %10447 = vst [vmem:[#allocation71_spill] sm:$0xff] %v8123_v38  ;;  %v8125_v27 = vpop.f32.mrb[39].mxu0 }
 0x601   :  { %10448 = vst [vmem:[#allocation72_spill] sm:$0xff] %v8125_v27 }
 0x605   :  { %v6280_v24 = vpop.f32.mrb[40].mxu0 }
 0x606   :  { %v1791_v45 = vpop.f32.mrb[41].mxu0  ;;  %v1828_v35 = vsel %vm628_vm1, %v6280_v24, -inf }
 0x607   :  { %1829 = vmax.xlane.f32.xlu0 %v1828_v35  ;;  %v6281_v6 = vpop.f32.mrb[42].mxu0  ;;  %v1822_v48 = vsel %vm628_vm1, %v1791_v45, -inf }
 0x608   :  { %v1794_v44 = vpop.f32.mrb[43].mxu0  ;;  %v1831_v38 = vsel %vm628_vm1, %v6281_v6, -inf }
 0x609   :  { %v1825_v50 = vsel %vm628_vm1, %v1794_v44, -inf }
 0x60a   :  { %1826 = vmax.xlane.f32.xlu1 %v1825_v50 }
 0x60b   :  { %1823 = vmax.xlane.f32.xlu0 %v1822_v48  ;;  %v10449_v48 = vld [vmem:[#allocation14_spill] sm:$0xff] }
 0x60d   :  { %v6284_v1 = vpop.f32.mrb[44].mxu0 }
 0x60e   :  { %v8130_v33 = vpop.f32.mrb[45].mxu0  ;;  %v1840_v22 = vsel %vm628_vm1, %v6284_v1, -inf }
 0x60f   :  { %1832 = vmax.xlane.f32.xlu0 %v1831_v38  ;;  %v6285_v51 = vpop.f32.mrb[46].mxu0  ;;  %v1834_v35 = vsel %vm628_vm1, %v8130_v33, -inf }
 0x610   :  { %v8133_v27 = vpop.f32.mrb[47].mxu0  ;;  %v1843_v50 = vsel %vm628_vm1, %v6285_v51, -inf }
 0x613   :  { %1841 = vmax.xlane.f32.xlu0 %v1840_v22  ;;  %v1837_v22 = vsel %vm628_vm1, %v8133_v27, -inf }
 0x617   :  { %1835 = vmax.xlane.f32.xlu0 %v1834_v35 }
 0x61b   :  { %2040 = vrot.lane.b32.xlu1 %v10449_v48, %s7446_s7  ;;  %1844 = vmax.xlane.f32.xlu0 %v1843_v50 }
 0x631   :  { %2038 = vrot.lane.b32.xlu0 %v7591_v17, %s7446_s7 }
 0x635   :  { %2028 = vrot.lane.b32.xlu0 %v7557_v57, %s7446_s7 }
 0x639   :  { %2032 = vrot.lane.b32.xlu0 %v7615_v40, %s7446_s7 }
 0x63d   :  { %2211 = vrot.lane.b32.xlu0 %v7694_v46, %s7446_s7 }
 0x63f   :  { %1838 = vmax.xlane.f32.xlu1 %v1837_v22 }
 0x650   :  { %2042 = vrot.lane.b32.xlu1 %v7647_v5, %s7446_s7 }
 0x654   :  { %2030 = vrot.lane.b32.xlu1 %v7587_v15, %s7446_s7 }
 0x658   :  { %2034 = vrot.lane.b32.xlu1 %v7643_v3, %s7446_s7 }
 0x65c   :  { %2209 = vrot.lane.b32.xlu1 %v7696_v47, %s7446_s7 }
 0x660   :  { %2213 = vrot.lane.b32.xlu1 %v7702_v61, %s7446_s7 }
 0x664   :  { %2215 = vrot.lane.b32.xlu1 %v7700_v60, %s7446_s7 }
 0x668   :  { %2346 = vrot.lane.b32.xlu1 %v7559_v58, %s7447_s8 }
 0x694   :  { %v1830_v38 = vpop.xlane.xlu0 %1829 }
 0x695   :  { %v1848_v50 = vsub.f32 %v6280_v24, %v1830_v38 }
 0x697   :  { %v1827_v35 = vpop.xlane.xlu1 %1826  ;;  %v1858_v11 = vmul.f32 1.442695, %v1848_v50 }
 0x698   :  { %v1847_v22 = vsub.f32 %v1794_v44, %v1827_v35  ;;  %v1824_v18 = vpop.xlane.xlu0 %1823 }
 0x699   :  { %v1846_v62 = vsub.f32 %v1791_v45, %v1824_v18 }
 0x69a   :  { %v1856_v0 = vmul.f32 1.442695, %v1847_v22 }
 0x69b   :  { %v1854_v23 = vmul.f32 1.442695, %v1846_v62  ;;  %v2041_v45 = vpop.permute.xlu1 %2040 }
 0x69c   :  { %6895 = vpow2.f32 %v1856_v0  ;;  %v1833_v53 = vpop.xlane.xlu0 %1832 }
 0x69d   :  { %6897 = vpow2.f32 %v1854_v23  ;;  %v1849_v9 = vsub.f32 %v6281_v6, %v1833_v53 }
 0x69e   :  { %6899 = vpow2.f32 %v1858_v11 }
 0x69f   :  { %v1860_v31 = vmul.f32 1.442695, %v1849_v9 }
 0x6a0   :  { %v1842_v52 = vpop.xlane.xlu0 %1841 }
 0x6a1   :  { %6901 = vpow2.f32 %v1860_v31  ;;  %v1852_v12 = vsub.f32 %v6284_v1, %v1842_v52  ;;  %v2063_v1 = vsel %vm538_vm0, %v2041_v45, 0 }
 0x6a3   :  { %v1866_v24 = vmul.f32 1.442695, %v1852_v12  ;;  %v2057_v12 = vsel %vm538_vm0, %v8106_v49, 0 }
 0x6a4   :  { %v1836_v54 = vpop.xlane.xlu0 %1835 }
 0x6a5   :  { %6903 = vpow2.f32 %v1866_v24  ;;  %v1850_v49 = vsub.f32 %v8130_v33, %v1836_v54 }
 0x6a6   :  { %v8165_v13 = vpop.eup %6895 }
 0x6a7   :  { %v8167_v41 = vpop.eup %6897  ;;  %v1862_v38 = vmul.f32 1.442695, %v1850_v49 }
 0x6a8   :  { %v1845_v44 = vpop.xlane.xlu0 %1844  ;;  %v1894_v18 = vpack.c.bf16 %v8165_v13, %v8167_v41  ;;  %v8171_v0 = vpop.eup %6899 }
 0x6a9   :  { %v1853_v62 = vsub.f32 %v6285_v51, %v1845_v44  ;;  %10450 = vst [vmem:[#allocation14_spill] sm:$0xff] %v8171_v0 }
 0x6aa   :  { %6294 = vmatprep.mubr.msk.bf16.mxu1 %vm628_vm1, %v1894_v18 }
 0x6ab   :  { %v8174_v23 = vpop.eup %6901  ;;  %v1868_v53 = vmul.f32 1.442695, %v1853_v62 }
 0x6ac   :  { %v1895_v52 = vpack.c.bf16 %v8174_v23, %v8171_v0  ;;  %v2039_v31 = vpop.permute.xlu0 %2038 }
 0x6ad   :  { %6905 = vpow2.f32 %v1868_v53  ;;  %v2060_v9 = vsel %vm538_vm0, %v2039_v31, 0 }
 0x6ae   :  { %6295 = vmatmul.mubr.msk.bf16.vlgmr.msra.gmra.mrb[72].mxu1 %vm628_vm1, %v1895_v52  ;;  %6907 = vpow2.f32 %v1862_v38 }
 0x6af   :  { %6303 = vmatpush3.bf16.xpose.msra.mxu1 %v2057_v12  ;;  %v8182_v11 = vpop.eup %6903 }
 0x6b0   :  { %6723 = vmatprep.subr.msk.bf16.mxu1 %vm538_vm0, %v2039_v31  ;;  %10451 = vst [vmem:[#allocation73_spill] sm:$0xff] %v8182_v11  ;;  %v2029_v18 = vpop.permute.xlu0 %2028 }
 0x6b4   :  { %v2033_v53 = vpop.permute.xlu0 %2032 }
 0x6b7   :  { %v8185_v51 = vpop.eup %6905  ;;  %6305 = vmatpush3.bf16.xpose.msra.mxu1 %v2060_v9 }
 0x6b8   :  { %10452 = vst [vmem:[#allocation74_spill] sm:$0xff] %v8185_v51  ;;  %6724 = vmatprep.subr.msk.bf16.mxu1 %vm538_vm0, %v2041_v45  ;;  %v1897_v6 = vpack.c.bf16 %v8185_v51, %v8182_v11  ;;  %v8195_v12 = vpop.eup %6907  ;;  %v2212_v31 = vpop.permute.xlu0 %2211 }
 0x6b9   :  { %10453 = vst [vmem:[#allocation75_spill] sm:$0xff] %v8195_v12 }
 0x6bf   :  { %6307 = vmatpush3.bf16.xpose.msra.mxu1 %v2063_v1 }
 0x6cc   :  { %v1839_v35 = vpop.xlane.xlu1 %1838 }
 0x6cd   :  { %v1851_v50 = vsub.f32 %v8133_v27, %v1839_v35 }
 0x6cf   :  { %v1864_v22 = vmul.f32 1.442695, %v1851_v50 }
 0x6d0   :  { %v2043_v24 = vpop.permute.xlu1 %2042 }
 0x6d1   :  { %6909 = vpow2.f32 %v1864_v22  ;;  %6725 = vmatprep.subr.msk.bf16.mxu1 %vm538_vm0, %v2043_v24  ;;  %v2066_v44 = vsel %vm538_vm0, %v2043_v24, 0 }
 0x6d2   :  { %6309 = vmatpush3.bf16.xpose.msra.mxu1 %v2066_v44 }
 0x6d4   :  { %v2031_v62 = vpop.permute.xlu1 %2030 }
 0x6d8   :  { %v2035_v52 = vpop.permute.xlu1 %2034 }
 0x6db   :  { %v8197_v54 = vpop.eup %6909 }
 0x6dc   :  { %10454 = vst [vmem:[#allocation76_spill] sm:$0xff] %v8197_v54  ;;  %v2210_v33 = vpop.permute.xlu1 %2209  ;;  %v1896_v27 = vpack.c.bf16 %v8197_v54, %v8195_v12 }
 0x6dd   :  { %6318 = vmatprep.subr.bf16.mxu0 %v2210_v33 }
 0x6de   :  { %6298 = vmatprep.mubr.msk.bf16.mxu1 %vm628_vm1, %v1896_v27  ;;  %6319 = vmatpush3.bf16.msra.mxu0 %v2210_v33 }
 0x6df   :  { %6299 = vmatmul.mubr.msk.bf16.gmra.mrb[76].mxu1 %vm628_vm1, %v1897_v6  ;;  %6320 = vmatprep.subr.bf16.mxu0 %v2212_v31 }
 0x6e0   :  { %v2214_v9 = vpop.permute.xlu1 %2213  ;;  %6310 = vmatprep.mubr.msk.bf16.mxu1 %vm538_vm0, %v2029_v18 }
 0x6e2   :  { %6321 = vmatpush3.bf16.msra.mxu0 %v2212_v31 }
 0x6e3   :  { %6322 = vmatprep.subr.bf16.mxu0 %v2214_v9 }
 0x6e4   :  { %v2216_v45 = vpop.permute.xlu1 %2215 }
 0x6e6   :  { %6323 = vmatpush3.bf16.msra.mxu0 %v2214_v9 }
 0x6e7   :  { %6311 = vmatmul.mubr.msk.bf16.vlgmr.msra.gmra.mrb[80].mxu1 %vm538_vm0, %v2031_v62  ;;  %6324 = vmatprep.subr.bf16.mxu0 %v2216_v45 }
 0x6e8   :  { %6314 = vmatprep.mubr.msk.bf16.mxu1 %vm538_vm0, %v2033_v53  ;;  %v8206_v1 = vpop.permute.xlu1 %2346 }
 0x6ea   :  { %6325 = vmatpush3.bf16.msra.mxu0 %v2216_v45 }
 0x6eb   :  { %6726 = vmatprep.subr.msk.bf16.mxu0 %vm538_vm0, %v8206_v1 }
 0x6ef   :  { %6315 = vmatmul.mubr.msk.bf16.gmra.mrb[84].mxu1 %vm538_vm0, %v2035_v52 }
 0x781   :  { %v8211_v6 = vpop.f32.mrb[72].mxu1 }
 0x782   :  { %10455 = vst [vmem:[#allocation77_spill] sm:$0xff] %v8211_v6  ;;  %v8213_v49 = vpop.f32.mrb[73].mxu1 }
 0x783   :  { %10456 = vst [vmem:[#allocation78_spill] sm:$0xff] %v8213_v49  ;;  %v8215_v38 = vpop.f32.mrb[74].mxu1 }
 0x784   :  { %10457 = vst [vmem:[#allocation79_spill] sm:$0xff] %v8215_v38  ;;  %v8217_v35 = vpop.f32.mrb[75].mxu1 }
 0x785   :  { %10458 = vst [vmem:[#allocation80_spill] sm:$0xff] %v8217_v35 }
 0x7b2   :  { %v8219_v50 = vpop.f32.mrb[76].mxu1 }
 0x7b3   :  { %10459 = vst [vmem:[#allocation81_spill] sm:$0xff] %v8219_v50  ;;  %v8221_v22 = vpop.f32.mrb[77].mxu1 }
 0x7b4   :  { %10460 = vst [vmem:[#allocation82_spill] sm:$0xff] %v8221_v22  ;;  %v8223_v24 = vpop.f32.mrb[78].mxu1 }
 0x7b5   :  { %10461 = vst [vmem:[#allocation83_spill] sm:$0xff] %v8223_v24  ;;  %v8225_v44 = vpop.f32.mrb[79].mxu1 }
 0x7b6   :  { %10462 = vst [vmem:[#allocation84_spill] sm:$0xff] %v8225_v44 }
 0x7ba   :  { %v6312_v18 = vpop.f32.mrb[80].mxu1 }
 0x7bb   :  { %v2102_v62 = vpop.f32.mrb[81].mxu1  ;;  %v2139_v53 = vsel %vm628_vm1, %v6312_v18, -inf }
 0x7bc   :  { %2140 = vmax.xlane.f32.xlu0 %v2139_v53  ;;  %v6313_v52 = vpop.f32.mrb[82].mxu1  ;;  %v2133_v31 = vsel %vm628_vm1, %v2102_v62, -inf }
 0x7bd   :  { %v2105_v33 = vpop.f32.mrb[83].mxu1  ;;  %v2142_v24 = vsel %vm628_vm1, %v6313_v52, -inf }
 0x7be   :  { %v2136_v27 = vsel %vm628_vm1, %v2105_v33, -inf }
 0x7bf   :  { %2137 = vmax.xlane.f32.xlu1 %v2136_v27 }
 0x7c0   :  { %2134 = vmax.xlane.f32.xlu0 %v2133_v31 }
 0x7c2   :  { %v6316_v9 = vpop.f32.mrb[84].mxu1 }
 0x7c3   :  { %v8230_v45 = vpop.f32.mrb[85].mxu1  ;;  %v2151_v22 = vsel %vm628_vm1, %v6316_v9, -inf }
 0x7c4   :  { %2143 = vmax.xlane.f32.xlu0 %v2142_v24  ;;  %v6317_v50 = vpop.f32.mrb[86].mxu1  ;;  %v2145_v53 = vsel %vm628_vm1, %v8230_v45, -inf }
 0x7c5   :  { %v8233_v44 = vpop.f32.mrb[87].mxu1  ;;  %v2154_v27 = vsel %vm628_vm1, %v6317_v50, -inf }
 0x7c8   :  { %2152 = vmax.xlane.f32.xlu0 %v2151_v22  ;;  %v2148_v22 = vsel %vm628_vm1, %v8233_v44, -inf }
 0x7cc   :  { %2146 = vmax.xlane.f32.xlu0 %v2145_v53 }
 0x7d0   :  { %2350 = vrot.lane.b32.xlu1 %v7617_v42, %s7447_s8  ;;  %2155 = vmax.xlane.f32.xlu0 %v2154_v27 }
 0x7e6   :  { %2348 = vrot.lane.b32.xlu0 %v7589_v16, %s7447_s8 }
 0x7ea   :  { %2338 = vrot.lane.b32.xlu0 %v7555_v56, %s7447_s8 }
 0x7ee   :  { %2342 = vrot.lane.b32.xlu0 %v7613_v39, %s7447_s8 }
 0x7f2   :  { %2521 = vrot.lane.b32.xlu0 %v7669_v34, %s7447_s8 }
 0x7f4   :  { %2149 = vmax.xlane.f32.xlu1 %v2148_v22 }
 0x805   :  { %2352 = vrot.lane.b32.xlu1 %v7645_v4, %s7447_s8 }
 0x809   :  { %2340 = vrot.lane.b32.xlu1 %v7585_v14, %s7447_s8 }
 0x80d   :  { %2344 = vrot.lane.b32.xlu1 %v7641_v2, %s7447_s8 }
 0x811   :  { %2519 = vrot.lane.b32.xlu1 %v7671_v20, %s7447_s8 }
 0x815   :  { %2523 = vrot.lane.b32.xlu1 %v7684_v29, %s7447_s8 }
 0x819   :  { %2525 = vrot.lane.b32.xlu1 %v7682_v28, %s7447_s8 }
 0x81d   :  { %2657 = vrot.lane.b32.xlu1 %v10432_v63, %s7447_s8 }
 0x849   :  { %v2141_v24 = vpop.xlane.xlu0 %2140 }
 0x84a   :  { %v2159_v53 = vsub.f32 %v6312_v18, %v2141_v24 }
 0x84c   :  { %v2138_v31 = vpop.xlane.xlu1 %2137  ;;  %v2169_v49 = vmul.f32 1.442695, %v2159_v53 }
 0x84d   :  { %v2158_v27 = vsub.f32 %v2105_v33, %v2138_v31  ;;  %v2135_v22 = vpop.xlane.xlu0 %2134 }
 0x84e   :  { %v2157_v38 = vsub.f32 %v2102_v62, %v2135_v22 }
 0x84f   :  { %v2167_v6 = vmul.f32 1.442695, %v2158_v27 }
 0x850   :  { %v2165_v35 = vmul.f32 1.442695, %v2157_v38 }
 0x851   :  { %6911 = vpow2.f32 %v2167_v6  ;;  %v2144_v43 = vpop.xlane.xlu0 %2143 }
 0x852   :  { %6913 = vpow2.f32 %v2165_v35  ;;  %v2160_v10 = vsub.f32 %v6313_v52, %v2144_v43  ;;  %v2351_v52 = vpop.permute.xlu1 %2350 }
 0x853   :  { %6915 = vpow2.f32 %v2169_v49  ;;  %v2373_v24 = vsel %vm538_vm0, %v2351_v52, 0 }
 0x854   :  { %v2171_v19 = vmul.f32 1.442695, %v2160_v10 }
 0x855   :  { %v2153_v36 = vpop.xlane.xlu0 %2152 }
 0x856   :  { %6917 = vpow2.f32 %v2171_v19  ;;  %v2163_v25 = vsub.f32 %v6316_v9, %v2153_v36  ;;  %v2367_v19 = vsel %vm538_vm0, %v8206_v1, 0 }
 0x858   :  { %v2177_v18 = vmul.f32 1.442695, %v2163_v25 }
 0x859   :  { %v2147_v11 = vpop.xlane.xlu0 %2146 }
 0x85a   :  { %6919 = vpow2.f32 %v2177_v18  ;;  %v2161_v1 = vsub.f32 %v8230_v45, %v2147_v11 }
 0x85b   :  { %v8265_v59 = vpop.eup %6911 }
 0x85c   :  { %10463 = vst [vmem:[#allocation85_spill] sm:$0xff] %v8265_v59  ;;  %v8267_v12 = vpop.eup %6913  ;;  %v2173_v31 = vmul.f32 1.442695, %v2161_v1 }
 0x85d   :  { %10464 = vst [vmem:[#allocation86_spill] sm:$0xff] %v8267_v12  ;;  %v2156_v33 = vpop.xlane.xlu0 %2155  ;;  %v2205_v38 = vpack.c.bf16 %v8265_v59, %v8267_v12  ;;  %v8271_v6 = vpop.eup %6915 }
 0x85e   :  { %v2164_v62 = vsub.f32 %v6317_v50, %v2156_v33  ;;  %10465 = vst [vmem:[#allocation87_spill] sm:$0xff] %v8271_v6 }
 0x85f   :  { %6326 = vmatprep.mubr.msk.bf16.mxu0 %vm628_vm1, %v2205_v38 }
 0x860   :  { %v8274_v43 = vpop.eup %6917  ;;  %v2179_v10 = vmul.f32 1.442695, %v2164_v62 }
 0x861   :  { %10466 = vst [vmem:[#allocation88_spill] sm:$0xff] %v8274_v43  ;;  %v2206_v36 = vpack.c.bf16 %v8274_v43, %v8271_v6  ;;  %v2349_v25 = vpop.permute.xlu0 %2348 }
 0x862   :  { %6921 = vpow2.f32 %v2179_v10  ;;  %v2370_v35 = vsel %vm538_vm0, %v2349_v25, 0 }
 0x863   :  { %6327 = vmatmul.mubr.msk.bf16.vlgmr.msra.gmra.mrb[48].mxu0 %vm628_vm1, %v2206_v36  ;;  %6923 = vpow2.f32 %v2173_v31 }
 0x864   :  { %6335 = vmatpush3.bf16.xpose.msra.mxu0 %v2367_v19  ;;  %v8282_v49 = vpop.eup %6919 }
 0x865   :  { %6727 = vmatprep.subr.msk.bf16.mxu0 %vm538_vm0, %v2349_v25  ;;  %10467 = vst [vmem:[#allocation89_spill] sm:$0xff] %v8282_v49  ;;  %v2339_v38 = vpop.permute.xlu0 %2338 }
 0x869   :  { %v2343_v10 = vpop.permute.xlu0 %2342 }
 0x86c   :  { %v8285_v50 = vpop.eup %6921  ;;  %6337 = vmatpush3.bf16.xpose.msra.mxu0 %v2370_v35 }
 0x86d   :  { %10468 = vst [vmem:[#allocation90_spill] sm:$0xff] %v8285_v50  ;;  %6728 = vmatprep.subr.msk.bf16.mxu0 %vm538_vm0, %v2351_v52  ;;  %v2208_v9 = vpack.c.bf16 %v8285_v50, %v8282_v49  ;;  %v8295_v19 = vpop.eup %6923  ;;  %v2522_v25 = vpop.permute.xlu0 %2521 }
 0x86e   :  { %10469 = vst [vmem:[#allocation91_spill] sm:$0xff] %v8295_v19 }
 0x874   :  { %6339 = vmatpush3.bf16.xpose.msra.mxu0 %v2373_v24 }
 0x881   :  { %v2150_v53 = vpop.xlane.xlu1 %2149 }
 0x882   :  { %v2162_v27 = vsub.f32 %v8233_v44, %v2150_v53 }
 0x884   :  { %v2175_v22 = vmul.f32 1.442695, %v2162_v27 }
 0x885   :  { %v2353_v18 = vpop.permute.xlu1 %2352 }
 0x886   :  { %6925 = vpow2.f32 %v2175_v22  ;;  %6729 = vmatprep.subr.msk.bf16.mxu0 %vm538_vm0, %v2353_v18  ;;  %v2376_v33 = vsel %vm538_vm0, %v2353_v18, 0 }
 0x887   :  { %6341 = vmatpush3.bf16.xpose.msra.mxu0 %v2376_v33 }
 0x889   :  { %v2341_v62 = vpop.permute.xlu1 %2340 }
 0x88d   :  { %v2345_v36 = vpop.permute.xlu1 %2344 }
 0x890   :  { %v8297_v11 = vpop.eup %6925 }
 0x891   :  { %10470 = vst [vmem:[#allocation92_spill] sm:$0xff] %v8297_v11  ;;  %v2520_v45 = vpop.permute.xlu1 %2519  ;;  %v2207_v44 = vpack.c.bf16 %v8297_v11, %v8295_v19 }
 0x892   :  { %6350 = vmatprep.subr.bf16.mxu1 %v2520_v45 }
 0x893   :  { %6330 = vmatprep.mubr.msk.bf16.mxu0 %vm628_vm1, %v2207_v44  ;;  %6351 = vmatpush3.bf16.msra.mxu1 %v2520_v45 }
 0x894   :  { %6331 = vmatmul.mubr.msk.bf16.gmra.mrb[52].mxu0 %vm628_vm1, %v2208_v9  ;;  %6352 = vmatprep.subr.bf16.mxu1 %v2522_v25 }
 0x895   :  { %v2524_v35 = vpop.permute.xlu1 %2523  ;;  %6342 = vmatprep.mubr.msk.bf16.mxu0 %vm538_vm0, %v2339_v38 }
 0x897   :  { %6353 = vmatpush3.bf16.msra.mxu1 %v2522_v25 }
 0x898   :  { %6354 = vmatprep.subr.bf16.mxu1 %v2524_v35 }
 0x899   :  { %v2526_v52 = vpop.permute.xlu1 %2525 }
 0x89b   :  { %6355 = vmatpush3.bf16.msra.mxu1 %v2524_v35 }
 0x89c   :  { %6343 = vmatmul.mubr.msk.bf16.vlgmr.msra.gmra.mrb[56].mxu0 %vm538_vm0, %v2341_v62  ;;  %6356 = vmatprep.subr.bf16.mxu1 %v2526_v52 }
 0x89d   :  { %6346 = vmatprep.mubr.msk.bf16.mxu0 %vm538_vm0, %v2343_v10  ;;  %v8306_v24 = vpop.permute.xlu1 %2657 }
 0x89f   :  { %6357 = vmatpush3.bf16.msra.mxu1 %v2526_v52 }
 0x8a0   :  { %6730 = vmatprep.subr.msk.bf16.mxu1 %vm538_vm0, %v8306_v24 }
 0x8a4   :  { %6347 = vmatmul.mubr.msk.bf16.gmra.mrb[60].mxu0 %vm538_vm0, %v2345_v36 }
 0x936   :  { %v8311_v9 = vpop.f32.mrb[48].mxu0 }
 0x937   :  { %10471 = vst [vmem:[#allocation93_spill] sm:$0xff] %v8311_v9  ;;  %v8313_v1 = vpop.f32.mrb[49].mxu0 }
 0x938   :  { %10472 = vst [vmem:[#allocation94_spill] sm:$0xff] %v8313_v1  ;;  %v8315_v31 = vpop.f32.mrb[50].mxu0 }
 0x939   :  { %10473 = vst [vmem:[#allocation95_spill] sm:$0xff] %v8315_v31  ;;  %v8317_v53 = vpop.f32.mrb[51].mxu0 }
 0x93a   :  { %10474 = vst [vmem:[#allocation96_spill] sm:$0xff] %v8317_v53 }
 0x967   :  { %v8319_v27 = vpop.f32.mrb[52].mxu0 }
 0x968   :  { %10475 = vst [vmem:[#allocation97_spill] sm:$0xff] %v8319_v27  ;;  %v8321_v22 = vpop.f32.mrb[53].mxu0 }
 0x969   :  { %10476 = vst [vmem:[#allocation98_spill] sm:$0xff] %v8321_v22  ;;  %v8323_v18 = vpop.f32.mrb[54].mxu0 }
 0x96a   :  { %10477 = vst [vmem:[#allocation99_spill] sm:$0xff] %v8323_v18  ;;  %v8325_v33 = vpop.f32.mrb[55].mxu0 }
 0x96b   :  { %10478 = vst [vmem:[#allocation100_spill] sm:$0xff] %v8325_v33 }
 0x96f   :  { %v6344_v38 = vpop.f32.mrb[56].mxu0 }
 0x970   :  { %v2412_v62 = vpop.f32.mrb[57].mxu0  ;;  %v2449_v10 = vsel %vm628_vm1, %v6344_v38, -inf }
 0x971   :  { %2450 = vmax.xlane.f32.xlu0 %v2449_v10  ;;  %v6345_v36 = vpop.f32.mrb[58].mxu0  ;;  %v2443_v25 = vsel %vm628_vm1, %v2412_v62, -inf }
 0x972   :  { %v2415_v45 = vpop.f32.mrb[59].mxu0  ;;  %v2452_v18 = vsel %vm628_vm1, %v6345_v36, -inf }
 0x973   :  { %v2446_v44 = vsel %vm628_vm1, %v2415_v45, -inf }
 0x974   :  { %2447 = vmax.xlane.f32.xlu1 %v2446_v44 }
 0x975   :  { %2444 = vmax.xlane.f32.xlu0 %v2443_v25 }
 0x977   :  { %v6348_v35 = vpop.f32.mrb[60].mxu0 }
 0x978   :  { %v8330_v52 = vpop.f32.mrb[61].mxu0  ;;  %v2461_v22 = vsel %vm628_vm1, %v6348_v35, -inf }
 0x979   :  { %2453 = vmax.xlane.f32.xlu0 %v2452_v18  ;;  %v6349_v27 = vpop.f32.mrb[62].mxu0  ;;  %v2455_v10 = vsel %vm628_vm1, %v8330_v52, -inf }
 0x97a   :  { %v8333_v33 = vpop.f32.mrb[63].mxu0  ;;  %v2464_v44 = vsel %vm628_vm1, %v6349_v27, -inf }
 0x97d   :  { %2462 = vmax.xlane.f32.xlu0 %v2461_v22  ;;  %v2458_v22 = vsel %vm628_vm1, %v8333_v33, -inf }
 0x981   :  { %2456 = vmax.xlane.f32.xlu0 %v2455_v10 }
 0x985   :  { %2661 = vrot.lane.b32.xlu1 %v10449_v48, %s7447_s8  ;;  %2465 = vmax.xlane.f32.xlu0 %v2464_v44 }
 0x99b   :  { %2659 = vrot.lane.b32.xlu0 %v7591_v17, %s7447_s8 }
 0x99f   :  { %2649 = vrot.lane.b32.xlu0 %v7557_v57, %s7447_s8 }
 0x9a3   :  { %2653 = vrot.lane.b32.xlu0 %v7615_v40, %s7447_s8 }
 0x9a7   :  { %2832 = vrot.lane.b32.xlu0 %v7694_v46, %s7447_s8 }
 0x9a9   :  { %2459 = vmax.xlane.f32.xlu1 %v2458_v22 }
 0x9ba   :  { %2663 = vrot.lane.b32.xlu1 %v7647_v5, %s7447_s8 }
 0x9be   :  { %2651 = vrot.lane.b32.xlu1 %v7587_v15, %s7447_s8 }
 0x9c2   :  { %2655 = vrot.lane.b32.xlu1 %v7643_v3, %s7447_s8 }
 0x9c6   :  { %2830 = vrot.lane.b32.xlu1 %v7696_v47, %s7447_s8 }
 0x9ca   :  { %2834 = vrot.lane.b32.xlu1 %v7702_v61, %s7447_s8 }
 0x9ce   :  { %2836 = vrot.lane.b32.xlu1 %v7700_v60, %s7447_s8 }
 0x9d2   :  { %2967 = vrot.lane.b32.xlu1 %v7559_v58, %s7441_s1 }
 0x9fe   :  { %v2451_v18 = vpop.xlane.xlu0 %2450 }
 0x9ff   :  { %v2469_v10 = vsub.f32 %v6344_v38, %v2451_v18 }
 0xa01   :  { %v2448_v25 = vpop.xlane.xlu1 %2447  ;;  %v2479_v11 = vmul.f32 1.442695, %v2469_v10 }
 0xa02   :  { %v2468_v44 = vsub.f32 %v2415_v45, %v2448_v25  ;;  %v2445_v22 = vpop.xlane.xlu0 %2444 }
 0xa03   :  { %v2467_v31 = vsub.f32 %v2412_v62, %v2445_v22 }
 0xa04   :  { %v2477_v9 = vmul.f32 1.442695, %v2468_v44 }
 0xa05   :  { %v2475_v50 = vmul.f32 1.442695, %v2467_v31 }
 0xa06   :  { %6927 = vpow2.f32 %v2477_v9  ;;  %v2454_v49 = vpop.xlane.xlu0 %2453 }
 0xa07   :  { %6929 = vpow2.f32 %v2475_v50  ;;  %v2470_v19 = vsub.f32 %v6345_v36, %v2454_v49  ;;  %v2662_v36 = vpop.permute.xlu1 %2661 }
 0xa08   :  { %6931 = vpow2.f32 %v2479_v11  ;;  %v2684_v18 = vsel %vm538_vm0, %v2662_v36, 0 }
 0xa09   :  { %v2481_v43 = vmul.f32 1.442695, %v2470_v19  ;;  %v2678_v19 = vsel %vm538_vm0, %v8306_v24, 0 }
 0xa0a   :  { %v2463_v53 = vpop.xlane.xlu0 %2462 }
 0xa0b   :  { %6933 = vpow2.f32 %v2481_v43  ;;  %v2473_v1 = vsub.f32 %v6348_v35, %v2463_v53 }
 0xa0d   :  { %v2487_v38 = vmul.f32 1.442695, %v2473_v1 }
 0xa0e   :  { %v2457_v6 = vpop.xlane.xlu0 %2456 }
 0xa0f   :  { %6935 = vpow2.f32 %v2487_v38  ;;  %v2471_v24 = vsub.f32 %v8330_v52, %v2457_v6 }
 0xa10   :  { %v8365_v12 = vpop.eup %6927 }
 0xa11   :  { %v8367_v59 = vpop.eup %6929  ;;  %v2483_v25 = vmul.f32 1.442695, %v2471_v24 }
 0xa12   :  { %10479 = vst [vmem:[#allocation101_spill] sm:$0xff] %v8367_v59  ;;  %v2466_v45 = vpop.xlane.xlu0 %2465  ;;  %v2515_v31 = vpack.c.bf16 %v8365_v12, %v8367_v59  ;;  %v8371_v9 = vpop.eup %6931 }
 0xa13   :  { %v2474_v62 = vsub.f32 %v6349_v27, %v2466_v45  ;;  %10480 = vst [vmem:[#allocation102_spill] sm:$0xff] %v8371_v9 }
 0xa14   :  { %6358 = vmatprep.mubr.msk.bf16.mxu1 %vm628_vm1, %v2515_v31 }
 0xa15   :  { %v8374_v49 = vpop.eup %6933  ;;  %v2489_v50 = vmul.f32 1.442695, %v2474_v62 }
 0xa16   :  { %v2516_v43 = vpack.c.bf16 %v8374_v49, %v8371_v9  ;;  %v2660_v11 = vpop.permute.xlu0 %2659 }
 0xa17   :  { %6937 = vpow2.f32 %v2489_v50  ;;  %v2681_v53 = vsel %vm538_vm0, %v2660_v11, 0 }
 0xa18   :  { %6359 = vmatmul.mubr.msk.bf16.vlgmr.msra.gmra.mrb[88].mxu1 %vm628_vm1, %v2516_v43  ;;  %6939 = vpow2.f32 %v2483_v25 }
 0xa19   :  { %6367 = vmatpush3.bf16.xpose.msra.mxu1 %v2678_v19  ;;  %v8382_v1 = vpop.eup %6935 }
 0xa1a   :  { %6731 = vmatprep.subr.msk.bf16.mxu1 %vm538_vm0, %v2660_v11  ;;  %10481 = vst [vmem:[#allocation103_spill] sm:$0xff] %v8382_v1  ;;  %v2650_v31 = vpop.permute.xlu0 %2649 }
 0xa1e   :  { %v2654_v50 = vpop.permute.xlu0 %2653 }
 0xa21   :  { %v8385_v27 = vpop.eup %6937  ;;  %6369 = vmatpush3.bf16.xpose.msra.mxu1 %v2681_v53 }
 0xa22   :  { %10482 = vst [vmem:[#allocation104_spill] sm:$0xff] %v8385_v27  ;;  %6732 = vmatprep.subr.msk.bf16.mxu1 %vm538_vm0, %v2662_v36  ;;  %v2518_v35 = vpack.c.bf16 %v8385_v27, %v8382_v1  ;;  %v8395_v19 = vpop.eup %6939  ;;  %v2833_v11 = vpop.permute.xlu0 %2832 }
 0xa23   :  { %10483 = vst [vmem:[#allocation105_spill] sm:$0xff] %v8395_v19 }
 0xa29   :  { %6371 = vmatpush3.bf16.xpose.msra.mxu1 %v2684_v18 }
 0xa36   :  { %v2460_v10 = vpop.xlane.xlu1 %2459 }
 0xa37   :  { %v2472_v44 = vsub.f32 %v8333_v33, %v2460_v10 }
 0xa39   :  { %v2485_v22 = vmul.f32 1.442695, %v2472_v44 }
 0xa3a   :  { %v2664_v38 = vpop.permute.xlu1 %2663 }
 0xa3b   :  { %6941 = vpow2.f32 %v2485_v22  ;;  %6733 = vmatprep.subr.msk.bf16.mxu1 %vm538_vm0, %v2664_v38  ;;  %v2687_v45 = vsel %vm538_vm0, %v2664_v38, 0 }
 0xa3c   :  { %6373 = vmatpush3.bf16.xpose.msra.mxu1 %v2687_v45 }
 0xa3e   :  { %v2652_v62 = vpop.permute.xlu1 %2651 }
 0xa42   :  { %v2656_v43 = vpop.permute.xlu1 %2655 }
 0xa45   :  { %v8397_v6 = vpop.eup %6941 }
 0xa46   :  { %10484 = vst [vmem:[#allocation106_spill] sm:$0xff] %v8397_v6  ;;  %v2831_v52 = vpop.permute.xlu1 %2830  ;;  %v2517_v33 = vpack.c.bf16 %v8397_v6, %v8395_v19 }
 0xa47   :  { %6382 = vmatprep.subr.bf16.mxu0 %v2831_v52 }
 0xa48   :  { %6362 = vmatprep.mubr.msk.bf16.mxu1 %vm628_vm1, %v2517_v33  ;;  %6383 = vmatpush3.bf16.msra.mxu0 %v2831_v52 }
 0xa49   :  { %6363 = vmatmul.mubr.msk.bf16.gmra.mrb[92].mxu1 %vm628_vm1, %v2518_v35  ;;  %6384 = vmatprep.subr.bf16.mxu0 %v2833_v11 }
 0xa4a   :  { %v2835_v53 = vpop.permute.xlu1 %2834  ;;  %6374 = vmatprep.mubr.msk.bf16.mxu1 %vm538_vm0, %v2650_v31 }
 0xa4c   :  { %6385 = vmatpush3.bf16.msra.mxu0 %v2833_v11 }
 0xa4d   :  { %6386 = vmatprep.subr.bf16.mxu0 %v2835_v53 }
 0xa4e   :  { %v2837_v36 = vpop.permute.xlu1 %2836 }
 0xa50   :  { %6387 = vmatpush3.bf16.msra.mxu0 %v2835_v53 }
 0xa51   :  { %6375 = vmatmul.mubr.msk.bf16.vlgmr.msra.gmra.mrb[96].mxu1 %vm538_vm0, %v2652_v62  ;;  %6388 = vmatprep.subr.bf16.mxu0 %v2837_v36 }
 0xa52   :  { %6378 = vmatprep.mubr.msk.bf16.mxu1 %vm538_vm0, %v2654_v50  ;;  %v8406_v18 = vpop.permute.xlu1 %2967 }
 0xa54   :  { %6389 = vmatpush3.bf16.msra.mxu0 %v2837_v36 }
 0xa55   :  { %6734 = vmatprep.subr.msk.bf16.mxu0 %vm538_vm0, %v8406_v18 }
 0xa59   :  { %6379 = vmatmul.mubr.msk.bf16.gmra.mrb[100].mxu1 %vm538_vm0, %v2656_v43 }
 0xaeb   :  { %v8411_v35 = vpop.f32.mrb[88].mxu1 }
 0xaec   :  { %10485 = vst [vmem:[#allocation107_spill] sm:$0xff] %v8411_v35  ;;  %v8413_v24 = vpop.f32.mrb[89].mxu1 }
 0xaed   :  { %10486 = vst [vmem:[#allocation108_spill] sm:$0xff] %v8413_v24  ;;  %v8415_v25 = vpop.f32.mrb[90].mxu1 }
 0xaee   :  { %10487 = vst [vmem:[#allocation109_spill] sm:$0xff] %v8415_v25  ;;  %v8417_v10 = vpop.f32.mrb[91].mxu1 }
 0xaef   :  { %10488 = vst [vmem:[#allocation110_spill] sm:$0xff] %v8417_v10 }
 0xb1c   :  { %v8419_v44 = vpop.f32.mrb[92].mxu1 }
 0xb1d   :  { %10489 = vst [vmem:[#allocation111_spill] sm:$0xff] %v8419_v44  ;;  %v8421_v22 = vpop.f32.mrb[93].mxu1 }
 0xb1e   :  { %10490 = vst [vmem:[#allocation112_spill] sm:$0xff] %v8421_v22  ;;  %v8423_v38 = vpop.f32.mrb[94].mxu1 }
 0xb1f   :  { %10491 = vst [vmem:[#allocation113_spill] sm:$0xff] %v8423_v38  ;;  %v8425_v45 = vpop.f32.mrb[95].mxu1 }
 0xb20   :  { %10492 = vst [vmem:[#allocation114_spill] sm:$0xff] %v8425_v45 }
 0xb24   :  { %v6376_v31 = vpop.f32.mrb[96].mxu1 }
 0xb25   :  { %v2723_v62 = vpop.f32.mrb[97].mxu1  ;;  %v2760_v50 = vsel %vm628_vm1, %v6376_v31, -inf }
 0xb26   :  { %2761 = vmax.xlane.f32.xlu0 %v2760_v50  ;;  %v6377_v43 = vpop.f32.mrb[98].mxu1  ;;  %v2754_v11 = vsel %vm628_vm1, %v2723_v62, -inf }
 0xb27   :  { %v2726_v52 = vpop.f32.mrb[99].mxu1  ;;  %v2763_v38 = vsel %vm628_vm1, %v6377_v43, -inf }
 0xb28   :  { %v2757_v33 = vsel %vm628_vm1, %v2726_v52, -inf }
 0xb29   :  { %2758 = vmax.xlane.f32.xlu1 %v2757_v33 }
 0xb2a   :  { %2755 = vmax.xlane.f32.xlu0 %v2754_v11 }
 0xb2c   :  { %v6380_v53 = vpop.f32.mrb[100].mxu1 }
 0xb2d   :  { %v8430_v36 = vpop.f32.mrb[101].mxu1  ;;  %v2772_v22 = vsel %vm628_vm1, %v6380_v53, -inf }
 0xb2e   :  { %2764 = vmax.xlane.f32.xlu0 %v2763_v38  ;;  %v6381_v44 = vpop.f32.mrb[102].mxu1  ;;  %v2766_v50 = vsel %vm628_vm1, %v8430_v36, -inf }
 0xb2f   :  { %v8433_v45 = vpop.f32.mrb[103].mxu1  ;;  %v2775_v33 = vsel %vm628_vm1, %v6381_v44, -inf }
 0xb32   :  { %2773 = vmax.xlane.f32.xlu0 %v2772_v22  ;;  %v2769_v22 = vsel %vm628_vm1, %v8433_v45, -inf }
 0xb36   :  { %2767 = vmax.xlane.f32.xlu0 %v2766_v50 }
 0xb3a   :  { %2971 = vrot.lane.b32.xlu1 %v7617_v42, %s7441_s1  ;;  %2776 = vmax.xlane.f32.xlu0 %v2775_v33 }
 0xb50   :  { %2969 = vrot.lane.b32.xlu0 %v7589_v16, %s7441_s1 }
 0xb54   :  { %2959 = vrot.lane.b32.xlu0 %v7555_v56, %s7441_s1 }
 0xb58   :  { %2963 = vrot.lane.b32.xlu0 %v7613_v39, %s7441_s1 }
 0xb5c   :  { %3142 = vrot.lane.b32.xlu0 %v7669_v34, %s7441_s1 }
 0xb5e   :  { %2770 = vmax.xlane.f32.xlu1 %v2769_v22 }
 0xb6f   :  { %2973 = vrot.lane.b32.xlu1 %v7645_v4, %s7441_s1 }
 0xb73   :  { %2961 = vrot.lane.b32.xlu1 %v7585_v14, %s7441_s1 }
 0xb77   :  { %2965 = vrot.lane.b32.xlu1 %v7641_v2, %s7441_s1 }
 0xb7b   :  { %3140 = vrot.lane.b32.xlu1 %v7671_v20, %s7441_s1 }
 0xb7f   :  { %3144 = vrot.lane.b32.xlu1 %v7684_v29, %s7441_s1 }
 0xb83   :  { %3146 = vrot.lane.b32.xlu1 %v7682_v28, %s7441_s1 }
 0xb87   :  { %3278 = vrot.lane.b32.xlu1 %v10432_v63, %s7441_s1 }
 0xbb3   :  { %v2762_v38 = vpop.xlane.xlu0 %2761 }
 0xbb4   :  { %v2780_v50 = vsub.f32 %v6376_v31, %v2762_v38 }
 0xbb6   :  { %v2759_v11 = vpop.xlane.xlu1 %2758  ;;  %v2790_v24 = vmul.f32 1.442695, %v2780_v50 }
 0xbb7   :  { %v2779_v33 = vsub.f32 %v2726_v52, %v2759_v11  ;;  %v2756_v22 = vpop.xlane.xlu0 %2755 }
 0xbb8   :  { %v2778_v25 = vsub.f32 %v2723_v62, %v2756_v22 }
 0xbb9   :  { %v2788_v35 = vmul.f32 1.442695, %v2779_v33 }
 0xbba   :  { %v2786_v10 = vmul.f32 1.442695, %v2778_v25 }
 0xbbb   :  { %6943 = vpow2.f32 %v2788_v35  ;;  %v2765_v1 = vpop.xlane.xlu0 %2764 }
 0xbbc   :  { %6945 = vpow2.f32 %v2786_v10  ;;  %v2781_v19 = vsub.f32 %v6377_v43, %v2765_v1  ;;  %v2972_v43 = vpop.permute.xlu1 %2971 }
 0xbbd   :  { %6947 = vpow2.f32 %v2790_v24  ;;  %v2994_v38 = vsel %vm538_vm0, %v2972_v43, 0 }
 0xbbe   :  { %v2792_v26 = vmul.f32 1.442695, %v2781_v19 }
 0xbbf   :  { %v2774_v55 = vpop.xlane.xlu0 %2773 }
 0xbc0   :  { %6949 = vpow2.f32 %v2792_v26  ;;  %v2784_v27 = vsub.f32 %v6380_v53, %v2774_v55  ;;  %v2988_v55 = vsel %vm538_vm0, %v8406_v18, 0 }
 0xbc2   :  { %v2798_v31 = vmul.f32 1.442695, %v2784_v27 }
 0xbc3   :  { %v2768_v6 = vpop.xlane.xlu0 %2767 }
 0xbc4   :  { %6951 = vpow2.f32 %v2798_v31  ;;  %v2782_v18 = vsub.f32 %v8430_v36, %v2768_v6 }
 0xbc5   :  { %v8465_v51 = vpop.eup %6943 }
 0xbc6   :  { %10493 = vst [vmem:[#allocation115_spill] sm:$0xff] %v8465_v51  ;;  %v8467_v9 = vpop.eup %6945  ;;  %v2794_v11 = vmul.f32 1.442695, %v2782_v18 }
 0xbc7   :  { %10494 = vst [vmem:[#allocation116_spill] sm:$0xff] %v8467_v9  ;;  %v2777_v52 = vpop.xlane.xlu0 %2776  ;;  %v2826_v25 = vpack.c.bf16 %v8465_v51, %v8467_v9  ;;  %v8471_v35 = vpop.eup %6947 }
 0xbc8   :  { %v2785_v62 = vsub.f32 %v6381_v44, %v2777_v52  ;;  %10495 = vst [vmem:[#allocation117_spill] sm:$0xff] %v8471_v35 }
 0xbc9   :  { %6390 = vmatprep.mubr.msk.bf16.mxu0 %vm628_vm1, %v2826_v25 }
 0xbca   :  { %v8474_v1 = vpop.eup %6949  ;;  %v2800_v19 = vmul.f32 1.442695, %v2785_v62 }
 0xbcb   :  { %10496 = vst [vmem:[#allocation118_spill] sm:$0xff] %v8474_v1  ;;  %v2827_v26 = vpack.c.bf16 %v8474_v1, %v8471_v35  ;;  %v2970_v27 = vpop.permute.xlu0 %2969 }
 0xbcc   :  { %6953 = vpow2.f32 %v2800_v19  ;;  %v2991_v10 = vsel %vm538_vm0, %v2970_v27, 0 }
 0xbcd   :  { %6391 = vmatmul.mubr.msk.bf16.vlgmr.msra.gmra.mrb[64].mxu0 %vm628_vm1, %v2827_v26  ;;  %6955 = vpow2.f32 %v2794_v11 }
 0xbce   :  { %6399 = vmatpush3.bf16.xpose.msra.mxu0 %v2988_v55  ;;  %v8482_v24 = vpop.eup %6951 }
 0xbcf   :  { %6735 = vmatprep.subr.msk.bf16.mxu0 %vm538_vm0, %v2970_v27  ;;  %10497 = vst [vmem:[#allocation119_spill] sm:$0xff] %v8482_v24  ;;  %v2960_v25 = vpop.permute.xlu0 %2959 }
 0xbd3   :  { %v2964_v19 = vpop.permute.xlu0 %2963 }
 0xbd6   :  { %v8485_v44 = vpop.eup %6953  ;;  %6401 = vmatpush3.bf16.xpose.msra.mxu0 %v2991_v10 }
 0xbd7   :  { %10498 = vst [vmem:[#allocation120_spill] sm:$0xff] %v8485_v44  ;;  %6736 = vmatprep.subr.msk.bf16.mxu0 %vm538_vm0, %v2972_v43  ;;  %v2829_v53 = vpack.c.bf16 %v8485_v44, %v8482_v24  ;;  %v8495_v55 = vpop.eup %6955  ;;  %v3143_v27 = vpop.permute.xlu0 %3142 }
 0xbd8   :  { %10499 = vst [vmem:[#allocation121_spill] sm:$0xff] %v8495_v55 }
 0xbde   :  { %6403 = vmatpush3.bf16.xpose.msra.mxu0 %v2994_v38 }
 0xbeb   :  { %v2771_v50 = vpop.xlane.xlu1 %2770 }
 0xbec   :  { %v2783_v33 = vsub.f32 %v8433_v45, %v2771_v50 }
 0xbee   :  { %v2796_v22 = vmul.f32 1.442695, %v2783_v33 }
 0xbef   :  { %v2974_v31 = vpop.permute.xlu1 %2973 }
 0xbf0   :  { %6957 = vpow2.f32 %v2796_v22  ;;  %6737 = vmatprep.subr.msk.bf16.mxu0 %vm538_vm0, %v2974_v31  ;;  %v2997_v52 = vsel %vm538_vm0, %v2974_v31, 0 }
 0xbf1   :  { %6405 = vmatpush3.bf16.xpose.msra.mxu0 %v2997_v52 }
 0xbf3   :  { %v2962_v62 = vpop.permute.xlu1 %2961 }
 0xbf7   :  { %v2966_v26 = vpop.permute.xlu1 %2965 }
 0xbfa   :  { %v8497_v6 = vpop.eup %6957 }
 0xbfb   :  { %10500 = vst [vmem:[#allocation122_spill] sm:$0xff] %v8497_v6  ;;  %v3141_v36 = vpop.permute.xlu1 %3140  ;;  %v2828_v45 = vpack.c.bf16 %v8497_v6, %v8495_v55 }
 0xbfc   :  { %6414 = vmatprep.subr.bf16.mxu1 %v3141_v36 }
 0xbfd   :  { %6394 = vmatprep.mubr.msk.bf16.mxu0 %vm628_vm1, %v2828_v45  ;;  %6415 = vmatpush3.bf16.msra.mxu1 %v3141_v36 }
 0xbfe   :  { %6395 = vmatmul.mubr.msk.bf16.gmra.mrb[68].mxu0 %vm628_vm1, %v2829_v53  ;;  %6416 = vmatprep.subr.bf16.mxu1 %v3143_v27 }
 0xbff   :  { %v3145_v10 = vpop.permute.xlu1 %3144  ;;  %6406 = vmatprep.mubr.msk.bf16.mxu0 %vm538_vm0, %v2960_v25 }
 0xc01   :  { %6417 = vmatpush3.bf16.msra.mxu1 %v3143_v27 }
 0xc02   :  { %6418 = vmatprep.subr.bf16.mxu1 %v3145_v10 }
 0xc03   :  { %v3147_v43 = vpop.permute.xlu1 %3146 }
 0xc05   :  { %6419 = vmatpush3.bf16.msra.mxu1 %v3145_v10 }
 0xc06   :  { %6407 = vmatmul.mubr.msk.bf16.vlgmr.msra.gmra.mrb[72].mxu0 %vm538_vm0, %v2962_v62  ;;  %6420 = vmatprep.subr.bf16.mxu1 %v3147_v43 }
 0xc07   :  { %6410 = vmatprep.mubr.msk.bf16.mxu0 %vm538_vm0, %v2964_v19  ;;  %v8506_v38 = vpop.permute.xlu1 %3278 }
 0xc09   :  { %6421 = vmatpush3.bf16.msra.mxu1 %v3147_v43 }
 0xc0a   :  { %6738 = vmatprep.subr.msk.bf16.mxu1 %vm538_vm0, %v8506_v38 }
 0xc0e   :  { %6411 = vmatmul.mubr.msk.bf16.gmra.mrb[76].mxu0 %vm538_vm0, %v2966_v26 }
 0xca0   :  { %v8511_v53 = vpop.f32.mrb[64].mxu0 }
 0xca1   :  { %10501 = vst [vmem:[#allocation123_spill] sm:$0xff] %v8511_v53  ;;  %v8513_v18 = vpop.f32.mrb[65].mxu0 }
 0xca2   :  { %10502 = vst [vmem:[#allocation124_spill] sm:$0xff] %v8513_v18  ;;  %v8515_v11 = vpop.f32.mrb[66].mxu0 }
 0xca3   :  { %10503 = vst [vmem:[#allocation125_spill] sm:$0xff] %v8515_v11  ;;  %v8517_v50 = vpop.f32.mrb[67].mxu0 }
 0xca4   :  { %10504 = vst [vmem:[#allocation126_spill] sm:$0xff] %v8517_v50 }
 0xcd1   :  { %v8519_v33 = vpop.f32.mrb[68].mxu0 }
 0xcd2   :  { %10505 = vst [vmem:[#allocation127_spill] sm:$0xff] %v8519_v33  ;;  %v8521_v22 = vpop.f32.mrb[69].mxu0 }
 0xcd3   :  { %10506 = vst [vmem:[#allocation128_spill] sm:$0xff] %v8521_v22  ;;  %v8523_v31 = vpop.f32.mrb[70].mxu0 }
 0xcd4   :  { %10507 = vst [vmem:[#allocation129_spill] sm:$0xff] %v8523_v31  ;;  %v8525_v52 = vpop.f32.mrb[71].mxu0 }
 0xcd5   :  { %10508 = vst [vmem:[#allocation130_spill] sm:$0xff] %v8525_v52 }
 0xcd9   :  { %v6408_v25 = vpop.f32.mrb[72].mxu0 }
 0xcda   :  { %v3033_v62 = vpop.f32.mrb[73].mxu0  ;;  %v3070_v19 = vsel %vm628_vm1, %v6408_v25, -inf }
 0xcdb   :  { %3071 = vmax.xlane.f32.xlu0 %v3070_v19  ;;  %v6409_v26 = vpop.f32.mrb[74].mxu0  ;;  %v3064_v27 = vsel %vm628_vm1, %v3033_v62, -inf }
 0xcdc   :  { %v3036_v36 = vpop.f32.mrb[75].mxu0  ;;  %v3073_v31 = vsel %vm628_vm1, %v6409_v26, -inf }
 0xcdd   :  { %v3067_v45 = vsel %vm628_vm1, %v3036_v36, -inf }
 0xcde   :  { %3068 = vmax.xlane.f32.xlu1 %v3067_v45 }
 0xcdf   :  { %3065 = vmax.xlane.f32.xlu0 %v3064_v27 }
 0xce1   :  { %v6412_v10 = vpop.f32.mrb[76].mxu0 }
 0xce2   :  { %v8530_v43 = vpop.f32.mrb[77].mxu0  ;;  %v3082_v22 = vsel %vm628_vm1, %v6412_v10, -inf }
 0xce3   :  { %3074 = vmax.xlane.f32.xlu0 %v3073_v31  ;;  %v6413_v52 = vpop.f32.mrb[78].mxu0  ;;  %v3076_v19 = vsel %vm628_vm1, %v8530_v43, -inf }
 0xce4   :  { %v8533_v33 = vpop.f32.mrb[79].mxu0  ;;  %v3085_v45 = vsel %vm628_vm1, %v6413_v52, -inf }
 0xce7   :  { %3083 = vmax.xlane.f32.xlu0 %v3082_v22  ;;  %v3079_v22 = vsel %vm628_vm1, %v8533_v33, -inf }
 0xceb   :  { %3077 = vmax.xlane.f32.xlu0 %v3076_v19 }
 0xcef   :  { %3282 = vrot.lane.b32.xlu1 %v10449_v48, %s7441_s1  ;;  %3086 = vmax.xlane.f32.xlu0 %v3085_v45 }
 0xd05   :  { %3280 = vrot.lane.b32.xlu0 %v7591_v17, %s7441_s1 }
 0xd09   :  { %3270 = vrot.lane.b32.xlu0 %v7557_v57, %s7441_s1 }
 0xd0d   :  { %3274 = vrot.lane.b32.xlu0 %v7615_v40, %s7441_s1 }
 0xd11   :  { %3453 = vrot.lane.b32.xlu0 %v7694_v46, %s7441_s1 }
 0xd13   :  { %3080 = vmax.xlane.f32.xlu1 %v3079_v22 }
 0xd24   :  { %3284 = vrot.lane.b32.xlu1 %v7647_v5, %s7441_s1 }
 0xd28   :  { %3272 = vrot.lane.b32.xlu1 %v7587_v15, %s7441_s1 }
 0xd2c   :  { %3276 = vrot.lane.b32.xlu1 %v7643_v3, %s7441_s1 }
 0xd30   :  { %3451 = vrot.lane.b32.xlu1 %v7696_v47, %s7441_s1 }
 0xd34   :  { %3455 = vrot.lane.b32.xlu1 %v7702_v61, %s7441_s1 }
 0xd38   :  { %3457 = vrot.lane.b32.xlu1 %v7700_v60, %s7441_s1 }
 0xd3c   :  { %3588 = vrot.lane.b32.xlu1 %v7559_v58, %s7448_s9 }
 0xd68   :  { %v3072_v31 = vpop.xlane.xlu0 %3071 }
 0xd69   :  { %v3090_v19 = vsub.f32 %v6408_v25, %v3072_v31 }
 0xd6b   :  { %v3069_v27 = vpop.xlane.xlu1 %3068  ;;  %v3100_v18 = vmul.f32 1.442695, %v3090_v19 }
 0xd6c   :  { %v3089_v45 = vsub.f32 %v3036_v36, %v3069_v27  ;;  %v3066_v22 = vpop.xlane.xlu0 %3065 }
 0xd6d   :  { %v3088_v11 = vsub.f32 %v3033_v62, %v3066_v22 }
 0xd6e   :  { %v3098_v53 = vmul.f32 1.442695, %v3089_v45 }
 0xd6f   :  { %v3096_v50 = vmul.f32 1.442695, %v3088_v11 }
 0xd70   :  { %6959 = vpow2.f32 %v3098_v53  ;;  %v3075_v44 = vpop.xlane.xlu0 %3074 }
 0xd71   :  { %6961 = vpow2.f32 %v3096_v50  ;;  %v3091_v6 = vsub.f32 %v6409_v26, %v3075_v44  ;;  %v3283_v26 = vpop.permute.xlu1 %3282 }
 0xd72   :  { %6963 = vpow2.f32 %v3100_v18  ;;  %v3305_v31 = vsel %vm538_vm0, %v3283_v26, 0 }
 0xd73   :  { %v3102_v24 = vmul.f32 1.442695, %v3091_v6 }
 0xd74   :  { %v3084_v55 = vpop.xlane.xlu0 %3083 }
 0xd75   :  { %6965 = vpow2.f32 %v3102_v24  ;;  %v3094_v1 = vsub.f32 %v6412_v10, %v3084_v55 }
 0xd77   :  { %v3108_v25 = vmul.f32 1.442695, %v3094_v1  ;;  %v3299_v1 = vsel %vm538_vm0, %v8506_v38, 0 }
 0xd78   :  { %v3078_v51 = vpop.xlane.xlu0 %3077 }
 0xd79   :  { %6967 = vpow2.f32 %v3108_v25  ;;  %v3092_v38 = vsub.f32 %v8530_v43, %v3078_v51 }
 0xd7a   :  { %v8565_v35 = vpop.eup %6959 }
 0xd7b   :  { %v8567_v9 = vpop.eup %6961  ;;  %v3104_v27 = vmul.f32 1.442695, %v3092_v38 }
 0xd7c   :  { %10509 = vst [vmem:[#allocation131_spill] sm:$0xff] %v8567_v9  ;;  %v3087_v36 = vpop.xlane.xlu0 %3086  ;;  %v3136_v11 = vpack.c.bf16 %v8565_v35, %v8567_v9  ;;  %v8571_v53 = vpop.eup %6963 }
 0xd7d   :  { %v3095_v62 = vsub.f32 %v6413_v52, %v3087_v36  ;;  %10510 = vst [vmem:[#allocation132_spill] sm:$0xff] %v8571_v53 }
 0xd7e   :  { %6422 = vmatprep.mubr.msk.bf16.mxu1 %vm628_vm1, %v3136_v11 }
 0xd7f   :  { %v8574_v44 = vpop.eup %6965  ;;  %v3110_v6 = vmul.f32 1.442695, %v3095_v62 }
 0xd80   :  { %v3137_v24 = vpack.c.bf16 %v8574_v44, %v8571_v53  ;;  %v3281_v55 = vpop.permute.xlu0 %3280 }
 0xd81   :  { %6969 = vpow2.f32 %v3110_v6  ;;  %v3302_v50 = vsel %vm538_vm0, %v3281_v55, 0 }
 0xd82   :  { %6423 = vmatmul.mubr.msk.bf16.vlgmr.msra.gmra.mrb[104].mxu1 %vm628_vm1, %v3137_v24  ;;  %6971 = vpow2.f32 %v3104_v27 }
 0xd83   :  { %6431 = vmatpush3.bf16.xpose.msra.mxu1 %v3299_v1  ;;  %v8582_v18 = vpop.eup %6967 }
 0xd84   :  { %6739 = vmatprep.subr.msk.bf16.mxu1 %vm538_vm0, %v3281_v55  ;;  %10511 = vst [vmem:[#allocation133_spill] sm:$0xff] %v8582_v18  ;;  %v3271_v11 = vpop.permute.xlu0 %3270 }
 0xd88   :  { %v3275_v6 = vpop.permute.xlu0 %3274 }
 0xd8b   :  { %v8585_v52 = vpop.eup %6969  ;;  %6433 = vmatpush3.bf16.xpose.msra.mxu1 %v3302_v50 }
 0xd8c   :  { %10512 = vst [vmem:[#allocation134_spill] sm:$0xff] %v8585_v52  ;;  %6740 = vmatprep.subr.msk.bf16.mxu1 %vm538_vm0, %v3283_v26  ;;  %v3139_v10 = vpack.c.bf16 %v8585_v52, %v8582_v18  ;;  %v8595_v1 = vpop.eup %6971  ;;  %v3454_v55 = vpop.permute.xlu0 %3453 }
 0xd8d   :  { %10513 = vst [vmem:[#allocation135_spill] sm:$0xff] %v8595_v1 }
 0xd93   :  { %6435 = vmatpush3.bf16.xpose.msra.mxu1 %v3305_v31 }
 0xda0   :  { %v3081_v19 = vpop.xlane.xlu1 %3080 }
 0xda1   :  { %v3093_v45 = vsub.f32 %v8533_v33, %v3081_v19 }
 0xda3   :  { %v3106_v22 = vmul.f32 1.442695, %v3093_v45 }
 0xda4   :  { %v3285_v25 = vpop.permute.xlu1 %3284 }
 0xda5   :  { %6973 = vpow2.f32 %v3106_v22  ;;  %6741 = vmatprep.subr.msk.bf16.mxu1 %vm538_vm0, %v3285_v25  ;;  %v3308_v36 = vsel %vm538_vm0, %v3285_v25, 0 }
 0xda6   :  { %6437 = vmatpush3.bf16.xpose.msra.mxu1 %v3308_v36 }
 0xda8   :  { %v3273_v62 = vpop.permute.xlu1 %3272 }
 0xdac   :  { %v3277_v24 = vpop.permute.xlu1 %3276 }
 0xdaf   :  { %v8597_v51 = vpop.eup %6973 }
 0xdb0   :  { %10514 = vst [vmem:[#allocation136_spill] sm:$0xff] %v8597_v51  ;;  %v3452_v43 = vpop.permute.xlu1 %3451  ;;  %v3138_v33 = vpack.c.bf16 %v8597_v51, %v8595_v1 }
 0xdb1   :  { %6446 = vmatprep.subr.bf16.mxu0 %v3452_v43 }
 0xdb2   :  { %6426 = vmatprep.mubr.msk.bf16.mxu1 %vm628_vm1, %v3138_v33  ;;  %6447 = vmatpush3.bf16.msra.mxu0 %v3452_v43 }
 0xdb3   :  { %6427 = vmatmul.mubr.msk.bf16.gmra.mrb[108].mxu1 %vm628_vm1, %v3139_v10  ;;  %6448 = vmatprep.subr.bf16.mxu0 %v3454_v55 }
 0xdb4   :  { %v3456_v50 = vpop.permute.xlu1 %3455  ;;  %6438 = vmatprep.mubr.msk.bf16.mxu1 %vm538_vm0, %v3271_v11 }
 0xdb6   :  { %6449 = vmatpush3.bf16.msra.mxu0 %v3454_v55 }
 0xdb7   :  { %6450 = vmatprep.subr.bf16.mxu0 %v3456_v50 }
 0xdb8   :  { %v3458_v26 = vpop.permute.xlu1 %3457 }
 0xdba   :  { %6451 = vmatpush3.bf16.msra.mxu0 %v3456_v50 }
 0xdbb   :  { %6439 = vmatmul.mubr.msk.bf16.vlgmr.msra.gmra.mrb[112].mxu1 %vm538_vm0, %v3273_v62  ;;  %6452 = vmatprep.subr.bf16.mxu0 %v3458_v26 }
 0xdbc   :  { %6442 = vmatprep.mubr.msk.bf16.mxu1 %vm538_vm0, %v3275_v6  ;;  %v8606_v31 = vpop.permute.xlu1 %3588 }
 0xdbe   :  { %6453 = vmatpush3.bf16.msra.mxu0 %v3458_v26 }
 0xdbf   :  { %6742 = vmatprep.subr.msk.bf16.mxu0 %vm538_vm0, %v8606_v31 }
 0xdc3   :  { %6443 = vmatmul.mubr.msk.bf16.gmra.mrb[116].mxu1 %vm538_vm0, %v3277_v24 }
 0xe55   :  { %v8611_v10 = vpop.f32.mrb[104].mxu1 }
 0xe56   :  { %10515 = vst [vmem:[#allocation137_spill] sm:$0xff] %v8611_v10  ;;  %v8613_v38 = vpop.f32.mrb[105].mxu1 }
 0xe57   :  { %10516 = vst [vmem:[#allocation138_spill] sm:$0xff] %v8613_v38  ;;  %v8615_v27 = vpop.f32.mrb[106].mxu1 }
 0xe58   :  { %10517 = vst [vmem:[#allocation139_spill] sm:$0xff] %v8615_v27  ;;  %v8617_v19 = vpop.f32.mrb[107].mxu1 }
 0xe59   :  { %10518 = vst [vmem:[#allocation140_spill] sm:$0xff] %v8617_v19 }
 0xe86   :  { %v8619_v45 = vpop.f32.mrb[108].mxu1 }
 0xe87   :  { %10519 = vst [vmem:[#allocation141_spill] sm:$0xff] %v8619_v45  ;;  %v8621_v22 = vpop.f32.mrb[109].mxu1 }
 0xe88   :  { %10520 = vst [vmem:[#allocation142_spill] sm:$0xff] %v8621_v22  ;;  %v8623_v25 = vpop.f32.mrb[110].mxu1 }
 0xe89   :  { %10521 = vst [vmem:[#allocation143_spill] sm:$0xff] %v8623_v25  ;;  %v8625_v36 = vpop.f32.mrb[111].mxu1 }
 0xe8a   :  { %10522 = vst [vmem:[#allocation144_spill] sm:$0xff] %v8625_v36 }
 0xe8e   :  { %v6440_v11 = vpop.f32.mrb[112].mxu1 }
 0xe8f   :  { %v3344_v62 = vpop.f32.mrb[113].mxu1  ;;  %v3381_v6 = vsel %vm628_vm1, %v6440_v11, -inf }
 0xe90   :  { %3382 = vmax.xlane.f32.xlu0 %v3381_v6  ;;  %v6441_v24 = vpop.f32.mrb[114].mxu1  ;;  %v3375_v55 = vsel %vm628_vm1, %v3344_v62, -inf }
 0xe91   :  { %v3347_v43 = vpop.f32.mrb[115].mxu1  ;;  %v3384_v25 = vsel %vm628_vm1, %v6441_v24, -inf }
 0xe92   :  { %v3378_v33 = vsel %vm628_vm1, %v3347_v43, -inf }
 0xe93   :  { %3379 = vmax.xlane.f32.xlu1 %v3378_v33 }
 0xe94   :  { %3376 = vmax.xlane.f32.xlu0 %v3375_v55 }
 0xe96   :  { %v6444_v50 = vpop.f32.mrb[116].mxu1 }
 0xe97   :  { %v8630_v26 = vpop.f32.mrb[117].mxu1  ;;  %v3393_v22 = vsel %vm628_vm1, %v6444_v50, -inf }
 0xe98   :  { %3385 = vmax.xlane.f32.xlu0 %v3384_v25  ;;  %v6445_v45 = vpop.f32.mrb[118].mxu1  ;;  %v3387_v6 = vsel %vm628_vm1, %v8630_v26, -inf }
 0xe99   :  { %v8633_v36 = vpop.f32.mrb[119].mxu1  ;;  %v3396_v33 = vsel %vm628_vm1, %v6445_v45, -inf }
 0xe9c   :  { %3394 = vmax.xlane.f32.xlu0 %v3393_v22  ;;  %v3390_v22 = vsel %vm628_vm1, %v8633_v36, -inf }
 0xea0   :  { %3388 = vmax.xlane.f32.xlu0 %v3387_v6 }
 0xea4   :  { %3592 = vrot.lane.b32.xlu1 %v7617_v42, %s7448_s9  ;;  %3397 = vmax.xlane.f32.xlu0 %v3396_v33 }
 0xeba   :  { %3590 = vrot.lane.b32.xlu0 %v7589_v16, %s7448_s9 }
 0xebe   :  { %3580 = vrot.lane.b32.xlu0 %v7555_v56, %s7448_s9 }
 0xec2   :  { %3584 = vrot.lane.b32.xlu0 %v7613_v39, %s7448_s9 }
 0xec6   :  { %3763 = vrot.lane.b32.xlu0 %v7669_v34, %s7448_s9 }
 0xec8   :  { %3391 = vmax.xlane.f32.xlu1 %v3390_v22 }
 0xed9   :  { %3594 = vrot.lane.b32.xlu1 %v7645_v4, %s7448_s9 }
 0xedd   :  { %3582 = vrot.lane.b32.xlu1 %v7585_v14, %s7448_s9 }
 0xee1   :  { %3586 = vrot.lane.b32.xlu1 %v7641_v2, %s7448_s9 }
 0xee5   :  { %3761 = vrot.lane.b32.xlu1 %v7671_v20, %s7448_s9 }
 0xee9   :  { %3765 = vrot.lane.b32.xlu1 %v7684_v29, %s7448_s9 }
 0xeed   :  { %3767 = vrot.lane.b32.xlu1 %v7682_v28, %s7448_s9 }
 0xef1   :  { %3899 = vrot.lane.b32.xlu1 %v10432_v63, %s7448_s9 }
 0xf1d   :  { %v3383_v25 = vpop.xlane.xlu0 %3382 }
 0xf1e   :  { %v3401_v6 = vsub.f32 %v6440_v11, %v3383_v25 }
 0xf20   :  { %v3380_v55 = vpop.xlane.xlu1 %3379  ;;  %v3411_v38 = vmul.f32 1.442695, %v3401_v6 }
 0xf21   :  { %v3400_v33 = vsub.f32 %v3347_v43, %v3380_v55  ;;  %v3377_v22 = vpop.xlane.xlu0 %3376 }
 0xf22   :  { %v3399_v27 = vsub.f32 %v3344_v62, %v3377_v22 }
 0xf23   :  { %v3409_v10 = vmul.f32 1.442695, %v3400_v33 }
 0xf24   :  { %v3407_v19 = vmul.f32 1.442695, %v3399_v27 }
 0xf25   :  { %6975 = vpow2.f32 %v3409_v10  ;;  %v3386_v18 = vpop.xlane.xlu0 %3385 }
 0xf26   :  { %6977 = vpow2.f32 %v3407_v19  ;;  %v3402_v1 = vsub.f32 %v6441_v24, %v3386_v18  ;;  %v3593_v24 = vpop.permute.xlu1 %3592 }
 0xf27   :  { %6979 = vpow2.f32 %v3411_v38  ;;  %v3615_v25 = vsel %vm538_vm0, %v3593_v24, 0 }
 0xf28   :  { %v3413_v52 = vmul.f32 1.442695, %v3402_v1 }
 0xf29   :  { %v3395_v51 = vpop.xlane.xlu0 %3394 }
 0xf2a   :  { %6981 = vpow2.f32 %v3413_v52  ;;  %v3405_v53 = vsub.f32 %v6444_v50, %v3395_v51 }
 0xf2c   :  { %v3419_v11 = vmul.f32 1.442695, %v3405_v53  ;;  %v3609_v53 = vsel %vm538_vm0, %v8606_v31, 0 }
 0xf2d   :  { %v3389_v9 = vpop.xlane.xlu0 %3388 }
 0xf2e   :  { %6983 = vpow2.f32 %v3419_v11  ;;  %v3403_v31 = vsub.f32 %v8630_v26, %v3389_v9 }
 0xf2f   :  { %v8665_v54 = vpop.eup %6975 }
 0xf30   :  { %10523 = vst [vmem:[#allocation145_spill] sm:$0xff] %v8665_v54  ;;  %v8667_v59 = vpop.eup %6977  ;;  %v3415_v55 = vmul.f32 1.442695, %v3403_v31 }
 0xf31   :  { %10524 = vst [vmem:[#allocation146_spill] sm:$0xff] %v8667_v59  ;;  %v3398_v43 = vpop.xlane.xlu0 %3397  ;;  %v3447_v27 = vpack.c.bf16 %v8665_v54, %v8667_v59  ;;  %v8671_v10 = vpop.eup %6979 }
 0xf32   :  { %v3406_v62 = vsub.f32 %v6445_v45, %v3398_v43  ;;  %10525 = vst [vmem:[#allocation147_spill] sm:$0xff] %v8671_v10 }
 0xf33   :  { %6454 = vmatprep.mubr.msk.bf16.mxu0 %vm628_vm1, %v3447_v27 }
 0xf34   :  { %v8674_v18 = vpop.eup %6981  ;;  %v3421_v1 = vmul.f32 1.442695, %v3406_v62 }
 0xf35   :  { %10526 = vst [vmem:[#allocation148_spill] sm:$0xff] %v8674_v18  ;;  %v3448_v52 = vpack.c.bf16 %v8674_v18, %v8671_v10  ;;  %v3591_v51 = vpop.permute.xlu0 %3590 }
 0xf36   :  { %6985 = vpow2.f32 %v3421_v1  ;;  %v3612_v19 = vsel %vm538_vm0, %v3591_v51, 0 }
 0xf37   :  { %6455 = vmatmul.mubr.msk.bf16.vlgmr.msra.gmra.mrb[80].mxu0 %vm628_vm1, %v3448_v52  ;;  %6987 = vpow2.f32 %v3415_v55 }
 0xf38   :  { %6463 = vmatpush3.bf16.xpose.msra.mxu0 %v3609_v53  ;;  %v8682_v38 = vpop.eup %6983 }
 0xf39   :  { %6743 = vmatprep.subr.msk.bf16.mxu0 %vm538_vm0, %v3591_v51  ;;  %10527 = vst [vmem:[#allocation149_spill] sm:$0xff] %v8682_v38  ;;  %v3581_v27 = vpop.permute.xlu0 %3580 }
 0xf3d   :  { %v3585_v1 = vpop.permute.xlu0 %3584 }
 0xf40   :  { %v8685_v45 = vpop.eup %6985  ;;  %6465 = vmatpush3.bf16.xpose.msra.mxu0 %v3612_v19 }
 0xf41   :  { %10528 = vst [vmem:[#allocation150_spill] sm:$0xff] %v8685_v45  ;;  %6744 = vmatprep.subr.msk.bf16.mxu0 %vm538_vm0, %v3593_v24  ;;  %v3450_v50 = vpack.c.bf16 %v8685_v45, %v8682_v38  ;;  %v8695_v53 = vpop.eup %6987  ;;  %v3764_v51 = vpop.permute.xlu0 %3763 }
 0xf42   :  { %10529 = vst [vmem:[#allocation151_spill] sm:$0xff] %v8695_v53 }
 0xf48   :  { %6467 = vmatpush3.bf16.xpose.msra.mxu0 %v3615_v25 }
 0xf55   :  { %v3392_v6 = vpop.xlane.xlu1 %3391 }
 0xf56   :  { %v3404_v33 = vsub.f32 %v8633_v36, %v3392_v6 }
 0xf58   :  { %v3417_v22 = vmul.f32 1.442695, %v3404_v33 }
 0xf59   :  { %v3595_v11 = vpop.permute.xlu1 %3594 }
 0xf5a   :  { %6989 = vpow2.f32 %v3417_v22  ;;  %6745 = vmatprep.subr.msk.bf16.mxu0 %vm538_vm0, %v3595_v11  ;;  %v3618_v43 = vsel %vm538_vm0, %v3595_v11, 0 }
 0xf5b   :  { %6469 = vmatpush3.bf16.xpose.msra.mxu0 %v3618_v43 }
 0xf5d   :  { %v3583_v62 = vpop.permute.xlu1 %3582 }
 0xf61   :  { %v3587_v52 = vpop.permute.xlu1 %3586 }
 0xf64   :  { %v8697_v9 = vpop.eup %6989 }
 0xf65   :  { %10530 = vst [vmem:[#allocation152_spill] sm:$0xff] %v8697_v9  ;;  %v3762_v26 = vpop.permute.xlu1 %3761  ;;  %v3449_v36 = vpack.c.bf16 %v8697_v9, %v8695_v53 }
 0xf66   :  { %6478 = vmatprep.subr.bf16.mxu1 %v3762_v26 }
 0xf67   :  { %6458 = vmatprep.mubr.msk.bf16.mxu0 %vm628_vm1, %v3449_v36  ;;  %6479 = vmatpush3.bf16.msra.mxu1 %v3762_v26 }
 0xf68   :  { %6459 = vmatmul.mubr.msk.bf16.gmra.mrb[84].mxu0 %vm628_vm1, %v3450_v50  ;;  %6480 = vmatprep.subr.bf16.mxu1 %v3764_v51 }
 0xf69   :  { %v3766_v19 = vpop.permute.xlu1 %3765  ;;  %6470 = vmatprep.mubr.msk.bf16.mxu0 %vm538_vm0, %v3581_v27 }
 0xf6b   :  { %6481 = vmatpush3.bf16.msra.mxu1 %v3764_v51 }
 0xf6c   :  { %6482 = vmatprep.subr.bf16.mxu1 %v3766_v19 }
 0xf6d   :  { %v3768_v24 = vpop.permute.xlu1 %3767 }
 0xf6f   :  { %6483 = vmatpush3.bf16.msra.mxu1 %v3766_v19 }
 0xf70   :  { %6471 = vmatmul.mubr.msk.bf16.vlgmr.msra.gmra.mrb[88].mxu0 %vm538_vm0, %v3583_v62  ;;  %6484 = vmatprep.subr.bf16.mxu1 %v3768_v24 }
 0xf71   :  { %6474 = vmatprep.mubr.msk.bf16.mxu0 %vm538_vm0, %v3585_v1  ;;  %v8706_v25 = vpop.permute.xlu1 %3899 }
 0xf73   :  { %6485 = vmatpush3.bf16.msra.mxu1 %v3768_v24 }
 0xf74   :  { %6746 = vmatprep.subr.msk.bf16.mxu1 %vm538_vm0, %v8706_v25 }
 0xf78   :  { %6475 = vmatmul.mubr.msk.bf16.gmra.mrb[92].mxu0 %vm538_vm0, %v3587_v52 }
0x100a   :  { %v8711_v50 = vpop.f32.mrb[80].mxu0 }
0x100b   :  { %10531 = vst [vmem:[#allocation153_spill] sm:$0xff] %v8711_v50  ;;  %v8713_v31 = vpop.f32.mrb[81].mxu0 }
0x100c   :  { %10532 = vst [vmem:[#allocation154_spill] sm:$0xff] %v8713_v31  ;;  %v8715_v55 = vpop.f32.mrb[82].mxu0 }
0x100d   :  { %10533 = vst [vmem:[#allocation155_spill] sm:$0xff] %v8715_v55  ;;  %v8717_v6 = vpop.f32.mrb[83].mxu0 }
0x100e   :  { %10534 = vst [vmem:[#allocation156_spill] sm:$0xff] %v8717_v6 }
0x103b   :  { %v8719_v33 = vpop.f32.mrb[84].mxu0 }
0x103c   :  { %10535 = vst [vmem:[#allocation157_spill] sm:$0xff] %v8719_v33  ;;  %v8721_v22 = vpop.f32.mrb[85].mxu0 }
0x103d   :  { %10536 = vst [vmem:[#allocation158_spill] sm:$0xff] %v8721_v22  ;;  %v8723_v11 = vpop.f32.mrb[86].mxu0 }
0x103e   :  { %10537 = vst [vmem:[#allocation159_spill] sm:$0xff] %v8723_v11  ;;  %v8725_v43 = vpop.f32.mrb[87].mxu0 }
0x103f   :  { %10538 = vst [vmem:[#allocation160_spill] sm:$0xff] %v8725_v43 }
0x1043   :  { %v6472_v27 = vpop.f32.mrb[88].mxu0 }
0x1044   :  { %v3654_v62 = vpop.f32.mrb[89].mxu0  ;;  %v3691_v1 = vsel %vm628_vm1, %v6472_v27, -inf }
0x1045   :  { %3692 = vmax.xlane.f32.xlu0 %v3691_v1  ;;  %v6473_v52 = vpop.f32.mrb[90].mxu0  ;;  %v3685_v51 = vsel %vm628_vm1, %v3654_v62, -inf }
0x1046   :  { %v3657_v26 = vpop.f32.mrb[91].mxu0  ;;  %v3694_v11 = vsel %vm628_vm1, %v6473_v52, -inf }
0x1047   :  { %v3688_v36 = vsel %vm628_vm1, %v3657_v26, -inf }
0x1048   :  { %3689 = vmax.xlane.f32.xlu1 %v3688_v36 }
0x1049   :  { %3686 = vmax.xlane.f32.xlu0 %v3685_v51 }
0x104b   :  { %v6476_v19 = vpop.f32.mrb[92].mxu0 }
0x104c   :  { %v8730_v24 = vpop.f32.mrb[93].mxu0  ;;  %v3703_v22 = vsel %vm628_vm1, %v6476_v19, -inf }
0x104d   :  { %3695 = vmax.xlane.f32.xlu0 %v3694_v11  ;;  %v6477_v43 = vpop.f32.mrb[94].mxu0  ;;  %v3697_v1 = vsel %vm628_vm1, %v8730_v24, -inf }
0x104e   :  { %v8733_v33 = vpop.f32.mrb[95].mxu0  ;;  %v3706_v36 = vsel %vm628_vm1, %v6477_v43, -inf }
0x1051   :  { %3704 = vmax.xlane.f32.xlu0 %v3703_v22  ;;  %v3700_v22 = vsel %vm628_vm1, %v8733_v33, -inf }
0x1055   :  { %3698 = vmax.xlane.f32.xlu0 %v3697_v1 }
0x1059   :  { %3903 = vrot.lane.b32.xlu1 %v10449_v48, %s7448_s9  ;;  %3707 = vmax.xlane.f32.xlu0 %v3706_v36 }
0x106f   :  { %3901 = vrot.lane.b32.xlu0 %v7591_v17, %s7448_s9 }
0x1073   :  { %3891 = vrot.lane.b32.xlu0 %v7557_v57, %s7448_s9 }
0x1077   :  { %3895 = vrot.lane.b32.xlu0 %v7615_v40, %s7448_s9 }
0x107b   :  { %4074 = vrot.lane.b32.xlu0 %v7694_v46, %s7448_s9 }
0x107d   :  { %3701 = vmax.xlane.f32.xlu1 %v3700_v22 }
0x108e   :  { %3905 = vrot.lane.b32.xlu1 %v7647_v5, %s7448_s9 }
0x1092   :  { %3893 = vrot.lane.b32.xlu1 %v7587_v15, %s7448_s9 }
0x1096   :  { %3897 = vrot.lane.b32.xlu1 %v7643_v3, %s7448_s9 }
0x109a   :  { %4072 = vrot.lane.b32.xlu1 %v7696_v47, %s7448_s9 }
0x109e   :  { %4076 = vrot.lane.b32.xlu1 %v7702_v61, %s7448_s9 }
0x10a2   :  { %4078 = vrot.lane.b32.xlu1 %v7700_v60, %s7448_s9 }
0x10a6   :  { %4209 = vrot.lane.b32.xlu1 %v7559_v58, %s7449_s10 }
0x10d2   :  { %v3693_v11 = vpop.xlane.xlu0 %3692 }
0x10d3   :  { %v3711_v1 = vsub.f32 %v6472_v27, %v3693_v11 }
0x10d5   :  { %v3690_v51 = vpop.xlane.xlu1 %3689  ;;  %v3721_v31 = vmul.f32 1.442695, %v3711_v1 }
0x10d6   :  { %v3710_v36 = vsub.f32 %v3657_v26, %v3690_v51  ;;  %v3687_v22 = vpop.xlane.xlu0 %3686 }
0x10d7   :  { %v3709_v55 = vsub.f32 %v3654_v62, %v3687_v22 }
0x10d8   :  { %v3719_v50 = vmul.f32 1.442695, %v3710_v36 }
0x10d9   :  { %v3717_v6 = vmul.f32 1.442695, %v3709_v55 }
0x10da   :  { %6991 = vpow2.f32 %v3719_v50  ;;  %v3696_v45 = vpop.xlane.xlu0 %3695 }
0x10db   :  { %6993 = vpow2.f32 %v3717_v6  ;;  %v3712_v9 = vsub.f32 %v6473_v52, %v3696_v45  ;;  %v3904_v52 = vpop.permute.xlu1 %3903 }
0x10dc   :  { %6995 = vpow2.f32 %v3721_v31  ;;  %v3926_v11 = vsel %vm538_vm0, %v3904_v52, 0 }
0x10dd   :  { %v3723_v38 = vmul.f32 1.442695, %v3712_v9 }
0x10de   :  { %v3705_v53 = vpop.xlane.xlu0 %3704 }
0x10df   :  { %6997 = vpow2.f32 %v3723_v38  ;;  %v3715_v18 = vsub.f32 %v6476_v19, %v3705_v53 }
0x10e1   :  { %v3729_v27 = vmul.f32 1.442695, %v3715_v18  ;;  %v3920_v18 = vsel %vm538_vm0, %v8706_v25, 0 }
0x10e2   :  { %v3699_v54 = vpop.xlane.xlu0 %3698 }
0x10e3   :  { %6999 = vpow2.f32 %v3729_v27  ;;  %v3713_v25 = vsub.f32 %v8730_v24, %v3699_v54 }
0x10e4   :  { %v8765_v10 = vpop.eup %6991 }
0x10e5   :  { %v8767_v59 = vpop.eup %6993  ;;  %v3725_v51 = vmul.f32 1.442695, %v3713_v25 }
0x10e6   :  { %10539 = vst [vmem:[#allocation161_spill] sm:$0xff] %v8767_v59  ;;  %v3708_v26 = vpop.xlane.xlu0 %3707  ;;  %v3757_v55 = vpack.c.bf16 %v8765_v10, %v8767_v59  ;;  %v8771_v50 = vpop.eup %6995 }
0x10e7   :  { %v3716_v62 = vsub.f32 %v6477_v43, %v3708_v26  ;;  %10540 = vst [vmem:[#allocation162_spill] sm:$0xff] %v8771_v50 }
0x10e8   :  { %6486 = vmatprep.mubr.msk.bf16.mxu1 %vm628_vm1, %v3757_v55 }
0x10e9   :  { %v8774_v45 = vpop.eup %6997  ;;  %v3731_v9 = vmul.f32 1.442695, %v3716_v62 }
0x10ea   :  { %v3758_v38 = vpack.c.bf16 %v8774_v45, %v8771_v50  ;;  %v3902_v53 = vpop.permute.xlu0 %3901 }
0x10eb   :  { %7001 = vpow2.f32 %v3731_v9  ;;  %v3923_v6 = vsel %vm538_vm0, %v3902_v53, 0 }
0x10ec   :  { %6487 = vmatmul.mubr.msk.bf16.vlgmr.msra.gmra.mrb[120].mxu1 %vm628_vm1, %v3758_v38  ;;  %7003 = vpow2.f32 %v3725_v51 }
0x10ed   :  { %6495 = vmatpush3.bf16.xpose.msra.mxu1 %v3920_v18  ;;  %v8782_v31 = vpop.eup %6999 }
0x10ee   :  { %6747 = vmatprep.subr.msk.bf16.mxu1 %vm538_vm0, %v3902_v53  ;;  %10541 = vst [vmem:[#allocation163_spill] sm:$0xff] %v8782_v31  ;;  %v3892_v55 = vpop.permute.xlu0 %3891 }
0x10f2   :  { %v3896_v9 = vpop.permute.xlu0 %3895 }
0x10f5   :  { %v8785_v43 = vpop.eup %7001  ;;  %6497 = vmatpush3.bf16.xpose.msra.mxu1 %v3923_v6 }
0x10f6   :  { %10542 = vst [vmem:[#allocation164_spill] sm:$0xff] %v8785_v43  ;;  %6748 = vmatprep.subr.msk.bf16.mxu1 %vm538_vm0, %v3904_v52  ;;  %v3760_v19 = vpack.c.bf16 %v8785_v43, %v8782_v31  ;;  %v8795_v18 = vpop.eup %7003  ;;  %v4075_v53 = vpop.permute.xlu0 %4074 }
0x10f7   :  { %10543 = vst [vmem:[#allocation165_spill] sm:$0xff] %v8795_v18 }
0x10fd   :  { %6499 = vmatpush3.bf16.xpose.msra.mxu1 %v3926_v11 }
0x110a   :  { %v3702_v1 = vpop.xlane.xlu1 %3701 }
0x110b   :  { %v3714_v36 = vsub.f32 %v8733_v33, %v3702_v1 }
0x110d   :  { %v3727_v22 = vmul.f32 1.442695, %v3714_v36 }
0x110e   :  { %v3906_v27 = vpop.permute.xlu1 %3905 }
0x110f   :  { %7005 = vpow2.f32 %v3727_v22  ;;  %6749 = vmatprep.subr.msk.bf16.mxu1 %vm538_vm0, %v3906_v27  ;;  %v3929_v26 = vsel %vm538_vm0, %v3906_v27, 0 }
0x1110   :  { %6501 = vmatpush3.bf16.xpose.msra.mxu1 %v3929_v26 }
0x1112   :  { %v3894_v62 = vpop.permute.xlu1 %3893 }
0x1116   :  { %v3898_v38 = vpop.permute.xlu1 %3897 }
0x1119   :  { %v8797_v54 = vpop.eup %7005 }
0x111a   :  { %10544 = vst [vmem:[#allocation166_spill] sm:$0xff] %v8797_v54  ;;  %v4073_v24 = vpop.permute.xlu1 %4072  ;;  %v3759_v33 = vpack.c.bf16 %v8797_v54, %v8795_v18 }
0x111b   :  { %6510 = vmatprep.subr.bf16.mxu0 %v4073_v24 }
0x111c   :  { %6490 = vmatprep.mubr.msk.bf16.mxu1 %vm628_vm1, %v3759_v33  ;;  %6511 = vmatpush3.bf16.msra.mxu0 %v4073_v24 }
0x111d   :  { %6491 = vmatmul.mubr.msk.bf16.gmra.mrb[124].mxu1 %vm628_vm1, %v3760_v19  ;;  %6512 = vmatprep.subr.bf16.mxu0 %v4075_v53 }
0x111e   :  { %v4077_v6 = vpop.permute.xlu1 %4076  ;;  %6502 = vmatprep.mubr.msk.bf16.mxu1 %vm538_vm0, %v3892_v55 }
0x1120   :  { %6513 = vmatpush3.bf16.msra.mxu0 %v4075_v53 }
0x1121   :  { %6514 = vmatprep.subr.bf16.mxu0 %v4077_v6 }
0x1122   :  { %v4079_v52 = vpop.permute.xlu1 %4078 }
0x1124   :  { %6515 = vmatpush3.bf16.msra.mxu0 %v4077_v6 }
0x1125   :  { %6503 = vmatmul.mubr.msk.bf16.vlgmr.msra.gmra.mrb[128].mxu1 %vm538_vm0, %v3894_v62  ;;  %6516 = vmatprep.subr.bf16.mxu0 %v4079_v52 }
0x1126   :  { %6506 = vmatprep.mubr.msk.bf16.mxu1 %vm538_vm0, %v3896_v9  ;;  %v8806_v11 = vpop.permute.xlu1 %4209 }
0x1128   :  { %6517 = vmatpush3.bf16.msra.mxu0 %v4079_v52 }
0x1129   :  { %6750 = vmatprep.subr.msk.bf16.mxu0 %vm538_vm0, %v8806_v11 }
0x112d   :  { %6507 = vmatmul.mubr.msk.bf16.gmra.mrb[132].mxu1 %vm538_vm0, %v3898_v38 }
0x11bf   :  { %v8811_v19 = vpop.f32.mrb[120].mxu1 }
0x11c0   :  { %10545 = vst [vmem:[#allocation167_spill] sm:$0xff] %v8811_v19  ;;  %v8813_v25 = vpop.f32.mrb[121].mxu1 }
0x11c1   :  { %10546 = vst [vmem:[#allocation168_spill] sm:$0xff] %v8813_v25  ;;  %v8815_v51 = vpop.f32.mrb[122].mxu1 }
0x11c2   :  { %10547 = vst [vmem:[#allocation169_spill] sm:$0xff] %v8815_v51  ;;  %v8817_v1 = vpop.f32.mrb[123].mxu1 }
0x11c3   :  { %10548 = vst [vmem:[#allocation170_spill] sm:$0xff] %v8817_v1 }
0x11f0   :  { %v8819_v36 = vpop.f32.mrb[124].mxu1 }
0x11f1   :  { %10549 = vst [vmem:[#allocation171_spill] sm:$0xff] %v8819_v36  ;;  %v8821_v22 = vpop.f32.mrb[125].mxu1 }
0x11f2   :  { %10550 = vst [vmem:[#allocation172_spill] sm:$0xff] %v8821_v22  ;;  %v8823_v27 = vpop.f32.mrb[126].mxu1 }
0x11f3   :  { %10551 = vst [vmem:[#allocation173_spill] sm:$0xff] %v8823_v27  ;;  %v8825_v26 = vpop.f32.mrb[127].mxu1 }
0x11f4   :  { %10552 = vst [vmem:[#allocation174_spill] sm:$0xff] %v8825_v26 }
0x11f8   :  { %v6504_v55 = vpop.f32.mrb[128].mxu1 }
0x11f9   :  { %v3965_v62 = vpop.f32.mrb[129].mxu1  ;;  %v4002_v9 = vsel %vm628_vm1, %v6504_v55, -inf }
0x11fa   :  { %4003 = vmax.xlane.f32.xlu0 %v4002_v9  ;;  %v6505_v38 = vpop.f32.mrb[130].mxu1  ;;  %v3996_v53 = vsel %vm628_vm1, %v3965_v62, -inf }
0x11fb   :  { %v3968_v24 = vpop.f32.mrb[131].mxu1  ;;  %v4005_v27 = vsel %vm628_vm1, %v6505_v38, -inf }
0x11fc   :  { %v3999_v33 = vsel %vm628_vm1, %v3968_v24, -inf }
0x11fd   :  { %4000 = vmax.xlane.f32.xlu1 %v3999_v33 }
0x11fe   :  { %3997 = vmax.xlane.f32.xlu0 %v3996_v53 }
0x1200   :  { %v6508_v6 = vpop.f32.mrb[132].mxu1 }
0x1201   :  { %v8830_v52 = vpop.f32.mrb[133].mxu1  ;;  %v4014_v22 = vsel %vm628_vm1, %v6508_v6, -inf }
0x1202   :  { %4006 = vmax.xlane.f32.xlu0 %v4005_v27  ;;  %v6509_v36 = vpop.f32.mrb[134].mxu1  ;;  %v4008_v9 = vsel %vm628_vm1, %v8830_v52, -inf }
0x1203   :  { %v8833_v26 = vpop.f32.mrb[135].mxu1  ;;  %v4017_v33 = vsel %vm628_vm1, %v6509_v36, -inf }
0x1206   :  { %4015 = vmax.xlane.f32.xlu0 %v4014_v22  ;;  %v4011_v22 = vsel %vm628_vm1, %v8833_v26, -inf }
0x120a   :  { %4009 = vmax.xlane.f32.xlu0 %v4008_v9 }
0x120e   :  { %4213 = vrot.lane.b32.xlu1 %v7617_v42, %s7449_s10  ;;  %4018 = vmax.xlane.f32.xlu0 %v4017_v33 }
0x1224   :  { %4211 = vrot.lane.b32.xlu0 %v7589_v16, %s7449_s10 }
0x1228   :  { %4201 = vrot.lane.b32.xlu0 %v7555_v56, %s7449_s10 }
0x122c   :  { %4205 = vrot.lane.b32.xlu0 %v7613_v39, %s7449_s10 }
0x1230   :  { %4384 = vrot.lane.b32.xlu0 %v7669_v34, %s7449_s10 }
0x1232   :  { %4012 = vmax.xlane.f32.xlu1 %v4011_v22 }
0x1243   :  { %4215 = vrot.lane.b32.xlu1 %v7645_v4, %s7449_s10 }
0x1247   :  { %4203 = vrot.lane.b32.xlu1 %v7585_v14, %s7449_s10 }
0x124b   :  { %4207 = vrot.lane.b32.xlu1 %v7641_v2, %s7449_s10 }
0x124f   :  { %4382 = vrot.lane.b32.xlu1 %v7671_v20, %s7449_s10 }
0x1253   :  { %4386 = vrot.lane.b32.xlu1 %v7684_v29, %s7449_s10 }
0x1257   :  { %4388 = vrot.lane.b32.xlu1 %v7682_v28, %s7449_s10 }
0x125b   :  { %4520 = vrot.lane.b32.xlu1 %v10432_v63, %s7449_s10 }
0x1287   :  { %v4004_v27 = vpop.xlane.xlu0 %4003 }
0x1288   :  { %v4022_v9 = vsub.f32 %v6504_v55, %v4004_v27 }
0x128a   :  { %v4001_v53 = vpop.xlane.xlu1 %4000  ;;  %v4032_v25 = vmul.f32 1.442695, %v4022_v9 }
0x128b   :  { %v4021_v33 = vsub.f32 %v3968_v24, %v4001_v53  ;;  %v3998_v22 = vpop.xlane.xlu0 %3997 }
0x128c   :  { %v4020_v51 = vsub.f32 %v3965_v62, %v3998_v22 }
0x128d   :  { %v4030_v19 = vmul.f32 1.442695, %v4021_v33 }
0x128e   :  { %v4028_v1 = vmul.f32 1.442695, %v4020_v51 }
0x128f   :  { %7007 = vpow2.f32 %v4030_v19  ;;  %v4007_v31 = vpop.xlane.xlu0 %4006 }
0x1290   :  { %7009 = vpow2.f32 %v4028_v1  ;;  %v4023_v18 = vsub.f32 %v6505_v38, %v4007_v31  ;;  %v4214_v38 = vpop.permute.xlu1 %4213 }
0x1291   :  { %7011 = vpow2.f32 %v4032_v25  ;;  %v4236_v27 = vsel %vm538_vm0, %v4214_v38, 0 }
0x1292   :  { %v4034_v43 = vmul.f32 1.442695, %v4023_v18 }
0x1293   :  { %v4016_v54 = vpop.xlane.xlu0 %4015 }
0x1294   :  { %7013 = vpow2.f32 %v4034_v43  ;;  %v4026_v50 = vsub.f32 %v6508_v6, %v4016_v54 }
0x1296   :  { %v4040_v55 = vmul.f32 1.442695, %v4026_v50  ;;  %v4230_v50 = vsel %vm538_vm0, %v8806_v11, 0 }
0x1297   :  { %v4010_v59 = vpop.xlane.xlu0 %4009 }
0x1298   :  { %7015 = vpow2.f32 %v4040_v55  ;;  %v4024_v11 = vsub.f32 %v8830_v52, %v4010_v59 }
0x1299   :  { %v8865_v30 = vpop.eup %7007 }
0x129a   :  { %10553 = vst [vmem:[#allocation175_spill] sm:$0xff] %v8865_v30  ;;  %v8867_v0 = vpop.eup %7009  ;;  %v4036_v53 = vmul.f32 1.442695, %v4024_v11 }
0x129b   :  { %10554 = vst [vmem:[#allocation176_spill] sm:$0xff] %v8867_v0  ;;  %v4019_v24 = vpop.xlane.xlu0 %4018  ;;  %v4068_v51 = vpack.c.bf16 %v8865_v30, %v8867_v0  ;;  %v8871_v19 = vpop.eup %7011 }
0x129c   :  { %v4027_v62 = vsub.f32 %v6509_v36, %v4019_v24  ;;  %10555 = vst [vmem:[#allocation177_spill] sm:$0xff] %v8871_v19 }
0x129d   :  { %6518 = vmatprep.mubr.msk.bf16.mxu0 %vm628_vm1, %v4068_v51 }
0x129e   :  { %v8874_v31 = vpop.eup %7013  ;;  %v4042_v18 = vmul.f32 1.442695, %v4027_v62 }
0x129f   :  { %10556 = vst [vmem:[#allocation178_spill] sm:$0xff] %v8874_v31  ;;  %v4069_v43 = vpack.c.bf16 %v8874_v31, %v8871_v19  ;;  %v4212_v54 = vpop.permute.xlu0 %4211 }
0x12a0   :  { %7017 = vpow2.f32 %v4042_v18  ;;  %v4233_v1 = vsel %vm538_vm0, %v4212_v54, 0 }
0x12a1   :  { %6519 = vmatmul.mubr.msk.bf16.vlgmr.msra.gmra.mrb[96].mxu0 %vm628_vm1, %v4069_v43  ;;  %7019 = vpow2.f32 %v4036_v53 }
0x12a2   :  { %6527 = vmatpush3.bf16.xpose.msra.mxu0 %v4230_v50  ;;  %v8882_v25 = vpop.eup %7015 }
0x12a3   :  { %6751 = vmatprep.subr.msk.bf16.mxu0 %vm538_vm0, %v4212_v54  ;;  %10557 = vst [vmem:[#allocation179_spill] sm:$0xff] %v8882_v25  ;;  %v4202_v51 = vpop.permute.xlu0 %4201 }
0x12a7   :  { %v4206_v18 = vpop.permute.xlu0 %4205 }
0x12aa   :  { %v8885_v36 = vpop.eup %7017  ;;  %6529 = vmatpush3.bf16.xpose.msra.mxu0 %v4233_v1 }
0x12ab   :  { %10558 = vst [vmem:[#allocation180_spill] sm:$0xff] %v8885_v36  ;;  %6752 = vmatprep.subr.msk.bf16.mxu0 %vm538_vm0, %v4214_v38  ;;  %v4071_v6 = vpack.c.bf16 %v8885_v36, %v8882_v25  ;;  %v8895_v50 = vpop.eup %7019  ;;  %v4385_v54 = vpop.permute.xlu0 %4384 }
0x12ac   :  { %10559 = vst [vmem:[#allocation181_spill] sm:$0xff] %v8895_v50 }
0x12b2   :  { %6531 = vmatpush3.bf16.xpose.msra.mxu0 %v4236_v27 }
0x12bf   :  { %v4013_v9 = vpop.xlane.xlu1 %4012 }
0x12c0   :  { %v4025_v33 = vsub.f32 %v8833_v26, %v4013_v9 }
0x12c2   :  { %v4038_v22 = vmul.f32 1.442695, %v4025_v33 }
0x12c3   :  { %v4216_v55 = vpop.permute.xlu1 %4215 }
0x12c4   :  { %7021 = vpow2.f32 %v4038_v22  ;;  %6753 = vmatprep.subr.msk.bf16.mxu0 %vm538_vm0, %v4216_v55  ;;  %v4239_v24 = vsel %vm538_vm0, %v4216_v55, 0 }
0x12c5   :  { %6533 = vmatpush3.bf16.xpose.msra.mxu0 %v4239_v24 }
0x12c7   :  { %v4204_v62 = vpop.permute.xlu1 %4203 }
0x12cb   :  { %v4208_v43 = vpop.permute.xlu1 %4207 }
0x12ce   :  { %v8897_v59 = vpop.eup %7021 }
0x12cf   :  { %10560 = vst [vmem:[#allocation182_spill] sm:$0xff] %v8897_v59  ;;  %v4383_v52 = vpop.permute.xlu1 %4382  ;;  %v4070_v26 = vpack.c.bf16 %v8897_v59, %v8895_v50 }
0x12d0   :  { %6542 = vmatprep.subr.bf16.mxu1 %v4383_v52 }
0x12d1   :  { %6522 = vmatprep.mubr.msk.bf16.mxu0 %vm628_vm1, %v4070_v26  ;;  %6543 = vmatpush3.bf16.msra.mxu1 %v4383_v52 }
0x12d2   :  { %6523 = vmatmul.mubr.msk.bf16.gmra.mrb[100].mxu0 %vm628_vm1, %v4071_v6  ;;  %6544 = vmatprep.subr.bf16.mxu1 %v4385_v54 }
0x12d3   :  { %v4387_v1 = vpop.permute.xlu1 %4386  ;;  %6534 = vmatprep.mubr.msk.bf16.mxu0 %vm538_vm0, %v4202_v51 }
0x12d5   :  { %6545 = vmatpush3.bf16.msra.mxu1 %v4385_v54 }
0x12d6   :  { %6546 = vmatprep.subr.bf16.mxu1 %v4387_v1 }
0x12d7   :  { %v4389_v38 = vpop.permute.xlu1 %4388 }
0x12d9   :  { %6547 = vmatpush3.bf16.msra.mxu1 %v4387_v1 }
0x12da   :  { %6535 = vmatmul.mubr.msk.bf16.vlgmr.msra.gmra.mrb[104].mxu0 %vm538_vm0, %v4204_v62  ;;  %6548 = vmatprep.subr.bf16.mxu1 %v4389_v38 }
0x12db   :  { %6538 = vmatprep.mubr.msk.bf16.mxu0 %vm538_vm0, %v4206_v18  ;;  %v8906_v27 = vpop.permute.xlu1 %4520 }
0x12dd   :  { %6549 = vmatpush3.bf16.msra.mxu1 %v4389_v38 }
0x12de   :  { %6754 = vmatprep.subr.msk.bf16.mxu1 %vm538_vm0, %v8906_v27 }
0x12e2   :  { %6539 = vmatmul.mubr.msk.bf16.gmra.mrb[108].mxu0 %vm538_vm0, %v4208_v43 }
0x1374   :  { %v8911_v6 = vpop.f32.mrb[96].mxu0 }
0x1375   :  { %10561 = vst [vmem:[#allocation183_spill] sm:$0xff] %v8911_v6  ;;  %v8913_v11 = vpop.f32.mrb[97].mxu0 }
0x1376   :  { %10562 = vst [vmem:[#allocation184_spill] sm:$0xff] %v8913_v11  ;;  %v8915_v53 = vpop.f32.mrb[98].mxu0 }
0x1377   :  { %10563 = vst [vmem:[#allocation185_spill] sm:$0xff] %v8915_v53  ;;  %v8917_v9 = vpop.f32.mrb[99].mxu0 }
0x1378   :  { %10564 = vst [vmem:[#allocation186_spill] sm:$0xff] %v8917_v9 }
0x13a5   :  { %v8919_v33 = vpop.f32.mrb[100].mxu0 }
0x13a6   :  { %10565 = vst [vmem:[#allocation187_spill] sm:$0xff] %v8919_v33  ;;  %v8921_v22 = vpop.f32.mrb[101].mxu0 }
0x13a7   :  { %10566 = vst [vmem:[#allocation188_spill] sm:$0xff] %v8921_v22  ;;  %v8923_v55 = vpop.f32.mrb[102].mxu0 }
0x13a8   :  { %10567 = vst [vmem:[#allocation189_spill] sm:$0xff] %v8923_v55  ;;  %v8925_v24 = vpop.f32.mrb[103].mxu0 }
0x13a9   :  { %10568 = vst [vmem:[#allocation190_spill] sm:$0xff] %v8925_v24 }
0x13ad   :  { %v6536_v51 = vpop.f32.mrb[104].mxu0 }
0x13ae   :  { %v4275_v62 = vpop.f32.mrb[105].mxu0  ;;  %v4312_v18 = vsel %vm628_vm1, %v6536_v51, -inf }
0x13af   :  { %4313 = vmax.xlane.f32.xlu0 %v4312_v18  ;;  %v6537_v43 = vpop.f32.mrb[106].mxu0  ;;  %v4306_v54 = vsel %vm628_vm1, %v4275_v62, -inf }
0x13b0   :  { %v4278_v52 = vpop.f32.mrb[107].mxu0  ;;  %v4315_v55 = vsel %vm628_vm1, %v6537_v43, -inf }
0x13b1   :  { %v4309_v26 = vsel %vm628_vm1, %v4278_v52, -inf }
0x13b2   :  { %4310 = vmax.xlane.f32.xlu1 %v4309_v26 }
0x13b3   :  { %4307 = vmax.xlane.f32.xlu0 %v4306_v54 }
0x13b5   :  { %v6540_v1 = vpop.f32.mrb[108].mxu0 }
0x13b6   :  { %v8930_v38 = vpop.f32.mrb[109].mxu0  ;;  %v4324_v22 = vsel %vm628_vm1, %v6540_v1, -inf }
0x13b7   :  { %4316 = vmax.xlane.f32.xlu0 %v4315_v55  ;;  %v6541_v33 = vpop.f32.mrb[110].mxu0  ;;  %v4318_v18 = vsel %vm628_vm1, %v8930_v38, -inf }
0x13b8   :  { %v8933_v24 = vpop.f32.mrb[111].mxu0  ;;  %v4327_v26 = vsel %vm628_vm1, %v6541_v33, -inf }
0x13bb   :  { %4325 = vmax.xlane.f32.xlu0 %v4324_v22  ;;  %v4321_v22 = vsel %vm628_vm1, %v8933_v24, -inf }
0x13bf   :  { %4319 = vmax.xlane.f32.xlu0 %v4318_v18 }
0x13c3   :  { %4524 = vrot.lane.b32.xlu1 %v10449_v48, %s7449_s10  ;;  %4328 = vmax.xlane.f32.xlu0 %v4327_v26 }
0x13d9   :  { %4522 = vrot.lane.b32.xlu0 %v7591_v17, %s7449_s10 }
0x13dd   :  { %4512 = vrot.lane.b32.xlu0 %v7557_v57, %s7449_s10 }
0x13e1   :  { %4516 = vrot.lane.b32.xlu0 %v7615_v40, %s7449_s10 }
0x13e5   :  { %4695 = vrot.lane.b32.xlu0 %v7694_v46, %s7449_s10 }
0x13e7   :  { %4322 = vmax.xlane.f32.xlu1 %v4321_v22 }
0x13f8   :  { %4526 = vrot.lane.b32.xlu1 %v7647_v5, %s7449_s10 }
0x13fc   :  { %4514 = vrot.lane.b32.xlu1 %v7587_v15, %s7449_s10 }
0x1400   :  { %4518 = vrot.lane.b32.xlu1 %v7643_v3, %s7449_s10 }
0x1404   :  { %4693 = vrot.lane.b32.xlu1 %v7696_v47, %s7449_s10 }
0x1408   :  { %4697 = vrot.lane.b32.xlu1 %v7702_v61, %s7449_s10 }
0x140c   :  { %4699 = vrot.lane.b32.xlu1 %v7700_v60, %s7449_s10 }
0x1410   :  { %4830 = vrot.lane.b32.xlu1 %v7559_v58, %s7450_s11 }
0x143c   :  { %v4314_v55 = vpop.xlane.xlu0 %4313 }
0x143d   :  { %v4332_v18 = vsub.f32 %v6536_v51, %v4314_v55 }
0x143f   :  { %v4311_v54 = vpop.xlane.xlu1 %4310  ;;  %v4342_v11 = vmul.f32 1.442695, %v4332_v18 }
0x1440   :  { %v4331_v26 = vsub.f32 %v4278_v52, %v4311_v54  ;;  %v4308_v22 = vpop.xlane.xlu0 %4307 }
0x1441   :  { %v4330_v53 = vsub.f32 %v4275_v62, %v4308_v22 }
0x1442   :  { %v4340_v6 = vmul.f32 1.442695, %v4331_v26 }
0x1443   :  { %v4338_v9 = vmul.f32 1.442695, %v4330_v53 }
0x1444   :  { %7023 = vpow2.f32 %v4340_v6  ;;  %v4317_v36 = vpop.xlane.xlu0 %4316 }
0x1445   :  { %7025 = vpow2.f32 %v4338_v9  ;;  %v4333_v59 = vsub.f32 %v6537_v43, %v4317_v36  ;;  %v4525_v43 = vpop.permute.xlu1 %4524 }
0x1446   :  { %7027 = vpow2.f32 %v4342_v11  ;;  %v4547_v55 = vsel %vm538_vm0, %v4525_v43, 0 }
0x1447   :  { %v4344_v25 = vmul.f32 1.442695, %v4333_v59 }
0x1448   :  { %v4326_v50 = vpop.xlane.xlu0 %4325 }
0x1449   :  { %7029 = vpow2.f32 %v4344_v25  ;;  %v4336_v31 = vsub.f32 %v6540_v1, %v4326_v50 }
0x144b   :  { %v4350_v51 = vmul.f32 1.442695, %v4336_v31  ;;  %v4541_v31 = vsel %vm538_vm0, %v8906_v27, 0 }
0x144c   :  { %v4320_v30 = vpop.xlane.xlu0 %4319 }
0x144d   :  { %7031 = vpow2.f32 %v4350_v51  ;;  %v4334_v27 = vsub.f32 %v8930_v38, %v4320_v30 }
0x144e   :  { %v8965_v58 = vpop.eup %7023 }
0x144f   :  { %v8967_v19 = vpop.eup %7025  ;;  %v4346_v54 = vmul.f32 1.442695, %v4334_v27 }
0x1450   :  { %v4329_v52 = vpop.xlane.xlu0 %4328  ;;  %v4378_v53 = vpack.c.bf16 %v8965_v58, %v8967_v19  ;;  %v8971_v6 = vpop.eup %7027 }
0x1451   :  { %v4337_v62 = vsub.f32 %v6541_v33, %v4329_v52 }
0x1452   :  { %6550 = vmatprep.mubr.msk.bf16.mxu1 %vm628_vm1, %v4378_v53 }
0x1453   :  { %v8974_v36 = vpop.eup %7029  ;;  %v4352_v59 = vmul.f32 1.442695, %v4337_v62 }
0x1454   :  { %v4379_v25 = vpack.c.bf16 %v8974_v36, %v8971_v6  ;;  %v4523_v50 = vpop.permute.xlu0 %4522 }
0x1455   :  { %7033 = vpow2.f32 %v4352_v59  ;;  %v4544_v9 = vsel %vm538_vm0, %v4523_v50, 0 }
0x1456   :  { %6551 = vmatmul.mubr.msk.bf16.vlgmr.msra.gmra.mrb[136].mxu1 %vm628_vm1, %v4379_v25  ;;  %7035 = vpow2.f32 %v4346_v54 }
0x1457   :  { %6559 = vmatpush3.bf16.xpose.msra.mxu1 %v4541_v31  ;;  %v8982_v11 = vpop.eup %7031 }
0x1458   :  { %6755 = vmatprep.subr.msk.bf16.mxu1 %vm538_vm0, %v4523_v50  ;;  %v4513_v53 = vpop.permute.xlu0 %4512 }
0x145c   :  { %v4517_v59 = vpop.permute.xlu0 %4516 }
0x145f   :  { %v8985_v33 = vpop.eup %7033  ;;  %6561 = vmatpush3.bf16.xpose.msra.mxu1 %v4544_v9 }
0x1460   :  { %6756 = vmatprep.subr.msk.bf16.mxu1 %vm538_vm0, %v4525_v43  ;;  %v4381_v1 = vpack.c.bf16 %v8985_v33, %v8982_v11  ;;  %v8995_v31 = vpop.eup %7035  ;;  %v4696_v50 = vpop.permute.xlu0 %4695 }
0x1467   :  { %6563 = vmatpush3.bf16.xpose.msra.mxu1 %v4547_v55 }
0x1474   :  { %v4323_v18 = vpop.xlane.xlu1 %4322 }
0x1475   :  { %v4335_v26 = vsub.f32 %v8933_v24, %v4323_v18 }
0x1477   :  { %v4348_v22 = vmul.f32 1.442695, %v4335_v26 }
0x1478   :  { %v4527_v51 = vpop.permute.xlu1 %4526 }
0x1479   :  { %7037 = vpow2.f32 %v4348_v22  ;;  %6757 = vmatprep.subr.msk.bf16.mxu1 %vm538_vm0, %v4527_v51  ;;  %v4550_v52 = vsel %vm538_vm0, %v4527_v51, 0 }
0x147a   :  { %6565 = vmatpush3.bf16.xpose.msra.mxu1 %v4550_v52 }
0x147c   :  { %v4515_v62 = vpop.permute.xlu1 %4514 }
0x1480   :  { %v4519_v25 = vpop.permute.xlu1 %4518 }
0x1483   :  { %v8997_v30 = vpop.eup %7037 }
0x1484   :  { %v4694_v38 = vpop.permute.xlu1 %4693  ;;  %v4380_v24 = vpack.c.bf16 %v8997_v30, %v8995_v31 }
0x1485   :  { %6574 = vmatprep.subr.bf16.mxu0 %v4694_v38 }
0x1486   :  { %6554 = vmatprep.mubr.msk.bf16.mxu1 %vm628_vm1, %v4380_v24  ;;  %6575 = vmatpush3.bf16.msra.mxu0 %v4694_v38 }
0x1487   :  { %6555 = vmatmul.mubr.msk.bf16.gmra.mrb[140].mxu1 %vm628_vm1, %v4381_v1  ;;  %6576 = vmatprep.subr.bf16.mxu0 %v4696_v50 }
0x1488   :  { %v4698_v9 = vpop.permute.xlu1 %4697  ;;  %6566 = vmatprep.mubr.msk.bf16.mxu1 %vm538_vm0, %v4513_v53 }
0x148a   :  { %6577 = vmatpush3.bf16.msra.mxu0 %v4696_v50 }
0x148b   :  { %6578 = vmatprep.subr.bf16.mxu0 %v4698_v9 }
0x148c   :  { %v4700_v43 = vpop.permute.xlu1 %4699 }
0x148e   :  { %6579 = vmatpush3.bf16.msra.mxu0 %v4698_v9 }
0x148f   :  { %6567 = vmatmul.mubr.msk.bf16.vlgmr.msra.gmra.mrb[144].mxu1 %vm538_vm0, %v4515_v62  ;;  %6580 = vmatprep.subr.bf16.mxu0 %v4700_v43 }
0x1490   :  { %6570 = vmatprep.mubr.msk.bf16.mxu1 %vm538_vm0, %v4517_v59  ;;  %v9006_v55 = vpop.permute.xlu1 %4830 }
0x1492   :  { %6581 = vmatpush3.bf16.msra.mxu0 %v4700_v43 }
0x1493   :  { %6758 = vmatprep.subr.msk.bf16.mxu0 %vm538_vm0, %v9006_v55 }
0x1497   :  { %6571 = vmatmul.mubr.msk.bf16.gmra.mrb[148].mxu1 %vm538_vm0, %v4519_v25 }
0x1529   :  { %v9011_v1 = vpop.f32.mrb[136].mxu1 }
0x152a   :  { %v9013_v27 = vpop.f32.mrb[137].mxu1 }
0x152b   :  { %v9015_v54 = vpop.f32.mrb[138].mxu1 }
0x152c   :  { %v9017_v18 = vpop.f32.mrb[139].mxu1 }
0x155a   :  { %v9019_v26 = vpop.f32.mrb[140].mxu1 }
0x155b   :  { %10569 = vst [vmem:[#allocation191_spill] sm:$0xff] %v9019_v26  ;;  %v9021_v22 = vpop.f32.mrb[141].mxu1 }
0x155c   :  { %v9023_v51 = vpop.f32.mrb[142].mxu1 }
0x155d   :  { %10570 = vst [vmem:[#allocation192_spill] sm:$0xff] %v9023_v51  ;;  %v9025_v52 = vpop.f32.mrb[143].mxu1 }
0x155e   :  { %10571 = vst [vmem:[#allocation193_spill] sm:$0xff] %v9025_v52 }
0x1562   :  { %v6568_v53 = vpop.f32.mrb[144].mxu1 }
0x1563   :  { %v4586_v62 = vpop.f32.mrb[145].mxu1  ;;  %v4623_v59 = vsel %vm628_vm1, %v6568_v53, -inf }
0x1564   :  { %4624 = vmax.xlane.f32.xlu0 %v4623_v59  ;;  %v6569_v25 = vpop.f32.mrb[146].mxu1  ;;  %v4617_v50 = vsel %vm628_vm1, %v4586_v62, -inf }
0x1565   :  { %v4589_v38 = vpop.f32.mrb[147].mxu1  ;;  %v4626_v0 = vsel %vm628_vm1, %v6569_v25, -inf }
0x1566   :  { %v4620_v24 = vsel %vm628_vm1, %v4589_v38, -inf }
0x1567   :  { %4621 = vmax.xlane.f32.xlu1 %v4620_v24 }
0x1568   :  { %4618 = vmax.xlane.f32.xlu0 %v4617_v50 }
0x156a   :  { %v6572_v9 = vpop.f32.mrb[148].mxu1 }
0x156b   :  { %v9030_v43 = vpop.f32.mrb[149].mxu1  ;;  %v4635_v52 = vsel %vm628_vm1, %v6572_v9, -inf }
0x156c   :  { %4627 = vmax.xlane.f32.xlu0 %v4626_v0  ;;  %v6573_v51 = vpop.f32.mrb[150].mxu1  ;;  %v4629_v59 = vsel %vm628_vm1, %v9030_v43, -inf }
0x156d   :  { %v9033_v26 = vpop.f32.mrb[151].mxu1  ;;  %v4638_v24 = vsel %vm628_vm1, %v6573_v51, -inf }
0x156e   :  { %v4632_v0 = vsel %vm628_vm1, %v9033_v26, -inf }
0x1570   :  { %4636 = vmax.xlane.f32.xlu0 %v4635_v52 }
0x1574   :  { %4630 = vmax.xlane.f32.xlu0 %v4629_v59 }
0x1578   :  { %4834 = vrot.lane.b32.xlu1 %v7617_v42, %s7450_s11  ;;  %4639 = vmax.xlane.f32.xlu0 %v4638_v24 }
0x158e   :  { %4832 = vrot.lane.b32.xlu0 %v7589_v16, %s7450_s11 }
0x1592   :  { %4822 = vrot.lane.b32.xlu0 %v7555_v56, %s7450_s11 }
0x1596   :  { %4826 = vrot.lane.b32.xlu0 %v7613_v39, %s7450_s11 }
0x159a   :  { %5005 = vrot.lane.b32.xlu0 %v7669_v34, %s7450_s11 }
0x159c   :  { %4633 = vmax.xlane.f32.xlu1 %v4632_v0 }
0x15ad   :  { %4836 = vrot.lane.b32.xlu1 %v7645_v4, %s7450_s11 }
0x15b1   :  { %4824 = vrot.lane.b32.xlu1 %v7585_v14, %s7450_s11 }
0x15b5   :  { %4828 = vrot.lane.b32.xlu1 %v7641_v2, %s7450_s11 }
0x15b9   :  { %5003 = vrot.lane.b32.xlu1 %v7671_v20, %s7450_s11 }
0x15bd   :  { %5007 = vrot.lane.b32.xlu1 %v7684_v29, %s7450_s11 }
0x15c1   :  { %5009 = vrot.lane.b32.xlu1 %v7682_v28, %s7450_s11 }
0x15c5   :  { %5141 = vrot.lane.b32.xlu1 %v10432_v63, %s7450_s11 }
0x15f1   :  { %v4625_v56 = vpop.xlane.xlu0 %4624 }
0x15f2   :  { %v4643_v39 = vsub.f32 %v6568_v53, %v4625_v56 }
0x15f4   :  { %v4622_v16 = vpop.xlane.xlu1 %4621  ;;  %v4653_v52 = vmul.f32 1.442695, %v4643_v39 }
0x15f5   :  { %v4642_v42 = vsub.f32 %v4589_v38, %v4622_v16  ;;  %v4619_v14 = vpop.xlane.xlu0 %4618 }
0x15f6   :  { %v4641_v4 = vsub.f32 %v4586_v62, %v4619_v14 }
0x15f7   :  { %v4651_v34 = vmul.f32 1.442695, %v4642_v42  ;;  %v4851_v42 = vsel %vm538_vm0, %v9006_v55, 0 }
0x15f8   :  { %v4649_v2 = vmul.f32 1.442695, %v4641_v4 }
0x15f9   :  { %7039 = vpow2.f32 %v4651_v34  ;;  %v4628_v20 = vpop.xlane.xlu0 %4627 }
0x15fa   :  { %7041 = vpow2.f32 %v4649_v2  ;;  %v4644_v50 = vsub.f32 %v6569_v25, %v4628_v20  ;;  %v4835_v2 = vpop.permute.xlu1 %4834 }
0x15fb   :  { %7043 = vpow2.f32 %v4653_v52  ;;  %v4857_v20 = vsel %vm538_vm0, %v4835_v2, 0 }
0x15fc   :  { %v4655_v29 = vmul.f32 1.442695, %v4644_v50 }
0x15fd   :  { %v4637_v59 = vpop.xlane.xlu0 %4636 }
0x15fe   :  { %7045 = vpow2.f32 %v4655_v29  ;;  %v4647_v28 = vsub.f32 %v6572_v9, %v4637_v59 }
0x1600   :  { %v4661_v53 = vmul.f32 1.442695, %v4647_v28 }
0x1601   :  { %v4631_v24 = vpop.xlane.xlu0 %4630 }
0x1602   :  { %7047 = vpow2.f32 %v4661_v53  ;;  %v4645_v55 = vsub.f32 %v9030_v43, %v4631_v24 }
0x1603   :  { %v9065_v63 = vpop.eup %7039 }
0x1604   :  { %v9067_v0 = vpop.eup %7041  ;;  %v4657_v50 = vmul.f32 1.442695, %v4645_v55 }
0x1605   :  { %v4640_v38 = vpop.xlane.xlu0 %4639  ;;  %v4689_v62 = vpack.c.bf16 %v9065_v63, %v9067_v0  ;;  %v9071_v16 = vpop.eup %7043 }
0x1606   :  { %v4648_v56 = vsub.f32 %v6573_v51, %v4640_v38 }
0x1607   :  { %6582 = vmatprep.mubr.msk.bf16.mxu0 %vm628_vm1, %v4689_v62 }
0x1608   :  { %v9074_v25 = vpop.eup %7045  ;;  %v4663_v39 = vmul.f32 1.442695, %v4648_v56 }
0x1609   :  { %v4690_v9 = vpack.c.bf16 %v9074_v25, %v9071_v16  ;;  %v4833_v14 = vpop.permute.xlu0 %4832 }
0x160a   :  { %7049 = vpow2.f32 %v4663_v39  ;;  %v4854_v4 = vsel %vm538_vm0, %v4833_v14, 0 }
0x160b   :  { %6583 = vmatmul.mubr.msk.bf16.vlgmr.msra.gmra.mrb[112].mxu0 %vm628_vm1, %v4690_v9  ;;  %7051 = vpow2.f32 %v4657_v50 }
0x160c   :  { %6591 = vmatpush3.bf16.xpose.msra.mxu0 %v4851_v42  ;;  %v9082_v51 = vpop.eup %7047 }
0x160d   :  { %6759 = vmatprep.subr.msk.bf16.mxu0 %vm538_vm0, %v4833_v14  ;;  %v4823_v62 = vpop.permute.xlu0 %4822 }
0x1611   :  { %v4827_v39 = vpop.permute.xlu0 %4826 }
0x1614   :  { %v9085_v34 = vpop.eup %7049  ;;  %6593 = vmatpush3.bf16.xpose.msra.mxu0 %v4854_v4 }
0x1615   :  { %6760 = vmatprep.subr.msk.bf16.mxu0 %vm538_vm0, %v4835_v2  ;;  %v4692_v52 = vpack.c.bf16 %v9085_v34, %v9082_v51  ;;  %v9095_v42 = vpop.eup %7051  ;;  %v5006_v14 = vpop.permute.xlu0 %5005 }
0x161c   :  { %6595 = vmatpush3.bf16.xpose.msra.mxu0 %v4857_v20 }
0x1629   :  { %v4634_v29 = vpop.xlane.xlu1 %4633 }
0x162a   :  { %v4646_v59 = vsub.f32 %v9033_v26, %v4634_v29 }
0x162c   :  { %v4659_v28 = vmul.f32 1.442695, %v4646_v59 }
0x162d   :  { %v4837_v53 = vpop.permute.xlu1 %4836 }
0x162e   :  { %7053 = vpow2.f32 %v4659_v28  ;;  %6761 = vmatprep.subr.msk.bf16.mxu0 %vm538_vm0, %v4837_v53  ;;  %v4860_v38 = vsel %vm538_vm0, %v4837_v53, 0 }
0x162f   :  { %6597 = vmatpush3.bf16.xpose.msra.mxu0 %v4860_v38 }
0x1631   :  { %v4825_v56 = vpop.permute.xlu1 %4824 }
0x1635   :  { %v4829_v9 = vpop.permute.xlu1 %4828 }
0x1638   :  { %v9097_v43 = vpop.eup %7053 }
0x1639   :  { %v5004_v24 = vpop.permute.xlu1 %5003  ;;  %v4691_v26 = vpack.c.bf16 %v9097_v43, %v9095_v42 }
0x163a   :  { %6606 = vmatprep.subr.bf16.mxu1 %v5004_v24 }
0x163b   :  { %6586 = vmatprep.mubr.msk.bf16.mxu0 %vm628_vm1, %v4691_v26  ;;  %6607 = vmatpush3.bf16.msra.mxu1 %v5004_v24 }
0x163c   :  { %6587 = vmatmul.mubr.msk.bf16.gmra.mrb[116].mxu0 %vm628_vm1, %v4692_v52  ;;  %6608 = vmatprep.subr.bf16.mxu1 %v5006_v14 }
0x163d   :  { %v5008_v4 = vpop.permute.xlu1 %5007  ;;  %6598 = vmatprep.mubr.msk.bf16.mxu0 %vm538_vm0, %v4823_v62 }
0x163f   :  { %6609 = vmatpush3.bf16.msra.mxu1 %v5006_v14 }
0x1640   :  { %6610 = vmatprep.subr.bf16.mxu1 %v5008_v4 }
0x1641   :  { %v5010_v2 = vpop.permute.xlu1 %5009 }
0x1643   :  { %6611 = vmatpush3.bf16.msra.mxu1 %v5008_v4 }
0x1644   :  { %6599 = vmatmul.mubr.msk.bf16.vlgmr.msra.gmra.mrb[120].mxu0 %vm538_vm0, %v4825_v56  ;;  %6612 = vmatprep.subr.bf16.mxu1 %v5010_v2 }
0x1645   :  { %6602 = vmatprep.mubr.msk.bf16.mxu0 %vm538_vm0, %v4827_v39  ;;  %v9106_v20 = vpop.permute.xlu1 %5141 }
0x1647   :  { %6613 = vmatpush3.bf16.msra.mxu1 %v5010_v2 }
0x1648   :  { %6762 = vmatprep.subr.msk.bf16.mxu1 %vm538_vm0, %v9106_v20 }
0x164c   :  { %6603 = vmatmul.mubr.msk.bf16.gmra.mrb[124].mxu0 %vm538_vm0, %v4829_v9 }
0x16de   :  { %v9111_v52 = vpop.f32.mrb[112].mxu0 }
0x16df   :  { %10572 = vst [vmem:[#allocation194_spill] sm:$0xff] %v9111_v52  ;;  %v9113_v55 = vpop.f32.mrb[113].mxu0  ;;  %v10654_v52 = vld [vmem:[#allocation141_spill] sm:$0xff] }
0x16e0   :  { %10573 = vst [vmem:[#allocation195_spill] sm:$0xff] %v9113_v55  ;;  %v9115_v50 = vpop.f32.mrb[114].mxu0 }
0x16e1   :  { %10574 = vst [vmem:[#allocation196_spill] sm:$0xff] %v9115_v50  ;;  %v9117_v29 = vpop.f32.mrb[115].mxu0 }
0x16e2   :  { %10575 = vst [vmem:[#allocation197_spill] sm:$0xff] %v9117_v29 }
0x170f   :  { %v9119_v59 = vpop.f32.mrb[116].mxu0 }
0x1710   :  { %10576 = vst [vmem:[#allocation198_spill] sm:$0xff] %v9119_v59  ;;  %v9121_v28 = vpop.f32.mrb[117].mxu0 }
0x1711   :  { %10577 = vst [vmem:[#allocation199_spill] sm:$0xff] %v9121_v28  ;;  %v9123_v53 = vpop.f32.mrb[118].mxu0 }
0x1712   :  { %10578 = vst [vmem:[#allocation200_spill] sm:$0xff] %v9123_v53  ;;  %v9125_v38 = vpop.f32.mrb[119].mxu0 }
0x1713   :  { %10579 = vst [vmem:[#allocation201_spill] sm:$0xff] %v9125_v38 }
0x1717   :  { %v9127_v62 = vpop.f32.mrb[120].mxu0 }
0x1718   :  { %v9129_v56 = vpop.f32.mrb[121].mxu0  ;;  %v4933_v39 = vsel %vm628_vm1, %v9127_v62, -inf }
0x1719   :  { %4934 = vmax.xlane.f32.xlu0 %v4933_v39  ;;  %v9133_v9 = vpop.f32.mrb[122].mxu0  ;;  %v4927_v14 = vsel %vm628_vm1, %v9129_v56, -inf }
0x171a   :  { %v9135_v24 = vpop.f32.mrb[123].mxu0  ;;  %v4936_v53 = vsel %vm628_vm1, %v9133_v9, -inf }
0x171b   :  { %v4930_v26 = vsel %vm628_vm1, %v9135_v24, -inf }
0x171c   :  { %4931 = vmax.xlane.f32.xlu1 %v4930_v26 }
0x171d   :  { %4928 = vmax.xlane.f32.xlu0 %v4927_v14 }
0x171f   :  { %v9141_v4 = vpop.f32.mrb[124].mxu0 }
0x1720   :  { %v9143_v2 = vpop.f32.mrb[125].mxu0  ;;  %v4945_v59 = vsel %vm628_vm1, %v9141_v4, -inf }
0x1721   :  { %4937 = vmax.xlane.f32.xlu0 %v4936_v53  ;;  %v9147_v39 = vpop.f32.mrb[126].mxu0  ;;  %v4939_v26 = vsel %vm628_vm1, %v9143_v2, -inf  ;;  %v10584_v53 = vld [vmem:[#allocation102_spill] sm:$0xff] }
0x1722   :  { %v9149_v38 = vpop.f32.mrb[127].mxu0  ;;  %v4948_v14 = vsel %vm628_vm1, %v9147_v39, -inf }
0x1725   :  { %4946 = vmax.xlane.f32.xlu0 %v4945_v59  ;;  %v4942_v59 = vsel %vm628_vm1, %v9149_v38, -inf }
0x1729   :  { %4940 = vmax.xlane.f32.xlu0 %v4939_v26 }
0x172d   :  { %5145 = vrot.lane.b32.xlu1 %v10449_v48, %s7450_s11  ;;  %4949 = vmax.xlane.f32.xlu0 %v4948_v14  ;;  %v1870_v48 = vsel %vm628_vm1, %v8167_v41, 0.0 }
0x1743   :  { %5143 = vrot.lane.b32.xlu0 %v7591_v17, %s7450_s11  ;;  %v1239_v17 = vsel %vm628_vm1, %v7933_v32, 0.0  ;;  %v3742_v32 = vsel %vm628_vm1, %v8774_v45, 0.0 }
0x1747   :  { %5133 = vrot.lane.b32.xlu0 %v7557_v57, %s7450_s11  ;;  %v1233_v57 = vsel %vm628_vm1, %v7940_v37, 0.0  ;;  %v1236_v37 = vsel %vm628_vm1, %v7942_v8, 0.0 }
0x174b   :  { %5137 = vrot.lane.b32.xlu0 %v7615_v40, %s7450_s11  ;;  %v1873_v40 = vsel %vm628_vm1, %v8165_v13, 0.0  ;;  %v4363_v13 = vsel %vm628_vm1, %v8974_v36, 0.0 }
0x174f   :  { %5316 = vrot.lane.b32.xlu0 %v7694_v46, %s7450_s11  ;;  %v2500_v46 = vsel %vm628_vm1, %v8374_v49, 0.0 }
0x1751   :  { %4943 = vmax.xlane.f32.xlu1 %v4942_v59 }
0x1762   :  { %5147 = vrot.lane.b32.xlu1 %v7647_v5, %s7450_s11  ;;  %v2494_v5 = vsel %vm628_vm1, %v8365_v12, 0.0  ;;  %v10580_v12 = vld [vmem:[#allocation14_spill] sm:$0xff] }
0x1763   :  { %v1876_v49 = vsel %vm628_vm1, %v10580_v12, 0.0 }
0x1766   :  { %5135 = vrot.lane.b32.xlu1 %v7587_v15, %s7450_s11  ;;  %v1242_v15 = vsel %vm628_vm1, %v7935_v7, 0.0  ;;  %v4357_v7 = vsel %vm628_vm1, %v8965_v58, 0.0  ;;  %v10583_v58 = vld [vmem:[#allocation76_spill] sm:$0xff] }
0x1767   :  { %v1885_v36 = vsel %vm628_vm1, %v10583_v58, 0.0 }
0x176a   :  { %5139 = vrot.lane.b32.xlu1 %v7643_v3, %s7450_s11  ;;  %v1879_v3 = vsel %vm628_vm1, %v8174_v23, 0.0  ;;  %v1248_v23 = vsel %vm628_vm1, %v7965_v21, 0.0  ;;  %v2497_v21 = vsel %vm628_vm1, %v10584_v53, 0.0 }
0x176e   :  { %1234 = vadd.xlane.f32.xlu0 %v1233_v57  ;;  %5314 = vrot.lane.b32.xlu1 %v7696_v47, %s7450_s11  ;;  %v3115_v47 = vsel %vm628_vm1, %v8565_v35, 0.0  ;;  %v10581_v35 = vld [vmem:[#allocation32_spill] sm:$0xff] }
0x176f   :  { %v1254_v8 = vsel %vm628_vm1, %v10581_v35, 0.0 }
0x1772   :  { %1240 = vadd.xlane.f32.xlu0 %v1239_v17  ;;  %5318 = vrot.lane.b32.xlu1 %v7702_v61, %s7450_s11  ;;  %v3736_v61 = vsel %vm628_vm1, %v8765_v10, 0.0 }
0x1776   :  { %1243 = vadd.xlane.f32.xlu0 %v1242_v15  ;;  %5320 = vrot.lane.b32.xlu1 %v7700_v60, %s7450_s11  ;;  %v3121_v60 = vsel %vm628_vm1, %v8574_v44, 0.0  ;;  %v10582_v44 = vld [vmem:[#allocation101_spill] sm:$0xff] }
0x1777   :  { %v2491_v10 = vsel %vm628_vm1, %v10582_v44, 0.0  ;;  %v10591_v44 = vld [vmem:[#allocation136_spill] sm:$0xff] }
0x177a   :  { %1874 = vadd.xlane.f32.xlu0 %v1873_v40  ;;  %v10585_v40 = vld [vmem:[#allocation74_spill] sm:$0xff] }
0x177e   :  { %1880 = vadd.xlane.f32.xlu0 %v1879_v3  ;;  %v1891_v3 = vsel %vm628_vm1, %v10585_v40, 0.0 }
0x1782   :  { %2495 = vadd.xlane.f32.xlu0 %v2494_v5  ;;  %v10586_v5 = vld [vmem:[#allocation131_spill] sm:$0xff] }
0x1786   :  { %2501 = vadd.xlane.f32.xlu0 %v2500_v46  ;;  %v3112_v46 = vsel %vm628_vm1, %v10586_v5, 0.0 }
0x178a   :  { %3116 = vadd.xlane.f32.xlu0 %v3115_v47 }
0x178e   :  { %3122 = vadd.xlane.f32.xlu0 %v3121_v60 }
0x1792   :  { %3737 = vadd.xlane.f32.xlu0 %v3736_v61  ;;  %v10587_v61 = vld [vmem:[#allocation106_spill] sm:$0xff] }
0x1796   :  { %3743 = vadd.xlane.f32.xlu0 %v3742_v32  ;;  %v10588_v32 = vld [vmem:[#allocation132_spill] sm:$0xff] }
0x179a   :  { %4358 = vadd.xlane.f32.xlu0 %v4357_v7  ;;  %1237 = vadd.xlane.f32.xlu1 %v1236_v37  ;;  %v3118_v7 = vsel %vm628_vm1, %v10588_v32, 0.0  ;;  %v10597_v32 = vld [vmem:[#allocation31_spill] sm:$0xff] }
0x179e   :  { %4364 = vadd.xlane.f32.xlu0 %v4363_v13  ;;  %1871 = vadd.xlane.f32.xlu1 %v1870_v48  ;;  %v10589_v13 = vld [vmem:[#allocation104_spill] sm:$0xff] }
0x179f   :  { %v2512_v48 = vsel %vm628_vm1, %v10589_v13, 0.0  ;;  %v4375_v13 = vsel %vm628_vm1, %v8985_v33, 0.0  ;;  %v10602_v33 = vld [vmem:[#allocation105_spill] sm:$0xff] }
0x17a2   :  { %1249 = vadd.xlane.f32.xlu0 %v1248_v23  ;;  %1877 = vadd.xlane.f32.xlu1 %v1876_v49  ;;  %v10590_v23 = vld [vmem:[#allocation161_spill] sm:$0xff] }
0x17a3   :  { %v3733_v12 = vsel %vm628_vm1, %v10590_v23, 0.0 }
0x17a6   :  { %1255 = vadd.xlane.f32.xlu0 %v1254_v8  ;;  %2492 = vadd.xlane.f32.xlu1 %v2491_v10  ;;  %v4935_v45 = vpop.xlane.xlu0 %4934  ;;  %v3127_v10 = vsel %vm628_vm1, %v10591_v44, 0.0  ;;  %v10600_v44 = vld [vmem:[#allocation73_spill] sm:$0xff] }
0x17a7   :  { %v4953_v26 = vsub.f32 %v9127_v62, %v4935_v45  ;;  %v10592_v45 = vld [vmem:[#allocation162_spill] sm:$0xff] }
0x17a9   :  { %v4932_v41 = vpop.xlane.xlu1 %4931  ;;  %v4963_v47 = vmul.f32 1.442695, %v4953_v26 }
0x17aa   :  { %v4952_v14 = vsub.f32 %v9135_v24, %v4932_v41  ;;  %1886 = vadd.xlane.f32.xlu0 %v1885_v36  ;;  %2498 = vadd.xlane.f32.xlu1 %v2497_v21  ;;  %v4929_v59 = vpop.xlane.xlu0 %4928  ;;  %v3739_v41 = vsel %vm628_vm1, %v10592_v45, 0.0  ;;  %v10601_v45 = vld [vmem:[#allocation60_spill] sm:$0xff] }
0x17ab   :  { %v4951_v57 = vsub.f32 %v9129_v56, %v4929_v59  ;;  %v2506_v56 = vsel %vm628_vm1, %v10587_v61, 0.0  ;;  %v10593_v59 = vld [vmem:[#allocation134_spill] sm:$0xff] }
0x17ac   :  { %v4961_v17 = vmul.f32 1.442695, %v4952_v14 }
0x17ad   :  { %v4959_v15 = vmul.f32 1.442695, %v4951_v57  ;;  %v3133_v57 = vsel %vm628_vm1, %v10593_v59, 0.0 }
0x17ae   :  { %7055 = vpow2.f32 %v4961_v17  ;;  %1892 = vadd.xlane.f32.xlu0 %v1891_v3  ;;  %3113 = vadd.xlane.f32.xlu1 %v3112_v46  ;;  %v4938_v62 = vpop.xlane.xlu0 %4937  ;;  %v4354_v17 = vsel %vm628_vm1, %v8967_v19, 0.0  ;;  %v10594_v3 = vld [vmem:[#allocation166_spill] sm:$0xff]  ;;  %v4360_v19 = vsel %vm628_vm1, %v8971_v6, 0.0  ;;  %v10595_v46 = vld [vmem:[#allocation164_spill] sm:$0xff]  ;;  %v4369_v6 = vsel %vm628_vm1, %v8997_v30, 0.0 }
0x17af   :  { %7057 = vpow2.f32 %v4959_v15  ;;  %v4954_v24 = vsub.f32 %v9133_v9, %v4938_v62  ;;  %v3748_v5 = vsel %vm628_vm1, %v10594_v3, 0.0  ;;  %v10596_v62 = vld [vmem:[#allocation33_spill] sm:$0xff] }
0x17b0   :  { %7059 = vpow2.f32 %v4963_v47  ;;  %v3754_v47 = vsel %vm628_vm1, %v10595_v46, 0.0 }
0x17b1   :  { %v4965_v60 = vmul.f32 1.442695, %v4954_v24  ;;  %v1245_v24 = vsel %vm628_vm1, %v10596_v62, 0.0  ;;  %v10607_v62 = vld [vmem:[#allocation165_spill] sm:$0xff] }
0x17b2   :  { %2507 = vadd.xlane.f32.xlu0 %v2506_v56  ;;  %3119 = vadd.xlane.f32.xlu1 %v3118_v7  ;;  %v4947_v37 = vpop.xlane.xlu0 %4946  ;;  %v5146_v56 = vpop.permute.xlu1 %5145  ;;  %v1251_v7 = vsel %vm628_vm1, %v10597_v32, 0.0 }
0x17b3   :  { %7061 = vpow2.f32 %v4965_v60  ;;  %v4957_v9 = vsub.f32 %v9141_v4, %v4947_v37  ;;  %v5168_v30 = vsel %vm538_vm0, %v5146_v56, 0 }
0x17b5   :  { %v4971_v58 = vmul.f32 1.442695, %v4957_v9 }
0x17b6   :  { %2513 = vadd.xlane.f32.xlu0 %v2512_v48  ;;  %3734 = vadd.xlane.f32.xlu1 %v3733_v12  ;;  %v9240_v49 = vpop.xlane.xlu0 %4940  ;;  %v10598_v48 = vld [vmem:[#allocation75_spill] sm:$0xff]  ;;  %v10599_v12 = vld [vmem:[#allocation13_spill] sm:$0xff] }
0x17b7   :  { %7063 = vpow2.f32 %v4971_v58  ;;  %v1882_v23 = vsel %vm628_vm1, %v10598_v48, 0.0  ;;  %v1559_v9 = vsel %vm628_vm1, %v10599_v12, 0.0  ;;  %v2503_v58 = vsel %vm628_vm1, %v10602_v33, 0.0  ;;  %v10611_v33 = vld [vmem:[#allocation86_spill] sm:$0xff] }
0x17b8   :  { %v9242_v35 = vpop.eup %7055  ;;  %v4366_v48 = vsel %vm628_vm1, %v8995_v31, 0.0 }
0x17b9   :  { %v9244_v8 = vpop.eup %7057 }
0x17ba   :  { %3128 = vadd.xlane.f32.xlu0 %v3127_v10  ;;  %3740 = vadd.xlane.f32.xlu1 %v3739_v41  ;;  %v4950_v36 = vpop.xlane.xlu0 %4949  ;;  %v4999_v4 = vpack.c.bf16 %v9242_v35, %v9244_v8  ;;  %v9253_v21 = vpop.eup %7059  ;;  %v1888_v10 = vsel %vm628_vm1, %v10600_v44, 0.0  ;;  %v1565_v41 = vsel %vm628_vm1, %v10601_v45, 0.0  ;;  %v10609_v44 = vld [vmem:[#allocation58_spill] sm:$0xff] }
0x17bb   :  { %v4958_v53 = vsub.f32 %v9147_v39, %v4950_v36  ;;  %v5162_v39 = vsel %vm538_vm0, %v9106_v20, 0  ;;  %v10603_v36 = vld [vmem:[#allocation85_spill] sm:$0xff] }
0x17bc   :  { %6614 = vmatprep.mubr.msk.bf16.mxu1 %vm628_vm1, %v4999_v4  ;;  %v2184_v4 = vsel %vm628_vm1, %v10603_v36, 0.0 }
0x17bd   :  { %v7062_v26 = vpop.eup %7061  ;;  %v4973_v14 = vmul.f32 1.442695, %v4958_v53  ;;  %v4955_v53 = vsub.f32 %v9143_v2, %v9240_v49  ;;  %v4978_v2 = vsel %vm628_vm1, %v9242_v35, 0.0  ;;  %v10606_v49 = vld [vmem:[#allocation133_spill] sm:$0xff]  ;;  %v3745_v35 = vsel %vm628_vm1, %v10607_v62, 0.0 }
0x17be   :  { %v5000_v15 = vpack.c.bf16 %v7062_v26, %v9253_v21  ;;  %3134 = vadd.xlane.f32.xlu0 %v3133_v57  ;;  %4355 = vadd.xlane.f32.xlu1 %v4354_v17  ;;  %v5144_v40 = vpop.permute.xlu0 %5143  ;;  %v4984_v57 = vsel %vm628_vm1, %v7062_v26, 0.0 }
0x17bf   :  { %7065 = vpow2.f32 %v4973_v14  ;;  %v5165_v60 = vsel %vm538_vm0, %v5144_v40, 0  ;;  %v10604_v14 = vld [vmem:[#allocation103_spill] sm:$0xff]  ;;  %v4967_v17 = vmul.f32 1.442695, %v4955_v53 }
0x17c0   :  { %6615 = vmatmul.mubr.msk.bf16.vlgmr.msra.gmra.mrb[152].mxu1 %vm628_vm1, %v5000_v15  ;;  %v2509_v59 = vsel %vm628_vm1, %v10604_v14, 0.0  ;;  %v10605_v15 = vld [vmem:[#allocation135_spill] sm:$0xff] }
0x17c1   :  { %6623 = vmatpush3.bf16.xpose.msra.mxu1 %v5162_v39  ;;  %v9273_v20 = vpop.eup %7063  ;;  %v3124_v39 = vsel %vm628_vm1, %v10605_v15, 0.0  ;;  %7067 = vpow2.f32 %v4967_v17  ;;  %v4975_v17 = vsel %vm628_vm1, %v9244_v8, 0.0 }
0x17c2   :  { %6763 = vmatprep.subr.msk.bf16.mxu1 %vm538_vm0, %v5144_v40  ;;  %3749 = vadd.xlane.f32.xlu0 %v3748_v5 }
0x17c3   :  { %4361 = vadd.xlane.f32.xlu1 %v4360_v19  ;;  %v3130_v19 = vsel %vm628_vm1, %v10606_v49, 0.0 }
0x17c6   :  { %3755 = vadd.xlane.f32.xlu0 %v3754_v47  ;;  %v5134_v47 = vpop.permute.xlu0 %5133 }
0x17c7   :  { %1246 = vadd.xlane.f32.xlu1 %v1245_v24 }
0x17c9   :  { %v9276_v61 = vpop.eup %7065  ;;  %6625 = vmatpush3.bf16.xpose.msra.mxu1 %v5165_v60  ;;  %v10608_v60 = vld [vmem:[#allocation163_spill] sm:$0xff] }
0x17ca   :  { %6764 = vmatprep.subr.msk.bf16.mxu1 %vm538_vm0, %v5146_v56  ;;  %4370 = vadd.xlane.f32.xlu0 %v4369_v6  ;;  %v5002_v37 = vpack.c.bf16 %v9276_v61, %v9273_v20  ;;  %v3751_v56 = vsel %vm628_vm1, %v10608_v60, 0.0  ;;  %v5138_v32 = vpop.permute.xlu0 %5137 }
0x17cb   :  { %1252 = vadd.xlane.f32.xlu1 %v1251_v7  ;;  %v7068_v7 = vpop.eup %7067 }
0x17cc   :  { %v4987_v8 = vsel %vm628_vm1, %v7068_v7, 0.0 }
0x17ce   :  { %4376 = vadd.xlane.f32.xlu0 %v4375_v13  ;;  %v5317_v12 = vpop.permute.xlu0 %5316 }
0x17cf   :  { %1883 = vadd.xlane.f32.xlu1 %v1882_v23 }
0x17d1   :  { %6627 = vmatpush3.bf16.xpose.msra.mxu1 %v5168_v30 }
0x17d2   :  { %1560 = vadd.xlane.f32.xlu0 %v1559_v9  ;;  %v4372_v9 = vsel %vm628_vm1, %v8982_v11, 0.0 }
0x17d3   :  { %1889 = vadd.xlane.f32.xlu1 %v1888_v10  ;;  %v1556_v10 = vsel %vm628_vm1, %v10609_v44, 0.0 }
0x17d6   :  { %1566 = vadd.xlane.f32.xlu0 %v1565_v41 }
0x17d7   :  { %2504 = vadd.xlane.f32.xlu1 %v2503_v58  ;;  %v2181_v58 = vsel %vm628_vm1, %v10611_v33, 0.0 }
0x17da   :  { %2185 = vadd.xlane.f32.xlu0 %v2184_v4  ;;  %v10612_v4 = vld [vmem:[#allocation87_spill] sm:$0xff] }
0x17db   :  { %2510 = vadd.xlane.f32.xlu1 %v2509_v59  ;;  %v2187_v53 = vsel %vm628_vm1, %v10612_v4, 0.0  ;;  %v4981_v59 = vsel %vm628_vm1, %v9253_v21, 0.0 }
0x17de   :  { %v4944_v40 = vpop.xlane.xlu1 %4943  ;;  %4985 = vadd.xlane.f32.xlu0 %v4984_v57 }
0x17df   :  { %3125 = vadd.xlane.f32.xlu1 %v3124_v39  ;;  %v4956_v3 = vsub.f32 %v9149_v38, %v4944_v40  ;;  %v4996_v38 = vsel %vm628_vm1, %v9276_v61, 0.0 }
0x17e1   :  { %v4969_v5 = vmul.f32 1.442695, %v4956_v3  ;;  %v4993_v3 = vsel %vm628_vm1, %v9273_v20, 0.0 }
0x17e2   :  { %v5148_v46 = vpop.permute.xlu1 %5147  ;;  %4979 = vadd.xlane.f32.xlu0 %v4978_v2  ;;  %v10613_v2 = vld [vmem:[#allocation50_spill] sm:$0xff] }
0x17e3   :  { %7069 = vpow2.f32 %v4969_v5  ;;  %3131 = vadd.xlane.f32.xlu1 %v3130_v19  ;;  %6765 = vmatprep.subr.msk.bf16.mxu1 %vm538_vm0, %v5148_v46  ;;  %v5171_v26 = vsel %vm538_vm0, %v5148_v46, 0  ;;  %v10614_v19 = vld [vmem:[#allocation52_spill] sm:$0xff] }
0x17e4   :  { %6629 = vmatpush3.bf16.xpose.msra.mxu1 %v5171_v26 }
0x17e6   :  { %v5136_v24 = vpop.permute.xlu1 %5135  ;;  %4997 = vadd.xlane.f32.xlu0 %v4996_v38 }
0x17e7   :  { %3746 = vadd.xlane.f32.xlu1 %v3745_v35 }
0x17ea   :  { %v5140_v6 = vpop.permute.xlu1 %5139 }
0x17eb   :  { %3752 = vadd.xlane.f32.xlu1 %v3751_v56 }
0x17ed   :  { %v7070_v13 = vpop.eup %7069 }
0x17ee   :  { %v5315_v23 = vpop.permute.xlu1 %5314  ;;  %v4990_v61 = vsel %vm628_vm1, %v7070_v13, 0.0  ;;  %v5001_v30 = vpack.c.bf16 %v7070_v13, %v7068_v7 }
0x17ef   :  { %4367 = vadd.xlane.f32.xlu1 %v4366_v48  ;;  %6638 = vmatprep.subr.bf16.mxu0 %v5315_v23  ;;  %v10615_v48 = vld [vmem:[#allocation51_spill] sm:$0xff] }
0x17f0   :  { %4991 = vadd.xlane.f32.xlu0 %v4990_v61  ;;  %6618 = vmatprep.mubr.msk.bf16.mxu1 %vm628_vm1, %v5001_v30  ;;  %v10616_v61 = vld [vmem:[#allocation53_spill] sm:$0xff] }
0x17f1   :  { %6639 = vmatpush3.bf16.msra.mxu0 %v5315_v23  ;;  %6619 = vmatmul.mubr.msk.bf16.gmra.mrb[156].mxu1 %vm628_vm1, %v5002_v37  ;;  %v10610_v37 = vld [vmem:[#allocation59_spill] sm:$0xff] }
0x17f2   :  { %6640 = vmatprep.subr.bf16.mxu0 %v5317_v12  ;;  %6630 = vmatprep.mubr.msk.bf16.mxu1 %vm538_vm0, %v5134_v47  ;;  %v5319_v31 = vpop.permute.xlu1 %5318  ;;  %v1562_v41 = vsel %vm628_vm1, %v10610_v37, 0.0 }
0x17f3   :  { %4373 = vadd.xlane.f32.xlu1 %v4372_v9 }
0x17f5   :  { %6641 = vmatpush3.bf16.msra.mxu0 %v5317_v12 }
0x17f6   :  { %6642 = vmatprep.subr.bf16.mxu0 %v5319_v31  ;;  %v5321_v45 = vpop.permute.xlu1 %5320 }
0x17f7   :  { %1557 = vadd.xlane.f32.xlu1 %v1556_v10 }
0x17f9   :  { %6643 = vmatpush3.bf16.msra.mxu0 %v5319_v31  ;;  %6631 = vmatmul.mubr.msk.bf16.vlgmr.msra.gmra.mrb[160].mxu1 %vm538_vm0, %v5136_v24 }
0x17fa   :  { %6644 = vmatprep.subr.bf16.mxu0 %v5321_v45  ;;  %6634 = vmatprep.mubr.msk.bf16.mxu1 %vm538_vm0, %v5138_v32 }
0x17fb   :  { %1563 = vadd.xlane.f32.xlu1 %v1562_v41  ;;  %v1235_v11 = vpop.xlane.xlu0 %1234  ;;  %v10618_v41 = vld [vmem:[#allocation80_spill] sm:$0xff] }
0x17fd   :  { %6645 = vmatpush3.bf16.msra.mxu0 %v5321_v45  ;;  %v10617_v45 = vld [vmem:[#allocation78_spill] sm:$0xff] }
0x17ff   :  { %2182 = vadd.xlane.f32.xlu1 %v2181_v58  ;;  %v1241_v36 = vpop.xlane.xlu0 %1240 }
0x1800   :  { %7071 = vrcp.f32 %v1241_v36 }
0x1801   :  { %6635 = vmatmul.mubr.msk.bf16.gmra.mrb[164].mxu1 %vm538_vm0, %v5140_v6 }
0x1803   :  { %2188 = vadd.xlane.f32.xlu1 %v2187_v53  ;;  %v1244_v14 = vpop.xlane.xlu0 %1243 }
0x1804   :  { %7073 = vrcp.f32 %v1244_v14  ;;  %v10619_v14 = vld [vmem:[#allocation77_spill] sm:$0xff] }
0x1805   :  { %7075 = vrcp.f32 %v1235_v11 }
0x1807   :  { %4982 = vadd.xlane.f32.xlu1 %v4981_v59  ;;  %v1875_v57 = vpop.xlane.xlu0 %1874 }
0x180a   :  { %v7072_v39 = vpop.eup %7071 }
0x180b   :  { %4976 = vadd.xlane.f32.xlu1 %v4975_v17  ;;  %v1881_v15 = vpop.xlane.xlu0 %1880  ;;  %v9346_v49 = vmul.f32 %v7072_v39, %v10613_v2  ;;  %v10643_v39 = vld [vmem:[#allocation112_spill] sm:$0xff] }
0x180e   :  { %v7074_v40 = vpop.eup %7073 }
0x180f   :  { %4994 = vadd.xlane.f32.xlu1 %v4993_v3  ;;  %v2496_v5 = vpop.xlane.xlu0 %2495  ;;  %v9349_v46 = vmul.f32 %v7074_v40, %v10614_v19  ;;  %v7076_v32 = vpop.eup %7075  ;;  %v10622_v19 = vld [vmem:[#allocation110_spill] sm:$0xff] }
0x1810   :  { %v9357_v23 = vmul.f32 %v7076_v32, %v10615_v48  ;;  %v10623_v32 = vld [vmem:[#allocation107_spill] sm:$0xff] }
0x1813   :  { %4988 = vadd.xlane.f32.xlu1 %v4987_v8  ;;  %v2502_v26 = vpop.xlane.xlu0 %2501 }
0x1817   :  { %v3117_v47 = vpop.xlane.xlu0 %3116 }
0x181b   :  { %v3123_v38 = vpop.xlane.xlu0 %3122 }
0x181f   :  { %v3738_v62 = vpop.xlane.xlu0 %3737 }
0x1823   :  { %v3744_v35 = vpop.xlane.xlu0 %3743 }
0x1827   :  { %v1238_v20 = vpop.xlane.xlu1 %1237  ;;  %v4359_v24 = vpop.xlane.xlu0 %4358 }
0x1828   :  { %7077 = vrcp.f32 %v1238_v20 }
0x1829   :  { %7079 = vrcp.f32 %v1875_v57  ;;  %v10620_v57 = vld [vmem:[#allocation79_spill] sm:$0xff] }
0x182b   :  { %v1872_v60 = vpop.xlane.xlu1 %1871  ;;  %v9354_v56 = vpop.xlane.xlu0 %4364 }
0x182c   :  { %7081 = vrcp.f32 %v1872_v60 }
0x182d   :  { %7083 = vrcp.f32 %v1881_v15 }
0x182f   :  { %v1878_v6 = vpop.xlane.xlu1 %1877  ;;  %v9362_v9 = vpop.xlane.xlu0 %1249 }
0x1830   :  { %7085 = vrcp.f32 %v1878_v6 }
0x1831   :  { %7087 = vrcp.f32 %v2496_v5  ;;  %v10621_v5 = vld [vmem:[#allocation108_spill] sm:$0xff] }
0x1832   :  { %v7078_v7 = vpop.eup %7077 }
0x1833   :  { %v2493_v13 = vpop.xlane.xlu1 %2492  ;;  %v9360_v30 = vmul.f32 %v7078_v7, %v10616_v61  ;;  %v7080_v12 = vpop.eup %7079 }
0x1834   :  { %7089 = vrcp.f32 %v2493_v13  ;;  %v9370_v11 = vmul.f32 %v7080_v12, %v10618_v41  ;;  %v1256_v4 = vpop.xlane.xlu0 %1255 }
0x1835   :  { %7091 = vrcp.f32 %v2502_v26 }
0x1836   :  { %v7082_v44 = vpop.eup %7081 }
0x1837   :  { %v2499_v10 = vpop.xlane.xlu1 %2498  ;;  %v9367_v37 = vmul.f32 %v7082_v44, %v10617_v45  ;;  %v7084_v33 = vpop.eup %7083  ;;  %v10625_v45 = vld [vmem:[#allocation138_spill] sm:$0xff] }
0x1838   :  { %7093 = vrcp.f32 %v2499_v10  ;;  %v9378_v17 = vmul.f32 %v7084_v33, %v10620_v57 }
0x1839   :  { %7095 = vrcp.f32 %v3117_v47  ;;  %v1887_v47 = vpop.xlane.xlu0 %1886 }
0x183a   :  { %v7086_v36 = vpop.eup %7085 }
0x183b   :  { %v3114_v53 = vpop.xlane.xlu1 %3113  ;;  %v9375_v59 = vmul.f32 %v7086_v36, %v10619_v14  ;;  %v7088_v15 = vpop.eup %7087 }
0x183c   :  { %7097 = vrcp.f32 %v3114_v53  ;;  %v9386_v8 = vmul.f32 %v7088_v15, %v10622_v19  ;;  %v10627_v15 = vld [vmem:[#allocation137_spill] sm:$0xff] }
0x183d   :  { %7099 = vrcp.f32 %v3123_v38  ;;  %v10624_v38 = vld [vmem:[#allocation109_spill] sm:$0xff]  ;;  %v1893_v44 = vpop.xlane.xlu0 %1892 }
0x183e   :  { %v7090_v40 = vpop.eup %7089 }
0x183f   :  { %v3120_v3 = vpop.xlane.xlu1 %3119  ;;  %v9383_v2 = vmul.f32 %v7090_v40, %v10621_v5  ;;  %v7092_v26 = vpop.eup %7091 }
0x1840   :  { %7101 = vrcp.f32 %v3120_v3  ;;  %v9394_v13 = vmul.f32 %v7092_v26, %v10624_v38 }
0x1841   :  { %7103 = vrcp.f32 %v3738_v62  ;;  %v10626_v62 = vld [vmem:[#allocation140_spill] sm:$0xff]  ;;  %v2508_v19 = vpop.xlane.xlu0 %2507 }
0x1842   :  { %v7094_v60 = vpop.eup %7093 }
0x1843   :  { %v3735_v6 = vpop.xlane.xlu1 %3734  ;;  %v9391_v7 = vmul.f32 %v7094_v60, %v10623_v32  ;;  %v7096_v48 = vpop.eup %7095 }
0x1844   :  { %7105 = vrcp.f32 %v3735_v6  ;;  %v9402_v33 = vmul.f32 %v7096_v48, %v10626_v62  ;;  %v10629_v6 = vld [vmem:[#allocation168_spill] sm:$0xff] }
0x1845   :  { %7107 = vrcp.f32 %v3744_v35  ;;  %v10628_v35 = vld [vmem:[#allocation139_spill] sm:$0xff]  ;;  %v2514_v62 = vpop.xlane.xlu0 %2513 }
0x1846   :  { %v7098_v12 = vpop.eup %7097 }
0x1847   :  { %v3741_v10 = vpop.xlane.xlu1 %3740  ;;  %v9399_v41 = vmul.f32 %v7098_v12, %v10625_v45  ;;  %v7100_v36 = vpop.eup %7099 }
0x1848   :  { %7109 = vrcp.f32 %v3741_v10  ;;  %v9410_v3 = vmul.f32 %v7100_v36, %v10628_v35  ;;  %v10631_v36 = vld [vmem:[#allocation167_spill] sm:$0xff] }
0x1849   :  { %7111 = vrcp.f32 %v4359_v24  ;;  %v10630_v24 = vld [vmem:[#allocation170_spill] sm:$0xff]  ;;  %v10633_v10 = vld [vmem:[#allocation55_spill] sm:$0xff] }
0x184a   :  { %v7102_v14 = vpop.eup %7101 }
0x184b   :  { %v4356_v57 = vpop.xlane.xlu1 %4355  ;;  %v9407_v40 = vmul.f32 %v7102_v14, %v10627_v15  ;;  %v7104_v5 = vpop.eup %7103 }
0x184c   :  { %7113 = vrcp.f32 %v4356_v57  ;;  %v9419_v38 = vmul.f32 %v7104_v5, %v10630_v24  ;;  %v10635_v5 = vld [vmem:[#allocation54_spill] sm:$0xff] }
0x184d   :  { %7115 = vrcp.f32 %v9354_v56  ;;  %v10632_v56 = vld [vmem:[#allocation169_spill] sm:$0xff] }
0x184e   :  { %v7106_v60 = vpop.eup %7105 }
0x184f   :  { %v9416_v32 = vmul.f32 %v7106_v60, %v10629_v6  ;;  %v7108_v48 = vpop.eup %7107 }
0x1850   :  { %v4362_v12 = vpop.xlane.xlu1 %4361  ;;  %v9428_v57 = vmul.f32 %v7108_v48, %v10632_v56 }
0x1851   :  { %7117 = vrcp.f32 %v4362_v12 }
0x1852   :  { %v7110_v45 = vpop.eup %7109  ;;  %7119 = vrcp.f32 %v9362_v9  ;;  %v3129_v9 = vpop.xlane.xlu0 %3128 }
0x1853   :  { %v9425_v14 = vmul.f32 %v7110_v45, %v10631_v36  ;;  %v7112_v15 = vpop.eup %7111 }
0x1854   :  { %v1247_v35 = vpop.xlane.xlu1 %1246  ;;  %v9436_v24 = vmul.f32 %v7112_v15, %v9017_v18 }
0x1855   :  { %7121 = vrcp.f32 %v1247_v35 }
0x1856   :  { %v7114_v60 = vpop.eup %7113  ;;  %7123 = vrcp.f32 %v1256_v4  ;;  %v3135_v18 = vpop.xlane.xlu0 %3134 }
0x1857   :  { %v9433_v6 = vmul.f32 %v7114_v60, %v9013_v27  ;;  %v7116_v45 = vpop.eup %7115 }
0x1858   :  { %v1253_v12 = vpop.xlane.xlu1 %1252  ;;  %v9444_v4 = vmul.f32 %v7116_v45, %v9015_v54 }
0x1859   :  { %7125 = vrcp.f32 %v1253_v12 }
0x185a   :  { %7127 = vrcp.f32 %v1887_v47  ;;  %v10634_v47 = vld [vmem:[#allocation57_spill] sm:$0xff] }
0x185b   :  { %v7118_v36 = vpop.eup %7117 }
0x185c   :  { %v1884_v56 = vpop.xlane.xlu1 %1883  ;;  %v9441_v35 = vmul.f32 %v7118_v36, %v9011_v1  ;;  %v7120_v27 = vpop.eup %7119 }
0x185d   :  { %7129 = vrcp.f32 %v1884_v56  ;;  %v9452_v53 = vmul.f32 %v7120_v27, %v10634_v47  ;;  %v3750_v36 = vpop.xlane.xlu0 %3749  ;;  %v10637_v47 = vld [vmem:[#allocation82_spill] sm:$0xff] }
0x185e   :  { %7131 = vrcp.f32 %v1893_v44  ;;  %v10636_v44 = vld [vmem:[#allocation56_spill] sm:$0xff] }
0x185f   :  { %v7122_v60 = vpop.eup %7121 }
0x1860   :  { %v1890_v12 = vpop.xlane.xlu1 %1889  ;;  %v9449_v48 = vmul.f32 %v7122_v60, %v10633_v10  ;;  %v7124_v1 = vpop.eup %7123 }
0x1861   :  { %7133 = vrcp.f32 %v1890_v12  ;;  %v9460_v20 = vmul.f32 %v7124_v1, %v10636_v44  ;;  %v10641_v44 = vld [vmem:[#allocation81_spill] sm:$0xff] }
0x1862   :  { %7135 = vrcp.f32 %v2508_v19  ;;  %v10639_v19 = vld [vmem:[#allocation84_spill] sm:$0xff] }
0x1863   :  { %v7126_v45 = vpop.eup %7125 }
0x1864   :  { %v2505_v56 = vpop.xlane.xlu1 %2504  ;;  %v9457_v15 = vmul.f32 %v7126_v45, %v10635_v5  ;;  %v7128_v10 = vpop.eup %7127 }
0x1865   :  { %7137 = vrcp.f32 %v2505_v56  ;;  %v9468_v26 = vmul.f32 %v7128_v10, %v10639_v19  ;;  %v3756_v5 = vpop.xlane.xlu0 %3755 }
0x1866   :  { %7139 = vrcp.f32 %v2514_v62  ;;  %v10642_v62 = vld [vmem:[#allocation83_spill] sm:$0xff] }
0x1867   :  { %v7130_v60 = vpop.eup %7129  ;;  %10640 = vst [vmem:[#allocation32_spill] sm:$0xff] %v9468_v26 }
0x1868   :  { %v2511_v12 = vpop.xlane.xlu1 %2510  ;;  %v9465_v54 = vmul.f32 %v7130_v60, %v10637_v47  ;;  %v7132_v21 = vpop.eup %7131 }
0x1869   :  { %7141 = vrcp.f32 %v2511_v12  ;;  %v9476_v61 = vmul.f32 %v7132_v21, %v10642_v62  ;;  %v4371_v12 = vpop.xlane.xlu0 %4370  ;;  %v10647_v62 = vld [vmem:[#allocation111_spill] sm:$0xff] }
0x186a   :  { %10638 = vst [vmem:[#allocation14_spill] sm:$0xff] %v9465_v54  ;;  %7143 = vrcp.f32 %v3129_v9  ;;  %v10645_v9 = vld [vmem:[#allocation114_spill] sm:$0xff] }
0x186b   :  { %v7134_v45 = vpop.eup %7133  ;;  %v10692_v54 = vld [vmem:[#allocation146_spill] sm:$0xff] }
0x186c   :  { %v3126_v56 = vpop.xlane.xlu1 %3125  ;;  %v9473_v27 = vmul.f32 %v7134_v45, %v10641_v44  ;;  %v7136_v60 = vpop.eup %7135 }
0x186d   :  { %7145 = vrcp.f32 %v3126_v56  ;;  %v9484_v58 = vmul.f32 %v7136_v60, %v10645_v9  ;;  %v10650_v9 = vld [vmem:[#allocation142_spill] sm:$0xff] }
0x186e   :  { %7147 = vrcp.f32 %v3135_v18  ;;  %v10649_v18 = vld [vmem:[#allocation113_spill] sm:$0xff] }
0x186f   :  { %v7138_v47 = vpop.eup %7137  ;;  %10646 = vst [vmem:[#allocation76_spill] sm:$0xff] %v9484_v58  ;;  %v10683_v58 = vld [vmem:[#allocation96_spill] sm:$0xff] }
0x1870   :  { %v3132_v19 = vpop.xlane.xlu1 %3131  ;;  %v9481_v1 = vmul.f32 %v7138_v47, %v10643_v39  ;;  %v7140_v45 = vpop.eup %7139 }
0x1871   :  { %7149 = vrcp.f32 %v3132_v19  ;;  %v9492_v31 = vmul.f32 %v7140_v45, %v10649_v18  ;;  %v4377_v39 = vpop.xlane.xlu0 %4376 }
0x1872   :  { %10644 = vst [vmem:[#allocation101_spill] sm:$0xff] %v9481_v1  ;;  %7151 = vrcp.f32 %v3750_v36  ;;  %v10652_v36 = vld [vmem:[#allocation144_spill] sm:$0xff] }
0x1873   :  { %v7142_v44 = vpop.eup %7141 }
0x1874   :  { %v3747_v56 = vpop.xlane.xlu1 %3746  ;;  %v9489_v10 = vmul.f32 %v7142_v44, %v10647_v62  ;;  %v7144_v28 = vpop.eup %7143 }
0x1875   :  { %7153 = vrcp.f32 %v3747_v56  ;;  %v9500_v50 = vmul.f32 %v7144_v28, %v10652_v36  ;;  %v1561_v56 = vpop.xlane.xlu0 %1560  ;;  %v10658_v36 = vld [vmem:[#allocation172_spill] sm:$0xff] }
0x1876   :  { %10648 = vst [vmem:[#allocation102_spill] sm:$0xff] %v9489_v10  ;;  %7155 = vrcp.f32 %v3756_v5  ;;  %v10656_v5 = vld [vmem:[#allocation143_spill] sm:$0xff] }
0x1877   :  { %v7146_v47 = vpop.eup %7145  ;;  %10653 = vst [vmem:[#allocation131_spill] sm:$0xff] %v9500_v50  ;;  %v10694_v10 = vld [vmem:[#allocation147_spill] sm:$0xff] }
0x1878   :  { %v3753_v19 = vpop.xlane.xlu1 %3752  ;;  %v9497_v21 = vmul.f32 %v7146_v47, %v10650_v9  ;;  %v7148_v44 = vpop.eup %7147 }
0x1879   :  { %7157 = vrcp.f32 %v3753_v19  ;;  %v9508_v29 = vmul.f32 %v7148_v44, %v10656_v5  ;;  %v10662_v5 = vld [vmem:[#allocation171_spill] sm:$0xff] }
0x187a   :  { %10651 = vst [vmem:[#allocation74_spill] sm:$0xff] %v9497_v21  ;;  %7159 = vrcp.f32 %v4371_v12  ;;  %v10660_v12 = vld [vmem:[#allocation174_spill] sm:$0xff] }
0x187b   :  { %v7150_v62 = vpop.eup %7149  ;;  %10657 = vst [vmem:[#allocation132_spill] sm:$0xff] %v9508_v29 }
0x187c   :  { %v4368_v18 = vpop.xlane.xlu1 %4367  ;;  %v9505_v60 = vmul.f32 %v7150_v62, %v10654_v52  ;;  %v7152_v47 = vpop.eup %7151 }
0x187d   :  { %7161 = vrcp.f32 %v4368_v18  ;;  %v9516_v55 = vmul.f32 %v7152_v47, %v10660_v12  ;;  %v1567_v52 = vpop.xlane.xlu0 %1566 }
0x187e   :  { %10655 = vst [vmem:[#allocation106_spill] sm:$0xff] %v9505_v60  ;;  %7163 = vrcp.f32 %v4377_v39  ;;  %v10664_v39 = vld [vmem:[#allocation173_spill] sm:$0xff] }
0x187f   :  { %v7154_v9 = vpop.eup %7153  ;;  %10661 = vst [vmem:[#allocation161_spill] sm:$0xff] %v9516_v55 }
0x1880   :  { %v4374_v19 = vpop.xlane.xlu1 %4373  ;;  %v9513_v45 = vmul.f32 %v7154_v9, %v10658_v36  ;;  %v7156_v21 = vpop.eup %7155 }
0x1881   :  { %7165 = vrcp.f32 %v4374_v19  ;;  %v9524_v50 = vmul.f32 %v7156_v21, %v10664_v39  ;;  %v2186_v19 = vpop.xlane.xlu0 %2185  ;;  %v10669_v39 = vld [vmem:[#allocation191_spill] sm:$0xff] }
0x1882   :  { %10659 = vst [vmem:[#allocation104_spill] sm:$0xff] %v9513_v45  ;;  %7167 = vrcp.f32 %v1561_v56  ;;  %v10667_v56 = vld [vmem:[#allocation193_spill] sm:$0xff] }
0x1883   :  { %v7158_v62 = vpop.eup %7157  ;;  %10665 = vst [vmem:[#allocation162_spill] sm:$0xff] %v9524_v50 }
0x1884   :  { %v1558_v18 = vpop.xlane.xlu1 %1557  ;;  %v9521_v28 = vmul.f32 %v7158_v62, %v10662_v5  ;;  %v7160_v9 = vpop.eup %7159 }
0x1885   :  { %7169 = vrcp.f32 %v1558_v18  ;;  %v9532_v45 = vmul.f32 %v7160_v9, %v10667_v56  ;;  %v10673_v56 = vld [vmem:[#allocation66_spill] sm:$0xff] }
0x1886   :  { %10663 = vst [vmem:[#allocation136_spill] sm:$0xff] %v9521_v28  ;;  %7171 = vrcp.f32 %v1567_v52  ;;  %v10671_v52 = vld [vmem:[#allocation192_spill] sm:$0xff] }
0x1887   :  { %v7162_v36 = vpop.eup %7161  ;;  %10668 = vst [vmem:[#allocation166_spill] sm:$0xff] %v9532_v45 }
0x1888   :  { %v1564_v12 = vpop.xlane.xlu1 %1563  ;;  %v9529_v44 = vmul.f32 %v7162_v36, %v9021_v22  ;;  %v7164_v62 = vpop.eup %7163  ;;  %v10677_v22 = vld [vmem:[#allocation65_spill] sm:$0xff] }
0x1889   :  { %7173 = vrcp.f32 %v1564_v12  ;;  %v9540_v55 = vmul.f32 %v7164_v62, %v10671_v52  ;;  %v4986_v36 = vpop.xlane.xlu0 %4985 }
0x188a   :  { %10666 = vst [vmem:[#allocation134_spill] sm:$0xff] %v9529_v44  ;;  %7175 = vrcp.f32 %v2186_v19  ;;  %v10675_v19 = vld [vmem:[#allocation68_spill] sm:$0xff] }
0x188b   :  { %v7166_v5 = vpop.eup %7165  ;;  %10672 = vst [vmem:[#allocation33_spill] sm:$0xff] %v9540_v55  ;;  %v10679_v55 = vld [vmem:[#allocation67_spill] sm:$0xff] }
0x188c   :  { %v2183_v18 = vpop.xlane.xlu1 %2182  ;;  %v9537_v47 = vmul.f32 %v7166_v5, %v10669_v39  ;;  %v7168_v28 = vpop.eup %7167 }
0x188d   :  { %7177 = vrcp.f32 %v2183_v18  ;;  %v9550_v44 = vmul.f32 %v7168_v28, %v10675_v19 }
0x188e   :  { %10670 = vst [vmem:[#allocation164_spill] sm:$0xff] %v9537_v47  ;;  %7179 = vrcp.f32 %v4986_v36  ;;  %v10681_v36 = vld [vmem:[#allocation94_spill] sm:$0xff] }
0x188f   :  { %v7170_v9 = vpop.eup %7169  ;;  %10676 = vst [vmem:[#allocation75_spill] sm:$0xff] %v9550_v44 }
0x1890   :  { %v9544_v12 = vpop.xlane.xlu1 %2188  ;;  %v9547_v21 = vmul.f32 %v7170_v9, %v10673_v56  ;;  %v7172_v5 = vpop.eup %7171 }
0x1891   :  { %v9558_v50 = vmul.f32 %v7172_v5, %v10679_v55  ;;  %v4980_v56 = vpop.xlane.xlu0 %4979 }
0x1892   :  { %10674 = vst [vmem:[#allocation31_spill] sm:$0xff] %v9547_v21 }
0x1893   :  { %v7174_v39 = vpop.eup %7173  ;;  %v6616_v52 = vpop.f32.mrb[152].mxu1  ;;  %10680 = vst [vmem:[#allocation73_spill] sm:$0xff] %v9558_v50 }
0x1894   :  { %v4983_v18 = vpop.xlane.xlu1 %4982  ;;  %v5061_v45 = vpop.f32.mrb[153].mxu1  ;;  %v9555_v47 = vmul.f32 %v7174_v39, %v10677_v22 }
0x1895   :  { %v7176_v9 = vpop.eup %7175  ;;  %7181 = vrcp.f32 %v4983_v18  ;;  %v6617_v28 = vpop.f32.mrb[154].mxu1 }
0x1896   :  { %10678 = vst [vmem:[#allocation13_spill] sm:$0xff] %v9555_v47  ;;  %v5064_v19 = vpop.f32.mrb[155].mxu1  ;;  %7183 = vrcp.f32 %v4980_v56  ;;  %v9566_v22 = vmul.f32 %v7176_v9, %v10683_v58 }
0x1897   :  { %v7178_v62 = vpop.eup %7177 }
0x1898   :  { %v4977_v21 = vpop.xlane.xlu1 %4976  ;;  %v9563_v44 = vmul.f32 %v7178_v62, %v10681_v36  ;;  %10684 = vst [vmem:[#allocation105_spill] sm:$0xff] %v9566_v22  ;;  %v7180_v5 = vpop.eup %7179 }
0x1899   :  { %7185 = vrcp.f32 %v4977_v21  ;;  %v9572_v60 = vmul.f32 %v7180_v5, %v6617_v28  ;;  %v4998_v21 = vpop.xlane.xlu0 %4997 }
0x189a   :  { %10682 = vst [vmem:[#allocation60_spill] sm:$0xff] %v9563_v44  ;;  %7187 = vrcp.f32 %v4998_v21 }
0x189c   :  { %v4995_v9 = vpop.xlane.xlu1 %4994 }
0x189d   :  { %v4992_v55 = vpop.xlane.xlu0 %4991 }
0x189e   :  { %7189 = vrcp.f32 %v4992_v55 }
0x189f   :  { %v7182_v39 = vpop.eup %7181  ;;  %7191 = vrcp.f32 %v4995_v9 }
0x18a0   :  { %v9570_v18 = vmul.f32 %v7182_v39, %v6616_v52  ;;  %v7184_v1 = vpop.eup %7183  ;;  %v4989_v52 = vpop.xlane.xlu1 %4988 }
0x18a1   :  { %v9576_v62 = vmul.f32 %v7184_v1, %v5064_v19  ;;  %7193 = vrcp.f32 %v4989_v52 }
0x18a3   :  { %v7186_v47 = vpop.eup %7185 }
0x18a4   :  { %v9578_v36 = vmul.f32 %v7186_v47, %v5061_v45  ;;  %v7188_v28 = vpop.eup %7187 }
0x18a8   :  { %v7190_v39 = vpop.eup %7189 }
0x18a9   :  { %v7192_v44 = vpop.eup %7191 }
0x18ab   :  { %v7194_v19 = vpop.eup %7193 }
0x18c4   :  { %v6620_v5 = vpop.f32.mrb[156].mxu1 }
0x18c5   :  { %v5077_v56 = vpop.f32.mrb[157].mxu1  ;;  %v9582_v45 = vmul.f32 %v7192_v44, %v6620_v5 }
0x18c6   :  { %v6621_v1 = vpop.f32.mrb[158].mxu1  ;;  %v9586_v22 = vmul.f32 %v7194_v19, %v5077_v56 }
0x18c7   :  { %10685 = vst [vmem:[#allocation85_spill] sm:$0xff] %v9582_v45  ;;  %v9584_v47 = vmul.f32 %v7188_v28, %v6621_v1  ;;  %v5080_v58 = vpop.f32.mrb[159].mxu1 }
0x18c8   :  { %10687 = vst [vmem:[#allocation135_spill] sm:$0xff] %v9586_v22  ;;  %v9588_v50 = vmul.f32 %v7190_v39, %v5080_v58 }
0x18c9   :  { %10686 = vst [vmem:[#allocation103_spill] sm:$0xff] %v9584_v47  ;;  %v10691_v47 = vld [vmem:[#allocation88_spill] sm:$0xff] }
0x18ca   :  { %10688 = vst [vmem:[#allocation133_spill] sm:$0xff] %v9588_v50  ;;  %v10689_v50 = vld [vmem:[#allocation116_spill] sm:$0xff]  ;;  %v2190_v29 = vsel %vm628_vm1, %v10691_v47, 0.0 }
0x18cb   :  { %v2802_v45 = vsel %vm628_vm1, %v10689_v50, 0.0  ;;  %v3429_v50 = vsel %vm628_vm1, %v10694_v10, 0.0  ;;  %v4665_v10 = vsel %vm628_vm1, %v9067_v0, 0.0  ;;  %v10703_v0 = vld [vmem:[#allocation61_spill] sm:$0xff] }
0x18cc   :  { %v9594_v9 = vpop.f32.mrb[160].mxu1 }
0x18cd   :  { %v9596_v52 = vpop.f32.mrb[161].mxu1  ;;  %v5244_v44 = vsel %vm628_vm1, %v9594_v9, -inf }
0x18ce   :  { %5245 = vmax.xlane.f32.xlu0 %v5244_v44  ;;  %v9600_v28 = vpop.f32.mrb[162].mxu1  ;;  %v5238_v5 = vsel %vm628_vm1, %v9596_v52, -inf }
0x18cf   :  { %v9602_v56 = vpop.f32.mrb[163].mxu1  ;;  %v5247_v19 = vsel %vm628_vm1, %v9600_v28, -inf }
0x18d0   :  { %v5241_v58 = vsel %vm628_vm1, %v9602_v56, -inf }
0x18d1   :  { %5242 = vmax.xlane.f32.xlu1 %v5241_v58 }
0x18d2   :  { %5239 = vmax.xlane.f32.xlu0 %v5238_v5 }
0x18d4   :  { %v9608_v39 = vpop.f32.mrb[164].mxu1 }
0x18d5   :  { %v9610_v1 = vpop.f32.mrb[165].mxu1  ;;  %v5256_v44 = vsel %vm628_vm1, %v9608_v39, -inf }
0x18d6   :  { %5248 = vmax.xlane.f32.xlu0 %v5247_v19  ;;  %5257 = vmax.xlane.f32.xlu1 %v5256_v44  ;;  %v9616_v21 = vpop.f32.mrb[166].mxu1  ;;  %v5250_v58 = vsel %vm628_vm1, %v9610_v1, -inf  ;;  %v10690_v19 = vld [vmem:[#allocation117_spill] sm:$0xff] }
0x18d7   :  { %v9618_v55 = vpop.f32.mrb[167].mxu1  ;;  %v5259_v5 = vsel %vm628_vm1, %v9616_v21, -inf  ;;  %v2808_v44 = vsel %vm628_vm1, %v10690_v19, 0.0  ;;  %v10696_v19 = vld [vmem:[#allocation176_spill] sm:$0xff] }
0x18d8   :  { %v5253_v22 = vsel %vm628_vm1, %v9618_v55, -inf  ;;  %v4044_v47 = vsel %vm628_vm1, %v10696_v19, 0.0  ;;  %v10701_v19 = vld [vmem:[#allocation178_spill] sm:$0xff] }
0x18da   :  { %5251 = vmax.xlane.f32.xlu1 %v5250_v58  ;;  %5260 = vmax.xlane.f32.xlu0 %v5259_v5  ;;  %v3423_v58 = vsel %vm628_vm1, %v10692_v54, 0.0  ;;  %v10693_v5 = vld [vmem:[#allocation115_spill] sm:$0xff]  ;;  %v10698_v54 = vld [vmem:[#allocation177_spill] sm:$0xff] }
0x18db   :  { %v2805_v26 = vsel %vm628_vm1, %v10693_v5, 0.0 }
0x18de   :  { %2803 = vadd.xlane.f32.xlu1 %v2802_v45  ;;  %5254 = vmax.xlane.f32.xlu0 %v5253_v22  ;;  %v10695_v22 = vld [vmem:[#allocation118_spill] sm:$0xff] }
0x18df   :  { %v2811_v45 = vsel %vm628_vm1, %v10695_v22, 0.0 }
0x18e2   :  { %2809 = vadd.xlane.f32.xlu1 %v2808_v44  ;;  %2191 = vadd.xlane.f32.xlu0 %v2190_v29  ;;  %v10697_v29 = vld [vmem:[#allocation145_spill] sm:$0xff] }
0x18e3   :  { %v3426_v44 = vsel %vm628_vm1, %v10697_v29, 0.0  ;;  %v10702_v29 = vld [vmem:[#allocation63_spill] sm:$0xff] }
0x18e6   :  { %3424 = vadd.xlane.f32.xlu1 %v3423_v58  ;;  %2806 = vadd.xlane.f32.xlu0 %v2805_v26  ;;  %v4050_v58 = vsel %vm628_vm1, %v10698_v54, 0.0  ;;  %v10699_v26 = vld [vmem:[#allocation148_spill] sm:$0xff]  ;;  %v4668_v54 = vsel %vm628_vm1, %v9065_v63, 0.0 }
0x18e7   :  { %v3432_v5 = vsel %vm628_vm1, %v10699_v26, 0.0  ;;  %v4674_v26 = vsel %vm628_vm1, %v9074_v25, 0.0 }
0x18ea   :  { %3430 = vadd.xlane.f32.xlu1 %v3429_v50  ;;  %2812 = vadd.xlane.f32.xlu0 %v2811_v45  ;;  %v10700_v50 = vld [vmem:[#allocation175_spill] sm:$0xff]  ;;  %v4671_v45 = vsel %vm628_vm1, %v9071_v16, 0.0 }
0x18eb   :  { %v4047_v22 = vsel %vm628_vm1, %v10700_v50, 0.0  ;;  %v10704_v16 = vld [vmem:[#allocation91_spill] sm:$0xff] }
0x18ee   :  { %4045 = vadd.xlane.f32.xlu1 %v4044_v47  ;;  %3427 = vadd.xlane.f32.xlu0 %v3426_v44  ;;  %v4053_v47 = vsel %vm628_vm1, %v10701_v19, 0.0  ;;  %v1568_v44 = vsel %vm628_vm1, %v10702_v29, 0.0  ;;  %v10709_v29 = vld [vmem:[#allocation92_spill] sm:$0xff] }
0x18f2   :  { %4051 = vadd.xlane.f32.xlu1 %v4050_v58  ;;  %3433 = vadd.xlane.f32.xlu0 %v3432_v5  ;;  %v1574_v58 = vsel %vm628_vm1, %v10703_v0, 0.0  ;;  %v2193_v5 = vsel %vm628_vm1, %v10704_v16, 0.0  ;;  %v10712_v16 = vld [vmem:[#allocation151_spill] sm:$0xff] }
0x18f6   :  { %4666 = vadd.xlane.f32.xlu1 %v4665_v10  ;;  %4048 = vadd.xlane.f32.xlu0 %v4047_v22  ;;  %v10705_v10 = vld [vmem:[#allocation64_spill] sm:$0xff]  ;;  %v10706_v22 = vld [vmem:[#allocation89_spill] sm:$0xff] }
0x18f7   :  { %v1571_v50 = vsel %vm628_vm1, %v10705_v10, 0.0  ;;  %v2199_v63 = vsel %vm628_vm1, %v10706_v22, 0.0  ;;  %v10713_v10 = vld [vmem:[#allocation122_spill] sm:$0xff]  ;;  %v10714_v22 = vld [vmem:[#allocation149_spill] sm:$0xff] }
0x18fa   :  { %4672 = vadd.xlane.f32.xlu1 %v4671_v45  ;;  %4054 = vadd.xlane.f32.xlu0 %v4053_v47  ;;  %v10707_v45 = vld [vmem:[#allocation62_spill] sm:$0xff]  ;;  %v10708_v47 = vld [vmem:[#allocation121_spill] sm:$0xff] }
0x18fb   :  { %v1577_v19 = vsel %vm628_vm1, %v10707_v45, 0.0  ;;  %v2814_v25 = vsel %vm628_vm1, %v10708_v47, 0.0  ;;  %v10715_v45 = vld [vmem:[#allocation120_spill] sm:$0xff]  ;;  %v10716_v47 = vld [vmem:[#allocation181_spill] sm:$0xff] }
0x18fe   :  { %1569 = vadd.xlane.f32.xlu1 %v1568_v44  ;;  %4669 = vadd.xlane.f32.xlu0 %v4668_v54  ;;  %v2196_v44 = vsel %vm628_vm1, %v10709_v29, 0.0  ;;  %v10710_v54 = vld [vmem:[#allocation119_spill] sm:$0xff]  ;;  %v10717_v29 = vld [vmem:[#allocation152_spill] sm:$0xff] }
0x18ff   :  { %v2820_v0 = vsel %vm628_vm1, %v10710_v54, 0.0  ;;  %v10718_v54 = vld [vmem:[#allocation179_spill] sm:$0xff] }
0x1902   :  { %1575 = vadd.xlane.f32.xlu1 %v1574_v58  ;;  %4675 = vadd.xlane.f32.xlu0 %v4674_v26  ;;  %v10711_v58 = vld [vmem:[#allocation90_spill] sm:$0xff] }
0x1903   :  { %v2202_v26 = vsel %vm628_vm1, %v10711_v58, 0.0  ;;  %v10719_v58 = vld [vmem:[#allocation150_spill] sm:$0xff] }
0x1906   :  { %2194 = vadd.xlane.f32.xlu1 %v2193_v5  ;;  %1572 = vadd.xlane.f32.xlu0 %v1571_v50  ;;  %v3435_v5 = vsel %vm628_vm1, %v10712_v16, 0.0  ;;  %v2817_v50 = vsel %vm628_vm1, %v10713_v10, 0.0  ;;  %v4677_v16 = vsel %vm628_vm1, %v9095_v42, 0.0  ;;  %v10723_v42 = vld [vmem:[#allocation15_spill] sm:$0xff] }
0x190a   :  { %2200 = vadd.xlane.f32.xlu1 %v2199_v63  ;;  %1578 = vadd.xlane.f32.xlu0 %v1577_v19  ;;  %v3441_v63 = vsel %vm628_vm1, %v10714_v22, 0.0  ;;  %v2823_v19 = vsel %vm628_vm1, %v10715_v45, 0.0  ;;  %v10721_v22 = vld [vmem:[#allocation180_spill] sm:$0xff] }
0x190b   :  { %v10722_v45 = vld [vmem:[#allocation16_spill] sm:$0xff] }
0x190e   :  { %2815 = vadd.xlane.f32.xlu1 %v2814_v25  ;;  %2197 = vadd.xlane.f32.xlu0 %v2196_v44  ;;  %v4056_v25 = vsel %vm628_vm1, %v10716_v47, 0.0  ;;  %v3438_v44 = vsel %vm628_vm1, %v10717_v29, 0.0  ;;  %v4680_v47 = vsel %vm628_vm1, %v9097_v43, 0.0  ;;  %v4686_v29 = vsel %vm628_vm1, %v9085_v34, 0.0 }
0x1912   :  { %2821 = vadd.xlane.f32.xlu1 %v2820_v0  ;;  %2203 = vadd.xlane.f32.xlu0 %v2202_v26  ;;  %v4062_v0 = vsel %vm628_vm1, %v10718_v54, 0.0  ;;  %v3444_v26 = vsel %vm628_vm1, %v10719_v58, 0.0  ;;  %v10725_v54 = vld [vmem:[#allocation18_spill] sm:$0xff]  ;;  %v10726_v58 = vld [vmem:[#allocation23_spill] sm:$0xff] }
0x1913   :  { %v695_v43 = vsel %vm628_vm1, %v10726_v58, 0.0  ;;  %v10736_v58 = vld [vmem:[#allocation30_spill] sm:$0xff] }
0x1916   :  { %3436 = vadd.xlane.f32.xlu1 %v3435_v5  ;;  %2818 = vadd.xlane.f32.xlu0 %v2817_v50  ;;  %v10720_v5 = vld [vmem:[#allocation182_spill] sm:$0xff]  ;;  %v4683_v50 = vsel %vm628_vm1, %v9082_v51, 0.0  ;;  %v10724_v51 = vld [vmem:[#allocation27_spill] sm:$0xff] }
0x1917   :  { %v4059_v10 = vsel %vm628_vm1, %v10720_v5, 0.0  ;;  %v10728_v5 = vld [vmem:[#allocation21_spill] sm:$0xff] }
0x1918   :  { %v943_v34 = vsel %vm628_vm1, %v10728_v5, 0.0  ;;  %v10738_v5 = vpack.c.bf16 %v9360_v30, %v9357_v23  ;;  %v10740_v30 = vpack.c.bf16 %v9378_v17, %v9375_v59 }
0x191a   :  { %3442 = vadd.xlane.f32.xlu1 %v3441_v63  ;;  %2824 = vadd.xlane.f32.xlu0 %v2823_v19  ;;  %v4065_v63 = vsel %vm628_vm1, %v10721_v22, 0.0  ;;  %v677_v19 = vsel %vm628_vm1, %v10722_v45, 0.0  ;;  %v10730_v22 = vld [vmem:[#allocation19_spill] sm:$0xff]  ;;  %v10731_v45 = vld [vmem:[#allocation24_spill] sm:$0xff] }
0x191e   :  { %4057 = vadd.xlane.f32.xlu1 %v4056_v25  ;;  %3439 = vadd.xlane.f32.xlu0 %v3438_v44  ;;  %v683_v25 = vsel %vm628_vm1, %v10723_v42, 0.0  ;;  %v689_v44 = vsel %vm628_vm1, %v10724_v51, 0.0  ;;  %v10734_v51 = vld [vmem:[#allocation25_spill] sm:$0xff] }
0x1922   :  { %4063 = vadd.xlane.f32.xlu1 %v4062_v0  ;;  %3445 = vadd.xlane.f32.xlu0 %v3444_v26  ;;  %v680_v0 = vsel %vm628_vm1, %v10725_v54, 0.0  ;;  %v10727_v26 = vld [vmem:[#allocation17_spill] sm:$0xff]  ;;  %v10735_v54 = vld [vmem:[#allocation20_spill] sm:$0xff] }
0x1926   :  { %4678 = vadd.xlane.f32.xlu1 %v4677_v16  ;;  %4060 = vadd.xlane.f32.xlu0 %v4059_v10  ;;  %v686_v16 = vsel %vm628_vm1, %v10727_v26, 0.0  ;;  %v10729_v10 = vld [vmem:[#allocation28_spill] sm:$0xff]  ;;  %v10737_v26 = vld [vmem:[#allocation26_spill] sm:$0xff] }
0x192a   :  { %4684 = vadd.xlane.f32.xlu1 %v4683_v50  ;;  %4066 = vadd.xlane.f32.xlu0 %v4065_v63  ;;  %v692_v50 = vsel %vm628_vm1, %v10729_v10, 0.0  ;;  %v949_v63 = vsel %vm628_vm1, %v10730_v22, 0.0  ;;  %v10739_v22 = vpack.c.bf16 %v9370_v11, %v9367_v37 }
0x192e   :  { %678 = vadd.xlane.f32.xlu1 %v677_v19  ;;  %4681 = vadd.xlane.f32.xlu0 %v4680_v47  ;;  %v698_v19 = vsel %vm628_vm1, %v10731_v45, 0.0  ;;  %v10732_v47 = vld [vmem:[#allocation29_spill] sm:$0xff] }
0x192f   :  { %v955_v42 = vsel %vm628_vm1, %v10732_v47, 0.0 }
0x1932   :  { %684 = vadd.xlane.f32.xlu1 %v683_v25  ;;  %4687 = vadd.xlane.f32.xlu0 %v4686_v29  ;;  %v10733_v25 = vld [vmem:[#allocation22_spill] sm:$0xff] }
0x1933   :  { %v946_v29 = vsel %vm628_vm1, %v10733_v25, 0.0  ;;  %v6823_v25 = vld [vmem:[#allocation8] sm:$0xff]  }
0x1934   :  { %6654 = vmatprep.subr.bf16.mxu0 %v6823_v25 }
0x1936   :  { %690 = vadd.xlane.f32.xlu1 %v689_v44  ;;  %681 = vadd.xlane.f32.xlu0 %v680_v0  ;;  %v961_v44 = vsel %vm628_vm1, %v10734_v51, 0.0  ;;  %v952_v0 = vsel %vm628_vm1, %v10735_v54, 0.0  ;;  %v10741_v51 = vpack.c.bf16 %v9394_v13, %v9391_v7  ;;  %v10743_v7 = vpack.c.bf16 %v9410_v3, %v9407_v40 }
0x1937   :  { %v10745_v3 = vpack.c.bf16 %v9428_v57, %v9425_v14  ;;  %v10747_v57 = vpack.c.bf16 %v9444_v4, %v9441_v35  ;;  %v10749_v4 = vpack.c.bf16 %v9572_v60, %v9570_v18  ;;  %v10751_v18 = vpack.c.bf16 %v9460_v20, %v9457_v15  ;;  %v10754_v15 = vld [vmem:[#allocation95_spill] sm:$0xff] }
0x193a   :  { %696 = vadd.xlane.f32.xlu1 %v695_v43  ;;  %687 = vadd.xlane.f32.xlu0 %v686_v16  ;;  %v958_v43 = vsel %vm628_vm1, %v10736_v58, 0.0  ;;  %v964_v16 = vsel %vm628_vm1, %v10737_v26, 0.0 }
0x193e   :  { %944 = vadd.xlane.f32.xlu1 %v943_v34  ;;  %693 = vadd.xlane.f32.xlu0 %v692_v50 }
0x1942   :  { %950 = vadd.xlane.f32.xlu1 %v949_v63  ;;  %699 = vadd.xlane.f32.xlu0 %v698_v19 }
0x1946   :  { %956 = vadd.xlane.f32.xlu1 %v955_v42  ;;  %947 = vadd.xlane.f32.xlu0 %v946_v29 }
0x194a   :  { %962 = vadd.xlane.f32.xlu1 %v961_v44  ;;  %953 = vadd.xlane.f32.xlu0 %v952_v0 }
0x194e   :  { %959 = vadd.xlane.f32.xlu0 %v958_v43 }
0x1952   :  { %965 = vadd.xlane.f32.xlu0 %v964_v16 }
0x195b   :  { %1378 = vrot.lane.b32.xlu1 %v10738_v5, %s7450_s11  ;;  %v5246_v34 = vpop.xlane.xlu0 %5245 }
0x195c   :  { %v5264_v45 = vsub.f32 %v9594_v9, %v5246_v34 }
0x195e   :  { %v5243_v10 = vpop.xlane.xlu1 %5242  ;;  %v5274_v29 = vmul.f32 1.442695, %v5264_v45 }
0x195f   :  { %v5263_v50 = vsub.f32 %v9602_v56, %v5243_v10  ;;  %2011 = vrot.lane.b32.xlu1 %v10739_v22, %s7449_s10  ;;  %v5240_v63 = vpop.xlane.xlu0 %5239 }
0x1960   :  { %v5262_v19 = vsub.f32 %v9596_v52, %v5240_v63  ;;  %v6825_v63 = vld [vmem:[#allocation8 + $0x10] sm:$0xff]  }
0x1961   :  { %v5272_v47 = vmul.f32 1.442695, %v5263_v50 }
0x1962   :  { %v5270_v42 = vmul.f32 1.442695, %v5262_v19 }
0x1963   :  { %7195 = vpow2.f32 %v5272_v47  ;;  %v5258_v23 = vpop.xlane.xlu1 %5257  ;;  %2013 = vrot.lane.b32.xlu1 %v10740_v30, %s7449_s10  ;;  %v5249_v56 = vpop.xlane.xlu0 %5248  ;;  %v10753_v30 = vld [vmem:[#allocation93_spill] sm:$0xff] }
0x1964   :  { %7197 = vpow2.f32 %v5270_v42  ;;  %v5268_v37 = vsub.f32 %v9608_v39, %v5258_v23  ;;  %v5265_v11 = vsub.f32 %v9600_v28, %v5249_v56  ;;  %v10742_v39 = vpack.c.bf16 %v9349_v46, %v9346_v49 }
0x1965   :  { %7199 = vpow2.f32 %v5274_v29  ;;  %v10752_v42 = vpack.c.bf16 %v9576_v62, %v9578_v36  ;;  %v10755_v62 = vpack.c.bf16 %v9476_v61, %v9473_v27  ;;  %v10828_v27 = vld [vmem:[#allocation34_spill] sm:$0xff] }
0x1966   :  { %v5276_v9 = vmul.f32 1.442695, %v5265_v11  ;;  %v5282_v54 = vmul.f32 1.442695, %v5268_v37 }
0x1967   :  { %v5252_v52 = vpop.xlane.xlu1 %5251  ;;  %2634 = vrot.lane.b32.xlu1 %v10741_v51, %s7448_s9  ;;  %v5261_v44 = vpop.xlane.xlu0 %5260 }
0x1968   :  { %v5266_v59 = vsub.f32 %v9610_v1, %v5252_v52  ;;  %v5269_v17 = vsub.f32 %v9616_v21, %v5261_v44  ;;  %1380 = vrot.lane.b32.xlu0 %v10742_v39, %s7450_s11  ;;  %7201 = vpow2.f32 %v5276_v9  ;;  %v10744_v21 = vpack.c.bf16 %v9386_v8, %v9383_v2  ;;  %v10757_v52 = vld [vmem:[#allocation124_spill] sm:$0xff]  ;;  %v10758_v44 = vld [vmem:[#allocation126_spill] sm:$0xff] }
0x1969   :  { %7203 = vpow2.f32 %v5282_v54  ;;  %v10746_v8 = vpack.c.bf16 %v9402_v33, %v9399_v41  ;;  %v10748_v41 = vpack.c.bf16 %v9419_v38, %v9416_v32  ;;  %v6824_v33 = vld [vmem:[#allocation8 + $0x8] sm:$0xff]   ;;  %v10750_v32 = vpack.c.bf16 %v9436_v24, %v9433_v6 }
0x196a   :  { %v5284_v28 = vmul.f32 1.442695, %v5269_v17  ;;  %v5278_v0 = vmul.f32 1.442695, %v5266_v59  ;;  %v10756_v9 = vpack.c.bf16 %v9452_v53, %v9449_v48  ;;  %v6827_v59 = vld [vmem:[#allocation8 + $0x20] sm:$0xff]   ;;  %v10759_v53 = vld [vmem:[#allocation102_spill] sm:$0xff] }
0x196b   :  { %v2804_v58 = vpop.xlane.xlu1 %2803  ;;  %3255 = vrot.lane.b32.xlu1 %v10743_v7, %s7441_s1  ;;  %v5255_v13 = vpop.xlane.xlu0 %5254  ;;  %v10760_v48 = vpack.c.bf16 %v9492_v31, %v10759_v53 }
0x196c   :  { %v5267_v1 = vsub.f32 %v9618_v55, %v5255_v13  ;;  %2632 = vrot.lane.b32.xlu0 %v10744_v21, %s7448_s9  ;;  %7205 = vpow2.f32 %v5284_v28  ;;  %v10764_v13 = vld [vmem:[#allocation123_spill] sm:$0xff]  ;;  %v10765_v21 = vld [vmem:[#allocation125_spill] sm:$0xff] }
0x196d   :  { %v9776_v49 = vpop.eup %7195  ;;  %7207 = vrcp.f32 %v9544_v12 }
0x196e   :  { %v9778_v46 = vpop.eup %7197  ;;  %v5280_v43 = vmul.f32 1.442695, %v5267_v1  ;;  %7209 = vpow2.f32 %v5278_v0  ;;  %v10761_v0 = vld [vmem:[#allocation32_spill] sm:$0xff] }
0x196f   :  { %v2810_v40 = vpop.xlane.xlu1 %2809  ;;  %3876 = vrot.lane.b32.xlu1 %v10745_v3, %s7447_s8  ;;  %v2192_v55 = vpop.xlane.xlu0 %2191  ;;  %v5310_v2 = vpack.c.bf16 %v9776_v49, %v9778_v46 }
0x1970   :  { %7211 = vpow2.f32 %v5280_v43  ;;  %3253 = vrot.lane.b32.xlu0 %v10746_v8, %s7441_s1  ;;  %v9792_v12 = vpop.eup %7199  ;;  %v10766_v8 = vld [vmem:[#allocation132_spill] sm:$0xff] }
0x1971   :  { %6646 = vmatprep.mubr.msk.bf16.mxu0 %vm628_vm1, %v5310_v2  ;;  %7213 = vrcp.f32 %v2192_v55 }
0x1972   :  { %v9794_v26 = vpop.eup %7201  ;;  %7215 = vrcp.f32 %v2804_v58  ;;  %v10762_v58 = vld [vmem:[#allocation14_spill] sm:$0xff] }
0x1973   :  { %v3425_v14 = vpop.xlane.xlu1 %3424  ;;  %4497 = vrot.lane.b32.xlu1 %v10747_v57, %s7446_s7  ;;  %v2807_v16 = vpop.xlane.xlu0 %2806  ;;  %v5311_v5 = vpack.c.bf16 %v9794_v26, %v9792_v12  ;;  %v10763_v7 = vpack.c.bf16 %v10761_v0, %v10762_v58  ;;  %v10788_v58 = vld [vmem:[#allocation184_spill] sm:$0xff] }
0x1974   :  { %3874 = vrot.lane.b32.xlu0 %v10748_v41, %s7447_s8  ;;  %7217 = vrcp.f32 %v2807_v16  ;;  %v9806_v34 = vpop.eup %7203  ;;  %v10770_v41 = vld [vmem:[#allocation101_spill] sm:$0xff] }
0x1975   :  { %6647 = vmatmul.mubr.msk.bf16.vlgmr.msra.gmra.mrb[128].mxu0 %vm628_vm1, %v5311_v5  ;;  %7219 = vrcp.f32 %v2810_v40  ;;  %v6828_v40 = vld [vmem:[#allocation8 + $0x28] sm:$0xff]   ;;  %v10769_v5 = vld [vmem:[#allocation76_spill] sm:$0xff] }
0x1976   :  { %v9809_v10 = vpop.eup %7205  ;;  %6655 = vmatpush3.bf16.msra.mxu0 %v6823_v25  ;;  %v6826_v25 = vld [vmem:[#allocation8 + $0x18] sm:$0xff]  }
0x1977   :  { %v3431_v35 = vpop.xlane.xlu1 %3430  ;;  %5118 = vrot.lane.b32.xlu1 %v10749_v4, %s7445_s2  ;;  %v2813_v50 = vpop.xlane.xlu0 %2812  ;;  %v5313_v38 = vpack.c.bf16 %v9809_v10, %v9806_v34  ;;  %6656 = vmatprep.subr.bf16.mxu0 %v6824_v33 }
0x1978   :  { %v7208_v22 = vpop.eup %7207  ;;  %4495 = vrot.lane.b32.xlu0 %v10750_v32, %s7446_s7  ;;  %7221 = vrcp.f32 %v2813_v50  ;;  %v10773_v50 = vld [vmem:[#allocation156_spill] sm:$0xff]  ;;  %v6829_v32 = vld [vmem:[#allocation8 + $0x30] sm:$0xff]  }
0x1979   :  { %v9821_v45 = vpop.eup %7209  ;;  %7223 = vrcp.f32 %v3425_v14  ;;  %v9837_v20 = vmul.f32 %v7208_v22, %v10753_v30  ;;  %v10767_v14 = vld [vmem:[#allocation106_spill] sm:$0xff] }
0x197a   :  { %v9823_v19 = vpop.eup %7211  ;;  %6657 = vmatpush3.bf16.msra.mxu0 %v6824_v33  ;;  %v10768_v57 = vpack.c.bf16 %v10766_v8, %v10767_v14  ;;  %v10771_v33 = vpack.c.bf16 %v10769_v5, %v10770_v41  ;;  %v10790_v14 = vld [vmem:[#allocation166_spill] sm:$0xff]  ;;  %v10793_v5 = vld [vmem:[#allocation183_spill] sm:$0xff] }
0x197b   :  { %v4046_v60 = vpop.xlane.xlu1 %4045  ;;  %1384 = vrot.lane.b32.xlu1 %v10751_v18, %s7450_s11  ;;  %v3428_v47 = vpop.xlane.xlu0 %3427  ;;  %v5312_v6 = vpack.c.bf16 %v9823_v19, %v9821_v45  ;;  %6658 = vmatprep.subr.bf16.mxu0 %v6825_v63 }
0x197c   :  { %v7214_v24 = vpop.eup %7213  ;;  %5116 = vrot.lane.b32.xlu0 %v10752_v42, %s7445_s2  ;;  %7225 = vrcp.f32 %v3428_v47  ;;  %v10774_v47 = vld [vmem:[#allocation162_spill] sm:$0xff] }
0x197d   :  { %v7216_v23 = vpop.eup %7215  ;;  %6650 = vmatprep.mubr.msk.bf16.mxu0 %vm628_vm1, %v5312_v6  ;;  %v9840_v56 = vmul.f32 %v7214_v24, %v10754_v15  ;;  %7227 = vrcp.f32 %v3431_v35  ;;  %v10772_v35 = vld [vmem:[#allocation154_spill] sm:$0xff]  ;;  %v10775_v6 = vld [vmem:[#allocation136_spill] sm:$0xff]  ;;  %v10780_v15 = vld [vmem:[#allocation153_spill] sm:$0xff] }
0x197e   :  { %6651 = vmatmul.mubr.msk.bf16.gmra.mrb[132].mxu0 %vm628_vm1, %v5313_v38  ;;  %v7218_v29 = vpop.eup %7217  ;;  %v9854_v51 = vmul.f32 %v7216_v23, %v10757_v52  ;;  %v10776_v24 = vpack.c.bf16 %v10774_v47, %v10775_v6  ;;  %v10778_v23 = vld [vmem:[#allocation74_spill] sm:$0xff]  ;;  %v10795_v47 = vld [vmem:[#allocation195_spill] sm:$0xff]  ;;  %v10829_v52 = vld [vmem:[#allocation36_spill] sm:$0xff] }
0x197f   :  { %v4052_v37 = vpop.xlane.xlu1 %4051  ;;  %2017 = vrot.lane.b32.xlu1 %v10755_v62, %s7449_s10  ;;  %v3434_v36 = vpop.xlane.xlu0 %3433  ;;  %v2315_v11 = vpack.c.bf16 %v9840_v56, %v9837_v20  ;;  %6659 = vmatpush3.bf16.msra.mxu0 %v6825_v63  ;;  %v9857_v54 = vmul.f32 %v7218_v29, %v10758_v44 }
0x1980   :  { %1382 = vrot.lane.b32.xlu0 %v10756_v9, %s7450_s11  ;;  %6660 = vmatprep.subr.bf16.mxu0 %v6826_v25  ;;  %v7220_v61 = vpop.eup %7219  ;;  %7229 = vrcp.f32 %v3434_v36  ;;  %v6830_v36 = vld [vmem:[#allocation8 + $0x38] sm:$0xff]  }
0x1981   :  { %7231 = vrcp.f32 %v4046_v60  ;;  %v9870_v1 = vmul.f32 %v7220_v61, %v10764_v13  ;;  %v10782_v61 = vld [vmem:[#allocation33_spill] sm:$0xff]  ;;  %v10789_v13 = vld [vmem:[#allocation186_spill] sm:$0xff] }
0x1982   :  { %v7222_v17 = vpop.eup %7221 }
0x1983   :  { %v4667_v39 = vpop.xlane.xlu1 %4666  ;;  %2638 = vrot.lane.b32.xlu1 %v10760_v48, %s7448_s9  ;;  %v4049_v28 = vpop.xlane.xlu0 %4048  ;;  %6661 = vmatpush3.bf16.msra.mxu0 %v6826_v25  ;;  %v9873_v43 = vmul.f32 %v7222_v17, %v10765_v21  ;;  %v10777_v25 = vld [vmem:[#allocation131_spill] sm:$0xff]  ;;  %v10783_v17 = vld [vmem:[#allocation164_spill] sm:$0xff]  ;;  %v10785_v48 = vld [vmem:[#allocation161_spill] sm:$0xff] }
0x1984   :  { %2015 = vrot.lane.b32.xlu0 %v10763_v7, %s7449_s10  ;;  %6662 = vmatprep.subr.bf16.mxu0 %v6827_v59  ;;  %v7224_v3 = vpop.eup %7223  ;;  %7233 = vrcp.f32 %v4049_v28  ;;  %v10779_v30 = vpack.c.bf16 %v10777_v25, %v10778_v23  ;;  %v10786_v28 = vld [vmem:[#allocation104_spill] sm:$0xff] }
0x1985   :  { %7235 = vrcp.f32 %v4052_v37  ;;  %v9886_v4 = vmul.f32 %v7224_v3, %v10772_v35  ;;  %v10781_v37 = vld [vmem:[#allocation155_spill] sm:$0xff]  ;;  %v10787_v0 = vpack.c.bf16 %v10785_v48, %v10786_v28  ;;  %v10799_v28 = vld [vmem:[#allocation70_spill] sm:$0xff]  ;;  %v10824_v3 = vld [vmem:[#allocation37_spill] sm:$0xff]  ;;  %v10843_v56 = vpack.c.bf16 %v9873_v43, %v9870_v1 }
0x1986   :  { %v7226_v55 = vpop.eup %7225 }
0x1987   :  { %v4673_v2 = vpop.xlane.xlu1 %4672  ;;  %3259 = vrot.lane.b32.xlu1 %v10768_v57, %s7441_s1  ;;  %v4055_v16 = vpop.xlane.xlu0 %4054  ;;  %6663 = vmatpush3.bf16.msra.mxu0 %v6827_v59  ;;  %v9889_v22 = vmul.f32 %v7226_v55, %v10773_v50  ;;  %v10791_v57 = vld [vmem:[#allocation134_spill] sm:$0xff] }
0x1988   :  { %2636 = vrot.lane.b32.xlu0 %v10771_v33, %s7448_s9  ;;  %6664 = vmatprep.subr.bf16.mxu0 %v6828_v40  ;;  %v7228_v38 = vpop.eup %7227  ;;  %7237 = vrcp.f32 %v4055_v16  ;;  %v10792_v16 = vpack.c.bf16 %v10790_v14, %v10791_v57  ;;  %v10794_v33 = vld [vmem:[#allocation185_spill] sm:$0xff] }
0x1989   :  { %7239 = vrcp.f32 %v4667_v39  ;;  %v9902_v29 = vmul.f32 %v7228_v38, %v10780_v15  ;;  %v10784_v39 = vpack.c.bf16 %v10782_v61, %v10783_v17  ;;  %v10801_v57 = vld [vmem:[#allocation69_spill] sm:$0xff] }
0x198a   :  { %v7230_v60 = vpop.eup %7229  ;;  %v10826_v17 = vld [vmem:[#allocation85_spill] sm:$0xff] }
0x198b   :  { %v1570_v18 = vpop.xlane.xlu1 %1569  ;;  %3880 = vrot.lane.b32.xlu1 %v10776_v24, %s7447_s8  ;;  %v4670_v42 = vpop.xlane.xlu0 %4669  ;;  %6665 = vmatpush3.bf16.msra.mxu0 %v6828_v40  ;;  %v9905_v62 = vmul.f32 %v7230_v60, %v10781_v37  ;;  %v10796_v24 = vld [vmem:[#allocation197_spill] sm:$0xff] }
0x198c   :  { %3257 = vrot.lane.b32.xlu0 %v10779_v30, %s7441_s1  ;;  %6666 = vmatprep.subr.bf16.mxu0 %v6829_v32  ;;  %v7232_v9 = vpop.eup %7231  ;;  %7241 = vrcp.f32 %v4670_v42 }
0x198d   :  { %7243 = vrcp.f32 %v4673_v2  ;;  %v9918_v7 = vmul.f32 %v7232_v9, %v10788_v58  ;;  %v10800_v58 = vld [vmem:[#allocation72_spill] sm:$0xff]  ;;  %v10849_v1 = vpack.c.bf16 %v9905_v62, %v9902_v29 }
0x198e   :  { %v7234_v44 = vpop.eup %7233 }
0x198f   :  { %v1576_v59 = vpop.xlane.xlu1 %1575  ;;  %4501 = vrot.lane.b32.xlu1 %v10784_v39, %s7446_s7  ;;  %v4676_v53 = vpop.xlane.xlu0 %4675  ;;  %6667 = vmatpush3.bf16.msra.mxu0 %v6829_v32  ;;  %v9921_v21 = vmul.f32 %v7234_v44, %v10789_v13  ;;  %v10798_v44 = vld [vmem:[#allocation196_spill] sm:$0xff] }
0x1990   :  { %3878 = vrot.lane.b32.xlu0 %v10787_v0, %s7447_s8  ;;  %6668 = vmatprep.subr.bf16.mxu0 %v6830_v36  ;;  %v7236_v40 = vpop.eup %7235  ;;  %7245 = vrcp.f32 %v4676_v53 }
0x1991   :  { %7247 = vrcp.f32 %v1570_v18  ;;  %v9930_v41 = vmul.f32 %v7236_v40, %v10793_v5  ;;  %v10802_v5 = vld [vmem:[#allocation71_spill] sm:$0xff] }
0x1992   :  { %v7238_v55 = vpop.eup %7237 }
0x1993   :  { %v2195_v2 = vpop.xlane.xlu1 %2194  ;;  %v1573_v8 = vpop.xlane.xlu0 %1572  ;;  %6669 = vmatpush3.bf16.msra.mxu0 %v6830_v36  ;;  %v9933_v35 = vmul.f32 %v7238_v55, %v10794_v33  ;;  %v10797_v36 = vld [vmem:[#allocation194_spill] sm:$0xff] }
0x1994   :  { %4499 = vrot.lane.b32.xlu0 %v10792_v16, %s7446_s7  ;;  %v7240_v50 = vpop.eup %7239  ;;  %7249 = vrcp.f32 %v1573_v8  ;;  %v10818_v55 = vld [vmem:[#allocation198_spill] sm:$0xff] }
0x1995   :  { %7251 = vrcp.f32 %v1576_v59  ;;  %v9938_v6 = vmul.f32 %v7240_v50, %v10795_v47  ;;  %v10853_v29 = vpack.c.bf16 %v9933_v35, %v9930_v41 }
0x1996   :  { %v7242_v38 = vpop.eup %7241 }
0x1997   :  { %v2201_v60 = vpop.xlane.xlu1 %2200  ;;  %v1579_v18 = vpop.xlane.xlu0 %1578  ;;  %v9941_v42 = vmul.f32 %v7242_v38, %v10796_v24 }
0x1998   :  { %v7244_v25 = vpop.eup %7243  ;;  %7253 = vrcp.f32 %v1579_v18 }
0x1999   :  { %7255 = vrcp.f32 %v2195_v2  ;;  %v9946_v9 = vmul.f32 %v7244_v25, %v10797_v36  ;;  %v10803_v25 = vld [vmem:[#allocation128_spill] sm:$0xff] }
0x199a   :  { %v7246_v30 = vpop.eup %7245  ;;  %v10805_v36 = vld [vmem:[#allocation100_spill] sm:$0xff] }
0x199b   :  { %v2816_v15 = vpop.xlane.xlu1 %2815  ;;  %v2198_v37 = vpop.xlane.xlu0 %2197  ;;  %v9949_v59 = vmul.f32 %v7246_v30, %v10798_v44 }
0x199c   :  { %7257 = vrcp.f32 %v2816_v15  ;;  %v7248_v61 = vpop.eup %7247  ;;  %v10804_v15 = vld [vmem:[#allocation98_spill] sm:$0xff] }
0x199d   :  { %7259 = vrcp.f32 %v2198_v37  ;;  %v9954_v0 = vmul.f32 %v7248_v61, %v10799_v28  ;;  %v10857_v35 = vpack.c.bf16 %v9949_v59, %v9946_v9 }
0x199e   :  { %v7250_v39 = vpop.eup %7249  ;;  %7261 = vrcp.f32 %v2201_v60 }
0x199f   :  { %v2822_v53 = vpop.xlane.xlu1 %2821  ;;  %v2204_v48 = vpop.xlane.xlu0 %2203  ;;  %v9957_v13 = vmul.f32 %v7250_v39, %v10800_v58 }
0x19a0   :  { %7263 = vrcp.f32 %v2822_v53  ;;  %v7252_v40 = vpop.eup %7251 }
0x19a1   :  { %7265 = vrcp.f32 %v2204_v48  ;;  %v9962_v16 = vmul.f32 %v7252_v40, %v10801_v57  ;;  %v10806_v40 = vld [vmem:[#allocation127_spill] sm:$0xff] }
0x19a2   :  { %v7254_v2 = vpop.eup %7253  ;;  %v10808_v57 = vld [vmem:[#allocation99_spill] sm:$0xff] }
0x19a3   :  { %v3437_v8 = vpop.xlane.xlu1 %3436  ;;  %v2819_v14 = vpop.xlane.xlu0 %2818  ;;  %v9965_v33 = vmul.f32 %v7254_v2, %v10802_v5 }
0x19a4   :  { %7267 = vrcp.f32 %v3437_v8  ;;  %v7256_v50 = vpop.eup %7255  ;;  %v10807_v8 = vld [vmem:[#allocation97_spill] sm:$0xff] }
0x19a5   :  { %7269 = vrcp.f32 %v2819_v14  ;;  %v9973_v37 = vmul.f32 %v7256_v50, %v10804_v15 }
0x19a6   :  { %v7258_v38 = vpop.eup %7257 }
0x19a7   :  { %v7260_v18 = vpop.eup %7259  ;;  %v3443_v47 = vpop.xlane.xlu1 %3442  ;;  %v9970_v30 = vmul.f32 %v7258_v38, %v10803_v25  ;;  %v10809_v25 = vld [vmem:[#allocation158_spill] sm:$0xff] }
0x19a8   :  { %v2825_v24 = vpop.xlane.xlu0 %2824  ;;  %7271 = vrcp.f32 %v3443_v47  ;;  %v9976_v44 = vmul.f32 %v7260_v18, %v10805_v36  ;;  %v7262_v61 = vpop.eup %7261  ;;  %v10810_v36 = vld [vmem:[#allocation130_spill] sm:$0xff] }
0x19a9   :  { %7273 = vrcp.f32 %v2825_v24  ;;  %v9984_v14 = vmul.f32 %v7262_v61, %v10807_v8 }
0x19aa   :  { %v7264_v39 = vpop.eup %7263 }
0x19ab   :  { %v7266_v48 = vpop.eup %7265  ;;  %v4058_v28 = vpop.xlane.xlu1 %4057  ;;  %v9981_v2 = vmul.f32 %v7264_v39, %v10806_v40 }
0x19ac   :  { %v3440_v58 = vpop.xlane.xlu0 %3439  ;;  %7275 = vrcp.f32 %v4058_v28  ;;  %v9987_v5 = vmul.f32 %v7266_v48, %v10808_v57  ;;  %v5292_v48 = vsel %vm628_vm1, %v9792_v12, 0.0  ;;  %v5295_v28 = vsel %vm628_vm1, %v9794_v26, 0.0 }
0x19ad   :  { %7277 = vrcp.f32 %v3440_v58  ;;  %v5286_v26 = vsel %vm628_vm1, %v9778_v46, 0.0  ;;  %v5307_v46 = vsel %vm628_vm1, %v9809_v10, 0.0 }
0x19ae   :  { %v7268_v50 = vpop.eup %7267 }
0x19af   :  { %v7270_v18 = vpop.eup %7269  ;;  %v4064_v47 = vpop.xlane.xlu1 %4063  ;;  %v9992_v15 = vmul.f32 %v7268_v50, %v10809_v25  ;;  %v10811_v50 = vld [vmem:[#allocation157_spill] sm:$0xff] }
0x19b0   :  { %v3446_v24 = vpop.xlane.xlu0 %3445  ;;  %v9995_v39 = vmul.f32 %v7270_v18, %v10810_v36  ;;  %v10812_v18 = vld [vmem:[#allocation129_spill] sm:$0xff]  ;;  %v5289_v36 = vsel %vm628_vm1, %v9776_v49, 0.0  ;;  %v5304_v49 = vsel %vm628_vm1, %v9806_v34, 0.0  ;;  %v5301_v34 = vsel %vm628_vm1, %v9823_v19, 0.0 }
0x19b1   :  { %7279 = vrcp.f32 %v3446_v24 }
0x19b2   :  { %v7272_v61 = vpop.eup %7271 }
0x19b3   :  { %v7274_v40 = vpop.eup %7273  ;;  %v4679_v8 = vpop.xlane.xlu1 %4678  ;;  %5293 = vadd.xlane.f32.xlu1 %v5292_v48  ;;  %5296 = vadd.xlane.f32.xlu0 %v5295_v28  ;;  %v10004_v25 = vmul.f32 %v7272_v61, %v10811_v50 }
0x19b4   :  { %v4061_v57 = vpop.xlane.xlu0 %4060  ;;  %7281 = vrcp.f32 %v4679_v8  ;;  %v10007_v24 = vmul.f32 %v7274_v40, %v10812_v18  ;;  %v10813_v8 = vld [vmem:[#allocation188_spill] sm:$0xff] }
0x19b5   :  { %7283 = vrcp.f32 %v4061_v57  ;;  %v10814_v57 = vld [vmem:[#allocation160_spill] sm:$0xff] }
0x19b6   :  { %v7276_v12 = vpop.eup %7275  ;;  %7285 = vrcp.f32 %v4064_v47 }
0x19b7   :  { %v7278_v28 = vpop.eup %7277  ;;  %v4685_v58 = vpop.xlane.xlu1 %4684  ;;  %5287 = vadd.xlane.f32.xlu1 %v5286_v26  ;;  %5290 = vadd.xlane.f32.xlu0 %v5289_v36  ;;  %v10016_v40 = vmul.f32 %v7276_v12, %v10813_v8  ;;  %v10815_v36 = vld [vmem:[#allocation159_spill] sm:$0xff] }
0x19b8   :  { %v4067_v61 = vpop.xlane.xlu0 %4066  ;;  %7287 = vrcp.f32 %v4685_v58  ;;  %v10019_v50 = vmul.f32 %v7278_v28, %v10814_v57 }
0x19b9   :  { %7289 = vrcp.f32 %v4067_v61  ;;  %v5298_v61 = vsel %vm628_vm1, %v9821_v45, 0.0 }
0x19bb   :  { %v7280_v18 = vpop.eup %7279  ;;  %v679_v26 = vpop.xlane.xlu1 %678  ;;  %5305 = vadd.xlane.f32.xlu1 %v5304_v49  ;;  %5308 = vadd.xlane.f32.xlu0 %v5307_v46  ;;  %v10816_v46 = vld [vmem:[#allocation199_spill] sm:$0xff] }
0x19bc   :  { %v4682_v12 = vpop.xlane.xlu0 %4681  ;;  %v10028_v58 = vmul.f32 %v7280_v18, %v10815_v36  ;;  %v10817_v18 = vld [vmem:[#allocation190_spill] sm:$0xff] }
0x19bd   :  { %7291 = vrcp.f32 %v4682_v12 }
0x19be   :  { %v7282_v28 = vpop.eup %7281 }
0x19bf   :  { %v7284_v8 = vpop.eup %7283  ;;  %v685_v57 = vpop.xlane.xlu1 %684  ;;  %5299 = vadd.xlane.f32.xlu1 %v5298_v61  ;;  %5302 = vadd.xlane.f32.xlu0 %v5301_v34  ;;  %v10037_v47 = vmul.f32 %v7282_v28, %v10816_v46  ;;  %v10819_v34 = vld [vmem:[#allocation187_spill] sm:$0xff]  ;;  %v10820_v28 = vld [vmem:[#allocation189_spill] sm:$0xff] }
0x19c0   :  { %v4688_v49 = vpop.xlane.xlu0 %4687  ;;  %v10040_v12 = vmul.f32 %v7284_v8, %v10817_v18  ;;  %v7286_v36 = vpop.eup %7285 }
0x19c1   :  { %7293 = vrcp.f32 %v4688_v49  ;;  %v10048_v38 = vmul.f32 %v7286_v36, %v10819_v34  ;;  %v10822_v34 = vld [vmem:[#allocation200_spill] sm:$0xff] }
0x19c2   :  { %v7288_v45 = vpop.eup %7287  ;;  %7295 = vrcp.f32 %v679_v26  ;;  %v10821_v26 = vld [vmem:[#allocation201_spill] sm:$0xff] }
0x19c3   :  { %v7290_v53 = vpop.eup %7289  ;;  %v691_v10 = vpop.xlane.xlu1 %690  ;;  %v10045_v61 = vmul.f32 %v7288_v45, %v10818_v55 }
0x19c4   :  { %v682_v48 = vpop.xlane.xlu0 %681  ;;  %v10051_v46 = vmul.f32 %v7290_v53, %v10820_v28 }
0x19c5   :  { %7297 = vrcp.f32 %v682_v48 }
0x19c6   :  { %7299 = vrcp.f32 %v685_v57 }
0x19c7   :  { %v7292_v49 = vpop.eup %7291  ;;  %v697_v18 = vpop.xlane.xlu1 %696 }
0x19c8   :  { %v688_v19 = vpop.xlane.xlu0 %687  ;;  %v10056_v23 = vmul.f32 %v7292_v49, %v10821_v26 }
0x19c9   :  { %7301 = vrcp.f32 %v688_v19  ;;  %v10823_v19 = vld [vmem:[#allocation35_spill] sm:$0xff] }
0x19ca   :  { %7303 = vrcp.f32 %v691_v10  ;;  %v10825_v10 = vld [vmem:[#allocation103_spill] sm:$0xff] }
0x19cb   :  { %v7294_v36 = vpop.eup %7293  ;;  %v945_v45 = vpop.xlane.xlu1 %944  ;;  %v10827_v63 = vpack.c.bf16 %v10825_v10, %v10826_v17 }
0x19cc   :  { %v694_v53 = vpop.xlane.xlu0 %693  ;;  %v10061_v48 = vmul.f32 %v7294_v36, %v10822_v34  ;;  %v7296_v28 = vpop.eup %7295 }
0x19cd   :  { %7305 = vrcp.f32 %v694_v53  ;;  %v790_v60 = vmul.f32 %v7296_v28, %v10823_v19  ;;  %v10830_v28 = vld [vmem:[#allocation73_spill] sm:$0xff] }
0x19ce   :  { %7307 = vrcp.f32 %v697_v18  ;;  %v10831_v19 = vld [vmem:[#allocation13_spill] sm:$0xff] }
0x19cf   :  { %v7298_v8 = vpop.eup %7297  ;;  %v951_v49 = vpop.xlane.xlu1 %950 }
0x19d0   :  { %v700_v26 = vpop.xlane.xlu0 %699  ;;  %v791_v55 = vmul.f32 %v7298_v8, %v10824_v3  ;;  %5122 = vrot.lane.b32.xlu1 %v10827_v63, %s7445_s2  ;;  %v7300_v36 = vpop.eup %7299  ;;  %v10832_v3 = vpack.c.bf16 %v10830_v28, %v10831_v19  ;;  %v10833_v63 = vld [vmem:[#allocation133_spill] sm:$0xff] }
0x19d1   :  { %7309 = vrcp.f32 %v700_v26  ;;  %v792_v18 = vmul.f32 %v7300_v36, %v10828_v27  ;;  %v10837_v36 = vld [vmem:[#allocation41_spill] sm:$0xff] }
0x19d2   :  { %v798_v34 = vpack.c.bf16 %v791_v55, %v790_v60  ;;  %7311 = vrcp.f32 %v945_v45  ;;  %v10834_v60 = vld [vmem:[#allocation135_spill] sm:$0xff] }
0x19d3   :  { %v7302_v53 = vpop.eup %7301  ;;  %v957_v32 = vpop.xlane.xlu1 %956  ;;  %v10835_v8 = vpack.c.bf16 %v10833_v63, %v10834_v60  ;;  %v10842_v60 = vld [vmem:[#allocation40_spill] sm:$0xff] }
0x19d4   :  { %v948_v57 = vpop.xlane.xlu0 %947  ;;  %v793_v31 = vmul.f32 %v7302_v53, %v10829_v52  ;;  %1703 = vrot.lane.b32.xlu1 %v10832_v3, %s7450_s11  ;;  %802 = vst.msk [vmem:[#allocation2] sm:$0xff] %vm538_vm0, %v798_v34  ;;  %v7304_v17 = vpop.eup %7303  ;;  %v10836_v52 = vld [vmem:[#allocation39_spill] sm:$0xff] }
0x19d5   :  { %7313 = vrcp.f32 %v948_v57  ;;  %5120 = vrot.lane.b32.xlu0 %v10835_v8, %s7445_s2  ;;  %v794_v10 = vmul.f32 %v7304_v17, %v10836_v52  ;;  %v10838_v34 = vld [vmem:[#allocation75_spill] sm:$0xff]  ;;  %v10841_v17 = vld [vmem:[#allocation38_spill] sm:$0xff]  ;;  %v10845_v8 = vld [vmem:[#allocation60_spill] sm:$0xff] }
0x19d6   :  { %v799_v55 = vpack.c.bf16 %v793_v31, %v792_v18  ;;  %7315 = vrcp.f32 %v951_v49  ;;  %v10839_v31 = vld [vmem:[#allocation31_spill] sm:$0xff] }
0x19d7   :  { %v7306_v45 = vpop.eup %7305  ;;  %v963_v27 = vpop.xlane.xlu1 %962  ;;  %v10840_v18 = vpack.c.bf16 %v10838_v34, %v10839_v31 }
0x19d8   :  { %v954_v26 = vpop.xlane.xlu0 %953  ;;  %v795_v53 = vmul.f32 %v7306_v45, %v10837_v36  ;;  %2324 = vrot.lane.b32.xlu1 %v2315_v11, %s7449_s10  ;;  %803 = vst.msk [vmem:[#allocation2 + $0x8] sm:$0xff] %vm538_vm0, %v799_v55  ;;  %v7308_v57 = vpop.eup %7307  ;;  %v10847_v36 = vld [vmem:[#allocation43_spill] sm:$0xff] }
0x19d9   :  { %7317 = vrcp.f32 %v954_v26  ;;  %1701 = vrot.lane.b32.xlu0 %v10840_v18, %s7450_s11  ;;  %v796_v63 = vmul.f32 %v7308_v57, %v10841_v17  ;;  %v10848_v57 = vld [vmem:[#allocation45_spill] sm:$0xff] }
0x19da   :  { %7319 = vrcp.f32 %v957_v32  ;;  %v800_v49 = vpack.c.bf16 %v795_v53, %v794_v10  ;;  %v10844_v32 = vld [vmem:[#allocation105_spill] sm:$0xff] }
0x19db   :  { %v7310_v28 = vpop.eup %7309  ;;  %v1379_v19 = vpop.permute.xlu1 %1378  ;;  %v10846_v55 = vpack.c.bf16 %v10844_v32, %v10845_v8 }
0x19dc   :  { %v960_v3 = vpop.xlane.xlu0 %959  ;;  %v797_v20 = vmul.f32 %v7310_v28, %v10842_v60  ;;  %1391 = vst.msk [vmem:[#allocation2] sm:$0xff] %vm1390_vm2, %v1379_v19  ;;  %2945 = vrot.lane.b32.xlu1 %v10843_v56, %s7448_s9  ;;  %v7312_v11 = vpop.eup %7311 }
0x19dd   :  { %7321 = vrcp.f32 %v960_v3  ;;  %804 = vst.msk [vmem:[#allocation2 + $0x10] sm:$0xff] %vm538_vm0, %v800_v49  ;;  %2322 = vrot.lane.b32.xlu0 %v10846_v55, %s7449_s10  ;;  %v1056_v53 = vmul.f32 %v7312_v11, %v10847_v36  ;;  %v10851_v3 = vld [vmem:[#allocation42_spill] sm:$0xff]  ;;  %v10856_v11 = vld [vmem:[#allocation49_spill] sm:$0xff] }
0x19de   :  { %7323 = vrcp.f32 %v963_v27  ;;  %v801_v45 = vpack.c.bf16 %v797_v20, %v796_v63  ;;  %v10850_v27 = vpack.c.bf16 %v9857_v54, %v9854_v51  ;;  %v10852_v63 = vld [vmem:[#allocation44_spill] sm:$0xff]  ;;  %v10854_v51 = vpack.c.bf16 %v9889_v22, %v9886_v4  ;;  %v10855_v20 = vld [vmem:[#allocation47_spill] sm:$0xff] }
0x19df   :  { %v7314_v26 = vpop.eup %7313  ;;  %v2012_v52 = vpop.permute.xlu1 %2011  ;;  %v10858_v4 = vpack.c.bf16 %v9921_v21, %v9918_v7  ;;  %v10861_v7 = vpack.c.bf16 %v9965_v33, %v9962_v16  ;;  %v10862_v21 = vpack.c.bf16 %v9941_v42, %v9938_v6  ;;  %v10863_v16 = vpack.c.bf16 %v9987_v5, %v9984_v14 }
0x19e0   :  { %v966_v10 = vpop.xlane.xlu0 %965  ;;  %v1057_v34 = vmul.f32 %v7314_v26, %v10848_v57  ;;  %2024 = vst.msk [vmem:[#allocation2] sm:$0xff] %vm2023_vm3, %v2012_v52  ;;  %3566 = vrot.lane.b32.xlu1 %v10849_v1, %s7441_s1  ;;  %v7316_v43 = vpop.eup %7315  ;;  %v10859_v26 = vld [vmem:[#allocation46_spill] sm:$0xff]  ;;  %v10864_v6 = vpack.c.bf16 %v9957_v13, %v9954_v0  ;;  %v10865_v1 = vpack.c.bf16 %v10007_v24, %v9981_v2 }
0x19e1   :  { %7325 = vrcp.f32 %v966_v10  ;;  %805 = vst.msk [vmem:[#allocation2 + $0x18] sm:$0xff] %vm538_vm0, %v801_v45  ;;  %2943 = vrot.lane.b32.xlu0 %v10850_v27, %s7448_s9  ;;  %v1058_v17 = vmul.f32 %v7316_v43, %v10851_v3  ;;  %v10860_v10 = vld [vmem:[#allocation48_spill] sm:$0xff]  ;;  %v10866_v14 = vpack.c.bf16 %v9976_v44, %v9973_v37  ;;  %v10867_v5 = vpack.c.bf16 %v10028_v58, %v10004_v25 }
0x19e2   :  { %v1064_v31 = vpack.c.bf16 %v1057_v34, %v1056_v53  ;;  %v10868_v2 = vpack.c.bf16 %v9995_v39, %v9970_v30  ;;  %v10869_v44 = vpack.c.bf16 %v10051_v46, %v10048_v38  ;;  %v10870_v25 = vpack.c.bf16 %v10019_v50, %v9992_v15 }
0x19e3   :  { %v7318_v18 = vpop.eup %7317  ;;  %v2014_v49 = vpop.permute.xlu1 %2013  ;;  %v10871_v27 = vpack.c.bf16 %v10040_v12, %v10016_v40 }
0x19e4   :  { %v1381_v28 = vpop.permute.xlu0 %1380  ;;  %v7320_v19 = vpop.eup %7319  ;;  %v1059_v60 = vmul.f32 %v7318_v18, %v10852_v63  ;;  %4187 = vrot.lane.b32.xlu1 %v10853_v29, %s7447_s8  ;;  %1068 = vst.msk [vmem:[#allocation2 + $0x20] sm:$0xff] %vm538_vm0, %v1064_v31 }
0x19e5   :  { %1392 = vst.msk [vmem:[#allocation2 + $0x8] sm:$0xff] %vm1390_vm2, %v1381_v28  ;;  %3564 = vrot.lane.b32.xlu0 %v10854_v51, %s7441_s1  ;;  %v1060_v56 = vmul.f32 %v7320_v19, %v10855_v20 }
0x19e6   :  { %2025 = vst.msk [vmem:[#allocation2 + $0x8] sm:$0xff] %vm2023_vm3, %v2014_v49  ;;  %v1065_v62 = vpack.c.bf16 %v1059_v60, %v1058_v17 }
0x19e7   :  { %v7322_v54 = vpop.eup %7321  ;;  %v2635_v8 = vpop.permute.xlu1 %2634 }
0x19e8   :  { %v1061_v32 = vmul.f32 %v7322_v54, %v10856_v11  ;;  %v2633_v55 = vpop.permute.xlu0 %2632  ;;  %v7324_v41 = vpop.eup %7323  ;;  %2646 = vst.msk [vmem:[#allocation2 + $0x8] sm:$0xff] %vm2644_vm4, %v2635_v8  ;;  %4808 = vrot.lane.b32.xlu1 %v10857_v35, %s7446_s7 }
0x19e9   :  { %2645 = vst.msk [vmem:[#allocation2] sm:$0xff] %vm2644_vm4, %v2633_v55  ;;  %4185 = vrot.lane.b32.xlu0 %v10858_v4, %s7447_s8  ;;  %v1062_v52 = vmul.f32 %v7324_v41, %v10859_v26 }
0x19ea   :  { %1069 = vst.msk [vmem:[#allocation2 + $0x28] sm:$0xff] %vm538_vm0, %v1065_v62  ;;  %v1066_v22 = vpack.c.bf16 %v1061_v32, %v1060_v56 }
0x19eb   :  { %v7326_v45 = vpop.eup %7325  ;;  %v3256_v53 = vpop.permute.xlu1 %3255 }
0x19ec   :  { %v1063_v36 = vmul.f32 %v7326_v45, %v10860_v10  ;;  %v3254_v57 = vpop.permute.xlu0 %3253  ;;  %1070 = vst.msk [vmem:[#allocation2 + $0x30] sm:$0xff] %vm538_vm0, %v1066_v22  ;;  %1707 = vrot.lane.b32.xlu1 %v10861_v7, %s7450_s11 }
0x19ed   :  { %3267 = vst.msk [vmem:[#allocation2 + $0x8] sm:$0xff] %vm3265_vm5, %v3256_v53  ;;  %3266 = vst.msk [vmem:[#allocation2] sm:$0xff] %vm3265_vm5, %v3254_v57  ;;  %4806 = vrot.lane.b32.xlu0 %v10862_v21, %s7446_s7 }
0x19ee   :  { %v1067_v9 = vpack.c.bf16 %v1063_v36, %v1062_v52 }
0x19ef   :  { %v3877_v59 = vpop.permute.xlu1 %3876 }
0x19f0   :  { %v3875_v34 = vpop.permute.xlu0 %3874  ;;  %1071 = vst.msk [vmem:[#allocation2 + $0x38] sm:$0xff] %vm538_vm0, %v1067_v9  ;;  %2328 = vrot.lane.b32.xlu1 %v10863_v16, %s7449_s10  ;;  %v10872_v16 = vpack.c.bf16 %v10061_v48, %v10045_v61 }
0x19f1   :  { %3888 = vst.msk [vmem:[#allocation2 + $0x8] sm:$0xff] %vm3886_vm6, %v3877_v59  ;;  %3887 = vst.msk [vmem:[#allocation2] sm:$0xff] %vm3886_vm6, %v3875_v34  ;;  %1705 = vrot.lane.b32.xlu0 %v10864_v6, %s7450_s11 }
0x19f3   :  { %v4498_v42 = vpop.permute.xlu1 %4497 }
0x19f4   :  { %v4496_v33 = vpop.permute.xlu0 %4495  ;;  %4509 = vst.msk [vmem:[#allocation2 + $0x8] sm:$0xff] %vm4507_vm7, %v4498_v42  ;;  %2949 = vrot.lane.b32.xlu1 %v10865_v1, %s7448_s9 }
0x19f5   :  { %4508 = vst.msk [vmem:[#allocation2] sm:$0xff] %vm4507_vm7, %v4496_v33  ;;  %2326 = vrot.lane.b32.xlu0 %v10866_v14, %s7449_s10 }
0x19f7   :  { %v5119_v0 = vpop.permute.xlu1 %5118 }
0x19f8   :  { %v5117_v13 = vpop.permute.xlu0 %5116  ;;  %5130 = vst.msk [vmem:[#allocation2 + $0x8] sm:$0xff] %vm5128_vm8, %v5119_v0  ;;  %3570 = vrot.lane.b32.xlu1 %v10867_v5, %s7441_s1 }
0x19f9   :  { %5129 = vst.msk [vmem:[#allocation2] sm:$0xff] %vm5128_vm8, %v5117_v13  ;;  %2947 = vrot.lane.b32.xlu0 %v10868_v2, %s7448_s9  ;;  %v10873_v2 = vpack.c.bf16 %v10056_v23, %v10037_v47 }
0x19fb   :  { %v1385_v24 = vpop.permute.xlu1 %1384 }
0x19fc   :  { %v1383_v37 = vpop.permute.xlu0 %1382  ;;  %1394 = vst.msk [vmem:[#allocation2 + $0x18] sm:$0xff] %vm1390_vm2, %v1385_v24  ;;  %4191 = vrot.lane.b32.xlu1 %v10869_v44, %s7447_s8 }
0x19fd   :  { %1393 = vst.msk [vmem:[#allocation2 + $0x10] sm:$0xff] %vm1390_vm2, %v1383_v37  ;;  %3568 = vrot.lane.b32.xlu0 %v10870_v25, %s7441_s1 }
0x19ff   :  { %v2018_v58 = vpop.permute.xlu1 %2017  ;;  %v5444_v39 = vld [vmem:[#allocation2 + $0x8] sm:$0xff] }
0x1a00   :  { %v2016_v43 = vpop.permute.xlu0 %2015  ;;  %v5443_v30 = vld [vmem:[#allocation2] sm:$0xff]  ;;  %2027 = vst.msk [vmem:[#allocation2 + $0x18] sm:$0xff] %vm2023_vm3, %v2018_v58 }
0x1a01   :  { %2026 = vst.msk [vmem:[#allocation2 + $0x10] sm:$0xff] %vm2023_vm3, %v2016_v43  ;;  %6670 = vmatprep.mubr.bf16.mxu0 %v5443_v30  ;;  %4189 = vrot.lane.b32.xlu0 %v10871_v27, %s7447_s8 }
0x1a02   :  { %6671 = vmatmul.mubr.bf16.vlgmr.msra.gmra.mrb[136].mxu0 %v5444_v39 }
0x1a03   :  { %v2639_v38 = vpop.permute.xlu1 %2638 }
0x1a04   :  { %v2637_v46 = vpop.permute.xlu0 %2636  ;;  %2648 = vst.msk [vmem:[#allocation2 + $0x18] sm:$0xff] %vm2644_vm4, %v2639_v38 }
0x1a05   :  { %2647 = vst.msk [vmem:[#allocation2 + $0x10] sm:$0xff] %vm2644_vm4, %v2637_v46 }
0x1a07   :  { %v3260_v15 = vpop.permute.xlu1 %3259 }
0x1a08   :  { %v3258_v50 = vpop.permute.xlu0 %3257  ;;  %3269 = vst.msk [vmem:[#allocation2 + $0x18] sm:$0xff] %vm3265_vm5, %v3260_v15 }
0x1a09   :  { %3268 = vst.msk [vmem:[#allocation2 + $0x10] sm:$0xff] %vm3265_vm5, %v3258_v50 }
0x1a0b   :  { %v3881_v31 = vpop.permute.xlu1 %3880 }
0x1a0c   :  { %v3879_v18 = vpop.permute.xlu0 %3878  ;;  %3890 = vst.msk [vmem:[#allocation2 + $0x18] sm:$0xff] %vm3886_vm6, %v3881_v31 }
0x1a0d   :  { %3889 = vst.msk [vmem:[#allocation2 + $0x10] sm:$0xff] %vm3886_vm6, %v3879_v18 }
0x1a0f   :  { %v4502_v40 = vpop.permute.xlu1 %4501 }
0x1a10   :  { %v4500_v12 = vpop.permute.xlu0 %4499  ;;  %4511 = vst.msk [vmem:[#allocation2 + $0x18] sm:$0xff] %vm4507_vm7, %v4502_v40 }
0x1a11   :  { %4510 = vst.msk [vmem:[#allocation2 + $0x10] sm:$0xff] %vm4507_vm7, %v4500_v12 }
0x1a40   :  { %v5294_v49 = vpop.xlane.xlu1 %5293  ;;  %v5297_v28 = vpop.xlane.xlu0 %5296 }
0x1a41   :  { %7327 = vrcp.f32 %v5294_v49 }
0x1a42   :  { %7329 = vrcp.f32 %v5297_v28 }
0x1a44   :  { %v5288_v19 = vpop.xlane.xlu1 %5287  ;;  %v5291_v3 = vpop.xlane.xlu0 %5290 }
0x1a45   :  { %7331 = vrcp.f32 %v5288_v19 }
0x1a46   :  { %7333 = vrcp.f32 %v5291_v3 }
0x1a48   :  { %v5306_v17 = vpop.xlane.xlu1 %5305  ;;  %v5309_v63 = vpop.xlane.xlu0 %5308 }
0x1a49   :  { %7335 = vrcp.f32 %v5306_v17  ;;  %v6648_v60 = vpop.f32.mrb[128].mxu0 }
0x1a4a   :  { %7337 = vrcp.f32 %v5309_v63  ;;  %v5372_v29 = vpop.f32.mrb[129].mxu0 }
0x1a4b   :  { %v7328_v51 = vpop.eup %7327  ;;  %v6649_v54 = vpop.f32.mrb[130].mxu0 }
0x1a4c   :  { %v7330_v62 = vpop.eup %7329  ;;  %v5413_v20 = vmul.f32 %v7328_v51, %v6648_v60  ;;  %v5375_v56 = vpop.f32.mrb[131].mxu0  ;;  %v5813_v51 = vld [vmem:[%s10272_s4] ss:$0 sm:$0xff]  ;;  %s7451_s4 = smov [#allocation9]  }
0x1a4d   :  { %v5300_v11 = vpop.xlane.xlu1 %5299  ;;  %v5414_v32 = vmul.f32 %v7330_v62, %v6649_v54  ;;  %v5303_v8 = vpop.xlane.xlu0 %5302  ;;  %s5640_s14 = sshll.u32 %s7451_s4, 4  ;;  %s5641_s14 = int_to_ptr.vmem [resolvable:$true] %s5640_s14 }
0x1a4e   :  { %7339 = vrcp.f32 %v5300_v11  ;;  %s7409_s15 = scalar_lea.vmem %s5641_s14, 2048  ;;  %p7414_p11 = scmp.lt.s32.totalorder %s5641_s14, %s5641_s14 }
0x1a4f   :  { %7341 = vrcp.f32 %v5303_v8  ;;  %v7332_v55 = vpop.eup %7331  ;;  %v5420_v41 = vpack.c.bf16 %v5414_v32, %v5413_v20  ;;  %p7410_p10 = scmp.ne.s32.totalorder %s5641_s14, %s7409_s15  ;;  %p7415_p12 = scmp.lt.s32.totalorder %s7409_s15, %s7409_s15 }
0x1a50   :  { %v7334_v35 = vpop.eup %7333  ;;  %v5411_v4 = vmul.f32 %v7332_v55, %v5372_v29 }
0x1a51   :  { %v5123_v22 = vpop.permute.xlu1 %5122  ;;  %v5412_v45 = vmul.f32 %v7334_v35, %v5375_v56  ;;  %5429 = vrot.lane.b32.xlu1 %v5420_v41, %s7445_s2  ;;  %v5121_v26 = vpop.permute.xlu0 %5120  ;;  %p7416_p13 = por %p7415_p12, %p7414_p11 }
0x1a52   :  { %5132 = vst.msk [vmem:[#allocation2 + $0x18] sm:$0xff] %vm5128_vm8, %v5123_v22  ;;  %v6652_v52 = vpop.f32.mrb[132].mxu0  ;;  %5131 = vst.msk [vmem:[#allocation2 + $0x10] sm:$0xff] %vm5128_vm8, %v5121_v26 }
0x1a53   :  { %v5388_v10 = vpop.f32.mrb[133].mxu0  ;;  %v7336_v36 = vpop.eup %7335  ;;  %v5419_v53 = vpack.c.bf16 %v5412_v45, %v5411_v4  ;;  %p7417_p0 = pnand %p7416_p13, %p7410_p10 }
0x1a54   :  { %v6653_v57 = vpop.f32.mrb[134].mxu0  ;;  %v7338_v7 = vpop.eup %7337  ;;  %v5417_v21 = vmul.f32 %v7336_v36, %v6652_v52 }
0x1a55   :  { %v1704_v9 = vpop.permute.xlu1 %1703  ;;  %v5391_v59 = vpop.f32.mrb[135].mxu0  ;;  %v5418_v34 = vmul.f32 %v7338_v7, %v6653_v57  ;;  %4812 = vrot.lane.b32.xlu1 %v10872_v16, %s7446_s7  ;;  %5427 = vrot.lane.b32.xlu0 %v5419_v53, %s7445_s2 }
0x1a56   :  { %1714 = vst.msk [vmem:[#allocation2 + $0x28] sm:$0xff] %vm1390_vm2, %v1704_v9  ;;  %v1702_v6 = vpop.permute.xlu0 %1701 }
0x1a57   :  { %1713 = vst.msk [vmem:[#allocation2 + $0x20] sm:$0xff] %vm1390_vm2, %v1702_v6  ;;  %v5422_v33 = vpack.c.bf16 %v5418_v34, %v5417_v21 }
0x1a58   :  { %v7340_v42 = vpop.eup %7339 }
0x1a59   :  { %v7342_v1 = vpop.eup %7341  ;;  %v5415_v14 = vmul.f32 %v7340_v42, %v5388_v10  ;;  %v2325_v0 = vpop.permute.xlu1 %2324  ;;  %v5446_v13 = vld [vmem:[#allocation2 + $0x18] sm:$0xff]  ;;  %4810 = vrot.lane.b32.xlu0 %v10873_v2, %s7446_s7  ;;  %5433 = vrot.lane.b32.xlu1 %v5422_v33, %s7445_s2  ;;  %v5445_v48 = vld [vmem:[#allocation2 + $0x10] sm:$0xff] }
0x1a5a   :  { %v5416_v5 = vmul.f32 %v7342_v1, %v5391_v59  ;;  %2335 = vst.msk [vmem:[#allocation2 + $0x28] sm:$0xff] %vm2023_vm3, %v2325_v0  ;;  %v2323_v61 = vpop.permute.xlu0 %2322  ;;  %6674 = vmatprep.mubr.bf16.mxu0 %v5445_v48 }
0x1a5b   :  { %2334 = vst.msk [vmem:[#allocation2 + $0x20] sm:$0xff] %vm2023_vm3, %v2323_v61  ;;  %6675 = vmatmul.mubr.bf16.gmra.mrb[140].mxu0 %v5446_v13 }
0x1a5c   :  { %v5421_v24 = vpack.c.bf16 %v5416_v5, %v5415_v14 }
0x1a5d   :  { %v2946_v37 = vpop.permute.xlu1 %2945 }
0x1a5e   :  { %2956 = vst.msk [vmem:[#allocation2 + $0x28] sm:$0xff] %vm2644_vm4, %v2946_v37  ;;  %5431 = vrot.lane.b32.xlu0 %v5421_v24, %s7445_s2  ;;  %v2944_v44 = vpop.permute.xlu0 %2943 }
0x1a5f   :  { %2955 = vst.msk [vmem:[#allocation2 + $0x20] sm:$0xff] %vm2644_vm4, %v2944_v44 }
0x1a61   :  { %v3567_v25 = vpop.permute.xlu1 %3566 }
0x1a62   :  { %3577 = vst.msk [vmem:[#allocation2 + $0x28] sm:$0xff] %vm3265_vm5, %v3567_v25  ;;  %v3565_v23 = vpop.permute.xlu0 %3564 }
0x1a63   :  { %3576 = vst.msk [vmem:[#allocation2 + $0x20] sm:$0xff] %vm3265_vm5, %v3565_v23 }
0x1a65   :  { %v4188_v47 = vpop.permute.xlu1 %4187 }
0x1a66   :  { %4198 = vst.msk [vmem:[#allocation2 + $0x28] sm:$0xff] %vm3886_vm6, %v4188_v47  ;;  %v4186_v58 = vpop.permute.xlu0 %4185 }
0x1a67   :  { %4197 = vst.msk [vmem:[#allocation2 + $0x20] sm:$0xff] %vm3886_vm6, %v4186_v58 }
0x1a69   :  { %v4809_v43 = vpop.permute.xlu1 %4808 }
0x1a6a   :  { %4819 = vst.msk [vmem:[#allocation2 + $0x28] sm:$0xff] %vm4507_vm7, %v4809_v43  ;;  %v4807_v30 = vpop.permute.xlu0 %4806 }
0x1a6b   :  { %4818 = vst.msk [vmem:[#allocation2 + $0x20] sm:$0xff] %vm4507_vm7, %v4807_v30 }
0x1a6d   :  { %v1708_v39 = vpop.permute.xlu1 %1707 }
0x1a6e   :  { %1716 = vst.msk [vmem:[#allocation2 + $0x38] sm:$0xff] %vm1390_vm2, %v1708_v39  ;;  %v1706_v27 = vpop.permute.xlu0 %1705 }
0x1a6f   :  { %1715 = vst.msk [vmem:[#allocation2 + $0x30] sm:$0xff] %vm1390_vm2, %v1706_v27 }
0x1a71   :  { %v2329_v38 = vpop.permute.xlu1 %2328 }
0x1a72   :  { %2337 = vst.msk [vmem:[#allocation2 + $0x38] sm:$0xff] %vm2023_vm3, %v2329_v38  ;;  %v2327_v46 = vpop.permute.xlu0 %2326 }
0x1a73   :  { %2336 = vst.msk [vmem:[#allocation2 + $0x30] sm:$0xff] %vm2023_vm3, %v2327_v46 }
0x1a75   :  { %v2950_v15 = vpop.permute.xlu1 %2949 }
0x1a76   :  { %2958 = vst.msk [vmem:[#allocation2 + $0x38] sm:$0xff] %vm2644_vm4, %v2950_v15  ;;  %v2948_v50 = vpop.permute.xlu0 %2947 }
0x1a77   :  { %2957 = vst.msk [vmem:[#allocation2 + $0x30] sm:$0xff] %vm2644_vm4, %v2948_v50 }
0x1a79   :  { %v3571_v31 = vpop.permute.xlu1 %3570 }
0x1a7a   :  { %3579 = vst.msk [vmem:[#allocation2 + $0x38] sm:$0xff] %vm3265_vm5, %v3571_v31  ;;  %v3569_v18 = vpop.permute.xlu0 %3568 }
0x1a7b   :  { %3578 = vst.msk [vmem:[#allocation2 + $0x30] sm:$0xff] %vm3265_vm5, %v3569_v18 }
0x1a7d   :  { %v4192_v40 = vpop.permute.xlu1 %4191 }
0x1a7e   :  { %4200 = vst.msk [vmem:[#allocation2 + $0x38] sm:$0xff] %vm3886_vm6, %v4192_v40  ;;  %v4190_v12 = vpop.permute.xlu0 %4189 }
0x1a7f   :  { %4199 = vst.msk [vmem:[#allocation2 + $0x30] sm:$0xff] %vm3886_vm6, %v4190_v12 }
0x1ac3   :  { %v5430_v49 = vpop.permute.xlu1 %5429 }
0x1ac4   :  { %5440 = vst.msk [vmem:[#allocation2 + $0x28] sm:$0xff] %vm5128_vm8, %v5430_v49 }
0x1ac7   :  { %v4813_v28 = vpop.permute.xlu1 %4812  ;;  %v5428_v19 = vpop.permute.xlu0 %5427 }
0x1ac8   :  { %4821 = vst.msk [vmem:[#allocation2 + $0x38] sm:$0xff] %vm4507_vm7, %v4813_v28 }
0x1ac9   :  { %5439 = vst.msk [vmem:[#allocation2 + $0x20] sm:$0xff] %vm5128_vm8, %v5428_v19 }
0x1acb   :  { %v5434_v3 = vpop.permute.xlu1 %5433  ;;  %v4811_v17 = vpop.permute.xlu0 %4810  ;;  %v5448_v29 = vld [vmem:[#allocation2 + $0x28] sm:$0xff] }
0x1acc   :  { %5442 = vst.msk [vmem:[#allocation2 + $0x38] sm:$0xff] %vm5128_vm8, %v5434_v3 }
0x1acd   :  { %4820 = vst.msk [vmem:[#allocation2 + $0x30] sm:$0xff] %vm4507_vm7, %v4811_v17 }
0x1ad0   :  { %v5432_v63 = vpop.permute.xlu0 %5431  ;;  %v5447_v60 = vld [vmem:[#allocation2 + $0x20] sm:$0xff] }
0x1ad1   :  { %5441 = vst.msk [vmem:[#allocation2 + $0x30] sm:$0xff] %vm5128_vm8, %v5432_v63  ;;  %6678 = vmatprep.mubr.bf16.mxu0 %v5447_v60 }
0x1ad2   :  { %6679 = vmatmul.mubr.bf16.gmra.mrb[144].mxu0 %v5448_v29 }
0x1ad3   :  { %v5450_v35 = vld [vmem:[#allocation2 + $0x38] sm:$0xff] }
0x1ad5   :  { %v6672_v54 = vpop.f32.mrb[136].mxu0 }
0x1ad6   :  { %v5565_v62 = vadd.f32 %v6672_v54, %v5813_v51  ;;  %v5556_v20 = vpop.f32.mrb[137].mxu0 }
0x1ad7   :  { %v5557_v56 = vadd.f32 %v5813_v51, %v5556_v20  ;;  %v6673_v11 = vpop.f32.mrb[138].mxu0 }
0x1ad8   :  { %5621 = vst [vmem:[#allocation9 + $0x10] sm:$0xff] %v5565_v62  ;;  %v5568_v32 = vadd.f32 %v6673_v11, %v5813_v51  ;;  %v5559_v8 = vpop.f32.mrb[139].mxu0  ;;  %v5449_v55 = vld [vmem:[#allocation2 + $0x30] sm:$0xff] }
0x1ad9   :  { %5619 = vst [vmem:[#allocation9] sm:$0xff] %v5557_v56  ;;  %v5560_v41 = vadd.f32 %v5813_v51, %v5559_v8  ;;  %6682 = vmatprep.mubr.bf16.mxu0 %v5449_v55 }
0x1ada   :  { %5622 = vst [vmem:[#allocation9 + $0x18] sm:$0xff] %v5568_v32  ;;  %6683 = vmatmul.mubr.bf16.gmra.mrb[148].mxu0 %v5450_v35 }
0x1adb   :  { %5620 = vst [vmem:[#allocation9 + $0x8] sm:$0xff] %v5560_v41 }
0x1b2e   :  { %v6676_v4 = vpop.f32.mrb[140].mxu0 }
0x1b2f   :  { %v5581_v22 = vadd.f32 %v6676_v4, %v5813_v51  ;;  %v5572_v45 = vpop.f32.mrb[141].mxu0 }
0x1b30   :  { %v5573_v26 = vadd.f32 %v5813_v51, %v5572_v45  ;;  %v6677_v52 = vpop.f32.mrb[142].mxu0 }
0x1b31   :  { %5625 = vst [vmem:[#allocation9 + $0x30] sm:$0xff] %v5581_v22  ;;  %v5584_v10 = vadd.f32 %v6677_v52, %v5813_v51  ;;  %v5575_v36 = vpop.f32.mrb[143].mxu0 }
0x1b32   :  { %5623 = vst [vmem:[#allocation9 + $0x20] sm:$0xff] %v5573_v26  ;;  %v5576_v53 = vadd.f32 %v5813_v51, %v5575_v36 }
0x1b33   :  { %5626 = vst [vmem:[#allocation9 + $0x38] sm:$0xff] %v5584_v10 }
0x1b34   :  { %5624 = vst [vmem:[#allocation9 + $0x28] sm:$0xff] %v5576_v53 }
0x1ba5   :  { %v6680_v57 = vpop.f32.mrb[144].mxu0 }
0x1ba6   :  { %v5597_v7 = vadd.f32 %v6680_v57, %v5813_v51  ;;  %v5588_v21 = vpop.f32.mrb[145].mxu0 }
0x1ba7   :  { %v5589_v9 = vadd.f32 %v5813_v51, %v5588_v21  ;;  %v6681_v59 = vpop.f32.mrb[146].mxu0 }
0x1ba8   :  { %5629 = vst [vmem:[#allocation9 + $0x50] sm:$0xff] %v5597_v7  ;;  %v5600_v34 = vadd.f32 %v6681_v59, %v5813_v51  ;;  %v5591_v16 = vpop.f32.mrb[147].mxu0 }
0x1ba9   :  { %5627 = vst [vmem:[#allocation9 + $0x40] sm:$0xff] %v5589_v9  ;;  %v5592_v6 = vadd.f32 %v5813_v51, %v5591_v16 }
0x1baa   :  { %5630 = vst [vmem:[#allocation9 + $0x58] sm:$0xff] %v5600_v34 }
0x1bab   :  { %5628 = vst [vmem:[#allocation9 + $0x48] sm:$0xff] %v5592_v6 }
0x1bad   :  { %v6684_v42 = vpop.f32.mrb[148].mxu0 }
0x1bae   :  { %v5613_v33 = vadd.f32 %v6684_v42, %v5813_v51  ;;  %v5604_v1 = vpop.f32.mrb[149].mxu0 }
0x1baf   :  { %v5605_v14 = vadd.f32 %v5813_v51, %v5604_v1  ;;  %v6685_v0 = vpop.f32.mrb[150].mxu0 }
0x1bb0   :  { %5633 = vst [vmem:[#allocation9 + $0x70] sm:$0xff] %v5613_v33  ;;  %v5616_v13 = vadd.f32 %v6685_v0, %v5813_v51  ;;  %v5607_v5 = vpop.f32.mrb[151].mxu0 }
0x1bb1   :  { %5631 = vst [vmem:[#allocation9 + $0x60] sm:$0xff] %v5605_v14  ;;  %v5608_v2 = vadd.f32 %v5813_v51, %v5607_v5 }
0x1bb2   :  { %5634 = vst [vmem:[#allocation9 + $0x78] sm:$0xff] %v5616_v13 }
0x1bb3   :  { %5632 = vst [vmem:[#allocation9 + $0x68] sm:$0xff] %v5608_v2 }
0x1bb4   :  { %7420 = shalt.err (!%p7417_p0)
}
0x1bb5   :  { %s7421_s17 = scalar_lea.hbm %s10273_s5, 2048 }
0x1bb6   :  { %p7422_p1 = scmp.ne.s32.totalorder %s10273_s5, %s7421_s17  ;;  %p7425_p2 = scmp.lt.u32.totalorder %s7421_s17, %s10273_s5 }
0x1bb8   :  { %p7427_p3 = pnand %p7425_p2, %p7422_p1 }
0x1bba   :  { %7430 = shalt.err (!%p7427_p3)
}
0x1bbb   :  { %s7452_s22 = smov 128   ;;  %s7453_s23 = smov 8  }
0x1bbc   :  { %5646 = dma.vmem_to_hbm [thread:$0]  %s5641_s14, 2048, %s10273_s5, [#allocation5], %s7452_s22, %s7452_s22, %s7453_s23  }
0x1bbd   :  { %7435 = dma.done.wait [#allocation5], 2048  }
0x1bbe   :  { %7436 = vsyncadd [#allocation5], 4294965248 }
0x1bbf   :  { %5650 = vsyncpa [#allocation4], 1 }
0x1bc0   :  { %5651 = vsyncpa [#allocation7], 1 }
0x1bc1   :  { %5652 = vsyncpa [#allocation5], 1 }

</bundles_post_ra>
